<compile_context>
chip_gen: v5e
topology: v5e:2x2
jax: 0.10.0
libtpu: 0.0.40
codegen_flags: <defaults>
</compile_context>

<pallas_src>
import functools

import jax
import jax.numpy as jnp
from jax.experimental import pallas as pl
from jax.experimental.pallas import tpu as pltpu


def _round_up(n, m):
    return ((n + m - 1) // m) * m


# ---------------------------------------------------------------------------
# Pallas kernels
# ---------------------------------------------------------------------------

def _matmul_bias_kernel(a_ref, w_ref, b_ref, o_ref, *, relu):
    """One M-tile of: out = relu?(a @ w + bias).  a/w are bf16, accumulate in f32,
    store in o_ref.dtype (bf16 for intermediates, f32 for final outputs)."""
    acc = jnp.dot(a_ref[...], w_ref[...], preferred_element_type=jnp.float32)
    acc = acc + b_ref[...]                 # (1, N) f32 bias broadcasts over rows
    if relu:
        acc = jnp.maximum(acc, 0.0)
    o_ref[...] = acc.astype(o_ref.dtype)


def _encoder_head_kernel(h_ref, w1_ref, b1_ref, w2_ref, b2_ref, w3_ref, b3_ref,
                         eps_ref, mu_ref, lv_ref, z_ref, *, z_dim):
    """Fused: fc1+ReLU -> fc2+ReLU -> fc3 (mu|logvar combined, lane-padded) -> reparam."""
    h = h_ref[...]                                                   # bf16 (B, 512)
    h1 = jnp.dot(h, w1_ref[...], preferred_element_type=jnp.float32) + b1_ref[...]
    h1 = jnp.maximum(h1, 0.0).astype(jnp.bfloat16)
    h2 = jnp.dot(h1, w2_ref[...], preferred_element_type=jnp.float32) + b2_ref[...]
    h2 = jnp.maximum(h2, 0.0).astype(jnp.bfloat16)
    d = jnp.dot(h2, w3_ref[...], preferred_element_type=jnp.float32) + b3_ref[...]
    mu = d[:, :z_dim]                                                # split in-register
    lv = d[:, z_dim:2 * z_dim]
    mu_ref[...] = mu
    lv_ref[...] = lv
    z_ref[...] = mu + jnp.exp(lv * 0.5) * eps_ref[...]               # reparam trick


def _decoder_head_kernel(z_ref, wfc_ref, bfc_ref, wct1_ref, bct1_ref, o_ref):
    """Fused: Linear(z->256)+ReLU -> ConvTranspose2d(256,64,4) on a 1x1 input (+ReLU)."""
    h = jnp.dot(z_ref[...], wfc_ref[...], preferred_element_type=jnp.float32) + bfc_ref[...]
    h = jnp.maximum(h, 0.0).astype(jnp.bfloat16)
    y = jnp.dot(h, wct1_ref[...], preferred_element_type=jnp.float32) + bct1_ref[...]
    o_ref[...] = jnp.maximum(y, 0.0).astype(o_ref.dtype)


# ---------------------------------------------------------------------------
# Fused matmul wrapper (<=2 M-tiles, weight/bias resident)
# ---------------------------------------------------------------------------

def _tile_m(M):
    """Return (tm, M_padded): one full-M block when it fits, exactly 2 blocks for large M
    (feeds both v7x TensorCores); padded fallback otherwise."""
    Mp = _round_up(M, 8)
    if Mp <= 1024:
        return Mp, Mp
    half = Mp // 2
    if Mp % 2 == 0 and half % 8 == 0 and half <= 1024:
        return half, Mp
    return 1024, _round_up(Mp, 1024)


def matmul_bias(a, w, bias, *, relu=False, out_dtype=jnp.bfloat16):
    """Fused (M,K)@(K,N) + bias (+ReLU).  w: bf16 (K, N) with N a multiple of 128
    (lane-dense stores).  bias: f32 (1, N).  Output (M, N) in out_dtype."""
    M, K = a.shape
    K2, N = w.shape
    assert K == K2
    a = a.astype(jnp.bfloat16)

    tm, Mfull = _tile_m(M)
    if Mfull != M:                       # not hit for the shapes in this model
        a = jnp.pad(a, ((0, Mfull - M), (0, 0)))

    out = pl.pallas_call(
        functools.partial(_matmul_bias_kernel, relu=relu),
        out_shape=jax.ShapeDtypeStruct((Mfull, N), out_dtype),
        grid=(Mfull // tm,),
        in_specs=[
            pl.BlockSpec((tm, K), lambda i: (i, 0)),   # activations / patches (bf16)
            pl.BlockSpec((K, N), lambda i: (0, 0)),    # weight, resident
            pl.BlockSpec((1, N), lambda i: (0, 0)),    # bias, resident
        ],
        out_specs=pl.BlockSpec((tm, N), lambda i: (i, 0)),
        compiler_params=pltpu.CompilerParams(
            dimension_semantics=("parallel",),
            vmem_limit_bytes=32 * 1024 * 1024),
    )(a, w, bias)
    return out[:M] if Mfull != M else out


# ---------------------------------------------------------------------------
# Conv / ConvTranspose on NHWC data (im2col / pixel-shuffle are layout glue only)
# ---------------------------------------------------------------------------

def _im2col_nhwc(x, k, stride, padding):
    """x: (B, H, W, C) -> patches (B*Ho*Wo, k*k*C), K ordered (i, j, c)."""
    B, H, W, C = x.shape
    xp = jnp.pad(x, ((0, 0), (padding, padding), (padding, padding), (0, 0)))
    Ho = (H + 2 * padding - k) // stride + 1
    Wo = (W + 2 * padding - k) // stride + 1
    cols = []
    for i in range(k):
        for j in range(k):
            cols.append(xp[:, i:i + stride * Ho:stride, j:j + stride * Wo:stride, :])
    patches = jnp.stack(cols, axis=3)                  # (B, Ho, Wo, k*k, C)
    return patches.reshape(B * Ho * Wo, k * k * C), Ho, Wo


def conv2d_nhwc(x, wm, b, *, k=4, stride=2, padding=1, relu=True, out_dtype=jnp.bfloat16):
    """PyTorch-semantics Conv2d on NHWC data.  wm: packed (k*k*Cin, Npad) bf16."""
    B = x.shape[0]
    Cout = b.shape[0]
    Npad = wm.shape[1]
    patches, Ho, Wo = _im2col_nhwc(x, k, stride, padding)
    bias = jnp.pad(b.astype(jnp.float32), (0, Npad - Cout)).reshape(1, Npad)
    out = matmul_bias(patches, wm, bias, relu=relu, out_dtype=out_dtype)
    return out[:, :Cout].reshape(B, Ho, Wo, Cout)


def conv_transpose2d_nhwc(x, wm, b, *, relu=True, out_dtype=jnp.bfloat16):
    """PyTorch ConvTranspose2d(Cin, Cout, 4, stride=2, padding=1) as a sub-pixel conv:
    3x3 stride-1 im2col of the zero-padded input, one GEMM with N = 2*2*Cout (output
    parity phases, bias+ReLU fused in the epilogue), then one pixel-shuffle reshape.
    Each output pixel belongs to exactly one phase, so bias is added exactly once."""
    B, H, W, Cin = x.shape
    Cout = b.shape[0]
    Npad = wm.shape[1]
    patches, _, _ = _im2col_nhwc(x, 3, 1, 1)           # (B*H*W, 9*Cin)
    bias = jnp.pad(jnp.tile(b.astype(jnp.float32), 4), (0, Npad - 4 * Cout)).reshape(1, Npad)
    y = matmul_bias(patches, wm, bias, relu=relu, out_dtype=out_dtype)
    y = y[:, :4 * Cout].reshape(B, H, W, 2, 2, Cout)   # (b, ho, wo, py, px, co)
    # TODO(synk): pixel-shuffle below is pure layout glue left to XLA (single transpose).
    return jnp.transpose(y, (0, 1, 3, 2, 4, 5)).reshape(B, 2 * H, 2 * W, Cout)


# ---------------------------------------------------------------------------
# Fused head wrappers
# ---------------------------------------------------------------------------

def encoder_head(q, hflat, eps, *, z_dim):
    """fc1+ReLU -> fc2+ReLU -> combined fc3 -> split(mu, logvar) -> reparam, one pallas_call."""
    # TODO(synk): folding e_conv4's GEMM into this kernel needs an in-kernel (B*16,32)->(B,512)
    # relayout; kept as a separate conv call for lowering robustness.
    B = eps.shape[0]
    return pl.pallas_call(
        functools.partial(_encoder_head_kernel, z_dim=z_dim),
        out_shape=(jax.ShapeDtypeStruct((B, z_dim), jnp.float32),   # mu
                   jax.ShapeDtypeStruct((B, z_dim), jnp.float32),   # logvar
                   jax.ShapeDtypeStruct((B, z_dim), jnp.float32)),  # z
    )(hflat.astype(jnp.bfloat16),
      q["e_fc1_w"], q["e_fc1_b"], q["e_fc2_w"], q["e_fc2_b"],
      q["e_fc3_w"], q["e_fc3_b"], eps.astype(jnp.float32))


def decoder_head(q, z):
    """Linear(z->256)+ReLU then ConvTranspose2d(256,64,4) on 1x1 input, one pallas_call."""
    B = z.shape[0]
    y = pl.pallas_call(
        _decoder_head_kernel,
        out_shape=jax.ShapeDtypeStruct((B, 16 * 64), jnp.bfloat16),
    )(z.astype(jnp.bfloat16), q["d_fc_w"], q["d_fc_b"], q["d_ct1_w"], q["d_ct1_b"])
    return y.reshape(B, 4, 4, 64)                       # NHWC, columns ordered (i, j, co)


# ---------------------------------------------------------------------------
# Parameters (PyTorch layout) + packing into kernel-ready layout
# ---------------------------------------------------------------------------

def init_params(key, z_dim=7, nchan=3, scale=0.05):
    cnt = [0]

    def w(shape):
        cnt[0] += 1
        k = jax.random.fold_in(key, cnt[0])
        return (scale * jax.random.normal(k, shape)).astype(jnp.float32)

    p = {}
    # encoder convs: Conv2d(nchan,32,4,2,1), then 3x Conv2d(32,32,4,2,1)
    p["e_conv1_w"], p["e_conv1_b"] = w((32, nchan, 4, 4)), w((32,))
    p["e_conv2_w"], p["e_conv2_b"] = w((32, 32, 4, 4)), w((32,))
    p["e_conv3_w"], p["e_conv3_b"] = w((32, 32, 4, 4)), w((32,))
    p["e_conv4_w"], p["e_conv4_b"] = w((32, 32, 4, 4)), w((32,))
    # encoder linears (PyTorch Linear weights are (out, in))
    p["e_fc1_w"], p["e_fc1_b"] = w((256, 32 * 4 * 4)), w((256,))
    p["e_fc2_w"], p["e_fc2_b"] = w((256, 256)), w((256,))
    p["e_fc3_w"], p["e_fc3_b"] = w((z_dim * 2, 256)), w((z_dim * 2,))
    # decoder
    p["d_fc_w"], p["d_fc_b"] = w((256, z_dim)), w((256,))
    # ConvTranspose2d weights are (Cin, Cout, k, k)
    p["d_ct1_w"], p["d_ct1_b"] = w((256, 64, 4, 4)), w((64,))
    p["d_ct2_w"], p["d_ct2_b"] = w((64, 64, 4, 4)), w((64,))
    p["d_ct3_w"], p["d_ct3_b"] = w((64, 32, 4, 4)), w((32,))
    p["d_ct4_w"], p["d_ct4_b"] = w((32, 32, 4, 4)), w((32,))
    p["d_ct5_w"], p["d_ct5_b"] = w((32, nchan, 4, 4)), w((nchan,))
    return p


def pack_params(p):
    """One-time conversion of PyTorch-layout params into matmul-ready, lane-padded bf16."""

    def conv_w(w):          # Conv2d (Cout,Cin,k,k) -> (k*k*Cin, Npad) bf16, rows (i, j, ci)
        Cout, Cin, k, _ = w.shape
        wm = jnp.transpose(w, (2, 3, 1, 0)).reshape(k * k * Cin, Cout)
        Npad = _round_up(Cout, 128)
        return jnp.pad(wm, ((0, 0), (0, Npad - Cout))).astype(jnp.bfloat16)

    def ct_phase_w(wt):     # ConvTranspose2d(s=2,p=1) (Cin,Cout,4,4) -> (9*Cin, pad(4*Cout))
        Cin, Cout, k, _ = wt.shape
        assert k == 4
        # For output row 2*ho+py, the contributing input rows are the 3-row window of the
        # 1-padded input starting at ho; tap[py][r] = kernel index used at window offset r
        # (-1 = unused, weight left zero).  Same table applies to columns.
        tap = ((3, 1, -1),   # phase 0: x[ho-1]*W[3] + x[ho]*W[1]
               (-1, 2, 0))   # phase 1: x[ho]*W[2]   + x[ho+1]*W[0]
        W = jnp.zeros((3, 3, Cin, 2, 2, Cout), jnp.float32)
        for py in range(2):
            for r in range(3):
                i = tap[py][r]
                if i < 0:
                    continue
                for px in range(2):
                    for c in range(3):
                        j = tap[px][c]
                        if j < 0:
                            continue
                        W = W.at[r, c, :, py, px, :].set(wt[:, :, i, j])
        W = W.reshape(9 * Cin, 4 * Cout)                 # rows (r, c, ci), cols (py, px, co)
        Npad = _round_up(4 * Cout, 128)
        return jnp.pad(W, ((0, 0), (0, Npad - 4 * Cout))).astype(jnp.bfloat16)

    def lin_w(w):           # PyTorch (out, in) -> (in, out) bf16
        return jnp.transpose(w).astype(jnp.bfloat16)

    q = {}
    for name in ("e_conv1", "e_conv2", "e_conv3", "e_conv4"):
        q[name + "_w"] = conv_w(p[name + "_w"])
        q[name + "_b"] = p[name + "_b"].astype(jnp.float32)

    # fc1: fold PyTorch's channel-major View((-1,32*4*4)) flatten into the weight rows so
    # the NHWC conv output flattens for free (no transpose before the encoder head).
    w1 = p["e_fc1_w"]                                            # (256, 512), in idx = c*16+h*4+w
    w1 = w1.reshape(256, 32, 4, 4).transpose(0, 2, 3, 1).reshape(256, 512)   # -> (h, w, c) order
    q["e_fc1_w"] = jnp.transpose(w1).astype(jnp.bfloat16)
    q["e_fc1_b"] = p["e_fc1_b"].astype(jnp.float32).reshape(1, -1)
    q["e_fc2_w"] = lin_w(p["e_fc2_w"])
    q["e_fc2_b"] = p["e_fc2_b"].astype(jnp.float32).reshape(1, -1)

    # fc3: mu rows [:z_dim] and logvar rows [z_dim:] combined into one lane-padded matrix.
    w3 = jnp.transpose(p["e_fc3_w"])                             # (256, 2*z_dim)
    n3 = w3.shape[1]
    n3p = _round_up(n3, 128)
    q["e_fc3_w"] = jnp.pad(w3, ((0, 0), (0, n3p - n3))).astype(jnp.bfloat16)
    q["e_fc3_b"] = jnp.pad(p["e_fc3_b"], (0, n3p - n3)).astype(jnp.float32).reshape(1, -1)

    q["d_fc_w"] = lin_w(p["d_fc_w"])
    q["d_fc_b"] = p["d_fc_b"].astype(jnp.float32).reshape(1, -1)
    # d_ct1 acts on a 1x1 input (stride 1, no padding) -> dense z(256) -> (4,4,64); cols (i, j, co)
    q["d_ct1_w"] = jnp.transpose(p["d_ct1_w"], (0, 2, 3, 1)).reshape(256, 16 * 64).astype(jnp.bfloat16)
    q["d_ct1_b"] = jnp.tile(p["d_ct1_b"].astype(jnp.float32), 16).reshape(1, 16 * 64)
    for name in ("d_ct2", "d_ct3", "d_ct4", "d_ct5"):
        q[name + "_w"] = ct_phase_w(p[name + "_w"])
        q[name + "_b"] = p[name + "_b"].astype(jnp.float32)
    return q


# ---------------------------------------------------------------------------
# betaVAE forward (NHWC internally; NCHW at the API boundary, as in PyTorch)
# ---------------------------------------------------------------------------

def beta_vae_forward(q, x, eps):
    B = x.shape[0]
    z_dim = eps.shape[1]
    h = jnp.transpose(x, (0, 2, 3, 1)).astype(jnp.bfloat16)      # NCHW -> NHWC (once)
    h = conv2d_nhwc(h, q["e_conv1_w"], q["e_conv1_b"])
    h = conv2d_nhwc(h, q["e_conv2_w"], q["e_conv2_b"])
    h = conv2d_nhwc(h, q["e_conv3_w"], q["e_conv3_b"])
    h = conv2d_nhwc(h, q["e_conv4_w"], q["e_conv4_b"])           # (B, 4, 4, 32) bf16
    hflat = h.reshape(B, 32 * 4 * 4)      # NHWC flatten; fc1 weight rows pre-permuted to match
    mu, logvar, z = encoder_head(q, hflat, eps, z_dim=z_dim)

    y = decoder_head(q, z)                                       # (B, 4, 4, 64) NHWC bf16
    y = conv_transpose2d_nhwc(y, q["d_ct2_w"], q["d_ct2_b"], relu=True)
    y = conv_transpose2d_nhwc(y, q["d_ct3_w"], q["d_ct3_b"], relu=True)
    y = conv_transpose2d_nhwc(y, q["d_ct4_w"], q["d_ct4_b"], relu=True)
    y = conv_transpose2d_nhwc(y, q["d_ct5_w"], q["d_ct5_b"], relu=False, out_dtype=jnp.float32)
    x_recon = jnp.transpose(y, (0, 3, 1, 2))                     # NHWC -> NCHW (once)
    return x_recon, mu, logvar


# ---------------------------------------------------------------------------
# Driver
# ---------------------------------------------------------------------------

if __name__ == "__main__":
    z_dim, nchan, batch = 7, 3, 2
    key = jax.random.PRNGKey(0)
    k_param, k_x, k_eps = jax.random.split(key, 3)

    params = init_params(k_param, z_dim=z_dim, nchan=nchan)
    packed = pack_params(params)

    # Architecture implies 64x64 spatial input (4 stride-2 convs -> 4x4, then 32*4*4 flatten).
    x = jax.random.normal(k_x, (batch, nchan, 64, 64), dtype=jnp.float32)
    # eps ~ N(0,1) supplied from host RNG (PyTorch reparam draws it inside forward).
    eps = jax.random.normal(k_eps, (batch, z_dim), dtype=jnp.float32)

    fwd = jax.jit(beta_vae_forward)
    x_recon, mu, logvar = fwd(packed, x, eps)
    jax.block_until_ready((x_recon, mu, logvar))

    assert x_recon.shape == (batch, nchan, 64, 64)
    assert mu.shape == (batch, z_dim) and logvar.shape == (batch, z_dim)
    assert bool(jnp.all(jnp.isfinite(x_recon))) and bool(jnp.all(jnp.isfinite(mu)))
    print("KERNEL_OK")
</pallas_src>

<mosaic_0001>
module attributes {stable_mosaic.version = 11 : i64} {
  func.func @_matmul_bias_kernel(%arg0: i32, %arg1: memref<1024x48xbf16, #tpu.memory_space<vmem>>, %arg2: memref<48x128xbf16, #tpu.memory_space<vmem>>, %arg3: memref<1x128xf32, #tpu.memory_space<vmem>>, %arg4: memref<1024x128xbf16, #tpu.memory_space<vmem>>) attributes {dimension_semantics = [#tpu.dimension_semantics<parallel>], iteration_bounds = array<i64: 2>, scalar_prefetch = 0 : i64, scratch_operands = 0 : i64, tpu.core_type = #tpu.core_type<tc>, window_params = [{transform_indices = @transform_0, window_bounds = array<i64: 1024, 48>}, {pipeline_mode = #tpu.pipeline_mode<synchronous>, transform_indices = @transform_1, window_bounds = array<i64: 48, 128>}, {pipeline_mode = #tpu.pipeline_mode<synchronous>, transform_indices = @transform_2, window_bounds = array<i64: 1, 128>}, {transform_indices = @transform_3, window_bounds = array<i64: 1024, 128>}]} {
    %c0 = arith.constant 0 : index
    %c0_0 = arith.constant 0 : index
    %0 = vector.load %arg1[%c0, %c0_0] : memref<1024x48xbf16, #tpu.memory_space<vmem>>, vector<1024x48xbf16>
    %c0_1 = arith.constant 0 : index
    %c0_2 = arith.constant 0 : index
    %1 = vector.load %arg2[%c0_1, %c0_2] : memref<48x128xbf16, #tpu.memory_space<vmem>>, vector<48x128xbf16>
    %cst = arith.constant dense<0.000000e+00> : vector<1024x128xf32>
    %2 = tpu.matmul %0, %1, %cst {dimension_numbers = #tpu.dot_dimension_numbers<[1], [0], [0], [1], [0, 0, 1, 1], [], []>} : vector<1024x48xbf16>, vector<48x128xbf16>, vector<1024x128xf32> -> vector<1024x128xf32>
    %c0_3 = arith.constant 0 : index
    %c0_4 = arith.constant 0 : index
    %3 = vector.load %arg3[%c0_3, %c0_4] : memref<1x128xf32, #tpu.memory_space<vmem>>, vector<1x128xf32>
    %4 = vector.broadcast %3 : vector<1x128xf32> to vector<1024x128xf32>
    %5 = arith.addf %2, %4 : vector<1024x128xf32>
    %cst_5 = arith.constant 0.000000e+00 : f32
    %6 = vector.broadcast %cst_5 : f32 to vector<1024x128xf32>
    %7 = arith.maximumf %5, %6 : vector<1024x128xf32>
    %8 = arith.truncf %7 : vector<1024x128xf32> to vector<1024x128xbf16>
    %c0_6 = arith.constant 0 : index
    %c0_7 = arith.constant 0 : index
    %9 = vector.load %arg4[%c0_6, %c0_7] : memref<1024x128xbf16, #tpu.memory_space<vmem>>, vector<1024x128xbf16>
    tpu.vector_store %arg4[%c0_6, %c0_7], %8 {strides = array<i32>} : memref<1024x128xbf16, #tpu.memory_space<vmem>>, vector<1024x128xbf16>,
    return
  }
  func.func @transform_0(%arg0: i32) -> (i32, i32) {
    %c0_i32 = arith.constant 0 : i32
    %c0_i32_0 = arith.constant 0 : i32
    return %arg0, %c0_i32 : i32, i32
  }
  func.func @transform_1(%arg0: i32) -> (i32, i32) {
    %c0_i32 = arith.constant 0 : i32
    %c0_i32_0 = arith.constant 0 : i32
    %c0_i32_1 = arith.constant 0 : i32
    return %c0_i32, %c0_i32_0 : i32, i32
  }
  func.func @transform_2(%arg0: i32) -> (i32, i32) {
    %c0_i32 = arith.constant 0 : i32
    %c0_i32_0 = arith.constant 0 : i32
    %c0_i32_1 = arith.constant 0 : i32
    return %c0_i32, %c0_i32_0 : i32, i32
  }
  func.func @transform_3(%arg0: i32) -> (i32, i32) {
    %c0_i32 = arith.constant 0 : i32
    %c0_i32_0 = arith.constant 0 : i32
    return %arg0, %c0_i32 : i32, i32
  }
}

module attributes {stable_mosaic.version = 11 : i64} {
  func.func @_matmul_bias_kernel(%arg0: i32, %arg1: memref<512x512xbf16, #tpu.memory_space<vmem>>, %arg2: memref<512x128xbf16, #tpu.memory_space<vmem>>, %arg3: memref<1x128xf32, #tpu.memory_space<vmem>>, %arg4: memref<512x128xbf16, #tpu.memory_space<vmem>>) attributes {dimension_semantics = [#tpu.dimension_semantics<parallel>], iteration_bounds = array<i64: 1>, scalar_prefetch = 0 : i64, scratch_operands = 0 : i64, tpu.core_type = #tpu.core_type<tc>, window_params = [{transform_indices = @transform_0, window_bounds = array<i64: 512, 512>}, {pipeline_mode = #tpu.pipeline_mode<synchronous>, transform_indices = @transform_1, window_bounds = array<i64: 512, 128>}, {pipeline_mode = #tpu.pipeline_mode<synchronous>, transform_indices = @transform_2, window_bounds = array<i64: 1, 128>}, {transform_indices = @transform_3, window_bounds = array<i64: 512, 128>}]} {
    %c0 = arith.constant 0 : index
    %c0_0 = arith.constant 0 : index
    %0 = vector.load %arg1[%c0, %c0_0] : memref<512x512xbf16, #tpu.memory_space<vmem>>, vector<512x512xbf16>
    %c0_1 = arith.constant 0 : index
    %c0_2 = arith.constant 0 : index
    %1 = vector.load %arg2[%c0_1, %c0_2] : memref<512x128xbf16, #tpu.memory_space<vmem>>, vector<512x128xbf16>
    %cst = arith.constant dense<0.000000e+00> : vector<512x128xf32>
    %2 = tpu.matmul %0, %1, %cst {dimension_numbers = #tpu.dot_dimension_numbers<[1], [0], [0], [1], [0, 0, 1, 1], [], []>} : vector<512x512xbf16>, vector<512x128xbf16>, vector<512x128xf32> -> vector<512x128xf32>
    %c0_3 = arith.constant 0 : index
    %c0_4 = arith.constant 0 : index
    %3 = vector.load %arg3[%c0_3, %c0_4] : memref<1x128xf32, #tpu.memory_space<vmem>>, vector<1x128xf32>
    %4 = vector.broadcast %3 : vector<1x128xf32> to vector<512x128xf32>
    %5 = arith.addf %2, %4 : vector<512x128xf32>
    %cst_5 = arith.constant 0.000000e+00 : f32
    %6 = vector.broadcast %cst_5 : f32 to vector<512x128xf32>
    %7 = arith.maximumf %5, %6 : vector<512x128xf32>
    %8 = arith.truncf %7 : vector<512x128xf32> to vector<512x128xbf16>
    %c0_6 = arith.constant 0 : index
    %c0_7 = arith.constant 0 : index
    %9 = vector.load %arg4[%c0_6, %c0_7] : memref<512x128xbf16, #tpu.memory_space<vmem>>, vector<512x128xbf16>
    tpu.vector_store %arg4[%c0_6, %c0_7], %8 {strides = array<i32>} : memref<512x128xbf16, #tpu.memory_space<vmem>>, vector<512x128xbf16>,
    return
  }
  func.func @transform_0(%arg0: i32) -> (i32, i32) {
    %c0_i32 = arith.constant 0 : i32
    %c0_i32_0 = arith.constant 0 : i32
    return %arg0, %c0_i32 : i32, i32
  }
  func.func @transform_1(%arg0: i32) -> (i32, i32) {
    %c0_i32 = arith.constant 0 : i32
    %c0_i32_0 = arith.constant 0 : i32
    %c0_i32_1 = arith.constant 0 : i32
    return %c0_i32, %c0_i32_0 : i32, i32
  }
  func.func @transform_2(%arg0: i32) -> (i32, i32) {
    %c0_i32 = arith.constant 0 : i32
    %c0_i32_0 = arith.constant 0 : i32
    %c0_i32_1 = arith.constant 0 : i32
    return %c0_i32, %c0_i32_0 : i32, i32
  }
  func.func @transform_3(%arg0: i32) -> (i32, i32) {
    %c0_i32 = arith.constant 0 : i32
    %c0_i32_0 = arith.constant 0 : i32
    return %arg0, %c0_i32 : i32, i32
  }
}

module attributes {stable_mosaic.version = 11 : i64} {
  func.func @_matmul_bias_kernel(%arg0: i32, %arg1: memref<128x512xbf16, #tpu.memory_space<vmem>>, %arg2: memref<512x128xbf16, #tpu.memory_space<vmem>>, %arg3: memref<1x128xf32, #tpu.memory_space<vmem>>, %arg4: memref<128x128xbf16, #tpu.memory_space<vmem>>) attributes {dimension_semantics = [#tpu.dimension_semantics<parallel>], iteration_bounds = array<i64: 1>, scalar_prefetch = 0 : i64, scratch_operands = 0 : i64, tpu.core_type = #tpu.core_type<tc>, window_params = [{transform_indices = @transform_0, window_bounds = array<i64: 128, 512>}, {pipeline_mode = #tpu.pipeline_mode<synchronous>, transform_indices = @transform_1, window_bounds = array<i64: 512, 128>}, {pipeline_mode = #tpu.pipeline_mode<synchronous>, transform_indices = @transform_2, window_bounds = array<i64: 1, 128>}, {transform_indices = @transform_3, window_bounds = array<i64: 128, 128>}]} {
    %c0 = arith.constant 0 : index
    %c0_0 = arith.constant 0 : index
    %0 = vector.load %arg1[%c0, %c0_0] : memref<128x512xbf16, #tpu.memory_space<vmem>>, vector<128x512xbf16>
    %c0_1 = arith.constant 0 : index
    %c0_2 = arith.constant 0 : index
    %1 = vector.load %arg2[%c0_1, %c0_2] : memref<512x128xbf16, #tpu.memory_space<vmem>>, vector<512x128xbf16>
    %cst = arith.constant dense<0.000000e+00> : vector<128x128xf32>
    %2 = tpu.matmul %0, %1, %cst {dimension_numbers = #tpu.dot_dimension_numbers<[1], [0], [0], [1], [0, 0, 1, 1], [], []>} : vector<128x512xbf16>, vector<512x128xbf16>, vector<128x128xf32> -> vector<128x128xf32>
    %c0_3 = arith.constant 0 : index
    %c0_4 = arith.constant 0 : index
    %3 = vector.load %arg3[%c0_3, %c0_4] : memref<1x128xf32, #tpu.memory_space<vmem>>, vector<1x128xf32>
    %4 = vector.broadcast %3 : vector<1x128xf32> to vector<128x128xf32>
    %5 = arith.addf %2, %4 : vector<128x128xf32>
    %cst_5 = arith.constant 0.000000e+00 : f32
    %6 = vector.broadcast %cst_5 : f32 to vector<128x128xf32>
    %7 = arith.maximumf %5, %6 : vector<128x128xf32>
    %8 = arith.truncf %7 : vector<128x128xf32> to vector<128x128xbf16>
    %c0_6 = arith.constant 0 : index
    %c0_7 = arith.constant 0 : index
    %9 = vector.load %arg4[%c0_6, %c0_7] : memref<128x128xbf16, #tpu.memory_space<vmem>>, vector<128x128xbf16>
    tpu.vector_store %arg4[%c0_6, %c0_7], %8 {strides = array<i32>} : memref<128x128xbf16, #tpu.memory_space<vmem>>, vector<128x128xbf16>,
    return
  }
  func.func @transform_0(%arg0: i32) -> (i32, i32) {
    %c0_i32 = arith.constant 0 : i32
    %c0_i32_0 = arith.constant 0 : i32
    return %arg0, %c0_i32 : i32, i32
  }
  func.func @transform_1(%arg0: i32) -> (i32, i32) {
    %c0_i32 = arith.constant 0 : i32
    %c0_i32_0 = arith.constant 0 : i32
    %c0_i32_1 = arith.constant 0 : i32
    return %c0_i32, %c0_i32_0 : i32, i32
  }
  func.func @transform_2(%arg0: i32) -> (i32, i32) {
    %c0_i32 = arith.constant 0 : i32
    %c0_i32_0 = arith.constant 0 : i32
    %c0_i32_1 = arith.constant 0 : i32
    return %c0_i32, %c0_i32_0 : i32, i32
  }
  func.func @transform_3(%arg0: i32) -> (i32, i32) {
    %c0_i32 = arith.constant 0 : i32
    %c0_i32_0 = arith.constant 0 : i32
    return %arg0, %c0_i32 : i32, i32
  }
}

module attributes {stable_mosaic.version = 11 : i64} {
  func.func @_matmul_bias_kernel(%arg0: i32, %arg1: memref<32x512xbf16, #tpu.memory_space<vmem>>, %arg2: memref<512x128xbf16, #tpu.memory_space<vmem>>, %arg3: memref<1x128xf32, #tpu.memory_space<vmem>>, %arg4: memref<32x128xbf16, #tpu.memory_space<vmem>>) attributes {dimension_semantics = [#tpu.dimension_semantics<parallel>], iteration_bounds = array<i64: 1>, scalar_prefetch = 0 : i64, scratch_operands = 0 : i64, tpu.core_type = #tpu.core_type<tc>, window_params = [{transform_indices = @transform_0, window_bounds = array<i64: 32, 512>}, {pipeline_mode = #tpu.pipeline_mode<synchronous>, transform_indices = @transform_1, window_bounds = array<i64: 512, 128>}, {pipeline_mode = #tpu.pipeline_mode<synchronous>, transform_indices = @transform_2, window_bounds = array<i64: 1, 128>}, {transform_indices = @transform_3, window_bounds = array<i64: 32, 128>}]} {
    %c0 = arith.constant 0 : index
    %c0_0 = arith.constant 0 : index
    %0 = vector.load %arg1[%c0, %c0_0] : memref<32x512xbf16, #tpu.memory_space<vmem>>, vector<32x512xbf16>
    %c0_1 = arith.constant 0 : index
    %c0_2 = arith.constant 0 : index
    %1 = vector.load %arg2[%c0_1, %c0_2] : memref<512x128xbf16, #tpu.memory_space<vmem>>, vector<512x128xbf16>
    %cst = arith.constant dense<0.000000e+00> : vector<32x128xf32>
    %2 = tpu.matmul %0, %1, %cst {dimension_numbers = #tpu.dot_dimension_numbers<[1], [0], [0], [1], [0, 0, 1, 1], [], []>} : vector<32x512xbf16>, vector<512x128xbf16>, vector<32x128xf32> -> vector<32x128xf32>
    %c0_3 = arith.constant 0 : index
    %c0_4 = arith.constant 0 : index
    %3 = vector.load %arg3[%c0_3, %c0_4] : memref<1x128xf32, #tpu.memory_space<vmem>>, vector<1x128xf32>
    %4 = vector.broadcast %3 : vector<1x128xf32> to vector<32x128xf32>
    %5 = arith.addf %2, %4 : vector<32x128xf32>
    %cst_5 = arith.constant 0.000000e+00 : f32
    %6 = vector.broadcast %cst_5 : f32 to vector<32x128xf32>
    %7 = arith.maximumf %5, %6 : vector<32x128xf32>
    %8 = arith.truncf %7 : vector<32x128xf32> to vector<32x128xbf16>
    %c0_6 = arith.constant 0 : index
    %c0_7 = arith.constant 0 : index
    %9 = vector.load %arg4[%c0_6, %c0_7] : memref<32x128xbf16, #tpu.memory_space<vmem>>, vector<32x128xbf16>
    tpu.vector_store %arg4[%c0_6, %c0_7], %8 {strides = array<i32>} : memref<32x128xbf16, #tpu.memory_space<vmem>>, vector<32x128xbf16>,
    return
  }
  func.func @transform_0(%arg0: i32) -> (i32, i32) {
    %c0_i32 = arith.constant 0 : i32
    %c0_i32_0 = arith.constant 0 : i32
    return %arg0, %c0_i32 : i32, i32
  }
  func.func @transform_1(%arg0: i32) -> (i32, i32) {
    %c0_i32 = arith.constant 0 : i32
    %c0_i32_0 = arith.constant 0 : i32
    %c0_i32_1 = arith.constant 0 : i32
    return %c0_i32, %c0_i32_0 : i32, i32
  }
  func.func @transform_2(%arg0: i32) -> (i32, i32) {
    %c0_i32 = arith.constant 0 : i32
    %c0_i32_0 = arith.constant 0 : i32
    %c0_i32_1 = arith.constant 0 : i32
    return %c0_i32, %c0_i32_0 : i32, i32
  }
  func.func @transform_3(%arg0: i32) -> (i32, i32) {
    %c0_i32 = arith.constant 0 : i32
    %c0_i32_0 = arith.constant 0 : i32
    return %arg0, %c0_i32 : i32, i32
  }
}

module attributes {stable_mosaic.version = 11 : i64} {
  func.func @_encoder_head_kernel(%arg0: memref<2x512xbf16, #tpu.memory_space<vmem>>, %arg1: memref<512x256xbf16, #tpu.memory_space<vmem>>, %arg2: memref<1x256xf32, #tpu.memory_space<vmem>>, %arg3: memref<256x256xbf16, #tpu.memory_space<vmem>>, %arg4: memref<1x256xf32, #tpu.memory_space<vmem>>, %arg5: memref<256x128xbf16, #tpu.memory_space<vmem>>, %arg6: memref<1x128xf32, #tpu.memory_space<vmem>>, %arg7: memref<2x7xf32, #tpu.memory_space<vmem>>, %arg8: memref<2x7xf32, #tpu.memory_space<vmem>>, %arg9: memref<2x7xf32, #tpu.memory_space<vmem>>, %arg10: memref<2x7xf32, #tpu.memory_space<vmem>>) attributes {dimension_semantics = [], scalar_prefetch = 0 : i64, scratch_operands = 0 : i64, tpu.core_type = #tpu.core_type<tc>} {
    %c0 = arith.constant 0 : index
    %c0_0 = arith.constant 0 : index
    %0 = vector.load %arg0[%c0, %c0_0] : memref<2x512xbf16, #tpu.memory_space<vmem>>, vector<2x512xbf16>
    %c0_1 = arith.constant 0 : index
    %c0_2 = arith.constant 0 : index
    %1 = vector.load %arg1[%c0_1, %c0_2] : memref<512x256xbf16, #tpu.memory_space<vmem>>, vector<512x256xbf16>
    %cst = arith.constant dense<0.000000e+00> : vector<2x256xf32>
    %2 = tpu.matmul %0, %1, %cst {dimension_numbers = #tpu.dot_dimension_numbers<[1], [0], [0], [1], [0, 0, 1, 1], [], []>} : vector<2x512xbf16>, vector<512x256xbf16>, vector<2x256xf32> -> vector<2x256xf32>
    %c0_3 = arith.constant 0 : index
    %c0_4 = arith.constant 0 : index
    %3 = vector.load %arg2[%c0_3, %c0_4] : memref<1x256xf32, #tpu.memory_space<vmem>>, vector<1x256xf32>
    %4 = vector.broadcast %3 : vector<1x256xf32> to vector<2x256xf32>
    %5 = arith.addf %2, %4 : vector<2x256xf32>
    %cst_5 = arith.constant 0.000000e+00 : f32
    %6 = vector.broadcast %cst_5 : f32 to vector<2x256xf32>
    %7 = arith.maximumf %5, %6 : vector<2x256xf32>
    %8 = arith.truncf %7 : vector<2x256xf32> to vector<2x256xbf16>
    %c0_6 = arith.constant 0 : index
    %c0_7 = arith.constant 0 : index
    %9 = vector.load %arg3[%c0_6, %c0_7] : memref<256x256xbf16, #tpu.memory_space<vmem>>, vector<256x256xbf16>
    %cst_8 = arith.constant dense<0.000000e+00> : vector<2x256xf32>
    %10 = tpu.matmul %8, %9, %cst_8 {dimension_numbers = #tpu.dot_dimension_numbers<[1], [0], [0], [1], [0, 0, 1, 1], [], []>} : vector<2x256xbf16>, vector<256x256xbf16>, vector<2x256xf32> -> vector<2x256xf32>
    %c0_9 = arith.constant 0 : index
    %c0_10 = arith.constant 0 : index
    %11 = vector.load %arg4[%c0_9, %c0_10] : memref<1x256xf32, #tpu.memory_space<vmem>>, vector<1x256xf32>
    %12 = vector.broadcast %11 : vector<1x256xf32> to vector<2x256xf32>
    %13 = arith.addf %10, %12 : vector<2x256xf32>
    %cst_11 = arith.constant 0.000000e+00 : f32
    %14 = vector.broadcast %cst_11 : f32 to vector<2x256xf32>
    %15 = arith.maximumf %13, %14 : vector<2x256xf32>
    %16 = arith.truncf %15 : vector<2x256xf32> to vector<2x256xbf16>
    %c0_12 = arith.constant 0 : index
    %c0_13 = arith.constant 0 : index
    %17 = vector.load %arg5[%c0_12, %c0_13] : memref<256x128xbf16, #tpu.memory_space<vmem>>, vector<256x128xbf16>
    %cst_14 = arith.constant dense<0.000000e+00> : vector<2x128xf32>
    %18 = tpu.matmul %16, %17, %cst_14 {dimension_numbers = #tpu.dot_dimension_numbers<[1], [0], [0], [1], [0, 0, 1, 1], [], []>} : vector<2x256xbf16>, vector<256x128xbf16>, vector<2x128xf32> -> vector<2x128xf32>
    %c0_15 = arith.constant 0 : index
    %c0_16 = arith.constant 0 : index
    %19 = vector.load %arg6[%c0_15, %c0_16] : memref<1x128xf32, #tpu.memory_space<vmem>>, vector<1x128xf32>
    %20 = vector.broadcast %19 : vector<1x128xf32> to vector<2x128xf32>
    %21 = arith.addf %18, %20 : vector<2x128xf32>
    %22 = vector.extract_strided_slice %21 {offsets = [0, 0], sizes = [2, 7], strides = [1, 1]} : vector<2x128xf32> to vector<2x7xf32>
    %23 = vector.extract_strided_slice %21 {offsets = [0, 7], sizes = [2, 7], strides = [1, 1]} : vector<2x128xf32> to vector<2x7xf32>
    %c0_17 = arith.constant 0 : index
    %c0_18 = arith.constant 0 : index
    %24 = vector.load %arg8[%c0_17, %c0_18] : memref<2x7xf32, #tpu.memory_space<vmem>>, vector<2x7xf32>
    tpu.vector_store %arg8[%c0_17, %c0_18], %22 {strides = array<i32>} : memref<2x7xf32, #tpu.memory_space<vmem>>, vector<2x7xf32>,
    %c0_19 = arith.constant 0 : index
    %c0_20 = arith.constant 0 : index
    %25 = vector.load %arg9[%c0_19, %c0_20] : memref<2x7xf32, #tpu.memory_space<vmem>>, vector<2x7xf32>
    tpu.vector_store %arg9[%c0_19, %c0_20], %23 {strides = array<i32>} : memref<2x7xf32, #tpu.memory_space<vmem>>, vector<2x7xf32>,
    %cst_21 = arith.constant 5.000000e-01 : f32
    %26 = vector.broadcast %cst_21 : f32 to vector<2x7xf32>
    %27 = arith.mulf %23, %26 : vector<2x7xf32>
    %28 = math.exp %27 : vector<2x7xf32>
    %c0_22 = arith.constant 0 : index
    %c0_23 = arith.constant 0 : index
    %29 = vector.load %arg7[%c0_22, %c0_23] : memref<2x7xf32, #tpu.memory_space<vmem>>, vector<2x7xf32>
    %30 = arith.mulf %28, %29 : vector<2x7xf32>
    %31 = arith.addf %22, %30 : vector<2x7xf32>
    %c0_24 = arith.constant 0 : index
    %c0_25 = arith.constant 0 : index
    %32 = vector.load %arg10[%c0_24, %c0_25] : memref<2x7xf32, #tpu.memory_space<vmem>>, vector<2x7xf32>
    tpu.vector_store %arg10[%c0_24, %c0_25], %31 {strides = array<i32>} : memref<2x7xf32, #tpu.memory_space<vmem>>, vector<2x7xf32>,
    return
  }
}

module attributes {stable_mosaic.version = 11 : i64} {
  func.func @_decoder_head_kernel(%arg0: memref<2x7xbf16, #tpu.memory_space<vmem>>, %arg1: memref<7x256xbf16, #tpu.memory_space<vmem>>, %arg2: memref<1x256xf32, #tpu.memory_space<vmem>>, %arg3: memref<256x1024xbf16, #tpu.memory_space<vmem>>, %arg4: memref<1x1024xf32, #tpu.memory_space<vmem>>, %arg5: memref<2x1024xbf16, #tpu.memory_space<vmem>>) attributes {dimension_semantics = [], scalar_prefetch = 0 : i64, scratch_operands = 0 : i64, tpu.core_type = #tpu.core_type<tc>} {
    %c0 = arith.constant 0 : index
    %c0_0 = arith.constant 0 : index
    %0 = vector.load %arg0[%c0, %c0_0] : memref<2x7xbf16, #tpu.memory_space<vmem>>, vector<2x7xbf16>
    %c0_1 = arith.constant 0 : index
    %c0_2 = arith.constant 0 : index
    %1 = vector.load %arg1[%c0_1, %c0_2] : memref<7x256xbf16, #tpu.memory_space<vmem>>, vector<7x256xbf16>
    %cst = arith.constant dense<0.000000e+00> : vector<2x256xf32>
    %2 = tpu.matmul %0, %1, %cst {dimension_numbers = #tpu.dot_dimension_numbers<[1], [0], [0], [1], [0, 0, 1, 1], [], []>} : vector<2x7xbf16>, vector<7x256xbf16>, vector<2x256xf32> -> vector<2x256xf32>
    %c0_3 = arith.constant 0 : index
    %c0_4 = arith.constant 0 : index
    %3 = vector.load %arg2[%c0_3, %c0_4] : memref<1x256xf32, #tpu.memory_space<vmem>>, vector<1x256xf32>
    %4 = vector.broadcast %3 : vector<1x256xf32> to vector<2x256xf32>
    %5 = arith.addf %2, %4 : vector<2x256xf32>
    %cst_5 = arith.constant 0.000000e+00 : f32
    %6 = vector.broadcast %cst_5 : f32 to vector<2x256xf32>
    %7 = arith.maximumf %5, %6 : vector<2x256xf32>
    %8 = arith.truncf %7 : vector<2x256xf32> to vector<2x256xbf16>
    %c0_6 = arith.constant 0 : index
    %c0_7 = arith.constant 0 : index
    %9 = vector.load %arg3[%c0_6, %c0_7] : memref<256x1024xbf16, #tpu.memory_space<vmem>>, vector<256x1024xbf16>
    %cst_8 = arith.constant dense<0.000000e+00> : vector<2x1024xf32>
    %10 = tpu.matmul %8, %9, %cst_8 {dimension_numbers = #tpu.dot_dimension_numbers<[1], [0], [0], [1], [0, 0, 1, 1], [], []>} : vector<2x256xbf16>, vector<256x1024xbf16>, vector<2x1024xf32> -> vector<2x1024xf32>
    %c0_9 = arith.constant 0 : index
    %c0_10 = arith.constant 0 : index
    %11 = vector.load %arg4[%c0_9, %c0_10] : memref<1x1024xf32, #tpu.memory_space<vmem>>, vector<1x1024xf32>
    %12 = vector.broadcast %11 : vector<1x1024xf32> to vector<2x1024xf32>
    %13 = arith.addf %10, %12 : vector<2x1024xf32>
    %cst_11 = arith.constant 0.000000e+00 : f32
    %14 = vector.broadcast %cst_11 : f32 to vector<2x1024xf32>
    %15 = arith.maximumf %13, %14 : vector<2x1024xf32>
    %16 = arith.truncf %15 : vector<2x1024xf32> to vector<2x1024xbf16>
    %c0_12 = arith.constant 0 : index
    %c0_13 = arith.constant 0 : index
    %17 = vector.load %arg5[%c0_12, %c0_13] : memref<2x1024xbf16, #tpu.memory_space<vmem>>, vector<2x1024xbf16>
    tpu.vector_store %arg5[%c0_12, %c0_13], %16 {strides = array<i32>} : memref<2x1024xbf16, #tpu.memory_space<vmem>>, vector<2x1024xbf16>,
    return
  }
}

module attributes {stable_mosaic.version = 11 : i64} {
  func.func @_matmul_bias_kernel(%arg0: i32, %arg1: memref<32x576xbf16, #tpu.memory_space<vmem>>, %arg2: memref<576x256xbf16, #tpu.memory_space<vmem>>, %arg3: memref<1x256xf32, #tpu.memory_space<vmem>>, %arg4: memref<32x256xbf16, #tpu.memory_space<vmem>>) attributes {dimension_semantics = [#tpu.dimension_semantics<parallel>], iteration_bounds = array<i64: 1>, scalar_prefetch = 0 : i64, scratch_operands = 0 : i64, tpu.core_type = #tpu.core_type<tc>, window_params = [{transform_indices = @transform_0, window_bounds = array<i64: 32, 576>}, {pipeline_mode = #tpu.pipeline_mode<synchronous>, transform_indices = @transform_1, window_bounds = array<i64: 576, 256>}, {pipeline_mode = #tpu.pipeline_mode<synchronous>, transform_indices = @transform_2, window_bounds = array<i64: 1, 256>}, {transform_indices = @transform_3, window_bounds = array<i64: 32, 256>}]} {
    %c0 = arith.constant 0 : index
    %c0_0 = arith.constant 0 : index
    %0 = vector.load %arg1[%c0, %c0_0] : memref<32x576xbf16, #tpu.memory_space<vmem>>, vector<32x576xbf16>
    %c0_1 = arith.constant 0 : index
    %c0_2 = arith.constant 0 : index
    %1 = vector.load %arg2[%c0_1, %c0_2] : memref<576x256xbf16, #tpu.memory_space<vmem>>, vector<576x256xbf16>
    %cst = arith.constant dense<0.000000e+00> : vector<32x256xf32>
    %2 = tpu.matmul %0, %1, %cst {dimension_numbers = #tpu.dot_dimension_numbers<[1], [0], [0], [1], [0, 0, 1, 1], [], []>} : vector<32x576xbf16>, vector<576x256xbf16>, vector<32x256xf32> -> vector<32x256xf32>
    %c0_3 = arith.constant 0 : index
    %c0_4 = arith.constant 0 : index
    %3 = vector.load %arg3[%c0_3, %c0_4] : memref<1x256xf32, #tpu.memory_space<vmem>>, vector<1x256xf32>
    %4 = vector.broadcast %3 : vector<1x256xf32> to vector<32x256xf32>
    %5 = arith.addf %2, %4 : vector<32x256xf32>
    %cst_5 = arith.constant 0.000000e+00 : f32
    %6 = vector.broadcast %cst_5 : f32 to vector<32x256xf32>
    %7 = arith.maximumf %5, %6 : vector<32x256xf32>
    %8 = arith.truncf %7 : vector<32x256xf32> to vector<32x256xbf16>
    %c0_6 = arith.constant 0 : index
    %c0_7 = arith.constant 0 : index
    %9 = vector.load %arg4[%c0_6, %c0_7] : memref<32x256xbf16, #tpu.memory_space<vmem>>, vector<32x256xbf16>
    tpu.vector_store %arg4[%c0_6, %c0_7], %8 {strides = array<i32>} : memref<32x256xbf16, #tpu.memory_space<vmem>>, vector<32x256xbf16>,
    return
  }
  func.func @transform_0(%arg0: i32) -> (i32, i32) {
    %c0_i32 = arith.constant 0 : i32
    %c0_i32_0 = arith.constant 0 : i32
    return %arg0, %c0_i32 : i32, i32
  }
  func.func @transform_1(%arg0: i32) -> (i32, i32) {
    %c0_i32 = arith.constant 0 : i32
    %c0_i32_0 = arith.constant 0 : i32
    %c0_i32_1 = arith.constant 0 : i32
    return %c0_i32, %c0_i32_0 : i32, i32
  }
  func.func @transform_2(%arg0: i32) -> (i32, i32) {
    %c0_i32 = arith.constant 0 : i32
    %c0_i32_0 = arith.constant 0 : i32
    %c0_i32_1 = arith.constant 0 : i32
    return %c0_i32, %c0_i32_0 : i32, i32
  }
  func.func @transform_3(%arg0: i32) -> (i32, i32) {
    %c0_i32 = arith.constant 0 : i32
    %c0_i32_0 = arith.constant 0 : i32
    return %arg0, %c0_i32 : i32, i32
  }
}

module attributes {stable_mosaic.version = 11 : i64} {
  func.func @_matmul_bias_kernel(%arg0: i32, %arg1: memref<128x576xbf16, #tpu.memory_space<vmem>>, %arg2: memref<576x128xbf16, #tpu.memory_space<vmem>>, %arg3: memref<1x128xf32, #tpu.memory_space<vmem>>, %arg4: memref<128x128xbf16, #tpu.memory_space<vmem>>) attributes {dimension_semantics = [#tpu.dimension_semantics<parallel>], iteration_bounds = array<i64: 1>, scalar_prefetch = 0 : i64, scratch_operands = 0 : i64, tpu.core_type = #tpu.core_type<tc>, window_params = [{transform_indices = @transform_0, window_bounds = array<i64: 128, 576>}, {pipeline_mode = #tpu.pipeline_mode<synchronous>, transform_indices = @transform_1, window_bounds = array<i64: 576, 128>}, {pipeline_mode = #tpu.pipeline_mode<synchronous>, transform_indices = @transform_2, window_bounds = array<i64: 1, 128>}, {transform_indices = @transform_3, window_bounds = array<i64: 128, 128>}]} {
    %c0 = arith.constant 0 : index
    %c0_0 = arith.constant 0 : index
    %0 = vector.load %arg1[%c0, %c0_0] : memref<128x576xbf16, #tpu.memory_space<vmem>>, vector<128x576xbf16>
    %c0_1 = arith.constant 0 : index
    %c0_2 = arith.constant 0 : index
    %1 = vector.load %arg2[%c0_1, %c0_2] : memref<576x128xbf16, #tpu.memory_space<vmem>>, vector<576x128xbf16>
    %cst = arith.constant dense<0.000000e+00> : vector<128x128xf32>
    %2 = tpu.matmul %0, %1, %cst {dimension_numbers = #tpu.dot_dimension_numbers<[1], [0], [0], [1], [0, 0, 1, 1], [], []>} : vector<128x576xbf16>, vector<576x128xbf16>, vector<128x128xf32> -> vector<128x128xf32>
    %c0_3 = arith.constant 0 : index
    %c0_4 = arith.constant 0 : index
    %3 = vector.load %arg3[%c0_3, %c0_4] : memref<1x128xf32, #tpu.memory_space<vmem>>, vector<1x128xf32>
    %4 = vector.broadcast %3 : vector<1x128xf32> to vector<128x128xf32>
    %5 = arith.addf %2, %4 : vector<128x128xf32>
    %cst_5 = arith.constant 0.000000e+00 : f32
    %6 = vector.broadcast %cst_5 : f32 to vector<128x128xf32>
    %7 = arith.maximumf %5, %6 : vector<128x128xf32>
    %8 = arith.truncf %7 : vector<128x128xf32> to vector<128x128xbf16>
    %c0_6 = arith.constant 0 : index
    %c0_7 = arith.constant 0 : index
    %9 = vector.load %arg4[%c0_6, %c0_7] : memref<128x128xbf16, #tpu.memory_space<vmem>>, vector<128x128xbf16>
    tpu.vector_store %arg4[%c0_6, %c0_7], %8 {strides = array<i32>} : memref<128x128xbf16, #tpu.memory_space<vmem>>, vector<128x128xbf16>,
    return
  }
  func.func @transform_0(%arg0: i32) -> (i32, i32) {
    %c0_i32 = arith.constant 0 : i32
    %c0_i32_0 = arith.constant 0 : i32
    return %arg0, %c0_i32 : i32, i32
  }
  func.func @transform_1(%arg0: i32) -> (i32, i32) {
    %c0_i32 = arith.constant 0 : i32
    %c0_i32_0 = arith.constant 0 : i32
    %c0_i32_1 = arith.constant 0 : i32
    return %c0_i32, %c0_i32_0 : i32, i32
  }
  func.func @transform_2(%arg0: i32) -> (i32, i32) {
    %c0_i32 = arith.constant 0 : i32
    %c0_i32_0 = arith.constant 0 : i32
    %c0_i32_1 = arith.constant 0 : i32
    return %c0_i32, %c0_i32_0 : i32, i32
  }
  func.func @transform_3(%arg0: i32) -> (i32, i32) {
    %c0_i32 = arith.constant 0 : i32
    %c0_i32_0 = arith.constant 0 : i32
    return %arg0, %c0_i32 : i32, i32
  }
}

module attributes {stable_mosaic.version = 11 : i64} {
  func.func @_matmul_bias_kernel(%arg0: i32, %arg1: memref<512x288xbf16, #tpu.memory_space<vmem>>, %arg2: memref<288x128xbf16, #tpu.memory_space<vmem>>, %arg3: memref<1x128xf32, #tpu.memory_space<vmem>>, %arg4: memref<512x128xbf16, #tpu.memory_space<vmem>>) attributes {dimension_semantics = [#tpu.dimension_semantics<parallel>], iteration_bounds = array<i64: 1>, scalar_prefetch = 0 : i64, scratch_operands = 0 : i64, tpu.core_type = #tpu.core_type<tc>, window_params = [{transform_indices = @transform_0, window_bounds = array<i64: 512, 288>}, {pipeline_mode = #tpu.pipeline_mode<synchronous>, transform_indices = @transform_1, window_bounds = array<i64: 288, 128>}, {pipeline_mode = #tpu.pipeline_mode<synchronous>, transform_indices = @transform_2, window_bounds = array<i64: 1, 128>}, {transform_indices = @transform_3, window_bounds = array<i64: 512, 128>}]} {
    %c0 = arith.constant 0 : index
    %c0_0 = arith.constant 0 : index
    %0 = vector.load %arg1[%c0, %c0_0] : memref<512x288xbf16, #tpu.memory_space<vmem>>, vector<512x288xbf16>
    %c0_1 = arith.constant 0 : index
    %c0_2 = arith.constant 0 : index
    %1 = vector.load %arg2[%c0_1, %c0_2] : memref<288x128xbf16, #tpu.memory_space<vmem>>, vector<288x128xbf16>
    %cst = arith.constant dense<0.000000e+00> : vector<512x128xf32>
    %2 = tpu.matmul %0, %1, %cst {dimension_numbers = #tpu.dot_dimension_numbers<[1], [0], [0], [1], [0, 0, 1, 1], [], []>} : vector<512x288xbf16>, vector<288x128xbf16>, vector<512x128xf32> -> vector<512x128xf32>
    %c0_3 = arith.constant 0 : index
    %c0_4 = arith.constant 0 : index
    %3 = vector.load %arg3[%c0_3, %c0_4] : memref<1x128xf32, #tpu.memory_space<vmem>>, vector<1x128xf32>
    %4 = vector.broadcast %3 : vector<1x128xf32> to vector<512x128xf32>
    %5 = arith.addf %2, %4 : vector<512x128xf32>
    %cst_5 = arith.constant 0.000000e+00 : f32
    %6 = vector.broadcast %cst_5 : f32 to vector<512x128xf32>
    %7 = arith.maximumf %5, %6 : vector<512x128xf32>
    %8 = arith.truncf %7 : vector<512x128xf32> to vector<512x128xbf16>
    %c0_6 = arith.constant 0 : index
    %c0_7 = arith.constant 0 : index
    %9 = vector.load %arg4[%c0_6, %c0_7] : memref<512x128xbf16, #tpu.memory_space<vmem>>, vector<512x128xbf16>
    tpu.vector_store %arg4[%c0_6, %c0_7], %8 {strides = array<i32>} : memref<512x128xbf16, #tpu.memory_space<vmem>>, vector<512x128xbf16>,
    return
  }
  func.func @transform_0(%arg0: i32) -> (i32, i32) {
    %c0_i32 = arith.constant 0 : i32
    %c0_i32_0 = arith.constant 0 : i32
    return %arg0, %c0_i32 : i32, i32
  }
  func.func @transform_1(%arg0: i32) -> (i32, i32) {
    %c0_i32 = arith.constant 0 : i32
    %c0_i32_0 = arith.constant 0 : i32
    %c0_i32_1 = arith.constant 0 : i32
    return %c0_i32, %c0_i32_0 : i32, i32
  }
  func.func @transform_2(%arg0: i32) -> (i32, i32) {
    %c0_i32 = arith.constant 0 : i32
    %c0_i32_0 = arith.constant 0 : i32
    %c0_i32_1 = arith.constant 0 : i32
    return %c0_i32, %c0_i32_0 : i32, i32
  }
  func.func @transform_3(%arg0: i32) -> (i32, i32) {
    %c0_i32 = arith.constant 0 : i32
    %c0_i32_0 = arith.constant 0 : i32
    return %arg0, %c0_i32 : i32, i32
  }
}

module attributes {stable_mosaic.version = 11 : i64} {
  func.func @_matmul_bias_kernel(%arg0: i32, %arg1: memref<1024x288xbf16, #tpu.memory_space<vmem>>, %arg2: memref<288x128xbf16, #tpu.memory_space<vmem>>, %arg3: memref<1x128xf32, #tpu.memory_space<vmem>>, %arg4: memref<1024x128xf32, #tpu.memory_space<vmem>>) attributes {dimension_semantics = [#tpu.dimension_semantics<parallel>], iteration_bounds = array<i64: 2>, scalar_prefetch = 0 : i64, scratch_operands = 0 : i64, tpu.core_type = #tpu.core_type<tc>, window_params = [{transform_indices = @transform_0, window_bounds = array<i64: 1024, 288>}, {pipeline_mode = #tpu.pipeline_mode<synchronous>, transform_indices = @transform_1, window_bounds = array<i64: 288, 128>}, {pipeline_mode = #tpu.pipeline_mode<synchronous>, transform_indices = @transform_2, window_bounds = array<i64: 1, 128>}, {transform_indices = @transform_3, window_bounds = array<i64: 1024, 128>}]} {
    %c0 = arith.constant 0 : index
    %c0_0 = arith.constant 0 : index
    %0 = vector.load %arg1[%c0, %c0_0] : memref<1024x288xbf16, #tpu.memory_space<vmem>>, vector<1024x288xbf16>
    %c0_1 = arith.constant 0 : index
    %c0_2 = arith.constant 0 : index
    %1 = vector.load %arg2[%c0_1, %c0_2] : memref<288x128xbf16, #tpu.memory_space<vmem>>, vector<288x128xbf16>
    %cst = arith.constant dense<0.000000e+00> : vector<1024x128xf32>
    %2 = tpu.matmul %0, %1, %cst {dimension_numbers = #tpu.dot_dimension_numbers<[1], [0], [0], [1], [0, 0, 1, 1], [], []>} : vector<1024x288xbf16>, vector<288x128xbf16>, vector<1024x128xf32> -> vector<1024x128xf32>
    %c0_3 = arith.constant 0 : index
    %c0_4 = arith.constant 0 : index
    %3 = vector.load %arg3[%c0_3, %c0_4] : memref<1x128xf32, #tpu.memory_space<vmem>>, vector<1x128xf32>
    %4 = vector.broadcast %3 : vector<1x128xf32> to vector<1024x128xf32>
    %5 = arith.addf %2, %4 : vector<1024x128xf32>
    %c0_5 = arith.constant 0 : index
    %c0_6 = arith.constant 0 : index
    %6 = vector.load %arg4[%c0_5, %c0_6] : memref<1024x128xf32, #tpu.memory_space<vmem>>, vector<1024x128xf32>
    tpu.vector_store %arg4[%c0_5, %c0_6], %5 {strides = array<i32>} : memref<1024x128xf32, #tpu.memory_space<vmem>>, vector<1024x128xf32>,
    return
  }
  func.func @transform_0(%arg0: i32) -> (i32, i32) {
    %c0_i32 = arith.constant 0 : i32
    %c0_i32_0 = arith.constant 0 : i32
    return %arg0, %c0_i32 : i32, i32
  }
  func.func @transform_1(%arg0: i32) -> (i32, i32) {
    %c0_i32 = arith.constant 0 : i32
    %c0_i32_0 = arith.constant 0 : i32
    %c0_i32_1 = arith.constant 0 : i32
    return %c0_i32, %c0_i32_0 : i32, i32
  }
  func.func @transform_2(%arg0: i32) -> (i32, i32) {
    %c0_i32 = arith.constant 0 : i32
    %c0_i32_0 = arith.constant 0 : i32
    %c0_i32_1 = arith.constant 0 : i32
    return %c0_i32, %c0_i32_0 : i32, i32
  }
  func.func @transform_3(%arg0: i32) -> (i32, i32) {
    %c0_i32 = arith.constant 0 : i32
    %c0_i32_0 = arith.constant 0 : i32
    return %arg0, %c0_i32 : i32, i32
  }
}

</mosaic_0001>

<bundles_post_ra>
// kernel: tile.28
= control target key start
LH: loop header
LB: loop body
LE: loop exit
PB: predicated region body
PF: predicated region fallthrough
CT: control target
= control target key end

     0   :  { %2 = vsyncpa [#allocation1], 0  ;;  %s48_s8 = smov [#allocation0]   ;;  %s65_s0 = inlined_call_operand.hbm [shape: f32[32], index: 0, kind: input, shape index: {}]   ;;  %s66_s1 = inlined_call_operand.vmem [shape: f32[4,32], index: 1, kind: output, shape index: {}]  }
   0x1   :  { %s8_s0 = sshll.u32 %s65_s0, 4  ;;  %s10_s9 = sshll.u32 %s48_s8, 4  ;;  %s9_s0 = int_to_ptr.hbm [resolvable:$true] %s8_s0  ;;  %s11_s9 = int_to_ptr.vmem [resolvable:$true] %s10_s9 }
   0x2   :  { %13 = dma.hbm_to_vmem [thread:$0]  %s9_s0, 16, %s11_s9, [#allocation1]  }
   0x3   :  { %46 = dma.done.wait [#allocation1], 16  }
   0x4   :  { %47 = vsyncadd [#allocation1], 4294967280  ;;  %v18_v0 = vld [vmem:[#allocation0] ss:$0 sm:$0xff] }
   0x5   :  { %19 = vst [vmem:[%s66_s1] sm:$0xf] %v18_v0 }
   0x6   :  { %20 = vsyncpa [#allocation1], 1 }

// kernel: tile.23
= control target key start
LH: loop header
LB: loop body
LE: loop exit
PB: predicated region body
PF: predicated region fallthrough
CT: control target
= control target key end

     0   :  { %2 = vsyncpa [#allocation1], 0  ;;  %s48_s8 = smov [#allocation0]   ;;  %s65_s0 = inlined_call_operand.hbm [shape: f32[64], index: 0, kind: input, shape index: {}]   ;;  %s66_s1 = inlined_call_operand.vmem [shape: f32[4,64], index: 1, kind: output, shape index: {}]  }
   0x1   :  { %s8_s0 = sshll.u32 %s65_s0, 4  ;;  %s10_s9 = sshll.u32 %s48_s8, 4  ;;  %s9_s0 = int_to_ptr.hbm [resolvable:$true] %s8_s0  ;;  %s11_s9 = int_to_ptr.vmem [resolvable:$true] %s10_s9 }
   0x2   :  { %13 = dma.hbm_to_vmem [thread:$0]  %s9_s0, 16, %s11_s9, [#allocation1]  }
   0x3   :  { %46 = dma.done.wait [#allocation1], 16  }
   0x4   :  { %47 = vsyncadd [#allocation1], 4294967280  ;;  %v18_v0 = vld [vmem:[#allocation0] ss:$0 sm:$0xff] }
   0x5   :  { %19 = vst [vmem:[%s66_s1] sm:$0xf] %v18_v0 }
   0x6   :  { %20 = vsyncpa [#allocation1], 1 }

// kernel: tile.38
= control target key start
LH: loop header
LB: loop body
LE: loop exit
PB: predicated region body
PF: predicated region fallthrough
CT: control target
= control target key end

     0   :  { %2 = vsyncpa [#allocation1], 0  ;;  %s48_s8 = smov [#allocation0]   ;;  %s65_s0 = inlined_call_operand.hbm [shape: f32[3], index: 0, kind: input, shape index: {}]   ;;  %s66_s1 = inlined_call_operand.vmem [shape: f32[4,3], index: 1, kind: output, shape index: {}]  }
   0x1   :  { %s8_s0 = sshll.u32 %s65_s0, 4  ;;  %s10_s9 = sshll.u32 %s48_s8, 4  ;;  %s9_s0 = int_to_ptr.hbm [resolvable:$true] %s8_s0  ;;  %s11_s9 = int_to_ptr.vmem [resolvable:$true] %s10_s9 }
   0x2   :  { %13 = dma.hbm_to_vmem [thread:$0]  %s9_s0, 16, %s11_s9, [#allocation1]  }
   0x3   :  { %46 = dma.done.wait [#allocation1], 16  }
   0x4   :  { %47 = vsyncadd [#allocation1], 4294967280  ;;  %v18_v0 = vld [vmem:[#allocation0] ss:$0 sm:$0xff] }
   0x5   :  { %19 = vst [vmem:[%s66_s1] sm:$0xf] %v18_v0 }
   0x6   :  { %20 = vsyncpa [#allocation1], 1 }

// kernel: tile.39
= control target key start
LH: loop header
LB: loop body
LE: loop exit
PB: predicated region body
PF: predicated region fallthrough
CT: control target
= control target key end

     0   :  { %s37_s8 = smov 3   ;;  %s38_s9 = smov 6   ;;  %vm7_vm0 = vcmask 23552   ;;  %vm13_vm1 = vcmask 97352   ;;  %vm19_vm2 = vcmask 72752   ;;  %vm25_vm3 = vcmask 48152   ;;  %s55_s0 = inlined_call_operand.vmem [shape: f32[4,3], index: 0, kind: input, shape index: {}]   ;;  %s56_s1 = inlined_call_operand.vmem [shape: f32[12], index: 1, kind: output, shape index: {}]  }
   0x1   :  { %v4_v0 = vld [vmem:[%s55_s0] sm:$0xf]  ;;  %s36_s0 = smov 9  }
   0x2   :  { %5 = vst [vmem:[#allocation1] sm:$0xf] %v4_v0 }
   0x9   :  { %v10_v1 = vld [vmem:[#allocation1 + $0x3] sm:$0x1]   ;;  %v22_v2 = vld [vmem:[#allocation1 + $0x1] sm:$0x1]   ;;  %v16_v3 = vld [vmem:[#allocation1 + $0x2] sm:$0x1]  }
   0xa   :  { %11 = vrot.lane.b32.xlu0 %v10_v1, %s36_s0  ;;  %23 = vrot.lane.b32.xlu1 %v22_v2, %s37_s8  ;;  %v6_v4 = vld [vmem:[#allocation1] sm:$0x1]  }
   0xb   :  { %8 = vst.msk [vmem:[#allocation0] sm:$0x1] %vm7_vm0, %v6_v4  }
  0x12   :  { %17 = vrot.lane.b32.xlu0 %v16_v3, %s38_s9 }
  0x7c   :  { %v12_v5 = vpop.permute.xlu0 %11   ;;  %v24_v6 = vpop.permute.xlu1 %23  }
  0x7d   :  { %14 = vst.msk [vmem:[#allocation0] sm:$0x1] %vm13_vm1, %v12_v5  }
  0x84   :  { %v18_v7 = vpop.permute.xlu0 %17  }
  0x85   :  { %20 = vst.msk [vmem:[#allocation0] sm:$0x1] %vm19_vm2, %v18_v7  }
  0x86   :  { %26 = vst.msk [vmem:[#allocation0] sm:$0x1] %vm25_vm3, %v24_v6  }
  0x8d   :  { %v29_v8 = vld [vmem:[#allocation0] sm:$0x1] }
  0x8e   :  { %32 = vst [vmem:[%s56_s1] sm:$0x1] %v29_v8 }

// kernel: beta_vae_forward.10
= control target key start
LH: loop header
LB: loop body
LE: loop exit
PB: predicated region body
PF: predicated region fallthrough
CT: control target
= control target key end

     0   :  { %s2453_s12 = smov 0   ;;  %s2804_s0 = inlined_call_operand.vmem [shape: bf16[2048,48], index: 0, kind: input, shape index: {}]   ;;  %s2805_s1 = inlined_call_operand.vmem [shape: bf16[48,128], index: 1, kind: input, shape index: {}]   ;;  %s2806_s2 = inlined_call_operand.vmem [shape: f32[1,128], index: 2, kind: input, shape index: {}]   ;;  %s2807_s3 = inlined_call_operand.vmem [shape: bf16[2048,128], index: 3, kind: output, shape index: {}]  }
   0x1 LB: > { %s1613_s13 = sadd.s32 4294967295, %s2431_s12   ;;  %p1617_p0 = scmp.ge.s32.totalorder %s2431_s12, 1  ;;  %s2431_s12 = sphi %s2453_s12, %s13_s12  }
   0x2   : > { %p138_p1 = scmp.lt.s32.totalorder %s2431_s12, 3 }
   0x4   : > { %p139_p2 = pnand %p1617_p0, %p138_p1 }
   0x5   : > { %s1618_s16 = sshll.u32 (!%p139_p2), %s1613_s13, 7 }
   0x6   : > { %142 = sbr.rel (%p139_p2) target bundleno = 412 (0x19c), region = 32  ;;  %p163_p3 = scmp.lt.s32.totalorder (!%p139_p2), %s1618_s16, 255 }
   0xb   : > { %v2022_v0 = vld [vmem:[%s2805_s1 + $0x10] sm:$0xff]  ;;  %v2021_v1 = vld [vmem:[%s2805_s1 + $0x8] sm:$0xff]  ;;  %s2809_s16 = smov (!%p163_p3, %s1618_s16), 255  ;;  %v2020_v2 = vld [vmem:[%s2805_s1] sm:$0xff]  ;;  %vm651_vm0 = vcmask 392192  }
   0xc   : > { %849 = vmatpush.bf16.msra.mxu0 %v2022_v0  ;;  %2406 = vmatpush.bf16.msra.mxu1 %v2022_v0  ;;  %s1619_s19 = sshll.u32 %s2809_s16, 2  ;;  %v2551_v41 = vld [vmem:[%s2806_s2] ss:$0 sm:$0xff] }
   0xd   : > { %2407 = vmatpush.bf16.msra.mxu2 %v2022_v0  ;;  %2408 = vmatpush.bf16.msra.mxu3 %v2022_v0  ;;  %s2478_s24 = scalar_lea.vmem %s2804_s0, %s1619_s19  ;;  %s2566_s29 = scalar_lea.vmem %s2807_s3, %s1619_s19 }
   0xe   : > { %v1956_v3 = vld [vmem:[%s2478_s24] sm:$0xff]  ;;  %v1957_v7 = vld [vmem:[%s2478_s24 + $0x8] sm:$0xff]  ;;  %v1958_v11 = vld [vmem:[%s2478_s24 + $0x10] sm:$0xff] }
   0xf   : > { %v1972_v4 = vld [vmem:[%s2478_s24 + $0x80] sm:$0xff]  ;;  %v1973_v8 = vld [vmem:[%s2478_s24 + $0x88] sm:$0xff]  ;;  %v1974_v12 = vld [vmem:[%s2478_s24 + $0x90] sm:$0xff] }
  0x10   : > { %850 = vmatpush.bf16.msra.mxu0 %v2021_v1  ;;  %2409 = vmatpush.bf16.msra.mxu1 %v2021_v1  ;;  %v1988_v5 = vld [vmem:[%s2478_s24 + $0x100] sm:$0xff]  ;;  %v1989_v9 = vld [vmem:[%s2478_s24 + $0x108] sm:$0xff]  ;;  %v1990_v13 = vld [vmem:[%s2478_s24 + $0x110] sm:$0xff] }
  0x11   : > { %2410 = vmatpush.bf16.msra.mxu2 %v2021_v1  ;;  %2411 = vmatpush.bf16.msra.mxu3 %v2021_v1  ;;  %v2004_v6 = vld [vmem:[%s2478_s24 + $0x180] sm:$0xff]  ;;  %v2005_v10 = vld [vmem:[%s2478_s24 + $0x188] sm:$0xff]  ;;  %v2006_v14 = vld [vmem:[%s2478_s24 + $0x190] sm:$0xff] }
  0x12   : > { %v1959_v15 = vld [vmem:[%s2478_s24 + $0x18] sm:$0xff]  ;;  %v1960_v19 = vld [vmem:[%s2478_s24 + $0x20] sm:$0xff]  ;;  %v1961_v23 = vld [vmem:[%s2478_s24 + $0x28] sm:$0xff] }
  0x13   : > { %v1975_v16 = vld [vmem:[%s2478_s24 + $0x98] sm:$0xff]  ;;  %v1976_v20 = vld [vmem:[%s2478_s24 + $0xa0] sm:$0xff]  ;;  %v1977_v24 = vld [vmem:[%s2478_s24 + $0xa8] sm:$0xff] }
  0x14   : > { %851 = vmatpush.bf16.msra.mxu0 %v2020_v2  ;;  %2412 = vmatpush.bf16.msra.mxu1 %v2020_v2  ;;  %v1991_v17 = vld [vmem:[%s2478_s24 + $0x118] sm:$0xff]  ;;  %v1992_v21 = vld [vmem:[%s2478_s24 + $0x120] sm:$0xff]  ;;  %v1993_v25 = vld [vmem:[%s2478_s24 + $0x128] sm:$0xff] }
  0x15   : > { %2413 = vmatpush.bf16.msra.mxu2 %v2020_v2  ;;  %2414 = vmatpush.bf16.msra.mxu3 %v2020_v2  ;;  %v2007_v18 = vld [vmem:[%s2478_s24 + $0x198] sm:$0xff]  ;;  %v2008_v22 = vld [vmem:[%s2478_s24 + $0x1a0] sm:$0xff]  ;;  %v2009_v26 = vld [vmem:[%s2478_s24 + $0x1a8] sm:$0xff] }
  0x16   : > { %v1962_v27 = vld [vmem:[%s2478_s24 + $0x30] sm:$0xff]  ;;  %v1963_v31 = vld [vmem:[%s2478_s24 + $0x38] sm:$0xff]  ;;  %v1964_v35 = vld [vmem:[%s2478_s24 + $0x40] sm:$0xff] }
  0x17   : > { %1890 = vmatmul.msk.bf16.vlgmr.msra.gmra.mxu0 %vm651_vm0, %v1956_v3  ;;  %1906 = vmatmul.msk.bf16.vlgmr.msra.gmra.mxu1 %vm651_vm0, %v1972_v4  ;;  %v1978_v28 = vld [vmem:[%s2478_s24 + $0xb0] sm:$0xff]  ;;  %v1979_v32 = vld [vmem:[%s2478_s24 + $0xb8] sm:$0xff]  ;;  %v1980_v36 = vld [vmem:[%s2478_s24 + $0xc0] sm:$0xff] }
  0x18   : > { %1922 = vmatmul.msk.bf16.vlgmr.msra.gmra.mxu2 %vm651_vm0, %v1988_v5  ;;  %1938 = vmatmul.msk.bf16.vlgmr.msra.gmra.mxu3 %vm651_vm0, %v2004_v6  ;;  %v1994_v29 = vld [vmem:[%s2478_s24 + $0x130] sm:$0xff]  ;;  %v1995_v33 = vld [vmem:[%s2478_s24 + $0x138] sm:$0xff]  ;;  %v1996_v39 = vld [vmem:[%s2478_s24 + $0x140] sm:$0xff] }
  0x19   : > { %v2010_v30 = vld [vmem:[%s2478_s24 + $0x1b0] sm:$0xff]  ;;  %v2011_v34 = vld [vmem:[%s2478_s24 + $0x1b8] sm:$0xff]  ;;  %v2012_v40 = vld [vmem:[%s2478_s24 + $0x1c0] sm:$0xff] }
  0x1a   : > { %v1965_v60 = vld [vmem:[%s2478_s24 + $0x48] sm:$0xff] }
  0x1b   : > { %v1981_v61 = vld [vmem:[%s2478_s24 + $0xc8] sm:$0xff] }
  0x1c   : > { %v1997_v2 = vld [vmem:[%s2478_s24 + $0x148] sm:$0xff] }
  0x1d   : > { %v2013_v3 = vld [vmem:[%s2478_s24 + $0x1c8] sm:$0xff] }
  0x27   : > { %1891 = vmatmul.msk.bf16.gmra.mxu0 %vm651_vm0, %v1957_v7  ;;  %1907 = vmatmul.msk.bf16.gmra.mxu1 %vm651_vm0, %v1973_v8 }
  0x28   : > { %1923 = vmatmul.msk.bf16.gmra.mxu2 %vm651_vm0, %v1989_v9  ;;  %1939 = vmatmul.msk.bf16.gmra.mxu3 %vm651_vm0, %v2005_v10 }
  0x37   : > { %1892 = vmatmul.msk.bf16.gmra.mxu0 %vm651_vm0, %v1958_v11  ;;  %1908 = vmatmul.msk.bf16.gmra.mxu1 %vm651_vm0, %v1974_v12 }
  0x38   : > { %1924 = vmatmul.msk.bf16.gmra.mxu2 %vm651_vm0, %v1990_v13  ;;  %1940 = vmatmul.msk.bf16.gmra.mxu3 %vm651_vm0, %v2006_v14 }
  0x47   : > { %1893 = vmatmul.msk.bf16.gmra.mxu0 %vm651_vm0, %v1959_v15  ;;  %1909 = vmatmul.msk.bf16.gmra.mxu1 %vm651_vm0, %v1975_v16 }
  0x48   : > { %1925 = vmatmul.msk.bf16.gmra.mxu2 %vm651_vm0, %v1991_v17  ;;  %1941 = vmatmul.msk.bf16.gmra.mxu3 %vm651_vm0, %v2007_v18 }
  0x57   : > { %1894 = vmatmul.msk.bf16.gmra.mxu0 %vm651_vm0, %v1960_v19  ;;  %1910 = vmatmul.msk.bf16.gmra.mxu1 %vm651_vm0, %v1976_v20 }
  0x58   : > { %1926 = vmatmul.msk.bf16.gmra.mxu2 %vm651_vm0, %v1992_v21  ;;  %1942 = vmatmul.msk.bf16.gmra.mxu3 %vm651_vm0, %v2008_v22 }
  0x67   : > { %1895 = vmatmul.msk.bf16.gmra.mxu0 %vm651_vm0, %v1961_v23  ;;  %1911 = vmatmul.msk.bf16.gmra.mxu1 %vm651_vm0, %v1977_v24 }
  0x68   : > { %1927 = vmatmul.msk.bf16.gmra.mxu2 %vm651_vm0, %v1993_v25  ;;  %1943 = vmatmul.msk.bf16.gmra.mxu3 %vm651_vm0, %v2009_v26 }
  0x77   : > { %1896 = vmatmul.msk.bf16.gmra.mxu0 %vm651_vm0, %v1962_v27  ;;  %1912 = vmatmul.msk.bf16.gmra.mxu1 %vm651_vm0, %v1978_v28  ;;  %v1966_v28 = vld [vmem:[%s2478_s24 + $0x50] sm:$0xff] }
  0x78   : > { %1928 = vmatmul.msk.bf16.gmra.mxu2 %vm651_vm0, %v1994_v29  ;;  %1944 = vmatmul.msk.bf16.gmra.mxu3 %vm651_vm0, %v2010_v30  ;;  %v1982_v29 = vld [vmem:[%s2478_s24 + $0xd0] sm:$0xff] }
  0x87   : > { %1897 = vmatmul.msk.bf16.gmra.mxu0 %vm651_vm0, %v1963_v31  ;;  %1913 = vmatmul.msk.bf16.gmra.mxu1 %vm651_vm0, %v1979_v32 }
  0x88   : > { %1929 = vmatmul.msk.bf16.gmra.mxu2 %vm651_vm0, %v1995_v33  ;;  %1945 = vmatmul.msk.bf16.gmra.mxu3 %vm651_vm0, %v2011_v34  ;;  %v1998_v34 = vld [vmem:[%s2478_s24 + $0x150] sm:$0xff] }
  0x94   : > { %v853_v37 = vpop.f32.mrf.mxu0  ;;  %v933_v38 = vpop.f32.mrf.mxu1 }
  0x95   : > { %v854_v42 = vadd.f32 %v2551_v41, %v853_v37  ;;  %v934_v43 = vadd.f32 %v2551_v41, %v933_v38 }
  0x97   : > { %1898 = vmatmul.msk.bf16.gmra.mxu0 %vm651_vm0, %v1964_v35  ;;  %1914 = vmatmul.msk.bf16.gmra.mxu1 %vm651_vm0, %v1980_v36  ;;  %v1173_v50 = vmax.f32 %v854_v42, 0.0  ;;  %v1205_v51 = vmax.f32 %v934_v43, 0.0  ;;  %v2014_v35 = vld [vmem:[%s2478_s24 + $0x1d0] sm:$0xff] }
  0x98   : > { %1930 = vmatmul.msk.bf16.gmra.mxu2 %vm651_vm0, %v1996_v39  ;;  %1946 = vmatmul.msk.bf16.gmra.mxu3 %vm651_vm0, %v2012_v40 }
  0x9b   : > { %v1013_v44 = vpop.f32.mrf.mxu2  ;;  %v1093_v45 = vpop.f32.mrf.mxu3 }
  0x9c   : > { %v855_v46 = vpop.f32.mrf.mxu0  ;;  %v935_v47 = vpop.f32.mrf.mxu1  ;;  %v1014_v56 = vadd.f32 %v2551_v41, %v1013_v44  ;;  %v1094_v57 = vadd.f32 %v2551_v41, %v1093_v45 }
  0x9d   : > { %v856_v48 = vadd.f32 %v2551_v41, %v855_v46  ;;  %v936_v49 = vadd.f32 %v2551_v41, %v935_v47 }
  0x9e   : > { %v1237_v4 = vmax.f32 %v1014_v56, 0.0  ;;  %v1269_v5 = vmax.f32 %v1094_v57, 0.0 }
  0x9f   : > { %v1174_v52 = vmax.f32 %v856_v48, 0.0  ;;  %v1206_v53 = vmax.f32 %v936_v49, 0.0 }
  0xa1   : > { %v2026_v54 = vpack.c.bf16 %v1174_v52, %v1173_v50  ;;  %v2106_v55 = vpack.c.bf16 %v1206_v53, %v1205_v51 }
  0xa3   : > { %2027 = vst [vmem:[%s2566_s29] sm:$0xff] %v2026_v54   ;;  %v1015_v58 = vpop.f32.mrf.mxu2  ;;  %v1095_v59 = vpop.f32.mrf.mxu3 }
  0xa4   : > { %2358 = vst [vmem:[%s2566_s29 + $0x80] sm:$0xff] %v2106_v55   ;;  %v1016_v62 = vadd.f32 %v2551_v41, %v1015_v58  ;;  %v1096_v63 = vadd.f32 %v2551_v41, %v1095_v59  ;;  %v858_v0 = vpop.f32.mrf.mxu0  ;;  %v938_v1 = vpop.f32.mrf.mxu1 }
  0xa5   : > { %v859_v10 = vadd.f32 %v2551_v41, %v858_v0  ;;  %v939_v11 = vadd.f32 %v2551_v41, %v938_v1 }
  0xa6   : > { %v1238_v6 = vmax.f32 %v1016_v62, 0.0  ;;  %v1270_v7 = vmax.f32 %v1096_v63, 0.0  ;;  %v1983_v62 = vld [vmem:[%s2478_s24 + $0xd8] sm:$0xff] }
  0xa7   : > { %1899 = vmatmul.msk.bf16.gmra.mxu0 %vm651_vm0, %v1965_v60  ;;  %1915 = vmatmul.msk.bf16.gmra.mxu1 %vm651_vm0, %v1981_v61  ;;  %v1175_v18 = vmax.f32 %v859_v10, 0.0  ;;  %v1207_v19 = vmax.f32 %v939_v11, 0.0  ;;  %v1967_v61 = vld [vmem:[%s2478_s24 + $0x58] sm:$0xff] }
  0xa8   : > { %v2186_v8 = vpack.c.bf16 %v1238_v6, %v1237_v4  ;;  %v2266_v9 = vpack.c.bf16 %v1270_v7, %v1269_v5  ;;  %1931 = vmatmul.msk.bf16.gmra.mxu2 %vm651_vm0, %v1997_v2  ;;  %1947 = vmatmul.msk.bf16.gmra.mxu3 %vm651_vm0, %v2013_v3  ;;  %v1999_v3 = vld [vmem:[%s2478_s24 + $0x158] sm:$0xff] }
  0xa9   : > { %v2015_v4 = vld [vmem:[%s2478_s24 + $0x1d8] sm:$0xff] }
  0xaa   : > { %2374 = vst [vmem:[%s2566_s29 + $0x100] sm:$0xff] %v2186_v8  }
  0xab   : > { %2390 = vst [vmem:[%s2566_s29 + $0x180] sm:$0xff] %v2266_v9   ;;  %v1018_v12 = vpop.f32.mrf.mxu2  ;;  %v1098_v13 = vpop.f32.mrf.mxu3 }
  0xac   : > { %v860_v14 = vpop.f32.mrf.mxu0  ;;  %v940_v15 = vpop.f32.mrf.mxu1  ;;  %v1019_v24 = vadd.f32 %v2551_v41, %v1018_v12  ;;  %v1099_v25 = vadd.f32 %v2551_v41, %v1098_v13 }
  0xad   : > { %v861_v16 = vadd.f32 %v2551_v41, %v860_v14  ;;  %v941_v17 = vadd.f32 %v2551_v41, %v940_v15 }
  0xae   : > { %v1239_v36 = vmax.f32 %v1019_v24, 0.0  ;;  %v1271_v37 = vmax.f32 %v1099_v25, 0.0 }
  0xaf   : > { %v1176_v20 = vmax.f32 %v861_v16, 0.0  ;;  %v1208_v21 = vmax.f32 %v941_v17, 0.0 }
  0xb1   : > { %v2031_v22 = vpack.c.bf16 %v1176_v20, %v1175_v18  ;;  %v2111_v23 = vpack.c.bf16 %v1208_v21, %v1207_v19 }
  0xb3   : > { %2343 = vst [vmem:[%s2566_s29 + $0x8] sm:$0xff] %v2031_v22   ;;  %v1020_v26 = vpop.f32.mrf.mxu2  ;;  %v1100_v27 = vpop.f32.mrf.mxu3 }
  0xb4   : > { %2359 = vst [vmem:[%s2566_s29 + $0x88] sm:$0xff] %v2111_v23   ;;  %v1021_v30 = vadd.f32 %v2551_v41, %v1020_v26  ;;  %v1101_v31 = vadd.f32 %v2551_v41, %v1100_v27  ;;  %v863_v32 = vpop.f32.mrf.mxu0  ;;  %v943_v33 = vpop.f32.mrf.mxu1 }
  0xb5   : > { %v864_v43 = vadd.f32 %v2551_v41, %v863_v32  ;;  %v944_v44 = vadd.f32 %v2551_v41, %v943_v33 }
  0xb6   : > { %v1240_v38 = vmax.f32 %v1021_v30, 0.0  ;;  %v1272_v39 = vmax.f32 %v1101_v31, 0.0  ;;  %v1984_v30 = vld [vmem:[%s2478_s24 + $0xe0] sm:$0xff] }
  0xb7   : > { %1900 = vmatmul.msk.bf16.gmra.mxu0 %vm651_vm0, %v1966_v28  ;;  %1916 = vmatmul.msk.bf16.gmra.mxu1 %vm651_vm0, %v1982_v29  ;;  %v1177_v51 = vmax.f32 %v864_v43, 0.0  ;;  %v1209_v52 = vmax.f32 %v944_v44, 0.0  ;;  %v1968_v29 = vld [vmem:[%s2478_s24 + $0x60] sm:$0xff] }
  0xb8   : > { %v2191_v40 = vpack.c.bf16 %v1240_v38, %v1239_v36  ;;  %v2271_v42 = vpack.c.bf16 %v1272_v39, %v1271_v37  ;;  %1932 = vmatmul.msk.bf16.gmra.mxu2 %vm651_vm0, %v1998_v34  ;;  %1948 = vmatmul.msk.bf16.gmra.mxu3 %vm651_vm0, %v2014_v35  ;;  %v2000_v35 = vld [vmem:[%s2478_s24 + $0x160] sm:$0xff] }
  0xb9   : > { %v2016_v36 = vld [vmem:[%s2478_s24 + $0x1e0] sm:$0xff] }
  0xba   : > { %2375 = vst [vmem:[%s2566_s29 + $0x108] sm:$0xff] %v2191_v40  }
  0xbb   : > { %2391 = vst [vmem:[%s2566_s29 + $0x188] sm:$0xff] %v2271_v42   ;;  %v1023_v45 = vpop.f32.mrf.mxu2  ;;  %v1103_v46 = vpop.f32.mrf.mxu3 }
  0xbc   : > { %v865_v47 = vpop.f32.mrf.mxu0  ;;  %v945_v48 = vpop.f32.mrf.mxu1  ;;  %v1024_v57 = vadd.f32 %v2551_v41, %v1023_v45  ;;  %v1104_v58 = vadd.f32 %v2551_v41, %v1103_v46 }
  0xbd   : > { %v866_v49 = vadd.f32 %v2551_v41, %v865_v47  ;;  %v946_v50 = vadd.f32 %v2551_v41, %v945_v48 }
  0xbe   : > { %v1241_v5 = vmax.f32 %v1024_v57, 0.0  ;;  %v1273_v6 = vmax.f32 %v1104_v58, 0.0 }
  0xbf   : > { %v1178_v53 = vmax.f32 %v866_v49, 0.0  ;;  %v1210_v54 = vmax.f32 %v946_v50, 0.0 }
  0xc1   : > { %v2036_v55 = vpack.c.bf16 %v1178_v53, %v1177_v51  ;;  %v2116_v56 = vpack.c.bf16 %v1210_v54, %v1209_v52 }
  0xc3   : > { %2344 = vst [vmem:[%s2566_s29 + $0x10] sm:$0xff] %v2036_v55   ;;  %v1025_v59 = vpop.f32.mrf.mxu2  ;;  %v1105_v60 = vpop.f32.mrf.mxu3 }
  0xc4   : > { %2360 = vst [vmem:[%s2566_s29 + $0x90] sm:$0xff] %v2116_v56   ;;  %v1026_v63 = vadd.f32 %v2551_v41, %v1025_v59  ;;  %v1106_v0 = vadd.f32 %v2551_v41, %v1105_v60  ;;  %v868_v1 = vpop.f32.mrf.mxu0  ;;  %v948_v2 = vpop.f32.mrf.mxu1 }
  0xc5   : > { %v869_v11 = vadd.f32 %v2551_v41, %v868_v1  ;;  %v949_v12 = vadd.f32 %v2551_v41, %v948_v2 }
  0xc6   : > { %v1242_v7 = vmax.f32 %v1026_v63, 0.0  ;;  %v1274_v8 = vmax.f32 %v1106_v0, 0.0  ;;  %v1985_v63 = vld [vmem:[%s2478_s24 + $0xe8] sm:$0xff] }
  0xc7   : > { %1901 = vmatmul.msk.bf16.gmra.mxu0 %vm651_vm0, %v1967_v61  ;;  %1917 = vmatmul.msk.bf16.gmra.mxu1 %vm651_vm0, %v1983_v62  ;;  %v1179_v19 = vmax.f32 %v869_v11, 0.0  ;;  %v1211_v20 = vmax.f32 %v949_v12, 0.0  ;;  %v1969_v62 = vld [vmem:[%s2478_s24 + $0x68] sm:$0xff] }
  0xc8   : > { %v2196_v9 = vpack.c.bf16 %v1242_v7, %v1241_v5  ;;  %v2276_v10 = vpack.c.bf16 %v1274_v8, %v1273_v6  ;;  %1933 = vmatmul.msk.bf16.gmra.mxu2 %vm651_vm0, %v1999_v3  ;;  %1949 = vmatmul.msk.bf16.gmra.mxu3 %vm651_vm0, %v2015_v4  ;;  %v2001_v4 = vld [vmem:[%s2478_s24 + $0x168] sm:$0xff] }
  0xc9   : > { %v2017_v5 = vld [vmem:[%s2478_s24 + $0x1e8] sm:$0xff] }
  0xca   : > { %2376 = vst [vmem:[%s2566_s29 + $0x110] sm:$0xff] %v2196_v9  }
  0xcb   : > { %2392 = vst [vmem:[%s2566_s29 + $0x190] sm:$0xff] %v2276_v10   ;;  %v1028_v13 = vpop.f32.mrf.mxu2  ;;  %v1108_v14 = vpop.f32.mrf.mxu3 }
  0xcc   : > { %v870_v15 = vpop.f32.mrf.mxu0  ;;  %v950_v16 = vpop.f32.mrf.mxu1  ;;  %v1029_v25 = vadd.f32 %v2551_v41, %v1028_v13  ;;  %v1109_v26 = vadd.f32 %v2551_v41, %v1108_v14 }
  0xcd   : > { %v871_v17 = vadd.f32 %v2551_v41, %v870_v15  ;;  %v951_v18 = vadd.f32 %v2551_v41, %v950_v16 }
  0xce   : > { %v1243_v37 = vmax.f32 %v1029_v25, 0.0  ;;  %v1275_v38 = vmax.f32 %v1109_v26, 0.0 }
  0xcf   : > { %v1180_v21 = vmax.f32 %v871_v17, 0.0  ;;  %v1212_v22 = vmax.f32 %v951_v18, 0.0 }
  0xd1   : > { %v2041_v23 = vpack.c.bf16 %v1180_v21, %v1179_v19  ;;  %v2121_v24 = vpack.c.bf16 %v1212_v22, %v1211_v20 }
  0xd3   : > { %2345 = vst [vmem:[%s2566_s29 + $0x18] sm:$0xff] %v2041_v23   ;;  %v1030_v27 = vpop.f32.mrf.mxu2  ;;  %v1110_v28 = vpop.f32.mrf.mxu3 }
  0xd4   : > { %2361 = vst [vmem:[%s2566_s29 + $0x98] sm:$0xff] %v2121_v24   ;;  %v1031_v31 = vadd.f32 %v2551_v41, %v1030_v27  ;;  %v1111_v32 = vadd.f32 %v2551_v41, %v1110_v28  ;;  %v873_v33 = vpop.f32.mrf.mxu0  ;;  %v953_v34 = vpop.f32.mrf.mxu1 }
  0xd5   : > { %v874_v44 = vadd.f32 %v2551_v41, %v873_v33  ;;  %v954_v45 = vadd.f32 %v2551_v41, %v953_v34 }
  0xd6   : > { %v1244_v39 = vmax.f32 %v1031_v31, 0.0  ;;  %v1276_v40 = vmax.f32 %v1111_v32, 0.0  ;;  %v1986_v31 = vld [vmem:[%s2478_s24 + $0xf0] sm:$0xff] }
  0xd7   : > { %1902 = vmatmul.msk.bf16.gmra.mxu0 %vm651_vm0, %v1968_v29  ;;  %1918 = vmatmul.msk.bf16.gmra.mxu1 %vm651_vm0, %v1984_v30  ;;  %v1181_v52 = vmax.f32 %v874_v44, 0.0  ;;  %v1213_v53 = vmax.f32 %v954_v45, 0.0  ;;  %v1970_v30 = vld [vmem:[%s2478_s24 + $0x70] sm:$0xff] }
  0xd8   : > { %v2201_v42 = vpack.c.bf16 %v1244_v39, %v1243_v37  ;;  %v2281_v43 = vpack.c.bf16 %v1276_v40, %v1275_v38  ;;  %1934 = vmatmul.msk.bf16.gmra.mxu2 %vm651_vm0, %v2000_v35  ;;  %1950 = vmatmul.msk.bf16.gmra.mxu3 %vm651_vm0, %v2016_v36  ;;  %v2002_v36 = vld [vmem:[%s2478_s24 + $0x170] sm:$0xff] }
  0xd9   : > { %v2018_v37 = vld [vmem:[%s2478_s24 + $0x1f0] sm:$0xff] }
  0xda   : > { %2377 = vst [vmem:[%s2566_s29 + $0x118] sm:$0xff] %v2201_v42  }
  0xdb   : > { %2393 = vst [vmem:[%s2566_s29 + $0x198] sm:$0xff] %v2281_v43   ;;  %v1033_v46 = vpop.f32.mrf.mxu2  ;;  %v1113_v47 = vpop.f32.mrf.mxu3 }
  0xdc   : > { %v875_v48 = vpop.f32.mrf.mxu0  ;;  %v955_v49 = vpop.f32.mrf.mxu1  ;;  %v1034_v58 = vadd.f32 %v2551_v41, %v1033_v46  ;;  %v1114_v59 = vadd.f32 %v2551_v41, %v1113_v47 }
  0xdd   : > { %v876_v50 = vadd.f32 %v2551_v41, %v875_v48  ;;  %v956_v51 = vadd.f32 %v2551_v41, %v955_v49 }
  0xde   : > { %v1245_v6 = vmax.f32 %v1034_v58, 0.0  ;;  %v1277_v7 = vmax.f32 %v1114_v59, 0.0 }
  0xdf   : > { %v1182_v54 = vmax.f32 %v876_v50, 0.0  ;;  %v1214_v55 = vmax.f32 %v956_v51, 0.0 }
  0xe1   : > { %v2046_v56 = vpack.c.bf16 %v1182_v54, %v1181_v52  ;;  %v2126_v57 = vpack.c.bf16 %v1214_v55, %v1213_v53 }
  0xe3   : > { %2346 = vst [vmem:[%s2566_s29 + $0x20] sm:$0xff] %v2046_v56   ;;  %v1035_v60 = vpop.f32.mrf.mxu2  ;;  %v1115_v61 = vpop.f32.mrf.mxu3 }
  0xe4   : > { %2362 = vst [vmem:[%s2566_s29 + $0xa0] sm:$0xff] %v2126_v57   ;;  %v1036_v0 = vadd.f32 %v2551_v41, %v1035_v60  ;;  %v1116_v1 = vadd.f32 %v2551_v41, %v1115_v61  ;;  %v878_v2 = vpop.f32.mrf.mxu0  ;;  %v958_v3 = vpop.f32.mrf.mxu1 }
  0xe5   : > { %v879_v12 = vadd.f32 %v2551_v41, %v878_v2  ;;  %v959_v13 = vadd.f32 %v2551_v41, %v958_v3 }
  0xe6   : > { %v1246_v8 = vmax.f32 %v1036_v0, 0.0  ;;  %v1278_v9 = vmax.f32 %v1116_v1, 0.0  ;;  %v1987_v0 = vld [vmem:[%s2478_s24 + $0xf8] sm:$0xff] }
  0xe7   : > { %1903 = vmatmul.msk.bf16.gmra.mxu0 %vm651_vm0, %v1969_v62  ;;  %1919 = vmatmul.msk.bf16.gmra.mxu1 %vm651_vm0, %v1985_v63  ;;  %v1183_v20 = vmax.f32 %v879_v12, 0.0  ;;  %v1215_v21 = vmax.f32 %v959_v13, 0.0  ;;  %v1971_v63 = vld [vmem:[%s2478_s24 + $0x78] sm:$0xff] }
  0xe8   : > { %v2206_v10 = vpack.c.bf16 %v1246_v8, %v1245_v6  ;;  %v2286_v11 = vpack.c.bf16 %v1278_v9, %v1277_v7  ;;  %1935 = vmatmul.msk.bf16.gmra.mxu2 %vm651_vm0, %v2001_v4  ;;  %1951 = vmatmul.msk.bf16.gmra.mxu3 %vm651_vm0, %v2017_v5  ;;  %v2003_v5 = vld [vmem:[%s2478_s24 + $0x178] sm:$0xff] }
  0xe9   : > { %v2019_v6 = vld [vmem:[%s2478_s24 + $0x1f8] sm:$0xff] }
  0xea   : > { %2378 = vst [vmem:[%s2566_s29 + $0x120] sm:$0xff] %v2206_v10  }
  0xeb   : > { %2394 = vst [vmem:[%s2566_s29 + $0x1a0] sm:$0xff] %v2286_v11   ;;  %v1038_v14 = vpop.f32.mrf.mxu2  ;;  %v1118_v15 = vpop.f32.mrf.mxu3 }
  0xec   : > { %v880_v16 = vpop.f32.mrf.mxu0  ;;  %v960_v17 = vpop.f32.mrf.mxu1  ;;  %v1039_v26 = vadd.f32 %v2551_v41, %v1038_v14  ;;  %v1119_v27 = vadd.f32 %v2551_v41, %v1118_v15 }
  0xed   : > { %v881_v18 = vadd.f32 %v2551_v41, %v880_v16  ;;  %v961_v19 = vadd.f32 %v2551_v41, %v960_v17 }
  0xee   : > { %v1247_v38 = vmax.f32 %v1039_v26, 0.0  ;;  %v1279_v39 = vmax.f32 %v1119_v27, 0.0 }
  0xef   : > { %v1184_v22 = vmax.f32 %v881_v18, 0.0  ;;  %v1216_v23 = vmax.f32 %v961_v19, 0.0 }
  0xf1   : > { %v2051_v24 = vpack.c.bf16 %v1184_v22, %v1183_v20  ;;  %v2131_v25 = vpack.c.bf16 %v1216_v23, %v1215_v21 }
  0xf3   : > { %2347 = vst [vmem:[%s2566_s29 + $0x28] sm:$0xff] %v2051_v24   ;;  %v1040_v28 = vpop.f32.mrf.mxu2  ;;  %v1120_v29 = vpop.f32.mrf.mxu3 }
  0xf4   : > { %2363 = vst [vmem:[%s2566_s29 + $0xa8] sm:$0xff] %v2131_v25   ;;  %v1041_v32 = vadd.f32 %v2551_v41, %v1040_v28  ;;  %v1121_v33 = vadd.f32 %v2551_v41, %v1120_v29  ;;  %v883_v34 = vpop.f32.mrf.mxu0  ;;  %v963_v35 = vpop.f32.mrf.mxu1 }
  0xf5   : > { %v884_v45 = vadd.f32 %v2551_v41, %v883_v34  ;;  %v964_v46 = vadd.f32 %v2551_v41, %v963_v35 }
  0xf6   : > { %v1248_v40 = vmax.f32 %v1041_v32, 0.0  ;;  %v1280_v42 = vmax.f32 %v1121_v33, 0.0 }
  0xf7   : > { %1904 = vmatmul.msk.bf16.gmra.mxu0 %vm651_vm0, %v1970_v30  ;;  %1920 = vmatmul.msk.bf16.gmra.mxu1 %vm651_vm0, %v1986_v31  ;;  %v1185_v53 = vmax.f32 %v884_v45, 0.0  ;;  %v1217_v54 = vmax.f32 %v964_v46, 0.0 }
  0xf8   : > { %v2211_v43 = vpack.c.bf16 %v1248_v40, %v1247_v38  ;;  %v2291_v44 = vpack.c.bf16 %v1280_v42, %v1279_v39  ;;  %1936 = vmatmul.msk.bf16.gmra.mxu2 %vm651_vm0, %v2002_v36  ;;  %1952 = vmatmul.msk.bf16.gmra.mxu3 %vm651_vm0, %v2018_v37 }
  0xfa   : > { %2379 = vst [vmem:[%s2566_s29 + $0x128] sm:$0xff] %v2211_v43  }
  0xfb   : > { %2395 = vst [vmem:[%s2566_s29 + $0x1a8] sm:$0xff] %v2291_v44   ;;  %v1043_v47 = vpop.f32.mrf.mxu2  ;;  %v1123_v48 = vpop.f32.mrf.mxu3 }
  0xfc   : > { %v885_v49 = vpop.f32.mrf.mxu0  ;;  %v965_v50 = vpop.f32.mrf.mxu1  ;;  %v1044_v59 = vadd.f32 %v2551_v41, %v1043_v47  ;;  %v1124_v60 = vadd.f32 %v2551_v41, %v1123_v48 }
  0xfd   : > { %v886_v51 = vadd.f32 %v2551_v41, %v885_v49  ;;  %v966_v52 = vadd.f32 %v2551_v41, %v965_v50 }
  0xfe   : > { %v1249_v7 = vmax.f32 %v1044_v59, 0.0  ;;  %v1281_v8 = vmax.f32 %v1124_v60, 0.0 }
  0xff   : > { %v1186_v55 = vmax.f32 %v886_v51, 0.0  ;;  %v1218_v56 = vmax.f32 %v966_v52, 0.0 }
 0x101   : > { %v2056_v57 = vpack.c.bf16 %v1186_v55, %v1185_v53  ;;  %v2136_v58 = vpack.c.bf16 %v1218_v56, %v1217_v54 }
 0x103   : > { %2348 = vst [vmem:[%s2566_s29 + $0x30] sm:$0xff] %v2056_v57   ;;  %v1045_v61 = vpop.f32.mrf.mxu2  ;;  %v1125_v62 = vpop.f32.mrf.mxu3 }
 0x104   : > { %2364 = vst [vmem:[%s2566_s29 + $0xb0] sm:$0xff] %v2136_v58   ;;  %v1046_v1 = vadd.f32 %v2551_v41, %v1045_v61  ;;  %v1126_v2 = vadd.f32 %v2551_v41, %v1125_v62  ;;  %v888_v3 = vpop.f32.mrf.mxu0  ;;  %v968_v4 = vpop.f32.mrf.mxu1 }
 0x105   : > { %v889_v13 = vadd.f32 %v2551_v41, %v888_v3  ;;  %v969_v14 = vadd.f32 %v2551_v41, %v968_v4 }
 0x106   : > { %v1250_v9 = vmax.f32 %v1046_v1, 0.0  ;;  %v1282_v10 = vmax.f32 %v1126_v2, 0.0 }
 0x107   : > { %1905 = vmatmul.msk.bf16.gmra.mxu0 %vm651_vm0, %v1971_v63  ;;  %1921 = vmatmul.msk.bf16.gmra.mxu1 %vm651_vm0, %v1987_v0  ;;  %v1187_v21 = vmax.f32 %v889_v13, 0.0  ;;  %v1219_v22 = vmax.f32 %v969_v14, 0.0 }
 0x108   : > { %v2216_v11 = vpack.c.bf16 %v1250_v9, %v1249_v7  ;;  %v2296_v12 = vpack.c.bf16 %v1282_v10, %v1281_v8  ;;  %1937 = vmatmul.msk.bf16.gmra.mxu2 %vm651_vm0, %v2003_v5  ;;  %1953 = vmatmul.msk.bf16.gmra.mxu3 %vm651_vm0, %v2019_v6 }
 0x10a   : > { %2380 = vst [vmem:[%s2566_s29 + $0x130] sm:$0xff] %v2216_v11  }
 0x10b   : > { %2396 = vst [vmem:[%s2566_s29 + $0x1b0] sm:$0xff] %v2296_v12   ;;  %v1048_v15 = vpop.f32.mrf.mxu2  ;;  %v1128_v16 = vpop.f32.mrf.mxu3 }
 0x10c   : > { %v890_v17 = vpop.f32.mrf.mxu0  ;;  %v970_v18 = vpop.f32.mrf.mxu1  ;;  %v1049_v27 = vadd.f32 %v2551_v41, %v1048_v15  ;;  %v1129_v28 = vadd.f32 %v2551_v41, %v1128_v16 }
 0x10d   : > { %v891_v19 = vadd.f32 %v2551_v41, %v890_v17  ;;  %v971_v20 = vadd.f32 %v2551_v41, %v970_v18 }
 0x10e   : > { %v1251_v35 = vmax.f32 %v1049_v27, 0.0  ;;  %v1283_v36 = vmax.f32 %v1129_v28, 0.0 }
 0x10f   : > { %v1188_v23 = vmax.f32 %v891_v19, 0.0  ;;  %v1220_v24 = vmax.f32 %v971_v20, 0.0 }
 0x111   : > { %v2061_v25 = vpack.c.bf16 %v1188_v23, %v1187_v21  ;;  %v2141_v26 = vpack.c.bf16 %v1220_v24, %v1219_v22 }
 0x113   : > { %2349 = vst [vmem:[%s2566_s29 + $0x38] sm:$0xff] %v2061_v25   ;;  %v1050_v29 = vpop.f32.mrf.mxu2  ;;  %v1130_v30 = vpop.f32.mrf.mxu3 }
 0x114   : > { %2365 = vst [vmem:[%s2566_s29 + $0xb8] sm:$0xff] %v2141_v26   ;;  %v1051_v31 = vadd.f32 %v2551_v41, %v1050_v29  ;;  %v1131_v32 = vadd.f32 %v2551_v41, %v1130_v30  ;;  %v893_v33 = vpop.f32.mrf.mxu0  ;;  %v973_v34 = vpop.f32.mrf.mxu1 }
 0x115   : > { %v894_v42 = vadd.f32 %v2551_v41, %v893_v33  ;;  %v974_v43 = vadd.f32 %v2551_v41, %v973_v34 }
 0x116   : > { %v1252_v37 = vmax.f32 %v1051_v31, 0.0  ;;  %v1284_v38 = vmax.f32 %v1131_v32, 0.0 }
 0x117   : > { %v1189_v50 = vmax.f32 %v894_v42, 0.0  ;;  %v1221_v51 = vmax.f32 %v974_v43, 0.0 }
 0x118   : > { %v2221_v39 = vpack.c.bf16 %v1252_v37, %v1251_v35  ;;  %v2301_v40 = vpack.c.bf16 %v1284_v38, %v1283_v36 }
 0x11a   : > { %2381 = vst [vmem:[%s2566_s29 + $0x138] sm:$0xff] %v2221_v39  }
 0x11b   : > { %2397 = vst [vmem:[%s2566_s29 + $0x1b8] sm:$0xff] %v2301_v40   ;;  %v1053_v44 = vpop.f32.mrf.mxu2  ;;  %v1133_v45 = vpop.f32.mrf.mxu3 }
 0x11c   : > { %v895_v46 = vpop.f32.mrf.mxu0  ;;  %v975_v47 = vpop.f32.mrf.mxu1  ;;  %v1054_v56 = vadd.f32 %v2551_v41, %v1053_v44  ;;  %v1134_v57 = vadd.f32 %v2551_v41, %v1133_v45 }
 0x11d   : > { %v896_v48 = vadd.f32 %v2551_v41, %v895_v46  ;;  %v976_v49 = vadd.f32 %v2551_v41, %v975_v47 }
 0x11e   : > { %v1253_v0 = vmax.f32 %v1054_v56, 0.0  ;;  %v1285_v1 = vmax.f32 %v1134_v57, 0.0 }
 0x11f   : > { %v1190_v52 = vmax.f32 %v896_v48, 0.0  ;;  %v1222_v53 = vmax.f32 %v976_v49, 0.0 }
 0x121   : > { %v2066_v54 = vpack.c.bf16 %v1190_v52, %v1189_v50  ;;  %v2146_v55 = vpack.c.bf16 %v1222_v53, %v1221_v51 }
 0x123   : > { %2350 = vst [vmem:[%s2566_s29 + $0x40] sm:$0xff] %v2066_v54   ;;  %v1055_v58 = vpop.f32.mrf.mxu2  ;;  %v1135_v59 = vpop.f32.mrf.mxu3 }
 0x124   : > { %2366 = vst [vmem:[%s2566_s29 + $0xc0] sm:$0xff] %v2146_v55   ;;  %v1056_v60 = vadd.f32 %v2551_v41, %v1055_v58  ;;  %v1136_v61 = vadd.f32 %v2551_v41, %v1135_v59  ;;  %v898_v62 = vpop.f32.mrf.mxu0  ;;  %v978_v63 = vpop.f32.mrf.mxu1 }
 0x125   : > { %v899_v6 = vadd.f32 %v2551_v41, %v898_v62  ;;  %v979_v7 = vadd.f32 %v2551_v41, %v978_v63 }
 0x126   : > { %v1254_v2 = vmax.f32 %v1056_v60, 0.0  ;;  %v1286_v3 = vmax.f32 %v1136_v61, 0.0 }
 0x127   : > { %v1191_v14 = vmax.f32 %v899_v6, 0.0  ;;  %v1223_v15 = vmax.f32 %v979_v7, 0.0 }
 0x128   : > { %v2226_v4 = vpack.c.bf16 %v1254_v2, %v1253_v0  ;;  %v2306_v5 = vpack.c.bf16 %v1286_v3, %v1285_v1 }
 0x12a   : > { %2382 = vst [vmem:[%s2566_s29 + $0x140] sm:$0xff] %v2226_v4  }
 0x12b   : > { %2398 = vst [vmem:[%s2566_s29 + $0x1c0] sm:$0xff] %v2306_v5   ;;  %v1058_v8 = vpop.f32.mrf.mxu2  ;;  %v1138_v9 = vpop.f32.mrf.mxu3 }
 0x12c   : > { %v900_v10 = vpop.f32.mrf.mxu0  ;;  %v980_v11 = vpop.f32.mrf.mxu1  ;;  %v1059_v20 = vadd.f32 %v2551_v41, %v1058_v8  ;;  %v1139_v21 = vadd.f32 %v2551_v41, %v1138_v9 }
 0x12d   : > { %v901_v12 = vadd.f32 %v2551_v41, %v900_v10  ;;  %v981_v13 = vadd.f32 %v2551_v41, %v980_v11 }
 0x12e   : > { %v1255_v28 = vmax.f32 %v1059_v20, 0.0  ;;  %v1287_v29 = vmax.f32 %v1139_v21, 0.0 }
 0x12f   : > { %v1192_v16 = vmax.f32 %v901_v12, 0.0  ;;  %v1224_v17 = vmax.f32 %v981_v13, 0.0 }
 0x131   : > { %v2071_v18 = vpack.c.bf16 %v1192_v16, %v1191_v14  ;;  %v2151_v19 = vpack.c.bf16 %v1224_v17, %v1223_v15 }
 0x133   : > { %2351 = vst [vmem:[%s2566_s29 + $0x48] sm:$0xff] %v2071_v18   ;;  %v1060_v22 = vpop.f32.mrf.mxu2  ;;  %v1140_v23 = vpop.f32.mrf.mxu3 }
 0x134   : > { %2367 = vst [vmem:[%s2566_s29 + $0xc8] sm:$0xff] %v2151_v19   ;;  %v1061_v24 = vadd.f32 %v2551_v41, %v1060_v22  ;;  %v1141_v25 = vadd.f32 %v2551_v41, %v1140_v23  ;;  %v903_v26 = vpop.f32.mrf.mxu0  ;;  %v983_v27 = vpop.f32.mrf.mxu1 }
 0x135   : > { %v904_v34 = vadd.f32 %v2551_v41, %v903_v26  ;;  %v984_v35 = vadd.f32 %v2551_v41, %v983_v27 }
 0x136   : > { %v1256_v30 = vmax.f32 %v1061_v24, 0.0  ;;  %v1288_v31 = vmax.f32 %v1141_v25, 0.0 }
 0x137   : > { %v1193_v43 = vmax.f32 %v904_v34, 0.0  ;;  %v1225_v44 = vmax.f32 %v984_v35, 0.0 }
 0x138   : > { %v2231_v32 = vpack.c.bf16 %v1256_v30, %v1255_v28  ;;  %v2311_v33 = vpack.c.bf16 %v1288_v31, %v1287_v29 }
 0x13a   : > { %2383 = vst [vmem:[%s2566_s29 + $0x148] sm:$0xff] %v2231_v32  }
 0x13b   : > { %2399 = vst [vmem:[%s2566_s29 + $0x1c8] sm:$0xff] %v2311_v33   ;;  %v1063_v36 = vpop.f32.mrf.mxu2  ;;  %v1143_v37 = vpop.f32.mrf.mxu3 }
 0x13c   : > { %v905_v38 = vpop.f32.mrf.mxu0  ;;  %v985_v39 = vpop.f32.mrf.mxu1  ;;  %v1064_v49 = vadd.f32 %v2551_v41, %v1063_v36  ;;  %v1144_v50 = vadd.f32 %v2551_v41, %v1143_v37 }
 0x13d   : > { %v906_v40 = vadd.f32 %v2551_v41, %v905_v38  ;;  %v986_v42 = vadd.f32 %v2551_v41, %v985_v39 }
 0x13e   : > { %v1257_v57 = vmax.f32 %v1064_v49, 0.0  ;;  %v1289_v58 = vmax.f32 %v1144_v50, 0.0 }
 0x13f   : > { %v1194_v45 = vmax.f32 %v906_v40, 0.0  ;;  %v1226_v46 = vmax.f32 %v986_v42, 0.0 }
 0x141   : > { %v2076_v47 = vpack.c.bf16 %v1194_v45, %v1193_v43  ;;  %v2156_v48 = vpack.c.bf16 %v1226_v46, %v1225_v44 }
 0x143   : > { %2352 = vst [vmem:[%s2566_s29 + $0x50] sm:$0xff] %v2076_v47   ;;  %v1065_v51 = vpop.f32.mrf.mxu2  ;;  %v1145_v52 = vpop.f32.mrf.mxu3 }
 0x144   : > { %2368 = vst [vmem:[%s2566_s29 + $0xd0] sm:$0xff] %v2156_v48   ;;  %v1066_v53 = vadd.f32 %v2551_v41, %v1065_v51  ;;  %v1146_v54 = vadd.f32 %v2551_v41, %v1145_v52  ;;  %v908_v55 = vpop.f32.mrf.mxu0  ;;  %v988_v56 = vpop.f32.mrf.mxu1 }
 0x145   : > { %v909_v63 = vadd.f32 %v2551_v41, %v908_v55  ;;  %v989_v0 = vadd.f32 %v2551_v41, %v988_v56 }
 0x146   : > { %v1258_v59 = vmax.f32 %v1066_v53, 0.0  ;;  %v1290_v60 = vmax.f32 %v1146_v54, 0.0 }
 0x147   : > { %v1195_v7 = vmax.f32 %v909_v63, 0.0  ;;  %v1227_v8 = vmax.f32 %v989_v0, 0.0 }
 0x148   : > { %v2236_v61 = vpack.c.bf16 %v1258_v59, %v1257_v57  ;;  %v2316_v62 = vpack.c.bf16 %v1290_v60, %v1289_v58 }
 0x14a   : > { %2384 = vst [vmem:[%s2566_s29 + $0x150] sm:$0xff] %v2236_v61  }
 0x14b   : > { %2400 = vst [vmem:[%s2566_s29 + $0x1d0] sm:$0xff] %v2316_v62   ;;  %v1068_v1 = vpop.f32.mrf.mxu2  ;;  %v1148_v2 = vpop.f32.mrf.mxu3 }
 0x14c   : > { %v910_v3 = vpop.f32.mrf.mxu0  ;;  %v990_v4 = vpop.f32.mrf.mxu1  ;;  %v1069_v13 = vadd.f32 %v2551_v41, %v1068_v1  ;;  %v1149_v14 = vadd.f32 %v2551_v41, %v1148_v2 }
 0x14d   : > { %v911_v5 = vadd.f32 %v2551_v41, %v910_v3  ;;  %v991_v6 = vadd.f32 %v2551_v41, %v990_v4 }
 0x14e   : > { %v1259_v21 = vmax.f32 %v1069_v13, 0.0  ;;  %v1291_v22 = vmax.f32 %v1149_v14, 0.0 }
 0x14f   : > { %v1196_v9 = vmax.f32 %v911_v5, 0.0  ;;  %v1228_v10 = vmax.f32 %v991_v6, 0.0 }
 0x151   : > { %v2081_v11 = vpack.c.bf16 %v1196_v9, %v1195_v7  ;;  %v2161_v12 = vpack.c.bf16 %v1228_v10, %v1227_v8 }
 0x153   : > { %2353 = vst [vmem:[%s2566_s29 + $0x58] sm:$0xff] %v2081_v11   ;;  %v1070_v15 = vpop.f32.mrf.mxu2  ;;  %v1150_v16 = vpop.f32.mrf.mxu3 }
 0x154   : > { %2369 = vst [vmem:[%s2566_s29 + $0xd8] sm:$0xff] %v2161_v12   ;;  %v1071_v17 = vadd.f32 %v2551_v41, %v1070_v15  ;;  %v1151_v18 = vadd.f32 %v2551_v41, %v1150_v16  ;;  %v913_v19 = vpop.f32.mrf.mxu0  ;;  %v993_v20 = vpop.f32.mrf.mxu1 }
 0x155   : > { %v914_v27 = vadd.f32 %v2551_v41, %v913_v19  ;;  %v994_v28 = vadd.f32 %v2551_v41, %v993_v20 }
 0x156   : > { %v1260_v23 = vmax.f32 %v1071_v17, 0.0  ;;  %v1292_v24 = vmax.f32 %v1151_v18, 0.0 }
 0x157   : > { %v1197_v35 = vmax.f32 %v914_v27, 0.0  ;;  %v1229_v36 = vmax.f32 %v994_v28, 0.0 }
 0x158   : > { %v2241_v25 = vpack.c.bf16 %v1260_v23, %v1259_v21  ;;  %v2321_v26 = vpack.c.bf16 %v1292_v24, %v1291_v22 }
 0x15a   : > { %2385 = vst [vmem:[%s2566_s29 + $0x158] sm:$0xff] %v2241_v25  }
 0x15b   : > { %2401 = vst [vmem:[%s2566_s29 + $0x1d8] sm:$0xff] %v2321_v26   ;;  %v1073_v29 = vpop.f32.mrf.mxu2  ;;  %v1153_v30 = vpop.f32.mrf.mxu3  ;;  %v2424_v26 = vld [vmem:[%s2806_s2] ss:$0 sm:$0xff] }
 0x15c   : > { %v915_v31 = vpop.f32.mrf.mxu0  ;;  %v995_v32 = vpop.f32.mrf.mxu1  ;;  %v1074_v42 = vadd.f32 %v2551_v41, %v1073_v29  ;;  %v1154_v43 = vadd.f32 %v2551_v41, %v1153_v30 }
 0x15d   : > { %v916_v33 = vadd.f32 %v2551_v41, %v915_v31  ;;  %v996_v34 = vadd.f32 %v2551_v41, %v995_v32 }
 0x15e   : > { %v1261_v50 = vmax.f32 %v1074_v42, 0.0  ;;  %v1293_v51 = vmax.f32 %v1154_v43, 0.0 }
 0x15f   : > { %v1198_v37 = vmax.f32 %v916_v33, 0.0  ;;  %v1230_v38 = vmax.f32 %v996_v34, 0.0 }
 0x161   : > { %v2086_v39 = vpack.c.bf16 %v1198_v37, %v1197_v35  ;;  %v2166_v40 = vpack.c.bf16 %v1230_v38, %v1229_v36 }
 0x163   : > { %2354 = vst [vmem:[%s2566_s29 + $0x60] sm:$0xff] %v2086_v39   ;;  %v1075_v44 = vpop.f32.mrf.mxu2  ;;  %v1155_v45 = vpop.f32.mrf.mxu3 }
 0x164   : > { %2370 = vst [vmem:[%s2566_s29 + $0xe0] sm:$0xff] %v2166_v40   ;;  %v1076_v46 = vadd.f32 %v2551_v41, %v1075_v44  ;;  %v1156_v47 = vadd.f32 %v2551_v41, %v1155_v45  ;;  %v918_v48 = vpop.f32.mrf.mxu0  ;;  %v998_v49 = vpop.f32.mrf.mxu1 }
 0x165   : > { %v919_v56 = vadd.f32 %v2551_v41, %v918_v48  ;;  %v999_v57 = vadd.f32 %v2551_v41, %v998_v49 }
 0x166   : > { %v1262_v52 = vmax.f32 %v1076_v46, 0.0  ;;  %v1294_v53 = vmax.f32 %v1156_v47, 0.0 }
 0x167   : > { %v1199_v0 = vmax.f32 %v919_v56, 0.0  ;;  %v1231_v1 = vmax.f32 %v999_v57, 0.0 }
 0x168   : > { %v2246_v54 = vpack.c.bf16 %v1262_v52, %v1261_v50  ;;  %v2326_v55 = vpack.c.bf16 %v1294_v53, %v1293_v51 }
 0x16a   : > { %2386 = vst [vmem:[%s2566_s29 + $0x160] sm:$0xff] %v2246_v54  }
 0x16b   : > { %2402 = vst [vmem:[%s2566_s29 + $0x1e0] sm:$0xff] %v2326_v55   ;;  %v1078_v58 = vpop.f32.mrf.mxu2  ;;  %v1158_v59 = vpop.f32.mrf.mxu3 }
 0x16c   : > { %v920_v60 = vpop.f32.mrf.mxu0  ;;  %v1000_v61 = vpop.f32.mrf.mxu1  ;;  %v1079_v6 = vadd.f32 %v2551_v41, %v1078_v58  ;;  %v1159_v7 = vadd.f32 %v2551_v41, %v1158_v59 }
 0x16d   : > { %v921_v62 = vadd.f32 %v2551_v41, %v920_v60  ;;  %v1001_v63 = vadd.f32 %v2551_v41, %v1000_v61 }
 0x16e   : > { %v1263_v14 = vmax.f32 %v1079_v6, 0.0  ;;  %v1295_v15 = vmax.f32 %v1159_v7, 0.0 }
 0x16f   : > { %v1200_v2 = vmax.f32 %v921_v62, 0.0  ;;  %v1232_v3 = vmax.f32 %v1001_v63, 0.0 }
 0x171   : > { %v2091_v4 = vpack.c.bf16 %v1200_v2, %v1199_v0  ;;  %v2171_v5 = vpack.c.bf16 %v1232_v3, %v1231_v1 }
 0x173   : > { %2355 = vst [vmem:[%s2566_s29 + $0x68] sm:$0xff] %v2091_v4   ;;  %v1080_v8 = vpop.f32.mrf.mxu2  ;;  %v1160_v9 = vpop.f32.mrf.mxu3 }
 0x174   : > { %2371 = vst [vmem:[%s2566_s29 + $0xe8] sm:$0xff] %v2171_v5   ;;  %v1081_v10 = vadd.f32 %v2551_v41, %v1080_v8  ;;  %v1161_v11 = vadd.f32 %v2551_v41, %v1160_v9  ;;  %v923_v12 = vpop.f32.mrf.mxu0  ;;  %v1003_v13 = vpop.f32.mrf.mxu1 }
 0x175   : > { %v924_v20 = vadd.f32 %v2551_v41, %v923_v12  ;;  %v1004_v21 = vadd.f32 %v2551_v41, %v1003_v13 }
 0x176   : > { %v1264_v16 = vmax.f32 %v1081_v10, 0.0  ;;  %v1296_v17 = vmax.f32 %v1161_v11, 0.0 }
 0x177   : > { %v1201_v29 = vmax.f32 %v924_v20, 0.0  ;;  %v1233_v30 = vmax.f32 %v1004_v21, 0.0 }
 0x178   : > { %v2251_v18 = vpack.c.bf16 %v1264_v16, %v1263_v14  ;;  %v2331_v19 = vpack.c.bf16 %v1296_v17, %v1295_v15 }
 0x17a   : > { %2387 = vst [vmem:[%s2566_s29 + $0x168] sm:$0xff] %v2251_v18  }
 0x17b   : > { %2403 = vst [vmem:[%s2566_s29 + $0x1e8] sm:$0xff] %v2331_v19   ;;  %v1083_v22 = vpop.f32.mrf.mxu2  ;;  %v1163_v23 = vpop.f32.mrf.mxu3 }
 0x17c   : > { %v925_v24 = vpop.f32.mrf.mxu0  ;;  %v1005_v25 = vpop.f32.mrf.mxu1  ;;  %v1084_v35 = vadd.f32 %v2424_v26, %v1083_v22  ;;  %v1164_v41 = vadd.f32 %v2424_v26, %v1163_v23 }
 0x17d   : > { %v926_v27 = vadd.f32 %v2424_v26, %v925_v24  ;;  %v1006_v28 = vadd.f32 %v2424_v26, %v1005_v25 }
 0x17e   : > { %v1265_v43 = vmax.f32 %v1084_v35, 0.0  ;;  %v1297_v44 = vmax.f32 %v1164_v41, 0.0 }
 0x17f   : > { %v1202_v31 = vmax.f32 %v926_v27, 0.0  ;;  %v1234_v32 = vmax.f32 %v1006_v28, 0.0 }
 0x181   : > { %v2096_v33 = vpack.c.bf16 %v1202_v31, %v1201_v29  ;;  %v2176_v34 = vpack.c.bf16 %v1234_v32, %v1233_v30 }
 0x183   : > { %2356 = vst [vmem:[%s2566_s29 + $0x70] sm:$0xff] %v2096_v33   ;;  %v1085_v36 = vpop.f32.mrf.mxu2  ;;  %v1165_v37 = vpop.f32.mrf.mxu3 }
 0x184   : > { %2372 = vst [vmem:[%s2566_s29 + $0xf0] sm:$0xff] %v2176_v34   ;;  %v1086_v38 = vadd.f32 %v2424_v26, %v1085_v36  ;;  %v1166_v39 = vadd.f32 %v2424_v26, %v1165_v37  ;;  %v928_v40 = vpop.f32.mrf.mxu0  ;;  %v1008_v42 = vpop.f32.mrf.mxu1 }
 0x185   : > { %v929_v49 = vadd.f32 %v2424_v26, %v928_v40  ;;  %v1009_v50 = vadd.f32 %v2424_v26, %v1008_v42 }
 0x186   : > { %v1266_v45 = vmax.f32 %v1086_v38, 0.0  ;;  %v1298_v46 = vmax.f32 %v1166_v39, 0.0 }
 0x187   : > { %v1203_v57 = vmax.f32 %v929_v49, 0.0  ;;  %v1235_v58 = vmax.f32 %v1009_v50, 0.0 }
 0x188   : > { %v2256_v47 = vpack.c.bf16 %v1266_v45, %v1265_v43  ;;  %v2336_v48 = vpack.c.bf16 %v1298_v46, %v1297_v44 }
 0x18a   : > { %2388 = vst [vmem:[%s2566_s29 + $0x170] sm:$0xff] %v2256_v47  }
 0x18b   : > { %2404 = vst [vmem:[%s2566_s29 + $0x1f0] sm:$0xff] %v2336_v48   ;;  %v1088_v51 = vpop.f32.mrf.mxu2  ;;  %v1168_v52 = vpop.f32.mrf.mxu3 }
 0x18c   : > { %v930_v53 = vpop.f32.mrf.mxu0  ;;  %v1010_v54 = vpop.f32.mrf.mxu1  ;;  %v1089_v63 = vadd.f32 %v2424_v26, %v1088_v51  ;;  %v1169_v0 = vadd.f32 %v2424_v26, %v1168_v52 }
 0x18d   : > { %v931_v55 = vadd.f32 %v2424_v26, %v930_v53  ;;  %v1011_v56 = vadd.f32 %v2424_v26, %v1010_v54 }
 0x18e   : > { %v1267_v5 = vmax.f32 %v1089_v63, 0.0  ;;  %v1299_v6 = vmax.f32 %v1169_v0, 0.0 }
 0x18f   : > { %v1204_v59 = vmax.f32 %v931_v55, 0.0  ;;  %v1236_v60 = vmax.f32 %v1011_v56, 0.0 }
 0x191   : > { %v2101_v61 = vpack.c.bf16 %v1204_v59, %v1203_v57  ;;  %v2181_v62 = vpack.c.bf16 %v1236_v60, %v1235_v58 }
 0x193   : > { %2357 = vst [vmem:[%s2566_s29 + $0x78] sm:$0xff] %v2101_v61   ;;  %v1090_v1 = vpop.f32.mrf.mxu2  ;;  %v1170_v2 = vpop.f32.mrf.mxu3 }
 0x194   : > { %2373 = vst [vmem:[%s2566_s29 + $0xf8] sm:$0xff] %v2181_v62   ;;  %v1091_v3 = vadd.f32 %v2424_v26, %v1090_v1  ;;  %v1171_v4 = vadd.f32 %v2424_v26, %v1170_v2 }
 0x196   : > { %v1268_v7 = vmax.f32 %v1091_v3, 0.0  ;;  %v1300_v8 = vmax.f32 %v1171_v4, 0.0 }
 0x198   : > { %v2261_v9 = vpack.c.bf16 %v1268_v7, %v1267_v5  ;;  %v2341_v10 = vpack.c.bf16 %v1300_v8, %v1299_v6 }
 0x19a   : > { %2389 = vst [vmem:[%s2566_s29 + $0x178] sm:$0xff] %v2261_v9  }
 0x19b   : > { %2405 = vst [vmem:[%s2566_s29 + $0x1f8] sm:$0xff] %v2341_v10  }
 0x19c PF: > { %s13_s12 = sadd.s32 1, %s2431_s12  }
 0x19d   : > { %p10_p4 = scmp.ge.s32.totalorder %s13_s12, 4  }
 0x19f   :  { %12 = sbr.rel (!%p10_p4) target bundleno = 1 (0x1), region = 62 }

// kernel: beta_vae_forward.11
= control target key start
LH: loop header
LB: loop body
LE: loop exit
PB: predicated region body
PF: predicated region fallthrough
CT: control target
= control target key end

     0   :  { %s3961_s1 = inlined_call_operand.vmem [shape: bf16[512,128], index: 1, kind: input, shape index: {}]   ;;  %s3962_s2 = inlined_call_operand.vmem [shape: f32[1,128], index: 2, kind: input, shape index: {}]   ;;  %s3963_s0 = inlined_call_operand.vmem [shape: bf16[512,512], index: 0, kind: input, shape index: {}]   ;;  %s3964_s3 = inlined_call_operand.vmem [shape: bf16[512,128], index: 3, kind: output, shape index: {}]  }
   0x1   :  { %v2689_v0 = vld [vmem:[%s3961_s1 + $0x38] sm:$0xff]  ;;  %v2688_v4 = vld [vmem:[%s3961_s1 + $0x30] sm:$0xff]  ;;  %v2687_v8 = vld [vmem:[%s3961_s1 + $0x28] sm:$0xff] }
   0x2   :  { %v2697_v1 = vld [vmem:[%s3961_s1 + $0x78] sm:$0xff]  ;;  %1042 = vmatpush.bf16.msra.mxu0 %v2689_v0  ;;  %v2696_v5 = vld [vmem:[%s3961_s1 + $0x70] sm:$0xff]  ;;  %v2695_v9 = vld [vmem:[%s3961_s1 + $0x68] sm:$0xff] }
   0x3   :  { %v2705_v2 = vld [vmem:[%s3961_s1 + $0xb8] sm:$0xff]  ;;  %1211 = vmatpush.bf16.msra.mxu1 %v2697_v1  ;;  %v2704_v6 = vld [vmem:[%s3961_s1 + $0xb0] sm:$0xff]  ;;  %v2703_v10 = vld [vmem:[%s3961_s1 + $0xa8] sm:$0xff] }
   0x4   :  { %v2713_v3 = vld [vmem:[%s3961_s1 + $0xf8] sm:$0xff]  ;;  %1380 = vmatpush.bf16.msra.mxu2 %v2705_v2  ;;  %v2712_v7 = vld [vmem:[%s3961_s1 + $0xf0] sm:$0xff]  ;;  %v2711_v11 = vld [vmem:[%s3961_s1 + $0xe8] sm:$0xff] }
   0x5   :  { %1549 = vmatpush.bf16.msra.mxu3 %v2713_v3  ;;  %v2686_v12 = vld [vmem:[%s3961_s1 + $0x20] sm:$0xff]  ;;  %v2685_v16 = vld [vmem:[%s3961_s1 + $0x18] sm:$0xff]  ;;  %v2684_v20 = vld [vmem:[%s3961_s1 + $0x10] sm:$0xff] }
   0x6   :  { %1043 = vmatpush.bf16.msra.mxu0 %v2688_v4  ;;  %v2694_v13 = vld [vmem:[%s3961_s1 + $0x60] sm:$0xff]  ;;  %v2693_v17 = vld [vmem:[%s3961_s1 + $0x58] sm:$0xff]  ;;  %v2692_v21 = vld [vmem:[%s3961_s1 + $0x50] sm:$0xff] }
   0x7   :  { %1212 = vmatpush.bf16.msra.mxu1 %v2696_v5  ;;  %v2702_v14 = vld [vmem:[%s3961_s1 + $0xa0] sm:$0xff]  ;;  %v2701_v18 = vld [vmem:[%s3961_s1 + $0x98] sm:$0xff]  ;;  %v2700_v22 = vld [vmem:[%s3961_s1 + $0x90] sm:$0xff] }
   0x8   :  { %1381 = vmatpush.bf16.msra.mxu2 %v2704_v6  ;;  %v2710_v15 = vld [vmem:[%s3961_s1 + $0xe0] sm:$0xff]  ;;  %v2709_v19 = vld [vmem:[%s3961_s1 + $0xd8] sm:$0xff]  ;;  %v2708_v23 = vld [vmem:[%s3961_s1 + $0xd0] sm:$0xff] }
   0x9   :  { %1550 = vmatpush.bf16.msra.mxu3 %v2712_v7  ;;  %v2683_v24 = vld [vmem:[%s3961_s1 + $0x8] sm:$0xff]  ;;  %v2682_v28 = vld [vmem:[%s3961_s1] sm:$0xff]  ;;  %v2556_v33 = vld [vmem:[%s3963_s0 + $0xc] sm:$0xf0] }
   0xa   :  { %1044 = vmatpush.bf16.msra.mxu0 %v2687_v8  ;;  %v2691_v25 = vld [vmem:[%s3961_s1 + $0x48] sm:$0xff]  ;;  %v2690_v29 = vld [vmem:[%s3961_s1 + $0x40] sm:$0xff]  ;;  %v1918_v35 = vld [vmem:[%s3963_s0 + $0x10] sm:$0xf0] }
   0xb   :  { %1213 = vmatpush.bf16.msra.mxu1 %v2695_v9  ;;  %v2699_v26 = vld [vmem:[%s3961_s1 + $0x88] sm:$0xff]  ;;  %v2698_v30 = vld [vmem:[%s3961_s1 + $0x80] sm:$0xff]  ;;  %v2557_v37 = vld [vmem:[%s3963_s0 + $0x14] sm:$0xf0] }
   0xc   :  { %1382 = vmatpush.bf16.msra.mxu2 %v2703_v10  ;;  %v2707_v27 = vld [vmem:[%s3961_s1 + $0xc8] sm:$0xff]  ;;  %v2706_v31 = vld [vmem:[%s3961_s1 + $0xc0] sm:$0xff]  ;;  %v1926_v39 = vld [vmem:[%s3963_s0 + $0x18] sm:$0xf0] }
   0xd   :  { %1551 = vmatpush.bf16.msra.mxu3 %v2711_v11  ;;  %v1916_v32 = vld [vmem:[%s3963_s0] sm:$0xf]  ;;  %v2554_v34 = vld [vmem:[%s3963_s0 + $0x4] sm:$0xf]  ;;  %v1924_v36 = vld [vmem:[%s3963_s0 + $0x8] sm:$0xf] }
   0xe   :  { %1045 = vmatpush.bf16.msra.mxu0 %v2686_v12  ;;  %v2555_v38 = vld [vmem:[%s3963_s0 + $0xc] sm:$0xf]  ;;  %v1917_v40 = vor.u32 %v2556_v33, %v1916_v32  ;;  %v1921_v41 = vor.u32 %v2554_v34, %v1918_v35  ;;  %v1925_v42 = vor.u32 %v2557_v37, %v1924_v36  ;;  %v1932_v44 = vld [vmem:[%s3963_s0 + $0x20] sm:$0xf]  ;;  %v2560_v45 = vld [vmem:[%s3963_s0 + $0x2c] sm:$0xf0] }
   0xf   :  { %1214 = vmatpush.bf16.msra.mxu1 %v2694_v13  ;;  %v1929_v43 = vor.u32 %v2555_v38, %v1926_v39  ;;  %v2558_v46 = vld [vmem:[%s3963_s0 + $0x24] sm:$0xf]  ;;  %v1934_v47 = vld [vmem:[%s3963_s0 + $0x30] sm:$0xf0]  ;;  %v1940_v48 = vld [vmem:[%s3963_s0 + $0x28] sm:$0xf]  ;;  %v1933_v52 = vor.u32 %v2560_v45, %v1932_v44 }
  0x10   :  { %1383 = vmatpush.bf16.msra.mxu2 %v2702_v14  ;;  %v2561_v49 = vld [vmem:[%s3963_s0 + $0x34] sm:$0xf0]  ;;  %v2559_v50 = vld [vmem:[%s3963_s0 + $0x2c] sm:$0xf]  ;;  %v1942_v51 = vld [vmem:[%s3963_s0 + $0x38] sm:$0xf0]  ;;  %v1937_v53 = vor.u32 %v2558_v46, %v1934_v47 }
  0x11   :  { %1552 = vmatpush.bf16.msra.mxu3 %v2710_v15  ;;  %v1941_v54 = vor.u32 %v2561_v49, %v1940_v48  ;;  %v1945_v55 = vor.u32 %v2559_v50, %v1942_v51  ;;  %v1948_v56 = vld [vmem:[%s3963_s0 + $0x40] sm:$0xf]  ;;  %v2564_v57 = vld [vmem:[%s3963_s0 + $0x4c] sm:$0xf0]  ;;  %v2562_v58 = vld [vmem:[%s3963_s0 + $0x44] sm:$0xf] }
  0x12   :  { %1046 = vmatpush.bf16.msra.mxu0 %v2685_v16  ;;  %v1950_v59 = vld [vmem:[%s3963_s0 + $0x50] sm:$0xf0]  ;;  %v1956_v60 = vld [vmem:[%s3963_s0 + $0x48] sm:$0xf]  ;;  %v2565_v61 = vld [vmem:[%s3963_s0 + $0x54] sm:$0xf0]  ;;  %v1949_v0 = vor.u32 %v2564_v57, %v1948_v56 }
  0x13   :  { %1215 = vmatpush.bf16.msra.mxu1 %v2693_v17  ;;  %v2563_v62 = vld [vmem:[%s3963_s0 + $0x4c] sm:$0xf]  ;;  %v1958_v63 = vld [vmem:[%s3963_s0 + $0x58] sm:$0xf0]  ;;  %v1953_v1 = vor.u32 %v2562_v58, %v1950_v59  ;;  %v1957_v2 = vor.u32 %v2565_v61, %v1956_v60  ;;  %v1964_v4 = vld [vmem:[%s3963_s0 + $0x60] sm:$0xf] }
  0x14   :  { %1384 = vmatpush.bf16.msra.mxu2 %v2701_v18  ;;  %v1961_v3 = vor.u32 %v2563_v62, %v1958_v63  ;;  %v2568_v5 = vld [vmem:[%s3963_s0 + $0x6c] sm:$0xf0]  ;;  %v2566_v6 = vld [vmem:[%s3963_s0 + $0x64] sm:$0xf]  ;;  %v1966_v7 = vld [vmem:[%s3963_s0 + $0x70] sm:$0xf0] }
  0x15   :  { %1553 = vmatpush.bf16.msra.mxu3 %v2709_v19  ;;  %v1972_v8 = vld [vmem:[%s3963_s0 + $0x68] sm:$0xf]  ;;  %v2569_v9 = vld [vmem:[%s3963_s0 + $0x74] sm:$0xf0]  ;;  %v2567_v10 = vld [vmem:[%s3963_s0 + $0x6c] sm:$0xf]  ;;  %v1965_v12 = vor.u32 %v2568_v5, %v1964_v4  ;;  %v1969_v13 = vor.u32 %v2566_v6, %v1966_v7 }
  0x16   :  { %1047 = vmatpush.bf16.msra.mxu0 %v2684_v20  ;;  %v1974_v11 = vld [vmem:[%s3963_s0 + $0x78] sm:$0xf0]  ;;  %v1973_v14 = vor.u32 %v2569_v9, %v1972_v8  ;;  %v1980_v16 = vld [vmem:[%s3963_s0 + $0x80] sm:$0xf]  ;;  %v2572_v17 = vld [vmem:[%s3963_s0 + $0x8c] sm:$0xf0] }
  0x17   :  { %1216 = vmatpush.bf16.msra.mxu1 %v2692_v21  ;;  %v1977_v15 = vor.u32 %v2567_v10, %v1974_v11  ;;  %v2570_v18 = vld [vmem:[%s3963_s0 + $0x84] sm:$0xf]  ;;  %v1982_v19 = vld [vmem:[%s3963_s0 + $0x90] sm:$0xf0]  ;;  %v1988_v20 = vld [vmem:[%s3963_s0 + $0x88] sm:$0xf] }
  0x18   :  { %1385 = vmatpush.bf16.msra.mxu2 %v2700_v22  ;;  %v2573_v21 = vld [vmem:[%s3963_s0 + $0x94] sm:$0xf0]  ;;  %v2571_v22 = vld [vmem:[%s3963_s0 + $0x8c] sm:$0xf]  ;;  %v2004_v32 = vld [vmem:[%s3963_s0 + $0xa8] sm:$0xf] }
  0x19   :  { %1554 = vmatpush.bf16.msra.mxu3 %v2708_v23  ;;  %v1990_v23 = vld [vmem:[%s3963_s0 + $0x98] sm:$0xf0]  ;;  %v2577_v33 = vld [vmem:[%s3963_s0 + $0xb4] sm:$0xf0]  ;;  %v2575_v34 = vld [vmem:[%s3963_s0 + $0xac] sm:$0xf] }
  0x1a   :  { %1048 = vmatpush.bf16.msra.mxu0 %v2683_v24  ;;  %v1981_v24 = vor.u32 %v2572_v17, %v1980_v16  ;;  %v2006_v35 = vld [vmem:[%s3963_s0 + $0xb8] sm:$0xf0]  ;;  %v2005_v38 = vor.u32 %v2577_v33, %v2004_v32  ;;  %v2020_v44 = vld [vmem:[%s3963_s0 + $0xc8] sm:$0xf]  ;;  %v2581_v45 = vld [vmem:[%s3963_s0 + $0xd4] sm:$0xf0] }
  0x1b   :  { %1217 = vmatpush.bf16.msra.mxu1 %v2691_v25  ;;  %v1985_v25 = vor.u32 %v2570_v18, %v1982_v19  ;;  %v2009_v39 = vor.u32 %v2575_v34, %v2006_v35  ;;  %v2579_v46 = vld [vmem:[%s3963_s0 + $0xcc] sm:$0xf]  ;;  %v2022_v47 = vld [vmem:[%s3963_s0 + $0xd8] sm:$0xf0]  ;;  %v2021_v50 = vor.u32 %v2581_v45, %v2020_v44  ;;  %v2036_v56 = vld [vmem:[%s3963_s0 + $0xe8] sm:$0xf] }
  0x1c   :  { %1386 = vmatpush.bf16.msra.mxu2 %v2699_v26  ;;  %v1989_v26 = vor.u32 %v2573_v21, %v1988_v20  ;;  %v2025_v51 = vor.u32 %v2579_v46, %v2022_v47  ;;  %v2585_v57 = vld [vmem:[%s3963_s0 + $0xf4] sm:$0xf0]  ;;  %v2583_v58 = vld [vmem:[%s3963_s0 + $0xec] sm:$0xf]  ;;  %v2038_v59 = vld [vmem:[%s3963_s0 + $0xf8] sm:$0xf0] }
  0x1d   :  { %1555 = vmatpush.bf16.msra.mxu3 %v2707_v27  ;;  %v1993_v27 = vor.u32 %v2571_v22, %v1990_v23  ;;  %v2037_v62 = vor.u32 %v2585_v57, %v2036_v56  ;;  %v2041_v63 = vor.u32 %v2583_v58, %v2038_v59  ;;  %v2052_v4 = vld [vmem:[%s3963_s0 + $0x108] sm:$0xf]  ;;  %v2589_v5 = vld [vmem:[%s3963_s0 + $0x114] sm:$0xf0]  ;;  %v2587_v6 = vld [vmem:[%s3963_s0 + $0x10c] sm:$0xf] }
  0x1e   :  { %1049 = vmatpush.bf16.msra.mxu0 %v2682_v28  ;;  %v1996_v28 = vld [vmem:[%s3963_s0 + $0xa0] sm:$0xf]  ;;  %v2054_v7 = vld [vmem:[%s3963_s0 + $0x118] sm:$0xf0]  ;;  %v2592_v23 = vld [vmem:[%s3963_s0 + $0x12c] sm:$0xf0] }
  0x1f   :  { %1218 = vmatpush.bf16.msra.mxu1 %v2690_v29  ;;  %v2576_v29 = vld [vmem:[%s3963_s0 + $0xac] sm:$0xf0]  ;;  %v3242_v10 = vld [vmem:[%s3962_s2] ss:$0 sm:$0xff]  ;;  %v2594_v56 = vld [vmem:[%s3963_s0 + $0x144] sm:$0xf] }
  0x20   :  { %1387 = vmatpush.bf16.msra.mxu2 %v2698_v30  ;;  %v2574_v30 = vld [vmem:[%s3963_s0 + $0xa4] sm:$0xf]  ;;  %v1997_v36 = vor.u32 %v2576_v29, %v1996_v28  ;;  %v2060_v22 = vld [vmem:[%s3963_s0 + $0x120] sm:$0xf]  ;;  %v2593_v28 = vld [vmem:[%s3963_s0 + $0x134] sm:$0xf0] }
  0x21   :  { %1556 = vmatpush.bf16.msra.mxu3 %v2706_v31  ;;  %1050 = vmatmul.bf16.vlgmr.msra.gmra.mxu0 %v1917_v40  ;;  %v1998_v31 = vld [vmem:[%s3963_s0 + $0xb0] sm:$0xf0]  ;;  %v2012_v40 = vld [vmem:[%s3963_s0 + $0xc0] sm:$0xf]  ;;  %v2591_v29 = vld [vmem:[%s3963_s0 + $0x12c] sm:$0xf]  ;;  %v2061_v34 = vor.u32 %v2592_v23, %v2060_v22 }
  0x22   :  { %1219 = vmatmul.bf16.vlgmr.msra.gmra.mxu1 %v1921_v41  ;;  %v2001_v37 = vor.u32 %v2574_v30, %v1998_v31  ;;  %v2580_v41 = vld [vmem:[%s3963_s0 + $0xcc] sm:$0xf0]  ;;  %v2070_v30 = vld [vmem:[%s3963_s0 + $0x138] sm:$0xf0]  ;;  %v2078_v57 = vld [vmem:[%s3963_s0 + $0x150] sm:$0xf0] }
  0x23   :  { %1388 = vmatmul.bf16.vlgmr.msra.gmra.mxu2 %v1925_v42  ;;  %v2578_v42 = vld [vmem:[%s3963_s0 + $0xc4] sm:$0xf]  ;;  %v2013_v48 = vor.u32 %v2580_v41, %v2012_v40  ;;  %v2073_v41 = vor.u32 %v2591_v29, %v2070_v30  ;;  %v2084_v58 = vld [vmem:[%s3963_s0 + $0x148] sm:$0xf]  ;;  %v2597_v59 = vld [vmem:[%s3963_s0 + $0x154] sm:$0xf0] }
  0x24   :  { %1557 = vmatmul.bf16.vlgmr.msra.gmra.mxu3 %v1929_v43  ;;  %v2014_v43 = vld [vmem:[%s3963_s0 + $0xd0] sm:$0xf0]  ;;  %v2600_v22 = vld [vmem:[%s3963_s0 + $0x16c] sm:$0xf0]  ;;  %v2102_v29 = vld [vmem:[%s3963_s0 + $0x178] sm:$0xf0] }
  0x25   :  { %v2017_v49 = vor.u32 %v2578_v42, %v2014_v43 }
  0x31   :  { %1055 = vmatmul.bf16.gmra.mxu0 %v1933_v52  ;;  %v2028_v52 = vld [vmem:[%s3963_s0 + $0xe0] sm:$0xf] }
  0x32   :  { %1224 = vmatmul.bf16.gmra.mxu1 %v1937_v53  ;;  %v2584_v53 = vld [vmem:[%s3963_s0 + $0xec] sm:$0xf0] }
  0x33   :  { %1393 = vmatmul.bf16.gmra.mxu2 %v1941_v54  ;;  %v2582_v54 = vld [vmem:[%s3963_s0 + $0xe4] sm:$0xf]  ;;  %v2029_v60 = vor.u32 %v2584_v53, %v2028_v52  ;;  %v2076_v53 = vld [vmem:[%s3963_s0 + $0x140] sm:$0xf] }
  0x34   :  { %1562 = vmatmul.bf16.gmra.mxu3 %v1945_v55  ;;  %v2030_v55 = vld [vmem:[%s3963_s0 + $0xf0] sm:$0xf0] }
  0x35   :  { %v2033_v61 = vor.u32 %v2582_v54, %v2030_v55  ;;  %v2596_v54 = vld [vmem:[%s3963_s0 + $0x14c] sm:$0xf0] }
  0x41   :  { %1060 = vmatmul.bf16.gmra.mxu0 %v1949_v0  ;;  %v2044_v0 = vld [vmem:[%s3963_s0 + $0x100] sm:$0xf] }
  0x42   :  { %1229 = vmatmul.bf16.gmra.mxu1 %v1953_v1  ;;  %v2588_v1 = vld [vmem:[%s3963_s0 + $0x10c] sm:$0xf0] }
  0x43   :  { %1398 = vmatmul.bf16.gmra.mxu2 %v1957_v2  ;;  %v2586_v2 = vld [vmem:[%s3963_s0 + $0x104] sm:$0xf]  ;;  %v2045_v8 = vor.u32 %v2588_v1, %v2044_v0  ;;  %v2077_v1 = vor.u32 %v2596_v54, %v2076_v53  ;;  %v2604_v53 = vld [vmem:[%s3963_s0 + $0x18c] sm:$0xf0] }
  0x44   :  { %1567 = vmatmul.bf16.gmra.mxu3 %v1961_v3  ;;  %v2046_v3 = vld [vmem:[%s3963_s0 + $0x110] sm:$0xf0] }
  0x45   :  { %v2049_v9 = vor.u32 %v2586_v2, %v2046_v3  ;;  %v2081_v2 = vor.u32 %v2594_v56, %v2078_v57  ;;  %v2110_v56 = vld [vmem:[%s3963_s0 + $0x190] sm:$0xf0]  ;;  %v2116_v57 = vld [vmem:[%s3963_s0 + $0x188] sm:$0xf] }
  0x51   :  { %1065 = vmatmul.bf16.gmra.mxu0 %v1965_v12 }
  0x52   :  { %1234 = vmatmul.bf16.gmra.mxu1 %v1969_v13  ;;  %v2053_v13 = vor.u32 %v2589_v5, %v2052_v4 }
  0x53   :  { %1403 = vmatmul.bf16.gmra.mxu2 %v1973_v14  ;;  %v2057_v14 = vor.u32 %v2587_v6, %v2054_v7  ;;  %v2085_v7 = vor.u32 %v2597_v59, %v2084_v58  ;;  %v2605_v58 = vld [vmem:[%s3963_s0 + $0x194] sm:$0xf0]  ;;  %v2603_v59 = vld [vmem:[%s3963_s0 + $0x18c] sm:$0xf] }
  0x54   :  { %1572 = vmatmul.bf16.gmra.mxu3 %v1977_v15 }
  0x61   :  { %1070 = vmatmul.bf16.gmra.mxu0 %v1981_v24 }
  0x62   :  { %1239 = vmatmul.bf16.gmra.mxu1 %v1985_v25  ;;  %v2590_v25 = vld [vmem:[%s3963_s0 + $0x124] sm:$0xf] }
  0x63   :  { %1408 = vmatmul.bf16.gmra.mxu2 %v1989_v26  ;;  %v2062_v26 = vld [vmem:[%s3963_s0 + $0x130] sm:$0xf0] }
  0x64   :  { %1577 = vmatmul.bf16.gmra.mxu3 %v1993_v27  ;;  %v2068_v27 = vld [vmem:[%s3963_s0 + $0x128] sm:$0xf]  ;;  %v2065_v35 = vor.u32 %v2590_v25, %v2062_v26  ;;  %v2094_v25 = vld [vmem:[%s3963_s0 + $0x170] sm:$0xf0] }
  0x65   :  { %v2069_v40 = vor.u32 %v2593_v28, %v2068_v27  ;;  %v2100_v26 = vld [vmem:[%s3963_s0 + $0x168] sm:$0xf]  ;;  %v2601_v27 = vld [vmem:[%s3963_s0 + $0x174] sm:$0xf0]  ;;  %v2599_v28 = vld [vmem:[%s3963_s0 + $0x16c] sm:$0xf] }
  0x71   :  { %1075 = vmatmul.bf16.gmra.mxu0 %v1997_v36 }
  0x72   :  { %1244 = vmatmul.bf16.gmra.mxu1 %v2001_v37 }
  0x73   :  { %1413 = vmatmul.bf16.gmra.mxu2 %v2005_v38 }
  0x74   :  { %1582 = vmatmul.bf16.gmra.mxu3 %v2009_v39 }
  0x81   :  { %1080 = vmatmul.bf16.gmra.mxu0 %v2013_v48 }
  0x82   :  { %1249 = vmatmul.bf16.gmra.mxu1 %v2017_v49 }
  0x83   :  { %1418 = vmatmul.bf16.gmra.mxu2 %v2021_v50 }
  0x84   :  { %1587 = vmatmul.bf16.gmra.mxu3 %v2025_v51 }
  0x91   :  { %1085 = vmatmul.bf16.gmra.mxu0 %v2029_v60  ;;  %v2595_v60 = vld [vmem:[%s3963_s0 + $0x14c] sm:$0xf] }
  0x92   :  { %1254 = vmatmul.bf16.gmra.mxu1 %v2033_v61  ;;  %v2086_v61 = vld [vmem:[%s3963_s0 + $0x158] sm:$0xf0] }
  0x93   :  { %1423 = vmatmul.bf16.gmra.mxu2 %v2037_v62 }
  0x94   :  { %1592 = vmatmul.bf16.gmra.mxu3 %v2041_v63 }
  0x9e   :  { %v1051_v11 = vpop.f32.mrf.mxu0 }
  0x9f   :  { %v1220_v12 = vpop.f32.mrf.mxu1  ;;  %v1052_v15 = vadd.f32 %v3242_v10, %v1051_v11 }
  0xa1   :  { %1090 = vmatmul.bf16.gmra.mxu0 %v2045_v8  ;;  %v1221_v18 = vadd.f32 %v1220_v12, %v1052_v15  ;;  %v2089_v8 = vor.u32 %v2595_v60, %v2086_v61  ;;  %v2118_v60 = vld [vmem:[%s3963_s0 + $0x198] sm:$0xf0] }
  0xa2   :  { %1259 = vmatmul.bf16.gmra.mxu1 %v2049_v9 }
  0xa3   :  { %1428 = vmatmul.bf16.gmra.mxu2 %v2053_v13 }
  0xa4   :  { %1597 = vmatmul.bf16.gmra.mxu3 %v2057_v14 }
  0xa6   :  { %v1389_v16 = vpop.f32.mrf.mxu2  ;;  %v1053_v19 = vpop.f32.mrf.mxu0 }
  0xa7   :  { %v1558_v17 = vpop.f32.mrf.mxu3  ;;  %v1222_v20 = vpop.f32.mrf.mxu1  ;;  %v1054_v21 = vadd.f32 %v3242_v10, %v1053_v19  ;;  %v1390_v24 = vadd.f32 %v1389_v16, %v1221_v18 }
  0xa9   :  { %v1223_v31 = vadd.f32 %v1222_v20, %v1054_v21  ;;  %v1559_v36 = vadd.f32 %v1558_v17, %v1390_v24  ;;  %v2092_v21 = vld [vmem:[%s3963_s0 + $0x160] sm:$0xf]  ;;  %v2598_v24 = vld [vmem:[%s3963_s0 + $0x164] sm:$0xf] }
  0xab   :  { %v1718_v43 = vmax.f32 %v1559_v36, 0.0 }
  0xae   :  { %v1391_v32 = vpop.f32.mrf.mxu2  ;;  %v1056_v38 = vpop.f32.mrf.mxu0 }
  0xaf   :  { %v1560_v33 = vpop.f32.mrf.mxu3  ;;  %v1392_v37 = vadd.f32 %v1391_v32, %v1223_v31  ;;  %v1225_v39 = vpop.f32.mrf.mxu1  ;;  %v1057_v45 = vadd.f32 %v3242_v10, %v1056_v38 }
  0xb1   :  { %v1561_v42 = vadd.f32 %v1560_v33, %v1392_v37  ;;  %1095 = vmatmul.bf16.gmra.mxu0 %v2061_v34  ;;  %v1226_v49 = vadd.f32 %v1225_v39, %v1057_v45  ;;  %v2093_v33 = vor.u32 %v2600_v22, %v2092_v21  ;;  %v2097_v34 = vor.u32 %v2598_v24, %v2094_v25  ;;  %v2608_v21 = vld [vmem:[%s3963_s0 + $0x1ac] sm:$0xf0]  ;;  %v2126_v24 = vld [vmem:[%s3963_s0 + $0x1b0] sm:$0xf0]  ;;  %v2132_v25 = vld [vmem:[%s3963_s0 + $0x1a8] sm:$0xf] }
  0xb2   :  { %1264 = vmatmul.bf16.gmra.mxu1 %v2065_v35  ;;  %v2101_v39 = vor.u32 %v2601_v27, %v2100_v26  ;;  %v2609_v26 = vld [vmem:[%s3963_s0 + $0x1b4] sm:$0xf0]  ;;  %v2607_v27 = vld [vmem:[%s3963_s0 + $0x1ac] sm:$0xf] }
  0xb3   :  { %v1719_v44 = vmax.f32 %v1561_v42, 0.0  ;;  %1433 = vmatmul.bf16.gmra.mxu2 %v2069_v40  ;;  %v2105_v40 = vor.u32 %v2599_v28, %v2102_v29  ;;  %v2134_v28 = vld [vmem:[%s3963_s0 + $0x1b8] sm:$0xf0] }
  0xb4   :  { %1602 = vmatmul.bf16.gmra.mxu3 %v2073_v41 }
  0xb5   :  { %v2717_v46 = vpack.c.bf16 %v1719_v44, %v1718_v43 }
  0xb6   :  { %v1394_v47 = vpop.f32.mrf.mxu2  ;;  %v1058_v50 = vpop.f32.mrf.mxu0 }
  0xb7   :  { %v1563_v48 = vpop.f32.mrf.mxu3  ;;  %2718 = vst [vmem:[%s3964_s3] sm:$0xff] %v2717_v46   ;;  %v1227_v51 = vpop.f32.mrf.mxu1  ;;  %v1059_v52 = vadd.f32 %v3242_v10, %v1058_v50  ;;  %v1395_v55 = vadd.f32 %v1394_v47, %v1226_v49 }
  0xb9   :  { %v1228_v62 = vadd.f32 %v1227_v51, %v1059_v52  ;;  %v1564_v3 = vadd.f32 %v1563_v48, %v1395_v55  ;;  %v2108_v52 = vld [vmem:[%s3963_s0 + $0x180] sm:$0xf]  ;;  %v2602_v55 = vld [vmem:[%s3963_s0 + $0x184] sm:$0xf] }
  0xbb   :  { %v1720_v11 = vmax.f32 %v1564_v3, 0.0 }
  0xbe   :  { %v1396_v63 = vpop.f32.mrf.mxu2  ;;  %v1061_v5 = vpop.f32.mrf.mxu0 }
  0xbf   :  { %v1565_v0 = vpop.f32.mrf.mxu3  ;;  %v1397_v4 = vadd.f32 %v1396_v63, %v1228_v62  ;;  %v1230_v6 = vpop.f32.mrf.mxu1  ;;  %v1062_v13 = vadd.f32 %v3242_v10, %v1061_v5 }
  0xc1   :  { %v1566_v9 = vadd.f32 %v1565_v0, %v1397_v4  ;;  %1100 = vmatmul.bf16.gmra.mxu0 %v2077_v1  ;;  %v1231_v17 = vadd.f32 %v1230_v6, %v1062_v13  ;;  %v2109_v0 = vor.u32 %v2604_v53, %v2108_v52  ;;  %v2113_v1 = vor.u32 %v2602_v55, %v2110_v56  ;;  %v2612_v52 = vld [vmem:[%s3963_s0 + $0x1cc] sm:$0xf0]  ;;  %v2142_v55 = vld [vmem:[%s3963_s0 + $0x1d0] sm:$0xf0]  ;;  %v2148_v56 = vld [vmem:[%s3963_s0 + $0x1c8] sm:$0xf] }
  0xc2   :  { %1269 = vmatmul.bf16.gmra.mxu1 %v2081_v2  ;;  %v2117_v6 = vor.u32 %v2605_v58, %v2116_v57  ;;  %v2613_v57 = vld [vmem:[%s3963_s0 + $0x1d4] sm:$0xf0]  ;;  %v2611_v58 = vld [vmem:[%s3963_s0 + $0x1cc] sm:$0xf] }
  0xc3   :  { %v1721_v12 = vmax.f32 %v1566_v9, 0.0  ;;  %1438 = vmatmul.bf16.gmra.mxu2 %v2085_v7  ;;  %v2121_v7 = vor.u32 %v2603_v59, %v2118_v60  ;;  %v2150_v59 = vld [vmem:[%s3963_s0 + $0x1d8] sm:$0xf0] }
  0xc4   :  { %1607 = vmatmul.bf16.gmra.mxu3 %v2089_v8 }
  0xc5   :  { %v2722_v14 = vpack.c.bf16 %v1721_v12, %v1720_v11 }
  0xc6   :  { %v1399_v15 = vpop.f32.mrf.mxu2  ;;  %v1063_v18 = vpop.f32.mrf.mxu0 }
  0xc7   :  { %v1568_v16 = vpop.f32.mrf.mxu3  ;;  %2874 = vst [vmem:[%s3964_s3 + $0x8] sm:$0xff] %v2722_v14   ;;  %v1232_v19 = vpop.f32.mrf.mxu1  ;;  %v1064_v20 = vadd.f32 %v3242_v10, %v1063_v18  ;;  %v1400_v23 = vadd.f32 %v1399_v15, %v1231_v17 }
  0xc9   :  { %v1233_v30 = vadd.f32 %v1232_v19, %v1064_v20  ;;  %v1569_v35 = vadd.f32 %v1568_v16, %v1400_v23  ;;  %v2124_v20 = vld [vmem:[%s3963_s0 + $0x1a0] sm:$0xf]  ;;  %v2606_v23 = vld [vmem:[%s3963_s0 + $0x1a4] sm:$0xf] }
  0xcb   :  { %v1722_v42 = vmax.f32 %v1569_v35, 0.0 }
  0xce   :  { %v1401_v31 = vpop.f32.mrf.mxu2  ;;  %v1066_v37 = vpop.f32.mrf.mxu0 }
  0xcf   :  { %v1570_v32 = vpop.f32.mrf.mxu3  ;;  %v1402_v36 = vadd.f32 %v1401_v31, %v1233_v30  ;;  %v1235_v38 = vpop.f32.mrf.mxu1  ;;  %v1067_v44 = vadd.f32 %v3242_v10, %v1066_v37 }
  0xd1   :  { %v1571_v41 = vadd.f32 %v1570_v32, %v1402_v36  ;;  %1105 = vmatmul.bf16.gmra.mxu0 %v2093_v33  ;;  %v1236_v48 = vadd.f32 %v1235_v38, %v1067_v44  ;;  %v2125_v32 = vor.u32 %v2608_v21, %v2124_v20  ;;  %v2129_v33 = vor.u32 %v2606_v23, %v2126_v24  ;;  %v2616_v20 = vld [vmem:[%s3963_s0 + $0x1ec] sm:$0xf0]  ;;  %v2158_v23 = vld [vmem:[%s3963_s0 + $0x1f0] sm:$0xf0]  ;;  %v2164_v24 = vld [vmem:[%s3963_s0 + $0x1e8] sm:$0xf] }
  0xd2   :  { %1274 = vmatmul.bf16.gmra.mxu1 %v2097_v34  ;;  %v2133_v38 = vor.u32 %v2609_v26, %v2132_v25  ;;  %v2617_v25 = vld [vmem:[%s3963_s0 + $0x1f4] sm:$0xf0]  ;;  %v2615_v26 = vld [vmem:[%s3963_s0 + $0x1ec] sm:$0xf] }
  0xd3   :  { %v1723_v43 = vmax.f32 %v1571_v41, 0.0  ;;  %1443 = vmatmul.bf16.gmra.mxu2 %v2101_v39  ;;  %v2137_v39 = vor.u32 %v2607_v27, %v2134_v28  ;;  %v2166_v27 = vld [vmem:[%s3963_s0 + $0x1f8] sm:$0xf0] }
  0xd4   :  { %1612 = vmatmul.bf16.gmra.mxu3 %v2105_v40 }
  0xd5   :  { %v2727_v45 = vpack.c.bf16 %v1723_v43, %v1722_v42 }
  0xd6   :  { %v1404_v46 = vpop.f32.mrf.mxu2  ;;  %v1068_v49 = vpop.f32.mrf.mxu0 }
  0xd7   :  { %v1573_v47 = vpop.f32.mrf.mxu3  ;;  %2875 = vst [vmem:[%s3964_s3 + $0x10] sm:$0xff] %v2727_v45   ;;  %v1237_v50 = vpop.f32.mrf.mxu1  ;;  %v1069_v51 = vadd.f32 %v3242_v10, %v1068_v49  ;;  %v1405_v54 = vadd.f32 %v1404_v46, %v1236_v48 }
  0xd9   :  { %v1238_v61 = vadd.f32 %v1237_v50, %v1069_v51  ;;  %v1574_v2 = vadd.f32 %v1573_v47, %v1405_v54  ;;  %v2140_v51 = vld [vmem:[%s3963_s0 + $0x1c0] sm:$0xf]  ;;  %v2610_v54 = vld [vmem:[%s3963_s0 + $0x1c4] sm:$0xf] }
  0xdb   :  { %v1724_v9 = vmax.f32 %v1574_v2, 0.0 }
  0xde   :  { %v1406_v62 = vpop.f32.mrf.mxu2  ;;  %v1071_v4 = vpop.f32.mrf.mxu0 }
  0xdf   :  { %v1575_v63 = vpop.f32.mrf.mxu3  ;;  %v1407_v3 = vadd.f32 %v1406_v62, %v1238_v61  ;;  %v1240_v5 = vpop.f32.mrf.mxu1  ;;  %v1072_v12 = vadd.f32 %v3242_v10, %v1071_v4 }
  0xe1   :  { %v1576_v8 = vadd.f32 %v1575_v63, %v1407_v3  ;;  %1110 = vmatmul.bf16.gmra.mxu0 %v2109_v0  ;;  %v1241_v16 = vadd.f32 %v1240_v5, %v1072_v12  ;;  %v2141_v63 = vor.u32 %v2612_v52, %v2140_v51  ;;  %v2145_v0 = vor.u32 %v2610_v54, %v2142_v55  ;;  %v2620_v51 = vld [vmem:[%s3963_s0 + $0x20c] sm:$0xf0]  ;;  %v2174_v54 = vld [vmem:[%s3963_s0 + $0x210] sm:$0xf0]  ;;  %v2180_v55 = vld [vmem:[%s3963_s0 + $0x208] sm:$0xf] }
  0xe2   :  { %1279 = vmatmul.bf16.gmra.mxu1 %v2113_v1  ;;  %v2149_v5 = vor.u32 %v2613_v57, %v2148_v56  ;;  %v2621_v56 = vld [vmem:[%s3963_s0 + $0x214] sm:$0xf0]  ;;  %v2619_v57 = vld [vmem:[%s3963_s0 + $0x20c] sm:$0xf] }
  0xe3   :  { %v1725_v11 = vmax.f32 %v1576_v8, 0.0  ;;  %1448 = vmatmul.bf16.gmra.mxu2 %v2117_v6  ;;  %v2153_v6 = vor.u32 %v2611_v58, %v2150_v59  ;;  %v2182_v58 = vld [vmem:[%s3963_s0 + $0x218] sm:$0xf0] }
  0xe4   :  { %1617 = vmatmul.bf16.gmra.mxu3 %v2121_v7 }
  0xe5   :  { %v2732_v13 = vpack.c.bf16 %v1725_v11, %v1724_v9 }
  0xe6   :  { %v1409_v14 = vpop.f32.mrf.mxu2  ;;  %v1073_v17 = vpop.f32.mrf.mxu0 }
  0xe7   :  { %v1578_v15 = vpop.f32.mrf.mxu3  ;;  %2876 = vst [vmem:[%s3964_s3 + $0x18] sm:$0xff] %v2732_v13   ;;  %v1242_v18 = vpop.f32.mrf.mxu1  ;;  %v1074_v19 = vadd.f32 %v3242_v10, %v1073_v17  ;;  %v1410_v22 = vadd.f32 %v1409_v14, %v1241_v16 }
  0xe9   :  { %v1243_v29 = vadd.f32 %v1242_v18, %v1074_v19  ;;  %v1579_v34 = vadd.f32 %v1578_v15, %v1410_v22  ;;  %v2156_v19 = vld [vmem:[%s3963_s0 + $0x1e0] sm:$0xf]  ;;  %v2614_v22 = vld [vmem:[%s3963_s0 + $0x1e4] sm:$0xf] }
  0xeb   :  { %v1726_v41 = vmax.f32 %v1579_v34, 0.0 }
  0xee   :  { %v1411_v30 = vpop.f32.mrf.mxu2  ;;  %v1076_v36 = vpop.f32.mrf.mxu0 }
  0xef   :  { %v1580_v31 = vpop.f32.mrf.mxu3  ;;  %v1412_v35 = vadd.f32 %v1411_v30, %v1243_v29  ;;  %v1245_v37 = vpop.f32.mrf.mxu1  ;;  %v1077_v43 = vadd.f32 %v3242_v10, %v1076_v36 }
  0xf1   :  { %v1581_v40 = vadd.f32 %v1580_v31, %v1412_v35  ;;  %1115 = vmatmul.bf16.gmra.mxu0 %v2125_v32  ;;  %v1246_v47 = vadd.f32 %v1245_v37, %v1077_v43  ;;  %v2157_v31 = vor.u32 %v2616_v20, %v2156_v19  ;;  %v2161_v32 = vor.u32 %v2614_v22, %v2158_v23  ;;  %v2624_v19 = vld [vmem:[%s3963_s0 + $0x22c] sm:$0xf0]  ;;  %v2190_v22 = vld [vmem:[%s3963_s0 + $0x230] sm:$0xf0]  ;;  %v2196_v23 = vld [vmem:[%s3963_s0 + $0x228] sm:$0xf] }
  0xf2   :  { %1284 = vmatmul.bf16.gmra.mxu1 %v2129_v33  ;;  %v2165_v37 = vor.u32 %v2617_v25, %v2164_v24  ;;  %v2625_v24 = vld [vmem:[%s3963_s0 + $0x234] sm:$0xf0]  ;;  %v2623_v25 = vld [vmem:[%s3963_s0 + $0x22c] sm:$0xf] }
  0xf3   :  { %v1727_v42 = vmax.f32 %v1581_v40, 0.0  ;;  %1453 = vmatmul.bf16.gmra.mxu2 %v2133_v38  ;;  %v2169_v38 = vor.u32 %v2615_v26, %v2166_v27  ;;  %v2198_v26 = vld [vmem:[%s3963_s0 + $0x238] sm:$0xf0] }
  0xf4   :  { %1622 = vmatmul.bf16.gmra.mxu3 %v2137_v39 }
  0xf5   :  { %v2737_v44 = vpack.c.bf16 %v1727_v42, %v1726_v41 }
  0xf6   :  { %v1414_v45 = vpop.f32.mrf.mxu2  ;;  %v1078_v48 = vpop.f32.mrf.mxu0 }
  0xf7   :  { %v1583_v46 = vpop.f32.mrf.mxu3  ;;  %2877 = vst [vmem:[%s3964_s3 + $0x20] sm:$0xff] %v2737_v44   ;;  %v1247_v49 = vpop.f32.mrf.mxu1  ;;  %v1079_v50 = vadd.f32 %v3242_v10, %v1078_v48  ;;  %v1415_v53 = vadd.f32 %v1414_v45, %v1246_v47 }
  0xf9   :  { %v1248_v60 = vadd.f32 %v1247_v49, %v1079_v50  ;;  %v1584_v1 = vadd.f32 %v1583_v46, %v1415_v53  ;;  %v2172_v50 = vld [vmem:[%s3963_s0 + $0x200] sm:$0xf]  ;;  %v2618_v53 = vld [vmem:[%s3963_s0 + $0x204] sm:$0xf] }
  0xfb   :  { %v1728_v8 = vmax.f32 %v1584_v1, 0.0 }
  0xfe   :  { %v1416_v61 = vpop.f32.mrf.mxu2  ;;  %v1081_v3 = vpop.f32.mrf.mxu0 }
  0xff   :  { %v1585_v62 = vpop.f32.mrf.mxu3  ;;  %v1417_v2 = vadd.f32 %v1416_v61, %v1248_v60  ;;  %v1250_v4 = vpop.f32.mrf.mxu1  ;;  %v1082_v11 = vadd.f32 %v3242_v10, %v1081_v3 }
 0x101   :  { %v1586_v7 = vadd.f32 %v1585_v62, %v1417_v2  ;;  %1120 = vmatmul.bf16.gmra.mxu0 %v2141_v63  ;;  %v1251_v15 = vadd.f32 %v1250_v4, %v1082_v11  ;;  %v2173_v62 = vor.u32 %v2620_v51, %v2172_v50  ;;  %v2177_v63 = vor.u32 %v2618_v53, %v2174_v54  ;;  %v2628_v50 = vld [vmem:[%s3963_s0 + $0x24c] sm:$0xf0]  ;;  %v2206_v53 = vld [vmem:[%s3963_s0 + $0x250] sm:$0xf0]  ;;  %v2212_v54 = vld [vmem:[%s3963_s0 + $0x248] sm:$0xf] }
 0x102   :  { %1289 = vmatmul.bf16.gmra.mxu1 %v2145_v0  ;;  %v2181_v4 = vor.u32 %v2621_v56, %v2180_v55  ;;  %v2629_v55 = vld [vmem:[%s3963_s0 + $0x254] sm:$0xf0]  ;;  %v2627_v56 = vld [vmem:[%s3963_s0 + $0x24c] sm:$0xf] }
 0x103   :  { %v1729_v9 = vmax.f32 %v1586_v7, 0.0  ;;  %1458 = vmatmul.bf16.gmra.mxu2 %v2149_v5  ;;  %v2185_v5 = vor.u32 %v2619_v57, %v2182_v58  ;;  %v2214_v57 = vld [vmem:[%s3963_s0 + $0x258] sm:$0xf0] }
 0x104   :  { %1627 = vmatmul.bf16.gmra.mxu3 %v2153_v6 }
 0x105   :  { %v2742_v12 = vpack.c.bf16 %v1729_v9, %v1728_v8 }
 0x106   :  { %v1419_v13 = vpop.f32.mrf.mxu2  ;;  %v1083_v16 = vpop.f32.mrf.mxu0 }
 0x107   :  { %v1588_v14 = vpop.f32.mrf.mxu3  ;;  %2878 = vst [vmem:[%s3964_s3 + $0x28] sm:$0xff] %v2742_v12   ;;  %v1252_v17 = vpop.f32.mrf.mxu1  ;;  %v1084_v18 = vadd.f32 %v3242_v10, %v1083_v16  ;;  %v1420_v21 = vadd.f32 %v1419_v13, %v1251_v15 }
 0x109   :  { %v1253_v28 = vadd.f32 %v1252_v17, %v1084_v18  ;;  %v1589_v33 = vadd.f32 %v1588_v14, %v1420_v21  ;;  %v2188_v18 = vld [vmem:[%s3963_s0 + $0x220] sm:$0xf]  ;;  %v2622_v21 = vld [vmem:[%s3963_s0 + $0x224] sm:$0xf] }
 0x10b   :  { %v1730_v40 = vmax.f32 %v1589_v33, 0.0 }
 0x10e   :  { %v1421_v29 = vpop.f32.mrf.mxu2  ;;  %v1086_v35 = vpop.f32.mrf.mxu0 }
 0x10f   :  { %v1590_v30 = vpop.f32.mrf.mxu3  ;;  %v1422_v34 = vadd.f32 %v1421_v29, %v1253_v28  ;;  %v1255_v36 = vpop.f32.mrf.mxu1  ;;  %v1087_v42 = vadd.f32 %v3242_v10, %v1086_v35 }
 0x111   :  { %v1591_v39 = vadd.f32 %v1590_v30, %v1422_v34  ;;  %1125 = vmatmul.bf16.gmra.mxu0 %v2157_v31  ;;  %v1256_v46 = vadd.f32 %v1255_v36, %v1087_v42  ;;  %v2189_v30 = vor.u32 %v2624_v19, %v2188_v18  ;;  %v2193_v31 = vor.u32 %v2622_v21, %v2190_v22  ;;  %v2632_v18 = vld [vmem:[%s3963_s0 + $0x26c] sm:$0xf0]  ;;  %v2222_v21 = vld [vmem:[%s3963_s0 + $0x270] sm:$0xf0]  ;;  %v2228_v22 = vld [vmem:[%s3963_s0 + $0x268] sm:$0xf] }
 0x112   :  { %1294 = vmatmul.bf16.gmra.mxu1 %v2161_v32  ;;  %v2197_v36 = vor.u32 %v2625_v24, %v2196_v23  ;;  %v2633_v23 = vld [vmem:[%s3963_s0 + $0x274] sm:$0xf0]  ;;  %v2631_v24 = vld [vmem:[%s3963_s0 + $0x26c] sm:$0xf] }
 0x113   :  { %v1731_v41 = vmax.f32 %v1591_v39, 0.0  ;;  %1463 = vmatmul.bf16.gmra.mxu2 %v2165_v37  ;;  %v2201_v37 = vor.u32 %v2623_v25, %v2198_v26  ;;  %v2230_v25 = vld [vmem:[%s3963_s0 + $0x278] sm:$0xf0] }
 0x114   :  { %1632 = vmatmul.bf16.gmra.mxu3 %v2169_v38 }
 0x115   :  { %v2747_v43 = vpack.c.bf16 %v1731_v41, %v1730_v40 }
 0x116   :  { %v1424_v44 = vpop.f32.mrf.mxu2  ;;  %v1088_v47 = vpop.f32.mrf.mxu0 }
 0x117   :  { %v1593_v45 = vpop.f32.mrf.mxu3  ;;  %2879 = vst [vmem:[%s3964_s3 + $0x30] sm:$0xff] %v2747_v43   ;;  %v1257_v48 = vpop.f32.mrf.mxu1  ;;  %v1089_v49 = vadd.f32 %v3242_v10, %v1088_v47  ;;  %v1425_v52 = vadd.f32 %v1424_v44, %v1256_v46 }
 0x119   :  { %v1258_v59 = vadd.f32 %v1257_v48, %v1089_v49  ;;  %v1594_v0 = vadd.f32 %v1593_v45, %v1425_v52  ;;  %v2204_v49 = vld [vmem:[%s3963_s0 + $0x240] sm:$0xf]  ;;  %v2626_v52 = vld [vmem:[%s3963_s0 + $0x244] sm:$0xf] }
 0x11b   :  { %v1732_v7 = vmax.f32 %v1594_v0, 0.0 }
 0x11e   :  { %v1426_v60 = vpop.f32.mrf.mxu2  ;;  %v1091_v2 = vpop.f32.mrf.mxu0 }
 0x11f   :  { %v1595_v61 = vpop.f32.mrf.mxu3  ;;  %v1427_v1 = vadd.f32 %v1426_v60, %v1258_v59  ;;  %v1260_v3 = vpop.f32.mrf.mxu1  ;;  %v1092_v9 = vadd.f32 %v3242_v10, %v1091_v2 }
 0x121   :  { %v1596_v6 = vadd.f32 %v1595_v61, %v1427_v1  ;;  %1130 = vmatmul.bf16.gmra.mxu0 %v2173_v62  ;;  %v1261_v14 = vadd.f32 %v1260_v3, %v1092_v9  ;;  %v2205_v61 = vor.u32 %v2628_v50, %v2204_v49  ;;  %v2209_v62 = vor.u32 %v2626_v52, %v2206_v53  ;;  %v2636_v49 = vld [vmem:[%s3963_s0 + $0x28c] sm:$0xf0]  ;;  %v2238_v52 = vld [vmem:[%s3963_s0 + $0x290] sm:$0xf0]  ;;  %v2244_v53 = vld [vmem:[%s3963_s0 + $0x288] sm:$0xf] }
 0x122   :  { %1299 = vmatmul.bf16.gmra.mxu1 %v2177_v63  ;;  %v2213_v3 = vor.u32 %v2629_v55, %v2212_v54  ;;  %v2637_v54 = vld [vmem:[%s3963_s0 + $0x294] sm:$0xf0]  ;;  %v2635_v55 = vld [vmem:[%s3963_s0 + $0x28c] sm:$0xf] }
 0x123   :  { %v1733_v8 = vmax.f32 %v1596_v6, 0.0  ;;  %1468 = vmatmul.bf16.gmra.mxu2 %v2181_v4  ;;  %v2217_v4 = vor.u32 %v2627_v56, %v2214_v57  ;;  %v2246_v56 = vld [vmem:[%s3963_s0 + $0x298] sm:$0xf0] }
 0x124   :  { %1637 = vmatmul.bf16.gmra.mxu3 %v2185_v5 }
 0x125   :  { %v2752_v11 = vpack.c.bf16 %v1733_v8, %v1732_v7 }
 0x126   :  { %v1429_v12 = vpop.f32.mrf.mxu2  ;;  %v1093_v15 = vpop.f32.mrf.mxu0 }
 0x127   :  { %v1598_v13 = vpop.f32.mrf.mxu3  ;;  %2880 = vst [vmem:[%s3964_s3 + $0x38] sm:$0xff] %v2752_v11   ;;  %v1262_v16 = vpop.f32.mrf.mxu1  ;;  %v1094_v17 = vadd.f32 %v3242_v10, %v1093_v15  ;;  %v1430_v20 = vadd.f32 %v1429_v12, %v1261_v14 }
 0x129   :  { %v1263_v27 = vadd.f32 %v1262_v16, %v1094_v17  ;;  %v1599_v32 = vadd.f32 %v1598_v13, %v1430_v20  ;;  %v2220_v17 = vld [vmem:[%s3963_s0 + $0x260] sm:$0xf]  ;;  %v2630_v20 = vld [vmem:[%s3963_s0 + $0x264] sm:$0xf] }
 0x12b   :  { %v1734_v39 = vmax.f32 %v1599_v32, 0.0 }
 0x12e   :  { %v1431_v28 = vpop.f32.mrf.mxu2  ;;  %v1096_v34 = vpop.f32.mrf.mxu0 }
 0x12f   :  { %v1600_v29 = vpop.f32.mrf.mxu3  ;;  %v1432_v33 = vadd.f32 %v1431_v28, %v1263_v27  ;;  %v1265_v35 = vpop.f32.mrf.mxu1  ;;  %v1097_v41 = vadd.f32 %v3242_v10, %v1096_v34 }
 0x131   :  { %v1601_v38 = vadd.f32 %v1600_v29, %v1432_v33  ;;  %1135 = vmatmul.bf16.gmra.mxu0 %v2189_v30  ;;  %v1266_v45 = vadd.f32 %v1265_v35, %v1097_v41  ;;  %v2221_v29 = vor.u32 %v2632_v18, %v2220_v17  ;;  %v2225_v30 = vor.u32 %v2630_v20, %v2222_v21  ;;  %v2640_v17 = vld [vmem:[%s3963_s0 + $0x2ac] sm:$0xf0]  ;;  %v2254_v20 = vld [vmem:[%s3963_s0 + $0x2b0] sm:$0xf0]  ;;  %v2260_v21 = vld [vmem:[%s3963_s0 + $0x2a8] sm:$0xf] }
 0x132   :  { %1304 = vmatmul.bf16.gmra.mxu1 %v2193_v31  ;;  %v2229_v35 = vor.u32 %v2633_v23, %v2228_v22  ;;  %v2641_v22 = vld [vmem:[%s3963_s0 + $0x2b4] sm:$0xf0]  ;;  %v2639_v23 = vld [vmem:[%s3963_s0 + $0x2ac] sm:$0xf] }
 0x133   :  { %v1735_v40 = vmax.f32 %v1601_v38, 0.0  ;;  %1473 = vmatmul.bf16.gmra.mxu2 %v2197_v36  ;;  %v2233_v36 = vor.u32 %v2631_v24, %v2230_v25  ;;  %v2262_v24 = vld [vmem:[%s3963_s0 + $0x2b8] sm:$0xf0] }
 0x134   :  { %1642 = vmatmul.bf16.gmra.mxu3 %v2201_v37 }
 0x135   :  { %v2757_v42 = vpack.c.bf16 %v1735_v40, %v1734_v39 }
 0x136   :  { %v1434_v43 = vpop.f32.mrf.mxu2  ;;  %v1098_v46 = vpop.f32.mrf.mxu0 }
 0x137   :  { %v1603_v44 = vpop.f32.mrf.mxu3  ;;  %2881 = vst [vmem:[%s3964_s3 + $0x40] sm:$0xff] %v2757_v42   ;;  %v1267_v47 = vpop.f32.mrf.mxu1  ;;  %v1099_v48 = vadd.f32 %v3242_v10, %v1098_v46  ;;  %v1435_v51 = vadd.f32 %v1434_v43, %v1266_v45 }
 0x139   :  { %v1268_v58 = vadd.f32 %v1267_v47, %v1099_v48  ;;  %v1604_v63 = vadd.f32 %v1603_v44, %v1435_v51  ;;  %v2236_v48 = vld [vmem:[%s3963_s0 + $0x280] sm:$0xf]  ;;  %v2634_v51 = vld [vmem:[%s3963_s0 + $0x284] sm:$0xf] }
 0x13b   :  { %v1736_v6 = vmax.f32 %v1604_v63, 0.0 }
 0x13e   :  { %v1436_v59 = vpop.f32.mrf.mxu2  ;;  %v1101_v1 = vpop.f32.mrf.mxu0 }
 0x13f   :  { %v1605_v60 = vpop.f32.mrf.mxu3  ;;  %v1437_v0 = vadd.f32 %v1436_v59, %v1268_v58  ;;  %v1270_v2 = vpop.f32.mrf.mxu1  ;;  %v1102_v8 = vadd.f32 %v3242_v10, %v1101_v1 }
 0x141   :  { %v1606_v5 = vadd.f32 %v1605_v60, %v1437_v0  ;;  %1140 = vmatmul.bf16.gmra.mxu0 %v2205_v61  ;;  %v1271_v13 = vadd.f32 %v1270_v2, %v1102_v8  ;;  %v2237_v60 = vor.u32 %v2636_v49, %v2236_v48  ;;  %v2241_v61 = vor.u32 %v2634_v51, %v2238_v52  ;;  %v2644_v48 = vld [vmem:[%s3963_s0 + $0x2cc] sm:$0xf0]  ;;  %v2270_v51 = vld [vmem:[%s3963_s0 + $0x2d0] sm:$0xf0]  ;;  %v2276_v52 = vld [vmem:[%s3963_s0 + $0x2c8] sm:$0xf] }
 0x142   :  { %1309 = vmatmul.bf16.gmra.mxu1 %v2209_v62  ;;  %v2245_v2 = vor.u32 %v2637_v54, %v2244_v53  ;;  %v2645_v53 = vld [vmem:[%s3963_s0 + $0x2d4] sm:$0xf0]  ;;  %v2643_v54 = vld [vmem:[%s3963_s0 + $0x2cc] sm:$0xf] }
 0x143   :  { %v1737_v7 = vmax.f32 %v1606_v5, 0.0  ;;  %1478 = vmatmul.bf16.gmra.mxu2 %v2213_v3  ;;  %v2249_v3 = vor.u32 %v2635_v55, %v2246_v56  ;;  %v2278_v55 = vld [vmem:[%s3963_s0 + $0x2d8] sm:$0xf0] }
 0x144   :  { %1647 = vmatmul.bf16.gmra.mxu3 %v2217_v4 }
 0x145   :  { %v2762_v9 = vpack.c.bf16 %v1737_v7, %v1736_v6 }
 0x146   :  { %v1439_v11 = vpop.f32.mrf.mxu2  ;;  %v1103_v14 = vpop.f32.mrf.mxu0 }
 0x147   :  { %v1608_v12 = vpop.f32.mrf.mxu3  ;;  %2882 = vst [vmem:[%s3964_s3 + $0x48] sm:$0xff] %v2762_v9   ;;  %v1272_v15 = vpop.f32.mrf.mxu1  ;;  %v1104_v16 = vadd.f32 %v3242_v10, %v1103_v14  ;;  %v1440_v19 = vadd.f32 %v1439_v11, %v1271_v13 }
 0x149   :  { %v1273_v26 = vadd.f32 %v1272_v15, %v1104_v16  ;;  %v1609_v31 = vadd.f32 %v1608_v12, %v1440_v19  ;;  %v2252_v16 = vld [vmem:[%s3963_s0 + $0x2a0] sm:$0xf]  ;;  %v2638_v19 = vld [vmem:[%s3963_s0 + $0x2a4] sm:$0xf] }
 0x14b   :  { %v1738_v38 = vmax.f32 %v1609_v31, 0.0 }
 0x14e   :  { %v1441_v27 = vpop.f32.mrf.mxu2  ;;  %v1106_v33 = vpop.f32.mrf.mxu0 }
 0x14f   :  { %v1610_v28 = vpop.f32.mrf.mxu3  ;;  %v1442_v32 = vadd.f32 %v1441_v27, %v1273_v26  ;;  %v1275_v34 = vpop.f32.mrf.mxu1  ;;  %v1107_v40 = vadd.f32 %v3242_v10, %v1106_v33 }
 0x151   :  { %v1611_v37 = vadd.f32 %v1610_v28, %v1442_v32  ;;  %1145 = vmatmul.bf16.gmra.mxu0 %v2221_v29  ;;  %v1276_v44 = vadd.f32 %v1275_v34, %v1107_v40  ;;  %v2253_v28 = vor.u32 %v2640_v17, %v2252_v16  ;;  %v2257_v29 = vor.u32 %v2638_v19, %v2254_v20  ;;  %v2648_v16 = vld [vmem:[%s3963_s0 + $0x2ec] sm:$0xf0]  ;;  %v2286_v19 = vld [vmem:[%s3963_s0 + $0x2f0] sm:$0xf0]  ;;  %v2292_v20 = vld [vmem:[%s3963_s0 + $0x2e8] sm:$0xf] }
 0x152   :  { %1314 = vmatmul.bf16.gmra.mxu1 %v2225_v30  ;;  %v2261_v34 = vor.u32 %v2641_v22, %v2260_v21  ;;  %v2649_v21 = vld [vmem:[%s3963_s0 + $0x2f4] sm:$0xf0]  ;;  %v2647_v22 = vld [vmem:[%s3963_s0 + $0x2ec] sm:$0xf] }
 0x153   :  { %v1739_v39 = vmax.f32 %v1611_v37, 0.0  ;;  %1483 = vmatmul.bf16.gmra.mxu2 %v2229_v35  ;;  %v2265_v35 = vor.u32 %v2639_v23, %v2262_v24  ;;  %v2294_v23 = vld [vmem:[%s3963_s0 + $0x2f8] sm:$0xf0] }
 0x154   :  { %1652 = vmatmul.bf16.gmra.mxu3 %v2233_v36 }
 0x155   :  { %v2767_v41 = vpack.c.bf16 %v1739_v39, %v1738_v38 }
 0x156   :  { %v1444_v42 = vpop.f32.mrf.mxu2  ;;  %v1108_v45 = vpop.f32.mrf.mxu0 }
 0x157   :  { %v1613_v43 = vpop.f32.mrf.mxu3  ;;  %2883 = vst [vmem:[%s3964_s3 + $0x50] sm:$0xff] %v2767_v41   ;;  %v1277_v46 = vpop.f32.mrf.mxu1  ;;  %v1109_v47 = vadd.f32 %v3242_v10, %v1108_v45  ;;  %v1445_v50 = vadd.f32 %v1444_v42, %v1276_v44 }
 0x159   :  { %v1278_v57 = vadd.f32 %v1277_v46, %v1109_v47  ;;  %v1614_v62 = vadd.f32 %v1613_v43, %v1445_v50  ;;  %v2268_v47 = vld [vmem:[%s3963_s0 + $0x2c0] sm:$0xf]  ;;  %v2642_v50 = vld [vmem:[%s3963_s0 + $0x2c4] sm:$0xf] }
 0x15b   :  { %v1740_v5 = vmax.f32 %v1614_v62, 0.0 }
 0x15e   :  { %v1446_v58 = vpop.f32.mrf.mxu2  ;;  %v1111_v0 = vpop.f32.mrf.mxu0 }
 0x15f   :  { %v1615_v59 = vpop.f32.mrf.mxu3  ;;  %v1447_v63 = vadd.f32 %v1446_v58, %v1278_v57  ;;  %v1280_v1 = vpop.f32.mrf.mxu1  ;;  %v1112_v7 = vadd.f32 %v3242_v10, %v1111_v0 }
 0x161   :  { %v1616_v4 = vadd.f32 %v1615_v59, %v1447_v63  ;;  %1150 = vmatmul.bf16.gmra.mxu0 %v2237_v60  ;;  %v1281_v12 = vadd.f32 %v1280_v1, %v1112_v7  ;;  %v2269_v59 = vor.u32 %v2644_v48, %v2268_v47  ;;  %v2273_v60 = vor.u32 %v2642_v50, %v2270_v51  ;;  %v2652_v47 = vld [vmem:[%s3963_s0 + $0x30c] sm:$0xf0]  ;;  %v2302_v50 = vld [vmem:[%s3963_s0 + $0x310] sm:$0xf0]  ;;  %v2308_v51 = vld [vmem:[%s3963_s0 + $0x308] sm:$0xf] }
 0x162   :  { %1319 = vmatmul.bf16.gmra.mxu1 %v2241_v61  ;;  %v2277_v1 = vor.u32 %v2645_v53, %v2276_v52  ;;  %v2653_v52 = vld [vmem:[%s3963_s0 + $0x314] sm:$0xf0]  ;;  %v2651_v53 = vld [vmem:[%s3963_s0 + $0x30c] sm:$0xf] }
 0x163   :  { %v1741_v6 = vmax.f32 %v1616_v4, 0.0  ;;  %1488 = vmatmul.bf16.gmra.mxu2 %v2245_v2  ;;  %v2281_v2 = vor.u32 %v2643_v54, %v2278_v55  ;;  %v2310_v54 = vld [vmem:[%s3963_s0 + $0x318] sm:$0xf0] }
 0x164   :  { %1657 = vmatmul.bf16.gmra.mxu3 %v2249_v3 }
 0x165   :  { %v2772_v8 = vpack.c.bf16 %v1741_v6, %v1740_v5 }
 0x166   :  { %v1449_v9 = vpop.f32.mrf.mxu2  ;;  %v1113_v13 = vpop.f32.mrf.mxu0 }
 0x167   :  { %v1618_v11 = vpop.f32.mrf.mxu3  ;;  %2884 = vst [vmem:[%s3964_s3 + $0x58] sm:$0xff] %v2772_v8   ;;  %v1282_v14 = vpop.f32.mrf.mxu1  ;;  %v1114_v15 = vadd.f32 %v3242_v10, %v1113_v13  ;;  %v1450_v18 = vadd.f32 %v1449_v9, %v1281_v12 }
 0x169   :  { %v1283_v25 = vadd.f32 %v1282_v14, %v1114_v15  ;;  %v1619_v30 = vadd.f32 %v1618_v11, %v1450_v18  ;;  %v3654_v14 = vld [vmem:[%s3962_s2] ss:$0 sm:$0xff]  ;;  %v2646_v18 = vld [vmem:[%s3963_s0 + $0x2e4] sm:$0xf] }
 0x16b   :  { %v1742_v37 = vmax.f32 %v1619_v30, 0.0 }
 0x16e   :  { %v1451_v26 = vpop.f32.mrf.mxu2  ;;  %v1116_v32 = vpop.f32.mrf.mxu0 }
 0x16f   :  { %v1620_v27 = vpop.f32.mrf.mxu3  ;;  %v1452_v31 = vadd.f32 %v1451_v26, %v1283_v25  ;;  %v1285_v33 = vpop.f32.mrf.mxu1  ;;  %v1117_v39 = vadd.f32 %v3242_v10, %v1116_v32 }
 0x171   :  { %v1621_v36 = vadd.f32 %v1620_v27, %v1452_v31  ;;  %1155 = vmatmul.bf16.gmra.mxu0 %v2253_v28  ;;  %v1286_v43 = vadd.f32 %v1285_v33, %v1117_v39  ;;  %v2289_v28 = vor.u32 %v2646_v18, %v2286_v19  ;;  %v2293_v33 = vor.u32 %v2649_v21, %v2292_v20  ;;  %v2318_v18 = vld [vmem:[%s3963_s0 + $0x330] sm:$0xf0]  ;;  %v2324_v19 = vld [vmem:[%s3963_s0 + $0x328] sm:$0xf]  ;;  %v2657_v20 = vld [vmem:[%s3963_s0 + $0x334] sm:$0xf0] }
 0x172   :  { %1324 = vmatmul.bf16.gmra.mxu1 %v2257_v29  ;;  %v2655_v21 = vld [vmem:[%s3963_s0 + $0x32c] sm:$0xf] }
 0x173   :  { %v1743_v38 = vmax.f32 %v1621_v36, 0.0  ;;  %1493 = vmatmul.bf16.gmra.mxu2 %v2261_v34  ;;  %v2297_v34 = vor.u32 %v2647_v22, %v2294_v23  ;;  %v2326_v22 = vld [vmem:[%s3963_s0 + $0x338] sm:$0xf0] }
 0x174   :  { %1662 = vmatmul.bf16.gmra.mxu3 %v2265_v35 }
 0x175   :  { %v2777_v40 = vpack.c.bf16 %v1743_v38, %v1742_v37 }
 0x176   :  { %v1454_v41 = vpop.f32.mrf.mxu2  ;;  %v1118_v44 = vpop.f32.mrf.mxu0 }
 0x177   :  { %v1623_v42 = vpop.f32.mrf.mxu3  ;;  %2885 = vst [vmem:[%s3964_s3 + $0x60] sm:$0xff] %v2777_v40   ;;  %v1287_v45 = vpop.f32.mrf.mxu1  ;;  %v1119_v46 = vadd.f32 %v3242_v10, %v1118_v44  ;;  %v1455_v49 = vadd.f32 %v1454_v41, %v1286_v43 }
 0x179   :  { %v1288_v56 = vadd.f32 %v1287_v45, %v1119_v46  ;;  %v1624_v61 = vadd.f32 %v1623_v42, %v1455_v49  ;;  %v2300_v46 = vld [vmem:[%s3963_s0 + $0x300] sm:$0xf]  ;;  %v2650_v49 = vld [vmem:[%s3963_s0 + $0x304] sm:$0xf] }
 0x17b   :  { %v1744_v4 = vmax.f32 %v1624_v61, 0.0 }
 0x17e   :  { %v1456_v57 = vpop.f32.mrf.mxu2  ;;  %v1121_v63 = vpop.f32.mrf.mxu0 }
 0x17f   :  { %v1625_v58 = vpop.f32.mrf.mxu3  ;;  %v1457_v62 = vadd.f32 %v1456_v57, %v1288_v56  ;;  %v1290_v0 = vpop.f32.mrf.mxu1  ;;  %v1122_v6 = vadd.f32 %v3242_v10, %v1121_v63  ;;  %v2284_v10 = vld [vmem:[%s3963_s0 + $0x2e0] sm:$0xf] }
 0x180   :  { %v2285_v27 = vor.u32 %v2648_v16, %v2284_v10  ;;  %v2656_v10 = vld [vmem:[%s3963_s0 + $0x32c] sm:$0xf0] }
 0x181   :  { %v1626_v3 = vadd.f32 %v1625_v58, %v1457_v62  ;;  %1160 = vmatmul.bf16.gmra.mxu0 %v2269_v59  ;;  %v1291_v11 = vadd.f32 %v1290_v0, %v1122_v6  ;;  %v2301_v58 = vor.u32 %v2652_v47, %v2300_v46  ;;  %v2305_v59 = vor.u32 %v2650_v49, %v2302_v50  ;;  %v2660_v46 = vld [vmem:[%s3963_s0 + $0x34c] sm:$0xf0]  ;;  %v2334_v49 = vld [vmem:[%s3963_s0 + $0x350] sm:$0xf0]  ;;  %v2340_v50 = vld [vmem:[%s3963_s0 + $0x348] sm:$0xf] }
 0x182   :  { %1329 = vmatmul.bf16.gmra.mxu1 %v2273_v60  ;;  %v2309_v0 = vor.u32 %v2653_v52, %v2308_v51  ;;  %v2661_v51 = vld [vmem:[%s3963_s0 + $0x354] sm:$0xf0]  ;;  %v2659_v52 = vld [vmem:[%s3963_s0 + $0x34c] sm:$0xf] }
 0x183   :  { %v1745_v5 = vmax.f32 %v1626_v3, 0.0  ;;  %1498 = vmatmul.bf16.gmra.mxu2 %v2277_v1  ;;  %v2313_v1 = vor.u32 %v2651_v53, %v2310_v54  ;;  %v2342_v53 = vld [vmem:[%s3963_s0 + $0x358] sm:$0xf0] }
 0x184   :  { %1667 = vmatmul.bf16.gmra.mxu3 %v2281_v2 }
 0x185   :  { %v2782_v7 = vpack.c.bf16 %v1745_v5, %v1744_v4 }
 0x186   :  { %v1459_v8 = vpop.f32.mrf.mxu2  ;;  %v1123_v12 = vpop.f32.mrf.mxu0 }
 0x187   :  { %v1628_v9 = vpop.f32.mrf.mxu3  ;;  %2886 = vst [vmem:[%s3964_s3 + $0x68] sm:$0xff] %v2782_v7   ;;  %v1292_v13 = vpop.f32.mrf.mxu1  ;;  %v1124_v15 = vadd.f32 %v3654_v14, %v1123_v12  ;;  %v1460_v17 = vadd.f32 %v1459_v8, %v1291_v11 }
 0x189   :  { %v1293_v24 = vadd.f32 %v1292_v13, %v1124_v15  ;;  %v1629_v29 = vadd.f32 %v1628_v9, %v1460_v17  ;;  %v2316_v15 = vld [vmem:[%s3963_s0 + $0x320] sm:$0xf]  ;;  %v2654_v17 = vld [vmem:[%s3963_s0 + $0x324] sm:$0xf] }
 0x18b   :  { %v1746_v36 = vmax.f32 %v1629_v29, 0.0 }
 0x18e   :  { %v1461_v25 = vpop.f32.mrf.mxu2  ;;  %v1126_v31 = vpop.f32.mrf.mxu0 }
 0x18f   :  { %v1630_v26 = vpop.f32.mrf.mxu3  ;;  %v1462_v30 = vadd.f32 %v1461_v25, %v1293_v24  ;;  %v1295_v32 = vpop.f32.mrf.mxu1  ;;  %v1127_v38 = vadd.f32 %v3654_v14, %v1126_v31 }
 0x191   :  { %v1631_v35 = vadd.f32 %v1630_v26, %v1462_v30  ;;  %1165 = vmatmul.bf16.gmra.mxu0 %v2285_v27  ;;  %v1296_v42 = vadd.f32 %v1295_v32, %v1127_v38  ;;  %v2317_v26 = vor.u32 %v2656_v10, %v2316_v15  ;;  %v2321_v27 = vor.u32 %v2654_v17, %v2318_v18  ;;  %v2664_v15 = vld [vmem:[%s3963_s0 + $0x36c] sm:$0xf0]  ;;  %v2350_v17 = vld [vmem:[%s3963_s0 + $0x370] sm:$0xf0]  ;;  %v2356_v18 = vld [vmem:[%s3963_s0 + $0x368] sm:$0xf] }
 0x192   :  { %1334 = vmatmul.bf16.gmra.mxu1 %v2289_v28  ;;  %v2325_v32 = vor.u32 %v2657_v20, %v2324_v19  ;;  %v2665_v19 = vld [vmem:[%s3963_s0 + $0x374] sm:$0xf0]  ;;  %v2663_v20 = vld [vmem:[%s3963_s0 + $0x36c] sm:$0xf] }
 0x193   :  { %v1747_v37 = vmax.f32 %v1631_v35, 0.0  ;;  %1503 = vmatmul.bf16.gmra.mxu2 %v2293_v33  ;;  %v2329_v33 = vor.u32 %v2655_v21, %v2326_v22  ;;  %v2358_v21 = vld [vmem:[%s3963_s0 + $0x378] sm:$0xf0] }
 0x194   :  { %1672 = vmatmul.bf16.gmra.mxu3 %v2297_v34 }
 0x195   :  { %v2787_v39 = vpack.c.bf16 %v1747_v37, %v1746_v36 }
 0x196   :  { %v1464_v40 = vpop.f32.mrf.mxu2  ;;  %v1128_v43 = vpop.f32.mrf.mxu0 }
 0x197   :  { %v1633_v41 = vpop.f32.mrf.mxu3  ;;  %2887 = vst [vmem:[%s3964_s3 + $0x70] sm:$0xff] %v2787_v39   ;;  %v1297_v44 = vpop.f32.mrf.mxu1  ;;  %v1129_v45 = vadd.f32 %v3654_v14, %v1128_v43  ;;  %v1465_v48 = vadd.f32 %v1464_v40, %v1296_v42 }
 0x199   :  { %v1298_v55 = vadd.f32 %v1297_v44, %v1129_v45  ;;  %v1634_v60 = vadd.f32 %v1633_v41, %v1465_v48  ;;  %v2332_v45 = vld [vmem:[%s3963_s0 + $0x340] sm:$0xf]  ;;  %v2658_v48 = vld [vmem:[%s3963_s0 + $0x344] sm:$0xf] }
 0x19b   :  { %v1748_v3 = vmax.f32 %v1634_v60, 0.0 }
 0x19e   :  { %v1466_v56 = vpop.f32.mrf.mxu2  ;;  %v1131_v62 = vpop.f32.mrf.mxu0 }
 0x19f   :  { %v1635_v57 = vpop.f32.mrf.mxu3  ;;  %v1467_v61 = vadd.f32 %v1466_v56, %v1298_v55  ;;  %v1300_v63 = vpop.f32.mrf.mxu1  ;;  %v1132_v5 = vadd.f32 %v3654_v14, %v1131_v62 }
 0x1a1   :  { %v1636_v2 = vadd.f32 %v1635_v57, %v1467_v61  ;;  %1170 = vmatmul.bf16.gmra.mxu0 %v2301_v58  ;;  %v1301_v9 = vadd.f32 %v1300_v63, %v1132_v5  ;;  %v2333_v57 = vor.u32 %v2660_v46, %v2332_v45  ;;  %v2337_v58 = vor.u32 %v2658_v48, %v2334_v49  ;;  %v2668_v45 = vld [vmem:[%s3963_s0 + $0x38c] sm:$0xf0]  ;;  %v2366_v48 = vld [vmem:[%s3963_s0 + $0x390] sm:$0xf0]  ;;  %v2372_v49 = vld [vmem:[%s3963_s0 + $0x388] sm:$0xf] }
 0x1a2   :  { %1339 = vmatmul.bf16.gmra.mxu1 %v2305_v59  ;;  %v2341_v63 = vor.u32 %v2661_v51, %v2340_v50  ;;  %v2669_v50 = vld [vmem:[%s3963_s0 + $0x394] sm:$0xf0]  ;;  %v2667_v51 = vld [vmem:[%s3963_s0 + $0x38c] sm:$0xf] }
 0x1a3   :  { %v1749_v4 = vmax.f32 %v1636_v2, 0.0  ;;  %1508 = vmatmul.bf16.gmra.mxu2 %v2309_v0  ;;  %v2345_v0 = vor.u32 %v2659_v52, %v2342_v53  ;;  %v2374_v52 = vld [vmem:[%s3963_s0 + $0x398] sm:$0xf0] }
 0x1a4   :  { %1677 = vmatmul.bf16.gmra.mxu3 %v2313_v1 }
 0x1a5   :  { %v2792_v6 = vpack.c.bf16 %v1749_v4, %v1748_v3 }
 0x1a6   :  { %v1469_v7 = vpop.f32.mrf.mxu2  ;;  %v1133_v11 = vpop.f32.mrf.mxu0 }
 0x1a7   :  { %v1638_v8 = vpop.f32.mrf.mxu3  ;;  %2888 = vst [vmem:[%s3964_s3 + $0x78] sm:$0xff] %v2792_v6   ;;  %v1302_v12 = vpop.f32.mrf.mxu1  ;;  %v1134_v13 = vadd.f32 %v3654_v14, %v1133_v11  ;;  %v1470_v16 = vadd.f32 %v1469_v7, %v1301_v9 }
 0x1a9   :  { %v1303_v23 = vadd.f32 %v1302_v12, %v1134_v13  ;;  %v1639_v28 = vadd.f32 %v1638_v8, %v1470_v16  ;;  %v2348_v13 = vld [vmem:[%s3963_s0 + $0x360] sm:$0xf]  ;;  %v2662_v16 = vld [vmem:[%s3963_s0 + $0x364] sm:$0xf] }
 0x1ab   :  { %v1750_v35 = vmax.f32 %v1639_v28, 0.0 }
 0x1ae   :  { %v1471_v24 = vpop.f32.mrf.mxu2  ;;  %v1136_v30 = vpop.f32.mrf.mxu0 }
 0x1af   :  { %v1640_v25 = vpop.f32.mrf.mxu3  ;;  %v1472_v29 = vadd.f32 %v1471_v24, %v1303_v23  ;;  %v1305_v31 = vpop.f32.mrf.mxu1  ;;  %v1137_v37 = vadd.f32 %v3654_v14, %v1136_v30 }
 0x1b1   :  { %v1641_v34 = vadd.f32 %v1640_v25, %v1472_v29  ;;  %1175 = vmatmul.bf16.gmra.mxu0 %v2317_v26  ;;  %v1306_v41 = vadd.f32 %v1305_v31, %v1137_v37  ;;  %v2349_v25 = vor.u32 %v2664_v15, %v2348_v13  ;;  %v2353_v26 = vor.u32 %v2662_v16, %v2350_v17  ;;  %v2672_v13 = vld [vmem:[%s3963_s0 + $0x3ac] sm:$0xf0]  ;;  %v2382_v16 = vld [vmem:[%s3963_s0 + $0x3b0] sm:$0xf0]  ;;  %v2388_v17 = vld [vmem:[%s3963_s0 + $0x3a8] sm:$0xf] }
 0x1b2   :  { %1344 = vmatmul.bf16.gmra.mxu1 %v2321_v27  ;;  %v2357_v31 = vor.u32 %v2665_v19, %v2356_v18  ;;  %v2673_v18 = vld [vmem:[%s3963_s0 + $0x3b4] sm:$0xf0]  ;;  %v2671_v19 = vld [vmem:[%s3963_s0 + $0x3ac] sm:$0xf] }
 0x1b3   :  { %v1751_v36 = vmax.f32 %v1641_v34, 0.0  ;;  %1513 = vmatmul.bf16.gmra.mxu2 %v2325_v32  ;;  %v2361_v32 = vor.u32 %v2663_v20, %v2358_v21  ;;  %v2390_v20 = vld [vmem:[%s3963_s0 + $0x3b8] sm:$0xf0] }
 0x1b4   :  { %1682 = vmatmul.bf16.gmra.mxu3 %v2329_v33 }
 0x1b5   :  { %v2797_v38 = vpack.c.bf16 %v1751_v36, %v1750_v35 }
 0x1b6   :  { %v1474_v39 = vpop.f32.mrf.mxu2  ;;  %v1138_v42 = vpop.f32.mrf.mxu0 }
 0x1b7   :  { %v1643_v40 = vpop.f32.mrf.mxu3  ;;  %2889 = vst [vmem:[%s3964_s3 + $0x80] sm:$0xff] %v2797_v38   ;;  %v1307_v43 = vpop.f32.mrf.mxu1  ;;  %v1139_v44 = vadd.f32 %v3654_v14, %v1138_v42  ;;  %v1475_v47 = vadd.f32 %v1474_v39, %v1306_v41 }
 0x1b9   :  { %v1308_v54 = vadd.f32 %v1307_v43, %v1139_v44  ;;  %v1644_v59 = vadd.f32 %v1643_v40, %v1475_v47  ;;  %v2364_v44 = vld [vmem:[%s3963_s0 + $0x380] sm:$0xf]  ;;  %v2666_v47 = vld [vmem:[%s3963_s0 + $0x384] sm:$0xf] }
 0x1bb   :  { %v1752_v2 = vmax.f32 %v1644_v59, 0.0 }
 0x1be   :  { %v1476_v55 = vpop.f32.mrf.mxu2  ;;  %v1141_v61 = vpop.f32.mrf.mxu0 }
 0x1bf   :  { %v1645_v56 = vpop.f32.mrf.mxu3  ;;  %v1477_v60 = vadd.f32 %v1476_v55, %v1308_v54  ;;  %v1310_v62 = vpop.f32.mrf.mxu1  ;;  %v1142_v4 = vadd.f32 %v3654_v14, %v1141_v61 }
 0x1c1   :  { %v1646_v1 = vadd.f32 %v1645_v56, %v1477_v60  ;;  %1180 = vmatmul.bf16.gmra.mxu0 %v2333_v57  ;;  %v1311_v8 = vadd.f32 %v1310_v62, %v1142_v4  ;;  %v2365_v56 = vor.u32 %v2668_v45, %v2364_v44  ;;  %v2369_v57 = vor.u32 %v2666_v47, %v2366_v48  ;;  %v2676_v44 = vld [vmem:[%s3963_s0 + $0x3cc] sm:$0xf0]  ;;  %v2398_v47 = vld [vmem:[%s3963_s0 + $0x3d0] sm:$0xf0]  ;;  %v2404_v48 = vld [vmem:[%s3963_s0 + $0x3c8] sm:$0xf] }
 0x1c2   :  { %1349 = vmatmul.bf16.gmra.mxu1 %v2337_v58  ;;  %v2373_v62 = vor.u32 %v2669_v50, %v2372_v49  ;;  %v2677_v49 = vld [vmem:[%s3963_s0 + $0x3d4] sm:$0xf0]  ;;  %v2675_v50 = vld [vmem:[%s3963_s0 + $0x3cc] sm:$0xf] }
 0x1c3   :  { %v1753_v3 = vmax.f32 %v1646_v1, 0.0  ;;  %1518 = vmatmul.bf16.gmra.mxu2 %v2341_v63  ;;  %v2377_v63 = vor.u32 %v2667_v51, %v2374_v52  ;;  %v2406_v51 = vld [vmem:[%s3963_s0 + $0x3d8] sm:$0xf0] }
 0x1c4   :  { %1687 = vmatmul.bf16.gmra.mxu3 %v2345_v0 }
 0x1c5   :  { %v2802_v5 = vpack.c.bf16 %v1753_v3, %v1752_v2 }
 0x1c6   :  { %v1479_v6 = vpop.f32.mrf.mxu2  ;;  %v1143_v9 = vpop.f32.mrf.mxu0 }
 0x1c7   :  { %v1648_v7 = vpop.f32.mrf.mxu3  ;;  %2890 = vst [vmem:[%s3964_s3 + $0x88] sm:$0xff] %v2802_v5   ;;  %v1312_v11 = vpop.f32.mrf.mxu1  ;;  %v1144_v12 = vadd.f32 %v3654_v14, %v1143_v9  ;;  %v1480_v10 = vadd.f32 %v1479_v6, %v1311_v8 }
 0x1c9   :  { %v1313_v22 = vadd.f32 %v1312_v11, %v1144_v12  ;;  %v1649_v27 = vadd.f32 %v1648_v7, %v1480_v10  ;;  %v2380_v12 = vld [vmem:[%s3963_s0 + $0x3a0] sm:$0xf]  ;;  %v2670_v10 = vld [vmem:[%s3963_s0 + $0x3a4] sm:$0xf] }
 0x1cb   :  { %v1754_v34 = vmax.f32 %v1649_v27, 0.0 }
 0x1ce   :  { %v1481_v23 = vpop.f32.mrf.mxu2  ;;  %v1146_v29 = vpop.f32.mrf.mxu0 }
 0x1cf   :  { %v1650_v24 = vpop.f32.mrf.mxu3  ;;  %v1482_v28 = vadd.f32 %v1481_v23, %v1313_v22  ;;  %v1315_v30 = vpop.f32.mrf.mxu1  ;;  %v1147_v36 = vadd.f32 %v3654_v14, %v1146_v29 }
 0x1d1   :  { %v1651_v33 = vadd.f32 %v1650_v24, %v1482_v28  ;;  %1185 = vmatmul.bf16.gmra.mxu0 %v2349_v25  ;;  %v1316_v40 = vadd.f32 %v1315_v30, %v1147_v36  ;;  %v2381_v24 = vor.u32 %v2672_v13, %v2380_v12  ;;  %v2385_v25 = vor.u32 %v2670_v10, %v2382_v16  ;;  %v2680_v12 = vld [vmem:[%s3963_s0 + $0x3ec] sm:$0xf0]  ;;  %v2414_v10 = vld [vmem:[%s3963_s0 + $0x3f0] sm:$0xf0]  ;;  %v2420_v16 = vld [vmem:[%s3963_s0 + $0x3e8] sm:$0xf] }
 0x1d2   :  { %1354 = vmatmul.bf16.gmra.mxu1 %v2353_v26  ;;  %v2389_v30 = vor.u32 %v2673_v18, %v2388_v17  ;;  %v2681_v17 = vld [vmem:[%s3963_s0 + $0x3f4] sm:$0xf0]  ;;  %v2679_v18 = vld [vmem:[%s3963_s0 + $0x3ec] sm:$0xf] }
 0x1d3   :  { %v1755_v35 = vmax.f32 %v1651_v33, 0.0  ;;  %1523 = vmatmul.bf16.gmra.mxu2 %v2357_v31  ;;  %v2393_v31 = vor.u32 %v2671_v19, %v2390_v20  ;;  %v2422_v19 = vld [vmem:[%s3963_s0 + $0x3f8] sm:$0xf0] }
 0x1d4   :  { %1692 = vmatmul.bf16.gmra.mxu3 %v2361_v32 }
 0x1d5   :  { %v2807_v37 = vpack.c.bf16 %v1755_v35, %v1754_v34 }
 0x1d6   :  { %v1484_v38 = vpop.f32.mrf.mxu2  ;;  %v1148_v41 = vpop.f32.mrf.mxu0 }
 0x1d7   :  { %v1653_v39 = vpop.f32.mrf.mxu3  ;;  %2891 = vst [vmem:[%s3964_s3 + $0x90] sm:$0xff] %v2807_v37   ;;  %v1317_v42 = vpop.f32.mrf.mxu1  ;;  %v1149_v43 = vadd.f32 %v3654_v14, %v1148_v41  ;;  %v1485_v46 = vadd.f32 %v1484_v38, %v1316_v40 }
 0x1d9   :  { %v1318_v53 = vadd.f32 %v1317_v42, %v1149_v43  ;;  %v1654_v58 = vadd.f32 %v1653_v39, %v1485_v46  ;;  %v2396_v43 = vld [vmem:[%s3963_s0 + $0x3c0] sm:$0xf]  ;;  %v2674_v46 = vld [vmem:[%s3963_s0 + $0x3c4] sm:$0xf] }
 0x1db   :  { %v1756_v1 = vmax.f32 %v1654_v58, 0.0 }
 0x1de   :  { %v1486_v54 = vpop.f32.mrf.mxu2  ;;  %v1151_v60 = vpop.f32.mrf.mxu0 }
 0x1df   :  { %v1655_v55 = vpop.f32.mrf.mxu3  ;;  %v1487_v59 = vadd.f32 %v1486_v54, %v1318_v53  ;;  %v1320_v61 = vpop.f32.mrf.mxu1  ;;  %v1152_v3 = vadd.f32 %v3654_v14, %v1151_v60 }
 0x1e1   :  { %v1656_v0 = vadd.f32 %v1655_v55, %v1487_v59  ;;  %1190 = vmatmul.bf16.gmra.mxu0 %v2365_v56  ;;  %v1321_v7 = vadd.f32 %v1320_v61, %v1152_v3  ;;  %v2397_v55 = vor.u32 %v2676_v44, %v2396_v43  ;;  %v2401_v56 = vor.u32 %v2674_v46, %v2398_v47 }
 0x1e2   :  { %1359 = vmatmul.bf16.gmra.mxu1 %v2369_v57  ;;  %v2405_v61 = vor.u32 %v2677_v49, %v2404_v48 }
 0x1e3   :  { %v1757_v2 = vmax.f32 %v1656_v0, 0.0  ;;  %1528 = vmatmul.bf16.gmra.mxu2 %v2373_v62  ;;  %v2409_v62 = vor.u32 %v2675_v50, %v2406_v51 }
 0x1e4   :  { %1697 = vmatmul.bf16.gmra.mxu3 %v2377_v63 }
 0x1e5   :  { %v2812_v4 = vpack.c.bf16 %v1757_v2, %v1756_v1 }
 0x1e6   :  { %v1489_v5 = vpop.f32.mrf.mxu2  ;;  %v1153_v8 = vpop.f32.mrf.mxu0 }
 0x1e7   :  { %v1658_v6 = vpop.f32.mrf.mxu3  ;;  %2892 = vst [vmem:[%s3964_s3 + $0x98] sm:$0xff] %v2812_v4   ;;  %v1322_v9 = vpop.f32.mrf.mxu1  ;;  %v1154_v11 = vadd.f32 %v3654_v14, %v1153_v8  ;;  %v1490_v15 = vadd.f32 %v1489_v5, %v1321_v7 }
 0x1e9   :  { %v1323_v21 = vadd.f32 %v1322_v9, %v1154_v11  ;;  %v1659_v26 = vadd.f32 %v1658_v6, %v1490_v15  ;;  %v2412_v11 = vld [vmem:[%s3963_s0 + $0x3e0] sm:$0xf]  ;;  %v2678_v15 = vld [vmem:[%s3963_s0 + $0x3e4] sm:$0xf] }
 0x1eb   :  { %v1758_v33 = vmax.f32 %v1659_v26, 0.0 }
 0x1ee   :  { %v1491_v22 = vpop.f32.mrf.mxu2  ;;  %v1156_v28 = vpop.f32.mrf.mxu0 }
 0x1ef   :  { %v1660_v23 = vpop.f32.mrf.mxu3  ;;  %v1492_v27 = vadd.f32 %v1491_v22, %v1323_v21  ;;  %v1325_v29 = vpop.f32.mrf.mxu1  ;;  %v1157_v35 = vadd.f32 %v3654_v14, %v1156_v28 }
 0x1f1   :  { %v1661_v32 = vadd.f32 %v1660_v23, %v1492_v27  ;;  %1195 = vmatmul.bf16.gmra.mxu0 %v2381_v24  ;;  %v1326_v39 = vadd.f32 %v1325_v29, %v1157_v35  ;;  %v2413_v23 = vor.u32 %v2680_v12, %v2412_v11  ;;  %v2417_v24 = vor.u32 %v2678_v15, %v2414_v10 }
 0x1f2   :  { %1364 = vmatmul.bf16.gmra.mxu1 %v2385_v25  ;;  %v2421_v29 = vor.u32 %v2681_v17, %v2420_v16 }
 0x1f3   :  { %v1759_v34 = vmax.f32 %v1661_v32, 0.0  ;;  %1533 = vmatmul.bf16.gmra.mxu2 %v2389_v30  ;;  %v2425_v30 = vor.u32 %v2679_v18, %v2422_v19 }
 0x1f4   :  { %1702 = vmatmul.bf16.gmra.mxu3 %v2393_v31 }
 0x1f5   :  { %v2817_v36 = vpack.c.bf16 %v1759_v34, %v1758_v33 }
 0x1f6   :  { %v1494_v37 = vpop.f32.mrf.mxu2  ;;  %v1158_v40 = vpop.f32.mrf.mxu0 }
 0x1f7   :  { %v1663_v38 = vpop.f32.mrf.mxu3  ;;  %2893 = vst [vmem:[%s3964_s3 + $0xa0] sm:$0xff] %v2817_v36   ;;  %v1327_v41 = vpop.f32.mrf.mxu1  ;;  %v1159_v42 = vadd.f32 %v3654_v14, %v1158_v40  ;;  %v1495_v45 = vadd.f32 %v1494_v37, %v1326_v39 }
 0x1f9   :  { %v1328_v52 = vadd.f32 %v1327_v41, %v1159_v42  ;;  %v1664_v57 = vadd.f32 %v1663_v38, %v1495_v45 }
 0x1fb   :  { %v1760_v0 = vmax.f32 %v1664_v57, 0.0 }
 0x1fe   :  { %v1496_v53 = vpop.f32.mrf.mxu2  ;;  %v1161_v59 = vpop.f32.mrf.mxu0 }
 0x1ff   :  { %v1665_v54 = vpop.f32.mrf.mxu3  ;;  %v1497_v58 = vadd.f32 %v1496_v53, %v1328_v52  ;;  %v1330_v60 = vpop.f32.mrf.mxu1  ;;  %v1162_v2 = vadd.f32 %v3654_v14, %v1161_v59 }
 0x201   :  { %v1666_v63 = vadd.f32 %v1665_v54, %v1497_v58  ;;  %1200 = vmatmul.bf16.gmra.mxu0 %v2397_v55  ;;  %v1331_v6 = vadd.f32 %v1330_v60, %v1162_v2 }
 0x202   :  { %1369 = vmatmul.bf16.gmra.mxu1 %v2401_v56 }
 0x203   :  { %v1761_v1 = vmax.f32 %v1666_v63, 0.0  ;;  %1538 = vmatmul.bf16.gmra.mxu2 %v2405_v61 }
 0x204   :  { %1707 = vmatmul.bf16.gmra.mxu3 %v2409_v62 }
 0x205   :  { %v2822_v3 = vpack.c.bf16 %v1761_v1, %v1760_v0 }
 0x206   :  { %v1499_v4 = vpop.f32.mrf.mxu2  ;;  %v1163_v7 = vpop.f32.mrf.mxu0 }
 0x207   :  { %v1668_v5 = vpop.f32.mrf.mxu3  ;;  %2894 = vst [vmem:[%s3964_s3 + $0xa8] sm:$0xff] %v2822_v3   ;;  %v1332_v8 = vpop.f32.mrf.mxu1  ;;  %v1164_v9 = vadd.f32 %v3654_v14, %v1163_v7  ;;  %v1500_v13 = vadd.f32 %v1499_v4, %v1331_v6 }
 0x209   :  { %v1333_v20 = vadd.f32 %v1332_v8, %v1164_v9  ;;  %v1669_v25 = vadd.f32 %v1668_v5, %v1500_v13 }
 0x20b   :  { %v1762_v32 = vmax.f32 %v1669_v25, 0.0 }
 0x20e   :  { %v1501_v21 = vpop.f32.mrf.mxu2  ;;  %v1166_v27 = vpop.f32.mrf.mxu0 }
 0x20f   :  { %v1670_v22 = vpop.f32.mrf.mxu3  ;;  %v1502_v26 = vadd.f32 %v1501_v21, %v1333_v20  ;;  %v1335_v28 = vpop.f32.mrf.mxu1  ;;  %v1167_v34 = vadd.f32 %v3654_v14, %v1166_v27 }
 0x211   :  { %v1671_v31 = vadd.f32 %v1670_v22, %v1502_v26  ;;  %1205 = vmatmul.bf16.gmra.mxu0 %v2413_v23  ;;  %v1336_v38 = vadd.f32 %v1335_v28, %v1167_v34 }
 0x212   :  { %1374 = vmatmul.bf16.gmra.mxu1 %v2417_v24 }
 0x213   :  { %v1763_v33 = vmax.f32 %v1671_v31, 0.0  ;;  %1543 = vmatmul.bf16.gmra.mxu2 %v2421_v29 }
 0x214   :  { %1712 = vmatmul.bf16.gmra.mxu3 %v2425_v30 }
 0x215   :  { %v2827_v35 = vpack.c.bf16 %v1763_v33, %v1762_v32 }
 0x216   :  { %v1504_v36 = vpop.f32.mrf.mxu2  ;;  %v1168_v39 = vpop.f32.mrf.mxu0 }
 0x217   :  { %v1673_v37 = vpop.f32.mrf.mxu3  ;;  %2895 = vst [vmem:[%s3964_s3 + $0xb0] sm:$0xff] %v2827_v35   ;;  %v1337_v40 = vpop.f32.mrf.mxu1  ;;  %v1169_v41 = vadd.f32 %v3654_v14, %v1168_v39  ;;  %v1505_v42 = vadd.f32 %v1504_v36, %v1336_v38 }
 0x219   :  { %v1338_v43 = vadd.f32 %v1337_v40, %v1169_v41  ;;  %v1674_v46 = vadd.f32 %v1673_v37, %v1505_v42 }
 0x21b   :  { %v1764_v51 = vmax.f32 %v1674_v46, 0.0 }
 0x21e   :  { %v1506_v44 = vpop.f32.mrf.mxu2  ;;  %v1171_v48 = vpop.f32.mrf.mxu0 }
 0x21f   :  { %v1675_v45 = vpop.f32.mrf.mxu3  ;;  %v1507_v47 = vadd.f32 %v1506_v44, %v1338_v43  ;;  %v1340_v49 = vpop.f32.mrf.mxu1  ;;  %v1172_v53 = vadd.f32 %v3654_v14, %v1171_v48 }
 0x221   :  { %v1676_v50 = vadd.f32 %v1675_v45, %v1507_v47  ;;  %v1341_v57 = vadd.f32 %v1340_v49, %v1172_v53 }
 0x223   :  { %v1765_v52 = vmax.f32 %v1676_v50, 0.0 }
 0x225   :  { %v2832_v54 = vpack.c.bf16 %v1765_v52, %v1764_v51 }
 0x226   :  { %v1509_v55 = vpop.f32.mrf.mxu2  ;;  %v1173_v58 = vpop.f32.mrf.mxu0 }
 0x227   :  { %v1678_v56 = vpop.f32.mrf.mxu3  ;;  %2896 = vst [vmem:[%s3964_s3 + $0xb8] sm:$0xff] %v2832_v54   ;;  %v1342_v59 = vpop.f32.mrf.mxu1  ;;  %v1174_v60 = vadd.f32 %v3654_v14, %v1173_v58  ;;  %v1510_v61 = vadd.f32 %v1509_v55, %v1341_v57 }
 0x229   :  { %v1343_v62 = vadd.f32 %v1342_v59, %v1174_v60  ;;  %v1679_v1 = vadd.f32 %v1678_v56, %v1510_v61 }
 0x22b   :  { %v1766_v6 = vmax.f32 %v1679_v1, 0.0 }
 0x22e   :  { %v1511_v63 = vpop.f32.mrf.mxu2  ;;  %v1176_v3 = vpop.f32.mrf.mxu0 }
 0x22f   :  { %v1680_v0 = vpop.f32.mrf.mxu3  ;;  %v1512_v2 = vadd.f32 %v1511_v63, %v1343_v62  ;;  %v1345_v4 = vpop.f32.mrf.mxu1  ;;  %v1177_v8 = vadd.f32 %v3654_v14, %v1176_v3 }
 0x231   :  { %v1681_v5 = vadd.f32 %v1680_v0, %v1512_v2  ;;  %v1346_v13 = vadd.f32 %v1345_v4, %v1177_v8 }
 0x233   :  { %v1767_v7 = vmax.f32 %v1681_v5, 0.0 }
 0x235   :  { %v2837_v9 = vpack.c.bf16 %v1767_v7, %v1766_v6 }
 0x236   :  { %v1514_v11 = vpop.f32.mrf.mxu2  ;;  %v1178_v15 = vpop.f32.mrf.mxu0 }
 0x237   :  { %v1683_v12 = vpop.f32.mrf.mxu3  ;;  %2897 = vst [vmem:[%s3964_s3 + $0xc0] sm:$0xff] %v2837_v9   ;;  %v1347_v10 = vpop.f32.mrf.mxu1  ;;  %v1179_v16 = vadd.f32 %v3654_v14, %v1178_v15  ;;  %v1515_v17 = vadd.f32 %v1514_v11, %v1346_v13 }
 0x239   :  { %v1348_v18 = vadd.f32 %v1347_v10, %v1179_v16  ;;  %v1684_v21 = vadd.f32 %v1683_v12, %v1515_v17 }
 0x23b   :  { %v1768_v26 = vmax.f32 %v1684_v21, 0.0 }
 0x23e   :  { %v1516_v19 = vpop.f32.mrf.mxu2  ;;  %v1181_v23 = vpop.f32.mrf.mxu0 }
 0x23f   :  { %v1685_v20 = vpop.f32.mrf.mxu3  ;;  %v1517_v22 = vadd.f32 %v1516_v19, %v1348_v18  ;;  %v1350_v24 = vpop.f32.mrf.mxu1  ;;  %v1182_v28 = vadd.f32 %v3654_v14, %v1181_v23 }
 0x241   :  { %v1686_v25 = vadd.f32 %v1685_v20, %v1517_v22  ;;  %v1351_v32 = vadd.f32 %v1350_v24, %v1182_v28 }
 0x243   :  { %v1769_v27 = vmax.f32 %v1686_v25, 0.0 }
 0x245   :  { %v2842_v29 = vpack.c.bf16 %v1769_v27, %v1768_v26 }
 0x246   :  { %v1519_v30 = vpop.f32.mrf.mxu2  ;;  %v1183_v33 = vpop.f32.mrf.mxu0 }
 0x247   :  { %v1688_v31 = vpop.f32.mrf.mxu3  ;;  %2898 = vst [vmem:[%s3964_s3 + $0xc8] sm:$0xff] %v2842_v29   ;;  %v1352_v34 = vpop.f32.mrf.mxu1  ;;  %v1184_v35 = vadd.f32 %v3654_v14, %v1183_v33  ;;  %v1520_v36 = vadd.f32 %v1519_v30, %v1351_v32 }
 0x249   :  { %v1353_v37 = vadd.f32 %v1352_v34, %v1184_v35  ;;  %v1689_v40 = vadd.f32 %v1688_v31, %v1520_v36 }
 0x24b   :  { %v1770_v45 = vmax.f32 %v1689_v40, 0.0 }
 0x24e   :  { %v1521_v38 = vpop.f32.mrf.mxu2  ;;  %v1186_v42 = vpop.f32.mrf.mxu0 }
 0x24f   :  { %v1690_v39 = vpop.f32.mrf.mxu3  ;;  %v1522_v41 = vadd.f32 %v1521_v38, %v1353_v37  ;;  %v1355_v43 = vpop.f32.mrf.mxu1  ;;  %v1187_v47 = vadd.f32 %v3654_v14, %v1186_v42 }
 0x251   :  { %v1691_v44 = vadd.f32 %v1690_v39, %v1522_v41  ;;  %v1356_v51 = vadd.f32 %v1355_v43, %v1187_v47 }
 0x253   :  { %v1771_v46 = vmax.f32 %v1691_v44, 0.0 }
 0x255   :  { %v2847_v48 = vpack.c.bf16 %v1771_v46, %v1770_v45 }
 0x256   :  { %v1524_v49 = vpop.f32.mrf.mxu2  ;;  %v1188_v52 = vpop.f32.mrf.mxu0 }
 0x257   :  { %v1693_v50 = vpop.f32.mrf.mxu3  ;;  %2899 = vst [vmem:[%s3964_s3 + $0xd0] sm:$0xff] %v2847_v48   ;;  %v1357_v53 = vpop.f32.mrf.mxu1  ;;  %v1189_v54 = vadd.f32 %v3654_v14, %v1188_v52  ;;  %v1525_v55 = vadd.f32 %v1524_v49, %v1356_v51 }
 0x259   :  { %v1358_v56 = vadd.f32 %v1357_v53, %v1189_v54  ;;  %v1694_v59 = vadd.f32 %v1693_v50, %v1525_v55 }
 0x25b   :  { %v1772_v0 = vmax.f32 %v1694_v59, 0.0 }
 0x25e   :  { %v1526_v57 = vpop.f32.mrf.mxu2  ;;  %v1191_v61 = vpop.f32.mrf.mxu0 }
 0x25f   :  { %v1695_v58 = vpop.f32.mrf.mxu3  ;;  %v1527_v60 = vadd.f32 %v1526_v57, %v1358_v56  ;;  %v1360_v62 = vpop.f32.mrf.mxu1  ;;  %v1192_v2 = vadd.f32 %v3654_v14, %v1191_v61 }
 0x261   :  { %v1696_v63 = vadd.f32 %v1695_v58, %v1527_v60  ;;  %v1361_v6 = vadd.f32 %v1360_v62, %v1192_v2 }
 0x263   :  { %v1773_v1 = vmax.f32 %v1696_v63, 0.0 }
 0x265   :  { %v2852_v3 = vpack.c.bf16 %v1773_v1, %v1772_v0 }
 0x266   :  { %v1529_v4 = vpop.f32.mrf.mxu2  ;;  %v1193_v7 = vpop.f32.mrf.mxu0 }
 0x267   :  { %v1698_v5 = vpop.f32.mrf.mxu3  ;;  %2900 = vst [vmem:[%s3964_s3 + $0xd8] sm:$0xff] %v2852_v3   ;;  %v1362_v8 = vpop.f32.mrf.mxu1  ;;  %v1194_v9 = vadd.f32 %v3654_v14, %v1193_v7  ;;  %v1530_v11 = vadd.f32 %v1529_v4, %v1361_v6 }
 0x269   :  { %v1363_v12 = vadd.f32 %v1362_v8, %v1194_v9  ;;  %v1699_v10 = vadd.f32 %v1698_v5, %v1530_v11 }
 0x26b   :  { %v1774_v20 = vmax.f32 %v1699_v10, 0.0 }
 0x26e   :  { %v1531_v13 = vpop.f32.mrf.mxu2  ;;  %v1196_v17 = vpop.f32.mrf.mxu0 }
 0x26f   :  { %v1700_v15 = vpop.f32.mrf.mxu3  ;;  %v1532_v16 = vadd.f32 %v1531_v13, %v1363_v12  ;;  %v1365_v18 = vpop.f32.mrf.mxu1  ;;  %v1197_v22 = vadd.f32 %v3654_v14, %v1196_v17 }
 0x271   :  { %v1701_v19 = vadd.f32 %v1700_v15, %v1532_v16  ;;  %v1366_v26 = vadd.f32 %v1365_v18, %v1197_v22 }
 0x273   :  { %v1775_v21 = vmax.f32 %v1701_v19, 0.0 }
 0x275   :  { %v2857_v23 = vpack.c.bf16 %v1775_v21, %v1774_v20 }
 0x276   :  { %v1534_v24 = vpop.f32.mrf.mxu2  ;;  %v1198_v27 = vpop.f32.mrf.mxu0 }
 0x277   :  { %v1703_v25 = vpop.f32.mrf.mxu3  ;;  %2901 = vst [vmem:[%s3964_s3 + $0xe0] sm:$0xff] %v2857_v23   ;;  %v1367_v28 = vpop.f32.mrf.mxu1  ;;  %v1199_v29 = vadd.f32 %v3654_v14, %v1198_v27  ;;  %v1535_v30 = vadd.f32 %v1534_v24, %v1366_v26 }
 0x279   :  { %v1368_v31 = vadd.f32 %v1367_v28, %v1199_v29  ;;  %v1704_v34 = vadd.f32 %v1703_v25, %v1535_v30 }
 0x27b   :  { %v1776_v39 = vmax.f32 %v1704_v34, 0.0 }
 0x27e   :  { %v1536_v32 = vpop.f32.mrf.mxu2  ;;  %v1201_v36 = vpop.f32.mrf.mxu0 }
 0x27f   :  { %v1705_v33 = vpop.f32.mrf.mxu3  ;;  %v1537_v35 = vadd.f32 %v1536_v32, %v1368_v31  ;;  %v1370_v37 = vpop.f32.mrf.mxu1  ;;  %v1202_v41 = vadd.f32 %v3654_v14, %v1201_v36 }
 0x281   :  { %v1706_v38 = vadd.f32 %v1705_v33, %v1537_v35  ;;  %v1371_v45 = vadd.f32 %v1370_v37, %v1202_v41 }
 0x283   :  { %v1777_v40 = vmax.f32 %v1706_v38, 0.0 }
 0x285   :  { %v2862_v42 = vpack.c.bf16 %v1777_v40, %v1776_v39 }
 0x286   :  { %v1539_v43 = vpop.f32.mrf.mxu2  ;;  %v1203_v46 = vpop.f32.mrf.mxu0 }
 0x287   :  { %v1708_v44 = vpop.f32.mrf.mxu3  ;;  %2902 = vst [vmem:[%s3964_s3 + $0xe8] sm:$0xff] %v2862_v42   ;;  %v1372_v47 = vpop.f32.mrf.mxu1  ;;  %v1204_v48 = vadd.f32 %v3654_v14, %v1203_v46  ;;  %v1540_v49 = vadd.f32 %v1539_v43, %v1371_v45 }
 0x289   :  { %v1373_v50 = vadd.f32 %v1372_v47, %v1204_v48  ;;  %v1709_v53 = vadd.f32 %v1708_v44, %v1540_v49 }
 0x28b   :  { %v1778_v58 = vmax.f32 %v1709_v53, 0.0 }
 0x28e   :  { %v1541_v51 = vpop.f32.mrf.mxu2  ;;  %v1206_v55 = vpop.f32.mrf.mxu0 }
 0x28f   :  { %v1710_v52 = vpop.f32.mrf.mxu3  ;;  %v1542_v54 = vadd.f32 %v1541_v51, %v1373_v50  ;;  %v1375_v57 = vpop.f32.mrf.mxu1  ;;  %v1207_v60 = vadd.f32 %v3654_v14, %v1206_v55 }
 0x291   :  { %v1711_v56 = vadd.f32 %v1710_v52, %v1542_v54  ;;  %v1376_v0 = vadd.f32 %v1375_v57, %v1207_v60 }
 0x293   :  { %v1779_v59 = vmax.f32 %v1711_v56, 0.0 }
 0x295   :  { %v2867_v61 = vpack.c.bf16 %v1779_v59, %v1778_v58 }
 0x296   :  { %v1544_v62 = vpop.f32.mrf.mxu2  ;;  %v1208_v1 = vpop.f32.mrf.mxu0 }
 0x297   :  { %v1713_v63 = vpop.f32.mrf.mxu3  ;;  %2903 = vst [vmem:[%s3964_s3 + $0xf0] sm:$0xff] %v2867_v61   ;;  %v1209_v2 = vadd.f32 %v3654_v14, %v1208_v1  ;;  %v1545_v3 = vadd.f32 %v1544_v62, %v1376_v0  ;;  %v1377_v4 = vpop.f32.mrf.mxu1 }
 0x299   :  { %v1378_v5 = vadd.f32 %v1377_v4, %v1209_v2  ;;  %v1714_v7 = vadd.f32 %v1713_v63, %v1545_v3 }
 0x29b   :  { %v1780_v12 = vmax.f32 %v1714_v7, 0.0 }
 0x29e   :  { %v1546_v6 = vpop.f32.mrf.mxu2 }
 0x29f   :  { %v1547_v8 = vadd.f32 %v1546_v6, %v1378_v5  ;;  %v1715_v9 = vpop.f32.mrf.mxu3 }
 0x2a1   :  { %v1716_v11 = vadd.f32 %v1715_v9, %v1547_v8 }
 0x2a3   :  { %v1781_v13 = vmax.f32 %v1716_v11, 0.0 }
 0x2a5   :  { %v2872_v15 = vpack.c.bf16 %v1781_v13, %v1780_v12 }
 0x2a7   :  { %2904 = vst [vmem:[%s3964_s3 + $0xf8] sm:$0xff] %v2872_v15  }

// kernel: beta_vae_forward.12
= control target key start
LH: loop header
LB: loop body
LE: loop exit
PB: predicated region body
PF: predicated region fallthrough
CT: control target
= control target key end

     0   :  { %s1435_s1 = inlined_call_operand.vmem [shape: bf16[512,128], index: 1, kind: input, shape index: {}]   ;;  %s1436_s2 = inlined_call_operand.vmem [shape: f32[1,128], index: 2, kind: input, shape index: {}]   ;;  %s1437_s0 = inlined_call_operand.vmem [shape: bf16[128,512], index: 0, kind: input, shape index: {}]   ;;  %s1438_s3 = inlined_call_operand.vmem [shape: bf16[128,128], index: 3, kind: output, shape index: {}]  }
   0x1   :  { %v1009_v0 = vld [vmem:[%s1435_s1 + $0x38] sm:$0xff]  ;;  %v1008_v4 = vld [vmem:[%s1435_s1 + $0x30] sm:$0xff]  ;;  %v1007_v8 = vld [vmem:[%s1435_s1 + $0x28] sm:$0xff] }
   0x2   :  { %v1017_v1 = vld [vmem:[%s1435_s1 + $0x78] sm:$0xff]  ;;  %466 = vmatpush.bf16.msra.mxu0 %v1009_v0  ;;  %v1016_v5 = vld [vmem:[%s1435_s1 + $0x70] sm:$0xff]  ;;  %v1015_v9 = vld [vmem:[%s1435_s1 + $0x68] sm:$0xff] }
   0x3   :  { %v1025_v2 = vld [vmem:[%s1435_s1 + $0xb8] sm:$0xff]  ;;  %515 = vmatpush.bf16.msra.mxu1 %v1017_v1  ;;  %v1024_v6 = vld [vmem:[%s1435_s1 + $0xb0] sm:$0xff]  ;;  %v1023_v10 = vld [vmem:[%s1435_s1 + $0xa8] sm:$0xff] }
   0x4   :  { %v1033_v3 = vld [vmem:[%s1435_s1 + $0xf8] sm:$0xff]  ;;  %564 = vmatpush.bf16.msra.mxu2 %v1025_v2  ;;  %v1032_v7 = vld [vmem:[%s1435_s1 + $0xf0] sm:$0xff]  ;;  %v1031_v11 = vld [vmem:[%s1435_s1 + $0xe8] sm:$0xff] }
   0x5   :  { %613 = vmatpush.bf16.msra.mxu3 %v1033_v3  ;;  %v1006_v12 = vld [vmem:[%s1435_s1 + $0x20] sm:$0xff]  ;;  %v1005_v16 = vld [vmem:[%s1435_s1 + $0x18] sm:$0xff]  ;;  %v1004_v20 = vld [vmem:[%s1435_s1 + $0x10] sm:$0xff] }
   0x6   :  { %467 = vmatpush.bf16.msra.mxu0 %v1008_v4  ;;  %v1014_v13 = vld [vmem:[%s1435_s1 + $0x60] sm:$0xff]  ;;  %v1013_v17 = vld [vmem:[%s1435_s1 + $0x58] sm:$0xff]  ;;  %v1012_v21 = vld [vmem:[%s1435_s1 + $0x50] sm:$0xff] }
   0x7   :  { %516 = vmatpush.bf16.msra.mxu1 %v1016_v5  ;;  %v1022_v14 = vld [vmem:[%s1435_s1 + $0xa0] sm:$0xff]  ;;  %v1021_v18 = vld [vmem:[%s1435_s1 + $0x98] sm:$0xff]  ;;  %v1020_v22 = vld [vmem:[%s1435_s1 + $0x90] sm:$0xff] }
   0x8   :  { %565 = vmatpush.bf16.msra.mxu2 %v1024_v6  ;;  %v1030_v15 = vld [vmem:[%s1435_s1 + $0xe0] sm:$0xff]  ;;  %v1029_v19 = vld [vmem:[%s1435_s1 + $0xd8] sm:$0xff]  ;;  %v1028_v23 = vld [vmem:[%s1435_s1 + $0xd0] sm:$0xff] }
   0x9   :  { %614 = vmatpush.bf16.msra.mxu3 %v1032_v7  ;;  %v1003_v24 = vld [vmem:[%s1435_s1 + $0x8] sm:$0xff]  ;;  %v1002_v28 = vld [vmem:[%s1435_s1] sm:$0xff]  ;;  %v972_v33 = vld [vmem:[%s1437_s0 + $0xc] sm:$0xf0] }
   0xa   :  { %468 = vmatpush.bf16.msra.mxu0 %v1007_v8  ;;  %v1011_v25 = vld [vmem:[%s1435_s1 + $0x48] sm:$0xff]  ;;  %v1010_v29 = vld [vmem:[%s1435_s1 + $0x40] sm:$0xff]  ;;  %v718_v35 = vld [vmem:[%s1437_s0 + $0x10] sm:$0xf0] }
   0xb   :  { %517 = vmatpush.bf16.msra.mxu1 %v1015_v9  ;;  %v1019_v26 = vld [vmem:[%s1435_s1 + $0x88] sm:$0xff]  ;;  %v1018_v30 = vld [vmem:[%s1435_s1 + $0x80] sm:$0xff]  ;;  %v973_v37 = vld [vmem:[%s1437_s0 + $0x14] sm:$0xf0] }
   0xc   :  { %566 = vmatpush.bf16.msra.mxu2 %v1023_v10  ;;  %v1027_v27 = vld [vmem:[%s1435_s1 + $0xc8] sm:$0xff]  ;;  %v1026_v31 = vld [vmem:[%s1435_s1 + $0xc0] sm:$0xff]  ;;  %v726_v39 = vld [vmem:[%s1437_s0 + $0x18] sm:$0xf0] }
   0xd   :  { %615 = vmatpush.bf16.msra.mxu3 %v1031_v11  ;;  %v716_v32 = vld [vmem:[%s1437_s0] sm:$0xf]  ;;  %v970_v34 = vld [vmem:[%s1437_s0 + $0x4] sm:$0xf]  ;;  %v724_v36 = vld [vmem:[%s1437_s0 + $0x8] sm:$0xf] }
   0xe   :  { %469 = vmatpush.bf16.msra.mxu0 %v1006_v12  ;;  %v971_v38 = vld [vmem:[%s1437_s0 + $0xc] sm:$0xf]  ;;  %v717_v40 = vor.u32 %v972_v33, %v716_v32  ;;  %v721_v41 = vor.u32 %v970_v34, %v718_v35  ;;  %v725_v42 = vor.u32 %v973_v37, %v724_v36  ;;  %v732_v44 = vld [vmem:[%s1437_s0 + $0x20] sm:$0xf]  ;;  %v976_v45 = vld [vmem:[%s1437_s0 + $0x2c] sm:$0xf0] }
   0xf   :  { %518 = vmatpush.bf16.msra.mxu1 %v1014_v13  ;;  %v729_v43 = vor.u32 %v971_v38, %v726_v39  ;;  %v974_v46 = vld [vmem:[%s1437_s0 + $0x24] sm:$0xf]  ;;  %v734_v47 = vld [vmem:[%s1437_s0 + $0x30] sm:$0xf0]  ;;  %v740_v48 = vld [vmem:[%s1437_s0 + $0x28] sm:$0xf]  ;;  %v733_v52 = vor.u32 %v976_v45, %v732_v44 }
  0x10   :  { %567 = vmatpush.bf16.msra.mxu2 %v1022_v14  ;;  %v977_v49 = vld [vmem:[%s1437_s0 + $0x34] sm:$0xf0]  ;;  %v975_v50 = vld [vmem:[%s1437_s0 + $0x2c] sm:$0xf]  ;;  %v742_v51 = vld [vmem:[%s1437_s0 + $0x38] sm:$0xf0]  ;;  %v737_v53 = vor.u32 %v974_v46, %v734_v47 }
  0x11   :  { %616 = vmatpush.bf16.msra.mxu3 %v1030_v15  ;;  %v741_v54 = vor.u32 %v977_v49, %v740_v48  ;;  %v745_v55 = vor.u32 %v975_v50, %v742_v51  ;;  %v748_v56 = vld [vmem:[%s1437_s0 + $0x40] sm:$0xf]  ;;  %v980_v57 = vld [vmem:[%s1437_s0 + $0x4c] sm:$0xf0]  ;;  %v978_v58 = vld [vmem:[%s1437_s0 + $0x44] sm:$0xf] }
  0x12   :  { %470 = vmatpush.bf16.msra.mxu0 %v1005_v16  ;;  %v750_v59 = vld [vmem:[%s1437_s0 + $0x50] sm:$0xf0]  ;;  %v756_v60 = vld [vmem:[%s1437_s0 + $0x48] sm:$0xf]  ;;  %v981_v61 = vld [vmem:[%s1437_s0 + $0x54] sm:$0xf0]  ;;  %v749_v0 = vor.u32 %v980_v57, %v748_v56 }
  0x13   :  { %519 = vmatpush.bf16.msra.mxu1 %v1013_v17  ;;  %v979_v62 = vld [vmem:[%s1437_s0 + $0x4c] sm:$0xf]  ;;  %v758_v63 = vld [vmem:[%s1437_s0 + $0x58] sm:$0xf0]  ;;  %v753_v1 = vor.u32 %v978_v58, %v750_v59  ;;  %v757_v2 = vor.u32 %v981_v61, %v756_v60  ;;  %v764_v4 = vld [vmem:[%s1437_s0 + $0x60] sm:$0xf] }
  0x14   :  { %568 = vmatpush.bf16.msra.mxu2 %v1021_v18  ;;  %v761_v3 = vor.u32 %v979_v62, %v758_v63  ;;  %v984_v5 = vld [vmem:[%s1437_s0 + $0x6c] sm:$0xf0]  ;;  %v982_v6 = vld [vmem:[%s1437_s0 + $0x64] sm:$0xf]  ;;  %v766_v7 = vld [vmem:[%s1437_s0 + $0x70] sm:$0xf0] }
  0x15   :  { %617 = vmatpush.bf16.msra.mxu3 %v1029_v19  ;;  %v772_v8 = vld [vmem:[%s1437_s0 + $0x68] sm:$0xf]  ;;  %v985_v9 = vld [vmem:[%s1437_s0 + $0x74] sm:$0xf0]  ;;  %v983_v10 = vld [vmem:[%s1437_s0 + $0x6c] sm:$0xf]  ;;  %v765_v12 = vor.u32 %v984_v5, %v764_v4  ;;  %v769_v13 = vor.u32 %v982_v6, %v766_v7 }
  0x16   :  { %471 = vmatpush.bf16.msra.mxu0 %v1004_v20  ;;  %v774_v11 = vld [vmem:[%s1437_s0 + $0x78] sm:$0xf0]  ;;  %v773_v14 = vor.u32 %v985_v9, %v772_v8  ;;  %v780_v16 = vld [vmem:[%s1437_s0 + $0x80] sm:$0xf]  ;;  %v988_v17 = vld [vmem:[%s1437_s0 + $0x8c] sm:$0xf0] }
  0x17   :  { %520 = vmatpush.bf16.msra.mxu1 %v1012_v21  ;;  %v777_v15 = vor.u32 %v983_v10, %v774_v11  ;;  %v986_v18 = vld [vmem:[%s1437_s0 + $0x84] sm:$0xf]  ;;  %v782_v19 = vld [vmem:[%s1437_s0 + $0x90] sm:$0xf0]  ;;  %v788_v20 = vld [vmem:[%s1437_s0 + $0x88] sm:$0xf] }
  0x18   :  { %569 = vmatpush.bf16.msra.mxu2 %v1020_v22  ;;  %v989_v21 = vld [vmem:[%s1437_s0 + $0x94] sm:$0xf0]  ;;  %v987_v22 = vld [vmem:[%s1437_s0 + $0x8c] sm:$0xf]  ;;  %v804_v32 = vld [vmem:[%s1437_s0 + $0xa8] sm:$0xf] }
  0x19   :  { %618 = vmatpush.bf16.msra.mxu3 %v1028_v23  ;;  %v790_v23 = vld [vmem:[%s1437_s0 + $0x98] sm:$0xf0]  ;;  %v993_v33 = vld [vmem:[%s1437_s0 + $0xb4] sm:$0xf0]  ;;  %v991_v34 = vld [vmem:[%s1437_s0 + $0xac] sm:$0xf] }
  0x1a   :  { %472 = vmatpush.bf16.msra.mxu0 %v1003_v24  ;;  %v781_v24 = vor.u32 %v988_v17, %v780_v16  ;;  %v806_v35 = vld [vmem:[%s1437_s0 + $0xb8] sm:$0xf0]  ;;  %v805_v38 = vor.u32 %v993_v33, %v804_v32  ;;  %v820_v44 = vld [vmem:[%s1437_s0 + $0xc8] sm:$0xf]  ;;  %v997_v45 = vld [vmem:[%s1437_s0 + $0xd4] sm:$0xf0] }
  0x1b   :  { %521 = vmatpush.bf16.msra.mxu1 %v1011_v25  ;;  %v785_v25 = vor.u32 %v986_v18, %v782_v19  ;;  %v809_v39 = vor.u32 %v991_v34, %v806_v35  ;;  %v995_v46 = vld [vmem:[%s1437_s0 + $0xcc] sm:$0xf]  ;;  %v822_v47 = vld [vmem:[%s1437_s0 + $0xd8] sm:$0xf0]  ;;  %v821_v50 = vor.u32 %v997_v45, %v820_v44  ;;  %v836_v56 = vld [vmem:[%s1437_s0 + $0xe8] sm:$0xf] }
  0x1c   :  { %570 = vmatpush.bf16.msra.mxu2 %v1019_v26  ;;  %v789_v26 = vor.u32 %v989_v21, %v788_v20  ;;  %v825_v51 = vor.u32 %v995_v46, %v822_v47  ;;  %v1001_v57 = vld [vmem:[%s1437_s0 + $0xf4] sm:$0xf0]  ;;  %v999_v58 = vld [vmem:[%s1437_s0 + $0xec] sm:$0xf]  ;;  %v838_v59 = vld [vmem:[%s1437_s0 + $0xf8] sm:$0xf0] }
  0x1d   :  { %619 = vmatpush.bf16.msra.mxu3 %v1027_v27  ;;  %v793_v27 = vor.u32 %v987_v22, %v790_v23  ;;  %v837_v62 = vor.u32 %v1001_v57, %v836_v56  ;;  %v841_v63 = vor.u32 %v999_v58, %v838_v59 }
  0x1e   :  { %473 = vmatpush.bf16.msra.mxu0 %v1002_v28  ;;  %v796_v28 = vld [vmem:[%s1437_s0 + $0xa0] sm:$0xf] }
  0x1f   :  { %522 = vmatpush.bf16.msra.mxu1 %v1010_v29  ;;  %v992_v29 = vld [vmem:[%s1437_s0 + $0xac] sm:$0xf0] }
  0x20   :  { %571 = vmatpush.bf16.msra.mxu2 %v1018_v30  ;;  %v990_v30 = vld [vmem:[%s1437_s0 + $0xa4] sm:$0xf]  ;;  %v797_v36 = vor.u32 %v992_v29, %v796_v28 }
  0x21   :  { %620 = vmatpush.bf16.msra.mxu3 %v1026_v31  ;;  %474 = vmatmul.bf16.vlgmr.msra.gmra.mxu0 %v717_v40  ;;  %v798_v31 = vld [vmem:[%s1437_s0 + $0xb0] sm:$0xf0]  ;;  %v812_v40 = vld [vmem:[%s1437_s0 + $0xc0] sm:$0xf] }
  0x22   :  { %523 = vmatmul.bf16.vlgmr.msra.gmra.mxu1 %v721_v41  ;;  %v801_v37 = vor.u32 %v990_v30, %v798_v31  ;;  %v996_v41 = vld [vmem:[%s1437_s0 + $0xcc] sm:$0xf0] }
  0x23   :  { %572 = vmatmul.bf16.vlgmr.msra.gmra.mxu2 %v725_v42  ;;  %v994_v42 = vld [vmem:[%s1437_s0 + $0xc4] sm:$0xf]  ;;  %v813_v48 = vor.u32 %v996_v41, %v812_v40 }
  0x24   :  { %621 = vmatmul.bf16.vlgmr.msra.gmra.mxu3 %v729_v43  ;;  %v814_v43 = vld [vmem:[%s1437_s0 + $0xd0] sm:$0xf0] }
  0x25   :  { %v817_v49 = vor.u32 %v994_v42, %v814_v43 }
  0x31   :  { %479 = vmatmul.bf16.gmra.mxu0 %v733_v52  ;;  %v828_v52 = vld [vmem:[%s1437_s0 + $0xe0] sm:$0xf] }
  0x32   :  { %528 = vmatmul.bf16.gmra.mxu1 %v737_v53  ;;  %v1000_v53 = vld [vmem:[%s1437_s0 + $0xec] sm:$0xf0] }
  0x33   :  { %577 = vmatmul.bf16.gmra.mxu2 %v741_v54  ;;  %v998_v54 = vld [vmem:[%s1437_s0 + $0xe4] sm:$0xf]  ;;  %v829_v60 = vor.u32 %v1000_v53, %v828_v52 }
  0x34   :  { %626 = vmatmul.bf16.gmra.mxu3 %v745_v55  ;;  %v830_v55 = vld [vmem:[%s1437_s0 + $0xf0] sm:$0xf0] }
  0x35   :  { %v833_v61 = vor.u32 %v998_v54, %v830_v55 }
  0x41   :  { %484 = vmatmul.bf16.gmra.mxu0 %v749_v0  ;;  %v1393_v0 = vld [vmem:[%s1436_s2] ss:$0 sm:$0xff] }
  0x42   :  { %533 = vmatmul.bf16.gmra.mxu1 %v753_v1 }
  0x43   :  { %582 = vmatmul.bf16.gmra.mxu2 %v757_v2 }
  0x44   :  { %631 = vmatmul.bf16.gmra.mxu3 %v761_v3 }
  0x51   :  { %489 = vmatmul.bf16.gmra.mxu0 %v765_v12 }
  0x52   :  { %538 = vmatmul.bf16.gmra.mxu1 %v769_v13 }
  0x53   :  { %587 = vmatmul.bf16.gmra.mxu2 %v773_v14 }
  0x54   :  { %636 = vmatmul.bf16.gmra.mxu3 %v777_v15 }
  0x61   :  { %494 = vmatmul.bf16.gmra.mxu0 %v781_v24 }
  0x62   :  { %543 = vmatmul.bf16.gmra.mxu1 %v785_v25 }
  0x63   :  { %592 = vmatmul.bf16.gmra.mxu2 %v789_v26 }
  0x64   :  { %641 = vmatmul.bf16.gmra.mxu3 %v793_v27 }
  0x71   :  { %499 = vmatmul.bf16.gmra.mxu0 %v797_v36 }
  0x72   :  { %548 = vmatmul.bf16.gmra.mxu1 %v801_v37 }
  0x73   :  { %597 = vmatmul.bf16.gmra.mxu2 %v805_v38 }
  0x74   :  { %646 = vmatmul.bf16.gmra.mxu3 %v809_v39 }
  0x81   :  { %504 = vmatmul.bf16.gmra.mxu0 %v813_v48 }
  0x82   :  { %553 = vmatmul.bf16.gmra.mxu1 %v817_v49 }
  0x83   :  { %602 = vmatmul.bf16.gmra.mxu2 %v821_v50 }
  0x84   :  { %651 = vmatmul.bf16.gmra.mxu3 %v825_v51 }
  0x91   :  { %509 = vmatmul.bf16.gmra.mxu0 %v829_v60 }
  0x92   :  { %558 = vmatmul.bf16.gmra.mxu1 %v833_v61 }
  0x93   :  { %607 = vmatmul.bf16.gmra.mxu2 %v837_v62 }
  0x94   :  { %656 = vmatmul.bf16.gmra.mxu3 %v841_v63 }
  0x9e   :  { %v475_v1 = vpop.f32.mrf.mxu0 }
  0x9f   :  { %v524_v2 = vpop.f32.mrf.mxu1  ;;  %v476_v3 = vadd.f32 %v1393_v0, %v475_v1 }
  0xa1   :  { %v525_v6 = vadd.f32 %v524_v2, %v476_v3 }
  0xa6   :  { %v573_v4 = vpop.f32.mrf.mxu2  ;;  %v477_v7 = vpop.f32.mrf.mxu0 }
  0xa7   :  { %v622_v5 = vpop.f32.mrf.mxu3  ;;  %v526_v8 = vpop.f32.mrf.mxu1  ;;  %v478_v9 = vadd.f32 %v1393_v0, %v477_v7  ;;  %v574_v10 = vadd.f32 %v573_v4, %v525_v6 }
  0xa9   :  { %v527_v11 = vadd.f32 %v526_v8, %v478_v9  ;;  %v623_v14 = vadd.f32 %v622_v5, %v574_v10 }
  0xab   :  { %v662_v19 = vmax.f32 %v623_v14, 0.0 }
  0xae   :  { %v575_v12 = vpop.f32.mrf.mxu2  ;;  %v480_v16 = vpop.f32.mrf.mxu0 }
  0xaf   :  { %v624_v13 = vpop.f32.mrf.mxu3  ;;  %v576_v15 = vadd.f32 %v575_v12, %v527_v11  ;;  %v529_v17 = vpop.f32.mrf.mxu1  ;;  %v481_v21 = vadd.f32 %v1393_v0, %v480_v16 }
  0xb1   :  { %v625_v18 = vadd.f32 %v624_v13, %v576_v15  ;;  %v530_v25 = vadd.f32 %v529_v17, %v481_v21 }
  0xb3   :  { %v663_v20 = vmax.f32 %v625_v18, 0.0 }
  0xb5   :  { %v1037_v22 = vpack.c.bf16 %v663_v20, %v662_v19 }
  0xb6   :  { %v578_v23 = vpop.f32.mrf.mxu2  ;;  %v482_v26 = vpop.f32.mrf.mxu0 }
  0xb7   :  { %v627_v24 = vpop.f32.mrf.mxu3  ;;  %1038 = vst [vmem:[%s1438_s3] sm:$0xff] %v1037_v22   ;;  %v531_v27 = vpop.f32.mrf.mxu1  ;;  %v483_v28 = vadd.f32 %v1393_v0, %v482_v26  ;;  %v579_v29 = vadd.f32 %v578_v23, %v530_v25 }
  0xb9   :  { %v532_v30 = vadd.f32 %v531_v27, %v483_v28  ;;  %v628_v33 = vadd.f32 %v627_v24, %v579_v29 }
  0xbb   :  { %v664_v38 = vmax.f32 %v628_v33, 0.0 }
  0xbe   :  { %v580_v31 = vpop.f32.mrf.mxu2  ;;  %v485_v35 = vpop.f32.mrf.mxu0 }
  0xbf   :  { %v629_v32 = vpop.f32.mrf.mxu3  ;;  %v581_v34 = vadd.f32 %v580_v31, %v532_v30  ;;  %v534_v36 = vpop.f32.mrf.mxu1  ;;  %v486_v40 = vadd.f32 %v1393_v0, %v485_v35 }
  0xc1   :  { %v630_v37 = vadd.f32 %v629_v32, %v581_v34  ;;  %v535_v44 = vadd.f32 %v534_v36, %v486_v40 }
  0xc3   :  { %v665_v39 = vmax.f32 %v630_v37, 0.0 }
  0xc5   :  { %v1042_v41 = vpack.c.bf16 %v665_v39, %v664_v38 }
  0xc6   :  { %v583_v42 = vpop.f32.mrf.mxu2  ;;  %v487_v45 = vpop.f32.mrf.mxu0 }
  0xc7   :  { %v632_v43 = vpop.f32.mrf.mxu3  ;;  %1074 = vst [vmem:[%s1438_s3 + $0x8] sm:$0xff] %v1042_v41   ;;  %v536_v46 = vpop.f32.mrf.mxu1  ;;  %v488_v47 = vadd.f32 %v1393_v0, %v487_v45  ;;  %v584_v48 = vadd.f32 %v583_v42, %v535_v44 }
  0xc9   :  { %v537_v49 = vadd.f32 %v536_v46, %v488_v47  ;;  %v633_v52 = vadd.f32 %v632_v43, %v584_v48 }
  0xcb   :  { %v666_v57 = vmax.f32 %v633_v52, 0.0 }
  0xce   :  { %v585_v50 = vpop.f32.mrf.mxu2  ;;  %v490_v54 = vpop.f32.mrf.mxu0 }
  0xcf   :  { %v634_v51 = vpop.f32.mrf.mxu3  ;;  %v586_v53 = vadd.f32 %v585_v50, %v537_v49  ;;  %v539_v55 = vpop.f32.mrf.mxu1  ;;  %v491_v59 = vadd.f32 %v1393_v0, %v490_v54 }
  0xd1   :  { %v635_v56 = vadd.f32 %v634_v51, %v586_v53  ;;  %v540_v63 = vadd.f32 %v539_v55, %v491_v59 }
  0xd3   :  { %v667_v58 = vmax.f32 %v635_v56, 0.0 }
  0xd5   :  { %v1047_v60 = vpack.c.bf16 %v667_v58, %v666_v57 }
  0xd6   :  { %v588_v61 = vpop.f32.mrf.mxu2  ;;  %v492_v1 = vpop.f32.mrf.mxu0 }
  0xd7   :  { %v637_v62 = vpop.f32.mrf.mxu3  ;;  %1075 = vst [vmem:[%s1438_s3 + $0x10] sm:$0xff] %v1047_v60   ;;  %v541_v2 = vpop.f32.mrf.mxu1  ;;  %v493_v3 = vadd.f32 %v1393_v0, %v492_v1  ;;  %v589_v4 = vadd.f32 %v588_v61, %v540_v63 }
  0xd9   :  { %v542_v5 = vadd.f32 %v541_v2, %v493_v3  ;;  %v638_v8 = vadd.f32 %v637_v62, %v589_v4 }
  0xdb   :  { %v668_v13 = vmax.f32 %v638_v8, 0.0 }
  0xde   :  { %v590_v6 = vpop.f32.mrf.mxu2  ;;  %v495_v10 = vpop.f32.mrf.mxu0 }
  0xdf   :  { %v639_v7 = vpop.f32.mrf.mxu3  ;;  %v591_v9 = vadd.f32 %v590_v6, %v542_v5  ;;  %v544_v11 = vpop.f32.mrf.mxu1  ;;  %v496_v15 = vadd.f32 %v1393_v0, %v495_v10 }
  0xe1   :  { %v640_v12 = vadd.f32 %v639_v7, %v591_v9  ;;  %v545_v19 = vadd.f32 %v544_v11, %v496_v15 }
  0xe3   :  { %v669_v14 = vmax.f32 %v640_v12, 0.0 }
  0xe5   :  { %v1052_v16 = vpack.c.bf16 %v669_v14, %v668_v13 }
  0xe6   :  { %v593_v17 = vpop.f32.mrf.mxu2  ;;  %v497_v20 = vpop.f32.mrf.mxu0 }
  0xe7   :  { %v642_v18 = vpop.f32.mrf.mxu3  ;;  %1076 = vst [vmem:[%s1438_s3 + $0x18] sm:$0xff] %v1052_v16   ;;  %v546_v21 = vpop.f32.mrf.mxu1  ;;  %v498_v22 = vadd.f32 %v1393_v0, %v497_v20  ;;  %v594_v23 = vadd.f32 %v593_v17, %v545_v19 }
  0xe9   :  { %v547_v24 = vadd.f32 %v546_v21, %v498_v22  ;;  %v643_v27 = vadd.f32 %v642_v18, %v594_v23 }
  0xeb   :  { %v670_v32 = vmax.f32 %v643_v27, 0.0 }
  0xee   :  { %v595_v25 = vpop.f32.mrf.mxu2  ;;  %v500_v29 = vpop.f32.mrf.mxu0 }
  0xef   :  { %v644_v26 = vpop.f32.mrf.mxu3  ;;  %v596_v28 = vadd.f32 %v595_v25, %v547_v24  ;;  %v549_v30 = vpop.f32.mrf.mxu1  ;;  %v501_v34 = vadd.f32 %v1393_v0, %v500_v29 }
  0xf1   :  { %v645_v31 = vadd.f32 %v644_v26, %v596_v28  ;;  %v550_v38 = vadd.f32 %v549_v30, %v501_v34 }
  0xf3   :  { %v671_v33 = vmax.f32 %v645_v31, 0.0 }
  0xf5   :  { %v1057_v35 = vpack.c.bf16 %v671_v33, %v670_v32 }
  0xf6   :  { %v598_v36 = vpop.f32.mrf.mxu2  ;;  %v502_v39 = vpop.f32.mrf.mxu0 }
  0xf7   :  { %v647_v37 = vpop.f32.mrf.mxu3  ;;  %1077 = vst [vmem:[%s1438_s3 + $0x20] sm:$0xff] %v1057_v35   ;;  %v551_v40 = vpop.f32.mrf.mxu1  ;;  %v503_v41 = vadd.f32 %v1393_v0, %v502_v39  ;;  %v599_v42 = vadd.f32 %v598_v36, %v550_v38 }
  0xf9   :  { %v552_v43 = vadd.f32 %v551_v40, %v503_v41  ;;  %v648_v46 = vadd.f32 %v647_v37, %v599_v42 }
  0xfb   :  { %v672_v51 = vmax.f32 %v648_v46, 0.0 }
  0xfe   :  { %v600_v44 = vpop.f32.mrf.mxu2  ;;  %v505_v48 = vpop.f32.mrf.mxu0 }
  0xff   :  { %v649_v45 = vpop.f32.mrf.mxu3  ;;  %v601_v47 = vadd.f32 %v600_v44, %v552_v43  ;;  %v554_v49 = vpop.f32.mrf.mxu1  ;;  %v506_v53 = vadd.f32 %v1393_v0, %v505_v48 }
 0x101   :  { %v650_v50 = vadd.f32 %v649_v45, %v601_v47  ;;  %v555_v57 = vadd.f32 %v554_v49, %v506_v53 }
 0x103   :  { %v673_v52 = vmax.f32 %v650_v50, 0.0 }
 0x105   :  { %v1062_v54 = vpack.c.bf16 %v673_v52, %v672_v51 }
 0x106   :  { %v603_v55 = vpop.f32.mrf.mxu2  ;;  %v507_v58 = vpop.f32.mrf.mxu0 }
 0x107   :  { %v652_v56 = vpop.f32.mrf.mxu3  ;;  %1078 = vst [vmem:[%s1438_s3 + $0x28] sm:$0xff] %v1062_v54   ;;  %v556_v59 = vpop.f32.mrf.mxu1  ;;  %v508_v60 = vadd.f32 %v1393_v0, %v507_v58  ;;  %v604_v61 = vadd.f32 %v603_v55, %v555_v57 }
 0x109   :  { %v557_v62 = vadd.f32 %v556_v59, %v508_v60  ;;  %v653_v2 = vadd.f32 %v652_v56, %v604_v61 }
 0x10b   :  { %v674_v7 = vmax.f32 %v653_v2, 0.0 }
 0x10e   :  { %v605_v63 = vpop.f32.mrf.mxu2  ;;  %v510_v4 = vpop.f32.mrf.mxu0 }
 0x10f   :  { %v654_v1 = vpop.f32.mrf.mxu3  ;;  %v606_v3 = vadd.f32 %v605_v63, %v557_v62  ;;  %v559_v6 = vpop.f32.mrf.mxu1  ;;  %v511_v9 = vadd.f32 %v1393_v0, %v510_v4 }
 0x111   :  { %v655_v5 = vadd.f32 %v654_v1, %v606_v3  ;;  %v560_v13 = vadd.f32 %v559_v6, %v511_v9 }
 0x113   :  { %v675_v8 = vmax.f32 %v655_v5, 0.0 }
 0x115   :  { %v1067_v10 = vpack.c.bf16 %v675_v8, %v674_v7 }
 0x116   :  { %v608_v11 = vpop.f32.mrf.mxu2  ;;  %v512_v14 = vpop.f32.mrf.mxu0 }
 0x117   :  { %v657_v12 = vpop.f32.mrf.mxu3  ;;  %1079 = vst [vmem:[%s1438_s3 + $0x30] sm:$0xff] %v1067_v10   ;;  %v513_v15 = vadd.f32 %v1393_v0, %v512_v14  ;;  %v609_v16 = vadd.f32 %v608_v11, %v560_v13  ;;  %v561_v17 = vpop.f32.mrf.mxu1 }
 0x119   :  { %v562_v18 = vadd.f32 %v561_v17, %v513_v15  ;;  %v658_v20 = vadd.f32 %v657_v12, %v609_v16 }
 0x11b   :  { %v676_v24 = vmax.f32 %v658_v20, 0.0 }
 0x11e   :  { %v610_v19 = vpop.f32.mrf.mxu2 }
 0x11f   :  { %v611_v21 = vadd.f32 %v610_v19, %v562_v18  ;;  %v659_v22 = vpop.f32.mrf.mxu3 }
 0x121   :  { %v660_v23 = vadd.f32 %v659_v22, %v611_v21 }
 0x123   :  { %v677_v25 = vmax.f32 %v660_v23, 0.0 }
 0x125   :  { %v1072_v26 = vpack.c.bf16 %v677_v25, %v676_v24 }
 0x127   :  { %1080 = vst [vmem:[%s1438_s3 + $0x38] sm:$0xff] %v1072_v26  }

// kernel: beta_vae_forward.13
= control target key start
LH: loop header
LB: loop body
LE: loop exit
PB: predicated region body
PF: predicated region fallthrough
CT: control target
= control target key end

     0   :  { %s799_s1 = inlined_call_operand.vmem [shape: bf16[512,128], index: 1, kind: input, shape index: {}]   ;;  %s800_s2 = inlined_call_operand.vmem [shape: f32[1,128], index: 2, kind: input, shape index: {}]   ;;  %s801_s0 = inlined_call_operand.vmem [shape: bf16[32,512], index: 0, kind: input, shape index: {}]   ;;  %s802_s3 = inlined_call_operand.vmem [shape: bf16[32,128], index: 3, kind: output, shape index: {}]  }
   0x1   :  { %v589_v0 = vld [vmem:[%s799_s1 + $0x38] sm:$0xff]  ;;  %v588_v4 = vld [vmem:[%s799_s1 + $0x30] sm:$0xff]  ;;  %v587_v8 = vld [vmem:[%s799_s1 + $0x28] sm:$0xff] }
   0x2   :  { %v597_v1 = vld [vmem:[%s799_s1 + $0x78] sm:$0xff]  ;;  %322 = vmatpush.bf16.msra.mxu0 %v589_v0  ;;  %v596_v5 = vld [vmem:[%s799_s1 + $0x70] sm:$0xff]  ;;  %v595_v9 = vld [vmem:[%s799_s1 + $0x68] sm:$0xff] }
   0x3   :  { %v605_v2 = vld [vmem:[%s799_s1 + $0xb8] sm:$0xff]  ;;  %341 = vmatpush.bf16.msra.mxu1 %v597_v1  ;;  %v604_v6 = vld [vmem:[%s799_s1 + $0xb0] sm:$0xff]  ;;  %v603_v10 = vld [vmem:[%s799_s1 + $0xa8] sm:$0xff] }
   0x4   :  { %v613_v3 = vld [vmem:[%s799_s1 + $0xf8] sm:$0xff]  ;;  %360 = vmatpush.bf16.msra.mxu2 %v605_v2  ;;  %v612_v7 = vld [vmem:[%s799_s1 + $0xf0] sm:$0xff]  ;;  %v611_v11 = vld [vmem:[%s799_s1 + $0xe8] sm:$0xff] }
   0x5   :  { %379 = vmatpush.bf16.msra.mxu3 %v613_v3  ;;  %v586_v12 = vld [vmem:[%s799_s1 + $0x20] sm:$0xff]  ;;  %v585_v16 = vld [vmem:[%s799_s1 + $0x18] sm:$0xff]  ;;  %v584_v20 = vld [vmem:[%s799_s1 + $0x10] sm:$0xff] }
   0x6   :  { %323 = vmatpush.bf16.msra.mxu0 %v588_v4  ;;  %v594_v13 = vld [vmem:[%s799_s1 + $0x60] sm:$0xff]  ;;  %v593_v17 = vld [vmem:[%s799_s1 + $0x58] sm:$0xff]  ;;  %v592_v21 = vld [vmem:[%s799_s1 + $0x50] sm:$0xff] }
   0x7   :  { %342 = vmatpush.bf16.msra.mxu1 %v596_v5  ;;  %v602_v14 = vld [vmem:[%s799_s1 + $0xa0] sm:$0xff]  ;;  %v601_v18 = vld [vmem:[%s799_s1 + $0x98] sm:$0xff]  ;;  %v600_v22 = vld [vmem:[%s799_s1 + $0x90] sm:$0xff] }
   0x8   :  { %361 = vmatpush.bf16.msra.mxu2 %v604_v6  ;;  %v610_v15 = vld [vmem:[%s799_s1 + $0xe0] sm:$0xff]  ;;  %v609_v19 = vld [vmem:[%s799_s1 + $0xd8] sm:$0xff]  ;;  %v608_v23 = vld [vmem:[%s799_s1 + $0xd0] sm:$0xff] }
   0x9   :  { %380 = vmatpush.bf16.msra.mxu3 %v612_v7  ;;  %v583_v24 = vld [vmem:[%s799_s1 + $0x8] sm:$0xff]  ;;  %v582_v28 = vld [vmem:[%s799_s1] sm:$0xff]  ;;  %v576_v33 = vld [vmem:[%s801_s0 + $0xc] sm:$0xf0] }
   0xa   :  { %324 = vmatpush.bf16.msra.mxu0 %v587_v8  ;;  %v591_v25 = vld [vmem:[%s799_s1 + $0x48] sm:$0xff]  ;;  %v590_v29 = vld [vmem:[%s799_s1 + $0x40] sm:$0xff]  ;;  %v418_v35 = vld [vmem:[%s801_s0 + $0x10] sm:$0xf0] }
   0xb   :  { %343 = vmatpush.bf16.msra.mxu1 %v595_v9  ;;  %v599_v26 = vld [vmem:[%s799_s1 + $0x88] sm:$0xff]  ;;  %v598_v30 = vld [vmem:[%s799_s1 + $0x80] sm:$0xff]  ;;  %v577_v37 = vld [vmem:[%s801_s0 + $0x14] sm:$0xf0] }
   0xc   :  { %362 = vmatpush.bf16.msra.mxu2 %v603_v10  ;;  %v607_v27 = vld [vmem:[%s799_s1 + $0xc8] sm:$0xff]  ;;  %v606_v31 = vld [vmem:[%s799_s1 + $0xc0] sm:$0xff]  ;;  %v426_v39 = vld [vmem:[%s801_s0 + $0x18] sm:$0xf0] }
   0xd   :  { %381 = vmatpush.bf16.msra.mxu3 %v611_v11  ;;  %v416_v32 = vld [vmem:[%s801_s0] sm:$0xf]  ;;  %v574_v34 = vld [vmem:[%s801_s0 + $0x4] sm:$0xf]  ;;  %v424_v36 = vld [vmem:[%s801_s0 + $0x8] sm:$0xf] }
   0xe   :  { %325 = vmatpush.bf16.msra.mxu0 %v586_v12  ;;  %v575_v38 = vld [vmem:[%s801_s0 + $0xc] sm:$0xf]  ;;  %v417_v40 = vor.u32 %v576_v33, %v416_v32  ;;  %v421_v41 = vor.u32 %v574_v34, %v418_v35  ;;  %v425_v42 = vor.u32 %v577_v37, %v424_v36  ;;  %v432_v44 = vld [vmem:[%s801_s0 + $0x20] sm:$0xf]  ;;  %v580_v45 = vld [vmem:[%s801_s0 + $0x2c] sm:$0xf0] }
   0xf   :  { %344 = vmatpush.bf16.msra.mxu1 %v594_v13  ;;  %v429_v43 = vor.u32 %v575_v38, %v426_v39  ;;  %v578_v46 = vld [vmem:[%s801_s0 + $0x24] sm:$0xf]  ;;  %v434_v47 = vld [vmem:[%s801_s0 + $0x30] sm:$0xf0]  ;;  %v440_v48 = vld [vmem:[%s801_s0 + $0x28] sm:$0xf]  ;;  %v433_v52 = vor.u32 %v580_v45, %v432_v44 }
  0x10   :  { %363 = vmatpush.bf16.msra.mxu2 %v602_v14  ;;  %v581_v49 = vld [vmem:[%s801_s0 + $0x34] sm:$0xf0]  ;;  %v579_v50 = vld [vmem:[%s801_s0 + $0x2c] sm:$0xf]  ;;  %v442_v51 = vld [vmem:[%s801_s0 + $0x38] sm:$0xf0]  ;;  %v437_v53 = vor.u32 %v578_v46, %v434_v47 }
  0x11   :  { %382 = vmatpush.bf16.msra.mxu3 %v610_v15  ;;  %v441_v54 = vor.u32 %v581_v49, %v440_v48  ;;  %v445_v55 = vor.u32 %v579_v50, %v442_v51  ;;  %v625_v56 = vld [vmem:[%s800_s2] ss:$0 sm:$0xff] }
  0x12   :  { %326 = vmatpush.bf16.msra.mxu0 %v585_v16 }
  0x13   :  { %345 = vmatpush.bf16.msra.mxu1 %v593_v17 }
  0x14   :  { %364 = vmatpush.bf16.msra.mxu2 %v601_v18 }
  0x15   :  { %383 = vmatpush.bf16.msra.mxu3 %v609_v19 }
  0x16   :  { %327 = vmatpush.bf16.msra.mxu0 %v584_v20 }
  0x17   :  { %346 = vmatpush.bf16.msra.mxu1 %v592_v21 }
  0x18   :  { %365 = vmatpush.bf16.msra.mxu2 %v600_v22 }
  0x19   :  { %384 = vmatpush.bf16.msra.mxu3 %v608_v23 }
  0x1a   :  { %328 = vmatpush.bf16.msra.mxu0 %v583_v24 }
  0x1b   :  { %347 = vmatpush.bf16.msra.mxu1 %v591_v25 }
  0x1c   :  { %366 = vmatpush.bf16.msra.mxu2 %v599_v26 }
  0x1d   :  { %385 = vmatpush.bf16.msra.mxu3 %v607_v27 }
  0x1e   :  { %329 = vmatpush.bf16.msra.mxu0 %v582_v28 }
  0x1f   :  { %348 = vmatpush.bf16.msra.mxu1 %v590_v29 }
  0x20   :  { %367 = vmatpush.bf16.msra.mxu2 %v598_v30 }
  0x21   :  { %386 = vmatpush.bf16.msra.mxu3 %v606_v31  ;;  %330 = vmatmul.bf16.vlgmr.msra.gmra.mxu0 %v417_v40 }
  0x22   :  { %349 = vmatmul.bf16.vlgmr.msra.gmra.mxu1 %v421_v41 }
  0x23   :  { %368 = vmatmul.bf16.vlgmr.msra.gmra.mxu2 %v425_v42 }
  0x24   :  { %387 = vmatmul.bf16.vlgmr.msra.gmra.mxu3 %v429_v43 }
  0x31   :  { %335 = vmatmul.bf16.gmra.mxu0 %v433_v52 }
  0x32   :  { %354 = vmatmul.bf16.gmra.mxu1 %v437_v53 }
  0x33   :  { %373 = vmatmul.bf16.gmra.mxu2 %v441_v54 }
  0x34   :  { %392 = vmatmul.bf16.gmra.mxu3 %v445_v55 }
  0x9e   :  { %v331_v57 = vpop.f32.mrf.mxu0 }
  0x9f   :  { %v350_v58 = vpop.f32.mrf.mxu1  ;;  %v332_v59 = vadd.f32 %v625_v56, %v331_v57 }
  0xa1   :  { %v351_v62 = vadd.f32 %v350_v58, %v332_v59 }
  0xa6   :  { %v369_v60 = vpop.f32.mrf.mxu2  ;;  %v333_v63 = vpop.f32.mrf.mxu0 }
  0xa7   :  { %v388_v61 = vpop.f32.mrf.mxu3  ;;  %v352_v0 = vpop.f32.mrf.mxu1  ;;  %v334_v1 = vadd.f32 %v625_v56, %v333_v63  ;;  %v370_v2 = vadd.f32 %v369_v60, %v351_v62 }
  0xa9   :  { %v353_v3 = vadd.f32 %v352_v0, %v334_v1  ;;  %v389_v6 = vadd.f32 %v388_v61, %v370_v2 }
  0xab   :  { %v398_v11 = vmax.f32 %v389_v6, 0.0 }
  0xae   :  { %v371_v4 = vpop.f32.mrf.mxu2  ;;  %v336_v8 = vpop.f32.mrf.mxu0 }
  0xaf   :  { %v390_v5 = vpop.f32.mrf.mxu3  ;;  %v372_v7 = vadd.f32 %v371_v4, %v353_v3  ;;  %v355_v10 = vpop.f32.mrf.mxu1  ;;  %v337_v13 = vadd.f32 %v625_v56, %v336_v8 }
  0xb1   :  { %v391_v9 = vadd.f32 %v390_v5, %v372_v7  ;;  %v356_v17 = vadd.f32 %v355_v10, %v337_v13 }
  0xb3   :  { %v399_v12 = vmax.f32 %v391_v9, 0.0 }
  0xb5   :  { %v617_v14 = vpack.c.bf16 %v399_v12, %v398_v11 }
  0xb6   :  { %v374_v15 = vpop.f32.mrf.mxu2  ;;  %v338_v18 = vpop.f32.mrf.mxu0 }
  0xb7   :  { %v393_v16 = vpop.f32.mrf.mxu3  ;;  %618 = vst [vmem:[%s802_s3] sm:$0xff] %v617_v14   ;;  %v339_v19 = vadd.f32 %v625_v56, %v338_v18  ;;  %v375_v20 = vadd.f32 %v374_v15, %v356_v17  ;;  %v357_v21 = vpop.f32.mrf.mxu1 }
  0xb9   :  { %v358_v22 = vadd.f32 %v357_v21, %v339_v19  ;;  %v394_v24 = vadd.f32 %v393_v16, %v375_v20 }
  0xbb   :  { %v400_v28 = vmax.f32 %v394_v24, 0.0 }
  0xbe   :  { %v376_v23 = vpop.f32.mrf.mxu2 }
  0xbf   :  { %v377_v25 = vadd.f32 %v376_v23, %v358_v22  ;;  %v395_v26 = vpop.f32.mrf.mxu3 }
  0xc1   :  { %v396_v27 = vadd.f32 %v395_v26, %v377_v25 }
  0xc3   :  { %v401_v29 = vmax.f32 %v396_v27, 0.0 }
  0xc5   :  { %v622_v30 = vpack.c.bf16 %v401_v29, %v400_v28 }
  0xc7   :  { %624 = vst [vmem:[%s802_s3 + $0x8] sm:$0xff] %v622_v30  }

// kernel: beta_vae_forward.14
= control target key start
LH: loop header
LB: loop body
LE: loop exit
PB: predicated region body
PF: predicated region fallthrough
CT: control target
= control target key end

     0   :  { %16 = vsyncpa [#allocation3], 0  ;;  %s2358_s0 = inlined_call_operand.vmem [shape: bf16[2,512], index: 0, kind: input, shape index: {}]   ;;  %s2359_s1 = inlined_call_operand.vmem [shape: bf16[512,256], index: 1, kind: input, shape index: {}]   ;;  %s2360_s2 = inlined_call_operand.vmem [shape: f32[1,256], index: 2, kind: input, shape index: {}]   ;;  %s2361_s3 = inlined_call_operand.vmem [shape: bf16[256,256], index: 3, kind: input, shape index: {}]   ;;  %s2362_s4 = inlined_call_operand.vmem [shape: f32[1,256], index: 4, kind: input, shape index: {}]   ;;  %s2363_s5 = inlined_call_operand.vmem [shape: bf16[256,128], index: 5, kind: input, shape index: {}]   ;;  %s2364_s6 = inlined_call_operand.vmem [shape: f32[1,128], index: 6, kind: input, shape index: {}]   ;;  %s2365_s7 = inlined_call_operand.vmem [shape: f32[2,7], index: 7, kind: input, shape index: {}]   ;;  %s2366_s8 = inlined_call_operand.hbm [shape: f32[2,7], index: 8, kind: output, shape index: {0}]   ;;  %s2367_s9 = inlined_call_operand.hbm [shape: f32[2,7], index: 9, kind: output, shape index: {1}]   ;;  %s2368_s10 = inlined_call_operand.vmem [shape: f32[2,7], index: 10, kind: output, shape index: {2}]  }
   0x1   :  { %v1071_v0 = vld [vmem:[%s2359_s1 + $0x70] sm:$0xf]  ;;  %v1476_v1 = vld [vmem:[%s2359_s1 + $0x74] sm:$0xf0]  ;;  %v1063_v11 = vld [vmem:[%s2359_s1 + $0x60] sm:$0xf] }
   0x2   :  { %v1135_v2 = vld [vmem:[%s2359_s1 + $0xf0] sm:$0xf]  ;;  %v1072_v3 = vor.u32 %v1476_v1, %v1071_v0  ;;  %v1492_v4 = vld [vmem:[%s2359_s1 + $0xf4] sm:$0xf0]  ;;  %v1474_v13 = vld [vmem:[%s2359_s1 + $0x64] sm:$0xf0] }
   0x3   :  { %v1199_v5 = vld [vmem:[%s2359_s1 + $0x170] sm:$0xf]  ;;  %v1508_v6 = vld [vmem:[%s2359_s1 + $0x174] sm:$0xf0]  ;;  %v1136_v7 = vor.u32 %v1492_v4, %v1135_v2  ;;  %v1127_v14 = vld [vmem:[%s2359_s1 + $0xe0] sm:$0xf]  ;;  %v1064_v16 = vor.u32 %v1474_v13, %v1063_v11 }
   0x4   :  { %v1200_v8 = vor.u32 %v1508_v6, %v1199_v5  ;;  %v1263_v9 = vld [vmem:[%s2359_s1 + $0x1f0] sm:$0xf]  ;;  %v1524_v10 = vld [vmem:[%s2359_s1 + $0x1f4] sm:$0xf0]  ;;  %435 = vmatpush.bf16.msra.mxu0 %v1072_v3  ;;  %v1490_v15 = vld [vmem:[%s2359_s1 + $0xe4] sm:$0xf0] }
   0x5   :  { %v1264_v12 = vor.u32 %v1524_v10, %v1263_v9  ;;  %448 = vmatpush.bf16.msra.mxu1 %v1136_v7  ;;  %v1128_v17 = vor.u32 %v1490_v15, %v1127_v14  ;;  %v1191_v18 = vld [vmem:[%s2359_s1 + $0x160] sm:$0xf]  ;;  %v1506_v19 = vld [vmem:[%s2359_s1 + $0x164] sm:$0xf0]  ;;  %v1055_v23 = vld [vmem:[%s2359_s1 + $0x50] sm:$0xf] }
   0x6   :  { %461 = vmatpush.bf16.msra.mxu2 %v1200_v8  ;;  %v1255_v20 = vld [vmem:[%s2359_s1 + $0x1e0] sm:$0xf]  ;;  %v1192_v21 = vor.u32 %v1506_v19, %v1191_v18  ;;  %v1522_v22 = vld [vmem:[%s2359_s1 + $0x1e4] sm:$0xf0]  ;;  %v1472_v24 = vld [vmem:[%s2359_s1 + $0x54] sm:$0xf0] }
   0x7   :  { %474 = vmatpush.bf16.msra.mxu3 %v1264_v12  ;;  %v1256_v25 = vor.u32 %v1522_v22, %v1255_v20  ;;  %v1119_v26 = vld [vmem:[%s2359_s1 + $0xd0] sm:$0xf]  ;;  %v1488_v27 = vld [vmem:[%s2359_s1 + $0xd4] sm:$0xf0]  ;;  %v1056_v29 = vor.u32 %v1472_v24, %v1055_v23  ;;  %v1047_v35 = vld [vmem:[%s2359_s1 + $0x40] sm:$0xf] }
   0x8   :  { %v1183_v28 = vld [vmem:[%s2359_s1 + $0x150] sm:$0xf]  ;;  %436 = vmatpush.bf16.msra.mxu0 %v1064_v16  ;;  %v1504_v30 = vld [vmem:[%s2359_s1 + $0x154] sm:$0xf0]  ;;  %v1120_v33 = vor.u32 %v1488_v27, %v1119_v26  ;;  %v1470_v36 = vld [vmem:[%s2359_s1 + $0x44] sm:$0xf0] }
   0x9   :  { %v1247_v31 = vld [vmem:[%s2359_s1 + $0x1d0] sm:$0xf]  ;;  %v1520_v32 = vld [vmem:[%s2359_s1 + $0x1d4] sm:$0xf0]  ;;  %449 = vmatpush.bf16.msra.mxu1 %v1128_v17  ;;  %v1184_v34 = vor.u32 %v1504_v30, %v1183_v28  ;;  %v1111_v37 = vld [vmem:[%s2359_s1 + $0xc0] sm:$0xf]  ;;  %v1048_v44 = vor.u32 %v1470_v36, %v1047_v35 }
   0xa   :  { %462 = vmatpush.bf16.msra.mxu2 %v1192_v21  ;;  %v1248_v38 = vor.u32 %v1520_v32, %v1247_v31  ;;  %v1486_v39 = vld [vmem:[%s2359_s1 + $0xc4] sm:$0xf0]  ;;  %v1175_v40 = vld [vmem:[%s2359_s1 + $0x140] sm:$0xf]  ;;  %v1039_v47 = vld [vmem:[%s2359_s1 + $0x30] sm:$0xf] }
   0xb   :  { %475 = vmatpush.bf16.msra.mxu3 %v1256_v25  ;;  %v1502_v41 = vld [vmem:[%s2359_s1 + $0x144] sm:$0xf0]  ;;  %v1239_v42 = vld [vmem:[%s2359_s1 + $0x1c0] sm:$0xf]  ;;  %v1112_v45 = vor.u32 %v1486_v39, %v1111_v37  ;;  %v1468_v48 = vld [vmem:[%s2359_s1 + $0x34] sm:$0xf0] }
   0xc   :  { %v1518_v43 = vld [vmem:[%s2359_s1 + $0x1c4] sm:$0xf0]  ;;  %437 = vmatpush.bf16.msra.mxu0 %v1056_v29  ;;  %v1176_v46 = vor.u32 %v1502_v41, %v1175_v40  ;;  %v1103_v49 = vld [vmem:[%s2359_s1 + $0xb0] sm:$0xf]  ;;  %v1484_v51 = vld [vmem:[%s2359_s1 + $0xb4] sm:$0xf0]  ;;  %v1040_v56 = vor.u32 %v1468_v48, %v1039_v47 }
   0xd   :  { %450 = vmatpush.bf16.msra.mxu1 %v1120_v33  ;;  %v1240_v50 = vor.u32 %v1518_v43, %v1239_v42  ;;  %v1167_v52 = vld [vmem:[%s2359_s1 + $0x130] sm:$0xf]  ;;  %v1500_v53 = vld [vmem:[%s2359_s1 + $0x134] sm:$0xf0]  ;;  %v1104_v57 = vor.u32 %v1484_v51, %v1103_v49  ;;  %v1031_v59 = vld [vmem:[%s2359_s1 + $0x20] sm:$0xf] }
   0xe   :  { %463 = vmatpush.bf16.msra.mxu2 %v1184_v34  ;;  %v1231_v54 = vld [vmem:[%s2359_s1 + $0x1b0] sm:$0xf]  ;;  %v1516_v55 = vld [vmem:[%s2359_s1 + $0x1b4] sm:$0xf0]  ;;  %v1168_v58 = vor.u32 %v1500_v53, %v1167_v52  ;;  %v1466_v60 = vld [vmem:[%s2359_s1 + $0x24] sm:$0xf0] }
   0xf   :  { %476 = vmatpush.bf16.msra.mxu3 %v1248_v38  ;;  %v1095_v61 = vld [vmem:[%s2359_s1 + $0xa0] sm:$0xf]  ;;  %v1232_v62 = vor.u32 %v1516_v55, %v1231_v54  ;;  %v1482_v63 = vld [vmem:[%s2359_s1 + $0xa4] sm:$0xf0]  ;;  %v1032_v4 = vor.u32 %v1466_v60, %v1031_v59  ;;  %v1023_v7 = vld [vmem:[%s2359_s1 + $0x10] sm:$0xf] }
  0x10   :  { %438 = vmatpush.bf16.msra.mxu0 %v1048_v44  ;;  %v1159_v0 = vld [vmem:[%s2359_s1 + $0x120] sm:$0xf]  ;;  %v1498_v1 = vld [vmem:[%s2359_s1 + $0x124] sm:$0xf0]  ;;  %v1096_v5 = vor.u32 %v1482_v63, %v1095_v61  ;;  %v1464_v8 = vld [vmem:[%s2359_s1 + $0x14] sm:$0xf0] }
  0x11   :  { %451 = vmatpush.bf16.msra.mxu1 %v1112_v45  ;;  %v1223_v2 = vld [vmem:[%s2359_s1 + $0x1a0] sm:$0xf]  ;;  %v1514_v3 = vld [vmem:[%s2359_s1 + $0x1a4] sm:$0xf0]  ;;  %v1160_v6 = vor.u32 %v1498_v1, %v1159_v0  ;;  %v1087_v9 = vld [vmem:[%s2359_s1 + $0x90] sm:$0xf]  ;;  %v1024_v17 = vor.u32 %v1464_v8, %v1023_v7 }
  0x12   :  { %464 = vmatpush.bf16.msra.mxu2 %v1176_v46  ;;  %v1224_v10 = vor.u32 %v1514_v3, %v1223_v2  ;;  %v1480_v11 = vld [vmem:[%s2359_s1 + $0x94] sm:$0xf0]  ;;  %v1151_v12 = vld [vmem:[%s2359_s1 + $0x110] sm:$0xf]  ;;  %v1015_v16 = vld [vmem:[%s2359_s1] sm:$0xf] }
  0x13   :  { %477 = vmatpush.bf16.msra.mxu3 %v1240_v50  ;;  %v1496_v13 = vld [vmem:[%s2359_s1 + $0x114] sm:$0xf0]  ;;  %v1215_v14 = vld [vmem:[%s2359_s1 + $0x190] sm:$0xf]  ;;  %v1462_v18 = vld [vmem:[%s2359_s1 + $0x4] sm:$0xf0]  ;;  %v1088_v21 = vor.u32 %v1480_v11, %v1087_v9 }
  0x14   :  { %439 = vmatpush.bf16.msra.mxu0 %v1040_v56  ;;  %v1512_v15 = vld [vmem:[%s2359_s1 + $0x194] sm:$0xf0]  ;;  %v1079_v19 = vld [vmem:[%s2359_s1 + $0x80] sm:$0xf]  ;;  %v1478_v20 = vld [vmem:[%s2359_s1 + $0x84] sm:$0xf0]  ;;  %v1152_v22 = vor.u32 %v1496_v13, %v1151_v12  ;;  %v1016_v33 = vor.u32 %v1462_v18, %v1015_v16 }
  0x15   :  { %452 = vmatpush.bf16.msra.mxu1 %v1104_v57  ;;  %v1143_v23 = vld [vmem:[%s2359_s1 + $0x100] sm:$0xf]  ;;  %v1494_v24 = vld [vmem:[%s2359_s1 + $0x104] sm:$0xf0]  ;;  %v1216_v26 = vor.u32 %v1512_v15, %v1215_v14  ;;  %v1475_v28 = vld [vmem:[%s2359_s1 + $0x74] sm:$0xf]  ;;  %v1080_v36 = vor.u32 %v1478_v20, %v1079_v19 }
  0x16   :  { %465 = vmatpush.bf16.msra.mxu2 %v1168_v58  ;;  %v1207_v25 = vld [vmem:[%s2359_s1 + $0x180] sm:$0xf]  ;;  %v1510_v27 = vld [vmem:[%s2359_s1 + $0x184] sm:$0xf0]  ;;  %v1073_v29 = vld [vmem:[%s2359_s1 + $0x78] sm:$0xf0]  ;;  %v1144_v37 = vor.u32 %v1494_v24, %v1143_v23 }
  0x17   :  { %478 = vmatpush.bf16.msra.mxu3 %v1232_v62  ;;  %v1491_v30 = vld [vmem:[%s2359_s1 + $0xf4] sm:$0xf]  ;;  %v1137_v31 = vld [vmem:[%s2359_s1 + $0xf8] sm:$0xf0]  ;;  %v34_v32 = vld [vmem:[%s2358_s0] sm:$0xf]  ;;  %v1208_v40 = vor.u32 %v1510_v27, %v1207_v25  ;;  %v1076_v41 = vor.u32 %v1475_v28, %v1073_v29 }
  0x18   :  { %440 = vmatpush.bf16.msra.mxu0 %v1032_v4  ;;  %v1507_v34 = vld [vmem:[%s2359_s1 + $0x174] sm:$0xf]  ;;  %v1201_v35 = vld [vmem:[%s2359_s1 + $0x178] sm:$0xf0]  ;;  %106 = vst [vmem:[#allocation1] ss:$9 sm:$0xff] %v34_v32  ;;  %v1140_v42 = vor.u32 %v1491_v30, %v1137_v31 }
  0x19   :  { %453 = vmatpush.bf16.msra.mxu1 %v1096_v5  ;;  %v1523_v38 = vld [vmem:[%s2359_s1 + $0x1f4] sm:$0xf]  ;;  %v1265_v39 = vld [vmem:[%s2359_s1 + $0x1f8] sm:$0xf0]  ;;  %v1204_v43 = vor.u32 %v1507_v34, %v1201_v35  ;;  %v1473_v44 = vld [vmem:[%s2359_s1 + $0x64] sm:$0xf] }
  0x1a   :  { %466 = vmatpush.bf16.msra.mxu2 %v1160_v6  ;;  %v1065_v45 = vld [vmem:[%s2359_s1 + $0x68] sm:$0xf0]  ;;  %v1489_v46 = vld [vmem:[%s2359_s1 + $0xe4] sm:$0xf]  ;;  %v1268_v47 = vor.u32 %v1523_v38, %v1265_v39  ;;  %v1471_v53 = vld [vmem:[%s2359_s1 + $0x54] sm:$0xf] }
  0x1b   :  { %479 = vmatpush.bf16.msra.mxu3 %v1224_v10  ;;  %v1129_v48 = vld [vmem:[%s2359_s1 + $0xe8] sm:$0xf0]  ;;  %v1505_v49 = vld [vmem:[%s2359_s1 + $0x164] sm:$0xf]  ;;  %v1068_v54 = vor.u32 %v1473_v44, %v1065_v45  ;;  %v1057_v55 = vld [vmem:[%s2359_s1 + $0x58] sm:$0xf0] }
  0x1c   :  { %441 = vmatpush.bf16.msra.mxu0 %v1024_v17  ;;  %v1193_v50 = vld [vmem:[%s2359_s1 + $0x168] sm:$0xf0]  ;;  %v1521_v51 = vld [vmem:[%s2359_s1 + $0x1e4] sm:$0xf]  ;;  %v1487_v56 = vld [vmem:[%s2359_s1 + $0xd4] sm:$0xf]  ;;  %v1132_v58 = vor.u32 %v1489_v46, %v1129_v48  ;;  %v1060_v5 = vor.u32 %v1471_v53, %v1057_v55 }
  0x1d   :  { %454 = vmatpush.bf16.msra.mxu1 %v1088_v21  ;;  %v1257_v52 = vld [vmem:[%s2359_s1 + $0x1e8] sm:$0xf0]  ;;  %v1121_v57 = vld [vmem:[%s2359_s1 + $0xd8] sm:$0xf0]  ;;  %v1196_v59 = vor.u32 %v1505_v49, %v1193_v50  ;;  %v1503_v0 = vld [vmem:[%s2359_s1 + $0x154] sm:$0xf] }
  0x1e   :  { %467 = vmatpush.bf16.msra.mxu2 %v1152_v22  ;;  %v1260_v63 = vor.u32 %v1521_v51, %v1257_v52  ;;  %v1185_v1 = vld [vmem:[%s2359_s1 + $0x158] sm:$0xf0]  ;;  %v1519_v3 = vld [vmem:[%s2359_s1 + $0x1d4] sm:$0xf]  ;;  %v1124_v6 = vor.u32 %v1487_v56, %v1121_v57  ;;  %v1469_v8 = vld [vmem:[%s2359_s1 + $0x44] sm:$0xf] }
  0x1f   :  { %480 = vmatpush.bf16.msra.mxu3 %v1216_v26  ;;  %v1946_v60 = vld [vmem:[#allocation1 + $0x12] sm:$0xff]  ;;  %v1948_v61 = vld [vmem:[#allocation1] sm:$0xff]  ;;  %v1959_v2 = vld [vmem:[#allocation1 + $0x9] sm:$0xff]  ;;  %v1188_v7 = vor.u32 %v1503_v0, %v1185_v1 }
  0x20   :  { %442 = vmatpush.bf16.msra.mxu0 %v1016_v33  ;;  %v1950_v62 = vld [vmem:[#allocation1 + $0x1b] sm:$0xff]  ;;  %v1049_v9 = vld [vmem:[%s2359_s1 + $0x48] sm:$0xf0]  ;;  %v1485_v10 = vld [vmem:[%s2359_s1 + $0xc4] sm:$0xf] }
  0x21   :  { %455 = vmatpush.bf16.msra.mxu1 %v1080_v36  ;;  %v1249_v4 = vld [vmem:[%s2359_s1 + $0x1d8] sm:$0xf0]  ;;  %v1113_v12 = vld [vmem:[%s2359_s1 + $0xc8] sm:$0xf0]  ;;  %v1501_v13 = vld [vmem:[%s2359_s1 + $0x144] sm:$0xf]  ;;  %v1052_v17 = vor.u32 %v1469_v8, %v1049_v9 }
  0x22   :  { %468 = vmatpush.bf16.msra.mxu2 %v1144_v37  ;;  %v1252_v11 = vor.u32 %v1519_v3, %v1249_v4  ;;  %v1177_v14 = vld [vmem:[%s2359_s1 + $0x148] sm:$0xf0]  ;;  %v1517_v15 = vld [vmem:[%s2359_s1 + $0x1c4] sm:$0xf]  ;;  %v1116_v18 = vor.u32 %v1485_v10, %v1113_v12  ;;  %v1467_v20 = vld [vmem:[%s2359_s1 + $0x34] sm:$0xf] }
  0x23   :  { %481 = vmatpush.bf16.msra.mxu3 %v1208_v40  ;;  %443 = vmatmul.bf16.vlgmr.msra.gmra.mxu0 %v1948_v61  ;;  %v1241_v16 = vld [vmem:[%s2359_s1 + $0x1c8] sm:$0xf0]  ;;  %v1180_v19 = vor.u32 %v1501_v13, %v1177_v14  ;;  %v1041_v21 = vld [vmem:[%s2359_s1 + $0x38] sm:$0xf0]  ;;  %v1483_v22 = vld [vmem:[%s2359_s1 + $0xb4] sm:$0xf] }
  0x24   :  { %487 = vmatpush.bf16.msrb.mxu0 %v1076_v41  ;;  %456 = vmatmul.bf16.vlgmr.msra.gmra.mxu1 %v1959_v2  ;;  %v1244_v23 = vor.u32 %v1517_v15, %v1241_v16  ;;  %v1105_v24 = vld [vmem:[%s2359_s1 + $0xb8] sm:$0xf0]  ;;  %v1499_v25 = vld [vmem:[%s2359_s1 + $0x134] sm:$0xf]  ;;  %v1044_v29 = vor.u32 %v1467_v20, %v1041_v21  ;;  %v1465_v32 = vld [vmem:[%s2359_s1 + $0x24] sm:$0xf] }
  0x25   :  { %500 = vmatpush.bf16.msrb.mxu1 %v1140_v42  ;;  %469 = vmatmul.bf16.vlgmr.msra.gmra.mxu2 %v1946_v60  ;;  %v1169_v26 = vld [vmem:[%s2359_s1 + $0x138] sm:$0xf0]  ;;  %v1515_v27 = vld [vmem:[%s2359_s1 + $0x1b4] sm:$0xf]  ;;  %v1108_v30 = vor.u32 %v1483_v22, %v1105_v24  ;;  %v1033_v33 = vld [vmem:[%s2359_s1 + $0x28] sm:$0xf0] }
  0x26   :  { %513 = vmatpush.bf16.msrb.mxu2 %v1204_v43  ;;  %482 = vmatmul.bf16.vlgmr.msra.gmra.mxu3 %v1950_v62  ;;  %v1233_v28 = vld [vmem:[%s2359_s1 + $0x1b8] sm:$0xf0]  ;;  %v1172_v31 = vor.u32 %v1499_v25, %v1169_v26  ;;  %v1481_v34 = vld [vmem:[%s2359_s1 + $0xa4] sm:$0xf]  ;;  %v1097_v36 = vld [vmem:[%s2359_s1 + $0xa8] sm:$0xf0]  ;;  %v1036_v41 = vor.u32 %v1465_v32, %v1033_v33 }
  0x27   :  { %526 = vmatpush.bf16.msrb.mxu3 %v1268_v47  ;;  %v1236_v35 = vor.u32 %v1515_v27, %v1233_v28  ;;  %v1497_v37 = vld [vmem:[%s2359_s1 + $0x124] sm:$0xf]  ;;  %v1161_v38 = vld [vmem:[%s2359_s1 + $0x128] sm:$0xf0]  ;;  %v1463_v42 = vld [vmem:[%s2359_s1 + $0x14] sm:$0xf]  ;;  %v1100_v43 = vor.u32 %v1481_v34, %v1097_v36 }
  0x28   :  { %488 = vmatpush.bf16.msrb.mxu0 %v1068_v54  ;;  %v1513_v39 = vld [vmem:[%s2359_s1 + $0x1a4] sm:$0xf]  ;;  %v1225_v40 = vld [vmem:[%s2359_s1 + $0x1a8] sm:$0xf0]  ;;  %v1164_v44 = vor.u32 %v1497_v37, %v1161_v38  ;;  %v1025_v45 = vld [vmem:[%s2359_s1 + $0x18] sm:$0xf0] }
  0x29   :  { %501 = vmatpush.bf16.msrb.mxu1 %v1132_v58  ;;  %v1479_v46 = vld [vmem:[%s2359_s1 + $0x94] sm:$0xf]  ;;  %v1089_v47 = vld [vmem:[%s2359_s1 + $0x98] sm:$0xf0]  ;;  %v1228_v48 = vor.u32 %v1513_v39, %v1225_v40 }
  0x2a   :  { %514 = vmatpush.bf16.msrb.mxu2 %v1196_v59  ;;  %v1495_v49 = vld [vmem:[%s2359_s1 + $0x114] sm:$0xf]  ;;  %v1153_v50 = vld [vmem:[%s2359_s1 + $0x118] sm:$0xf0] }
  0x2b   :  { %527 = vmatpush.bf16.msrb.mxu3 %v1260_v63  ;;  %v1511_v51 = vld [vmem:[%s2359_s1 + $0x194] sm:$0xf]  ;;  %v1217_v52 = vld [vmem:[%s2359_s1 + $0x198] sm:$0xf0] }
  0x2c   :  { %489 = vmatpush.bf16.msrb.mxu0 %v1060_v5 }
  0x2d   :  { %502 = vmatpush.bf16.msrb.mxu1 %v1124_v6 }
  0x2e   :  { %515 = vmatpush.bf16.msrb.mxu2 %v1188_v7 }
  0x2f   :  { %528 = vmatpush.bf16.msrb.mxu3 %v1252_v11 }
  0x30   :  { %490 = vmatpush.bf16.msrb.mxu0 %v1052_v17 }
  0x31   :  { %503 = vmatpush.bf16.msrb.mxu1 %v1116_v18 }
  0x32   :  { %516 = vmatpush.bf16.msrb.mxu2 %v1180_v19 }
  0x33   :  { %529 = vmatpush.bf16.msrb.mxu3 %v1244_v23 }
  0x34   :  { %491 = vmatpush.bf16.msrb.mxu0 %v1044_v29 }
  0x35   :  { %504 = vmatpush.bf16.msrb.mxu1 %v1108_v30 }
  0x36   :  { %517 = vmatpush.bf16.msrb.mxu2 %v1172_v31 }
  0x37   :  { %530 = vmatpush.bf16.msrb.mxu3 %v1236_v35 }
  0x38   :  { %17 = vsyncpa [#allocation5], 0  ;;  %492 = vmatpush.bf16.msrb.mxu0 %v1036_v41  ;;  %v1028_v53 = vor.u32 %v1463_v42, %v1025_v45  ;;  %v1461_v54 = vld [vmem:[%s2359_s1 + $0x4] sm:$0xf]  ;;  %v1092_v55 = vor.u32 %v1479_v46, %v1089_v47  ;;  %v1156_v56 = vor.u32 %v1495_v49, %v1153_v50  ;;  %v1017_v57 = vld [vmem:[%s2359_s1 + $0x8] sm:$0xf0]  ;;  %v1220_v63 = vor.u32 %v1511_v51, %v1217_v52 }
  0x39   :  { %505 = vmatpush.bf16.msrb.mxu1 %v1100_v43  ;;  %v1477_v58 = vld [vmem:[%s2359_s1 + $0x84] sm:$0xf]  ;;  %v1081_v59 = vld [vmem:[%s2359_s1 + $0x88] sm:$0xf0]  ;;  %v1327_v5 = vld [vmem:[%s2361_s3 + $0x70] sm:$0xf]  ;;  %v1020_v7 = vor.u32 %v1461_v54, %v1017_v57 }
  0x3a   :  { %518 = vmatpush.bf16.msrb.mxu2 %v1164_v44  ;;  %v1493_v0 = vld [vmem:[%s2359_s1 + $0x104] sm:$0xf]  ;;  %v1145_v1 = vld [vmem:[%s2359_s1 + $0x108] sm:$0xf0]  ;;  %v1540_v6 = vld [vmem:[%s2361_s3 + $0x74] sm:$0xf0]  ;;  %v1084_v10 = vor.u32 %v1477_v58, %v1081_v59 }
  0x3b   :  { %531 = vmatpush.bf16.msrb.mxu3 %v1228_v48  ;;  %v1509_v3 = vld [vmem:[%s2359_s1 + $0x184] sm:$0xf]  ;;  %v1209_v4 = vld [vmem:[%s2359_s1 + $0x188] sm:$0xf0]  ;;  %v1539_v8 = vld [vmem:[%s2361_s3 + $0x74] sm:$0xf]  ;;  %v1148_v11 = vor.u32 %v1493_v0, %v1145_v1  ;;  %v1328_v13 = vor.u32 %v1540_v6, %v1327_v5 }
  0x3c   :  { %493 = vmatpush.bf16.msrb.mxu0 %v1028_v53  ;;  %v1329_v9 = vld [vmem:[%s2361_s3 + $0x78] sm:$0xf0]  ;;  %v1212_v12 = vor.u32 %v1509_v3, %v1209_v4  ;;  %v1319_v15 = vld [vmem:[%s2361_s3 + $0x60] sm:$0xf]  ;;  %v1538_v16 = vld [vmem:[%s2361_s3 + $0x64] sm:$0xf0] }
  0x3d   :  { %506 = vmatpush.bf16.msrb.mxu1 %v1092_v55  ;;  %v1332_v14 = vor.u32 %v1539_v8, %v1329_v9  ;;  %v1537_v17 = vld [vmem:[%s2361_s3 + $0x64] sm:$0xf]  ;;  %v1321_v18 = vld [vmem:[%s2361_s3 + $0x68] sm:$0xf0]  ;;  %v1320_v19 = vor.u32 %v1538_v16, %v1319_v15  ;;  %v1311_v21 = vld [vmem:[%s2361_s3 + $0x50] sm:$0xf] }
  0x3e   :  { %519 = vmatpush.bf16.msrb.mxu2 %v1156_v56  ;;  %v1324_v20 = vor.u32 %v1537_v17, %v1321_v18  ;;  %v1536_v22 = vld [vmem:[%s2361_s3 + $0x54] sm:$0xf0]  ;;  %v1535_v23 = vld [vmem:[%s2361_s3 + $0x54] sm:$0xf]  ;;  %v1533_v26 = vld [vmem:[%s2361_s3 + $0x44] sm:$0xf] }
  0x3f   :  { %532 = vmatpush.bf16.msrb.mxu3 %v1220_v63  ;;  %v1312_v24 = vor.u32 %v1536_v22, %v1311_v21  ;;  %v1295_v29 = vld [vmem:[%s2361_s3 + $0x30] sm:$0xf]  ;;  %v1532_v30 = vld [vmem:[%s2361_s3 + $0x34] sm:$0xf0]  ;;  %v1531_v31 = vld [vmem:[%s2361_s3 + $0x34] sm:$0xf] }
  0x40   :  { %494 = vmatpush.bf16.msrb.mxu0 %v1020_v7  ;;  %v1297_v32 = vld [vmem:[%s2361_s3 + $0x38] sm:$0xf0]  ;;  %v1296_v33 = vor.u32 %v1532_v30, %v1295_v29  ;;  %v1287_v35 = vld [vmem:[%s2361_s3 + $0x20] sm:$0xf]  ;;  %v1530_v36 = vld [vmem:[%s2361_s3 + $0x24] sm:$0xf0] }
  0x41   :  { %507 = vmatpush.bf16.msrb.mxu1 %v1084_v10  ;;  %v1300_v34 = vor.u32 %v1531_v31, %v1297_v32  ;;  %v1529_v37 = vld [vmem:[%s2361_s3 + $0x24] sm:$0xf]  ;;  %v1288_v38 = vor.u32 %v1530_v36, %v1287_v35  ;;  %v1289_v39 = vld [vmem:[%s2361_s3 + $0x28] sm:$0xf0]  ;;  %v1279_v41 = vld [vmem:[%s2361_s3 + $0x10] sm:$0xf] }
  0x42   :  { %520 = vmatpush.bf16.msrb.mxu2 %v1148_v11  ;;  %v1292_v40 = vor.u32 %v1529_v37, %v1289_v39  ;;  %v1528_v42 = vld [vmem:[%s2361_s3 + $0x14] sm:$0xf0]  ;;  %v1391_v43 = vld [vmem:[%s2361_s3 + $0xf0] sm:$0xf]  ;;  %v1527_v46 = vld [vmem:[%s2361_s3 + $0x14] sm:$0xf] }
  0x43   :  { %533 = vmatpush.bf16.msrb.mxu3 %v1212_v12  ;;  %495 = vmatmul.bf16.vlgmr.msrb.gmra.mxu0 %v1948_v61  ;;  %v1313_v61 = vld [vmem:[%s2361_s3 + $0x58] sm:$0xf0]  ;;  %v1280_v44 = vor.u32 %v1528_v42, %v1279_v41  ;;  %v1556_v45 = vld [vmem:[%s2361_s3 + $0xf4] sm:$0xf0]  ;;  %v1555_v50 = vld [vmem:[%s2361_s3 + $0xf4] sm:$0xf] }
  0x44   :  { %741 = vmatpush.bf16.msra.mxu0 %v1328_v13  ;;  %508 = vmatmul.bf16.vlgmr.msrb.gmra.mxu1 %v1959_v2  ;;  %v1316_v25 = vor.u32 %v1535_v23, %v1313_v61  ;;  %v1303_v2 = vld [vmem:[%s2361_s3 + $0x40] sm:$0xf]  ;;  %v1281_v47 = vld [vmem:[%s2361_s3 + $0x18] sm:$0xf0]  ;;  %v1392_v48 = vor.u32 %v1556_v45, %v1391_v43  ;;  %v1526_v54 = vld [vmem:[%s2361_s3 + $0x4] sm:$0xf0] }
  0x45   :  { %521 = vmatmul.bf16.vlgmr.msrb.gmra.mxu2 %v1946_v60  ;;  %v1534_v60 = vld [vmem:[%s2361_s3 + $0x44] sm:$0xf0]  ;;  %v1284_v49 = vor.u32 %v1527_v46, %v1281_v47  ;;  %v1393_v51 = vld [vmem:[%s2361_s3 + $0xf8] sm:$0xf0]  ;;  %v1271_v52 = vld [vmem:[%s2361_s3] sm:$0xf] }
  0x46   :  { %767 = vmatpush.bf16.msra.mxu2 %v1332_v14  ;;  %534 = vmatmul.bf16.vlgmr.msrb.gmra.mxu3 %v1950_v62  ;;  %v1305_v62 = vld [vmem:[%s2361_s3 + $0x48] sm:$0xf0]  ;;  %v1304_v27 = vor.u32 %v1534_v60, %v1303_v2  ;;  %v1396_v53 = vor.u32 %v1555_v50, %v1393_v51  ;;  %v1383_v55 = vld [vmem:[%s2361_s3 + $0xe0] sm:$0xf]  ;;  %v1554_v56 = vld [vmem:[%s2361_s3 + $0xe4] sm:$0xf0]  ;;  %v1272_v57 = vor.u32 %v1526_v54, %v1271_v52 }
  0x47   :  { %v1308_v28 = vor.u32 %v1533_v26, %v1305_v62  ;;  %754 = vmatpush.bf16.msra.mxu1 %v1392_v48  ;;  %v1384_v58 = vor.u32 %v1554_v56, %v1383_v55  ;;  %v1525_v59 = vld [vmem:[%s2361_s3 + $0x4] sm:$0xf]  ;;  %v1273_v63 = vld [vmem:[%s2361_s3 + $0x8] sm:$0xf0]  ;;  %v1375_v4 = vld [vmem:[%s2361_s3 + $0xd0] sm:$0xf] }
  0x48   :  { %742 = vmatpush.bf16.msra.mxu0 %v1320_v19  ;;  %v1553_v0 = vld [vmem:[%s2361_s3 + $0xe4] sm:$0xf]  ;;  %780 = vmatpush.bf16.msra.mxu3 %v1396_v53  ;;  %v1276_v1 = vor.u32 %v1525_v59, %v1273_v63  ;;  %v1385_v3 = vld [vmem:[%s2361_s3 + $0xe8] sm:$0xf0]  ;;  %v1552_v5 = vld [vmem:[%s2361_s3 + $0xd4] sm:$0xf0] }
  0x49   :  { %v1388_v6 = vor.u32 %v1553_v0, %v1385_v3  ;;  %v1551_v7 = vld [vmem:[%s2361_s3 + $0xd4] sm:$0xf]  ;;  %v1377_v8 = vld [vmem:[%s2361_s3 + $0xd8] sm:$0xf0]  ;;  %v1376_v9 = vor.u32 %v1552_v5, %v1375_v4  ;;  %v1367_v11 = vld [vmem:[%s2361_s3 + $0xc0] sm:$0xf] }
  0x4a   :  { %768 = vmatpush.bf16.msra.mxu2 %v1324_v20  ;;  %v1380_v10 = vor.u32 %v1551_v7, %v1377_v8  ;;  %v1550_v12 = vld [vmem:[%s2361_s3 + $0xc4] sm:$0xf0]  ;;  %v1549_v13 = vld [vmem:[%s2361_s3 + $0xc4] sm:$0xf]  ;;  %v1369_v14 = vld [vmem:[%s2361_s3 + $0xc8] sm:$0xf0] }
  0x4b   :  { %755 = vmatpush.bf16.msra.mxu1 %v1384_v58  ;;  %v1368_v15 = vor.u32 %v1550_v12, %v1367_v11  ;;  %v1372_v16 = vor.u32 %v1549_v13, %v1369_v14  ;;  %v99_v17 = vld [vmem:[%s2360_s2] sm:$0x3]  ;;  %v1359_v18 = vld [vmem:[%s2361_s3 + $0xb0] sm:$0xf]  ;;  %v1548_v19 = vld [vmem:[%s2361_s3 + $0xb4] sm:$0xf0] }
  0x4c   :  { %743 = vmatpush.bf16.msra.mxu0 %v1312_v24  ;;  %781 = vmatpush.bf16.msra.mxu3 %v1388_v6  ;;  %v1547_v20 = vld [vmem:[%s2361_s3 + $0xb4] sm:$0xf]  ;;  %v1360_v21 = vor.u32 %v1548_v19, %v1359_v18  ;;  %v1361_v22 = vld [vmem:[%s2361_s3 + $0xb8] sm:$0xf0]  ;;  %v101_v23 = vperm.slane %v99_v17, 0  ;;  %v102_v53 = vperm.slane %v99_v17, 1 }
  0x4d   :  { %v1364_v61 = vor.u32 %v1547_v20, %v1361_v22  ;;  %v1351_v24 = vld [vmem:[%s2361_s3 + $0xa0] sm:$0xf]  ;;  %v1545_v2 = vld [vmem:[%s2361_s3 + $0xa4] sm:$0xf]  ;;  %v1353_v62 = vld [vmem:[%s2361_s3 + $0xa8] sm:$0xf0] }
  0x4e   :  { %769 = vmatpush.bf16.msra.mxu2 %v1316_v25  ;;  %v1546_v25 = vld [vmem:[%s2361_s3 + $0xa4] sm:$0xf0]  ;;  %v1356_v29 = vor.u32 %v1545_v2, %v1353_v62  ;;  %v1343_v31 = vld [vmem:[%s2361_s3 + $0x90] sm:$0xf]  ;;  %v1544_v32 = vld [vmem:[%s2361_s3 + $0x94] sm:$0xf0] }
  0x4f   :  { %756 = vmatpush.bf16.msra.mxu1 %v1376_v9  ;;  %v1352_v26 = vor.u32 %v1546_v25, %v1351_v24  ;;  %v1345_v35 = vld [vmem:[%s2361_s3 + $0x98] sm:$0xf0]  ;;  %v1542_v41 = vld [vmem:[%s2361_s3 + $0x84] sm:$0xf0]  ;;  %v1541_v42 = vld [vmem:[%s2361_s3 + $0x84] sm:$0xf] }
  0x50   :  { %744 = vmatpush.bf16.msra.mxu0 %v1304_v27  ;;  %782 = vmatpush.bf16.msra.mxu3 %v1380_v10  ;;  %v1337_v46 = vld [vmem:[%s2361_s3 + $0x88] sm:$0xf0]  ;;  %v1564_v8 = vld [vmem:[%s2363_s5 + $0x38] sm:$0xff]  ;;  %v1563_v9 = vld [vmem:[%s2363_s5 + $0x30] sm:$0xff]  ;;  %s1632_s30 = smov 7   ;;  %vm955_vm0 = vcmask 50176  }
  0x51   :  { %v1340_v48 = vor.u32 %v1541_v42, %v1337_v46  ;;  %v1572_v10 = vld [vmem:[%s2363_s5 + $0x78] sm:$0xff]  ;;  %v1562_v11 = vld [vmem:[%s2363_s5 + $0x28] sm:$0xff]  ;;  %v1571_v12 = vld [vmem:[%s2363_s5 + $0x70] sm:$0xff]  ;;  %s1634_s1 = smov [#allocation2]   ;;  %s984_s16 = sshll.u32 %s2366_s8, 4  ;;  %s985_s16 = int_to_ptr.hbm [resolvable:$true] %s984_s16 }
  0x52   :  { %770 = vmatpush.bf16.msra.mxu2 %v1308_v28  ;;  %v1561_v13 = vld [vmem:[%s2363_s5 + $0x20] sm:$0xff]  ;;  %v1570_v14 = vld [vmem:[%s2363_s5 + $0x68] sm:$0xff]  ;;  %v1559_v17 = vld [vmem:[%s2363_s5 + $0x10] sm:$0xff]  ;;  %s982_s13 = sshll.u32 %s1634_s1, 4  ;;  %s995_s19 = sshll.u32 %s2367_s9, 4  ;;  %s983_s13 = int_to_ptr.vmem [resolvable:$true] %s982_s13  ;;  %s996_s19 = int_to_ptr.hbm [resolvable:$true] %s995_s19 }
  0x53   :  { %757 = vmatpush.bf16.msra.mxu1 %v1368_v15  ;;  %v1560_v15 = vld [vmem:[%s2363_s5 + $0x18] sm:$0xff]  ;;  %v1558_v19 = vld [vmem:[%s2363_s5 + $0x8] sm:$0xff]  ;;  %v1567_v20 = vld [vmem:[%s2363_s5 + $0x50] sm:$0xff] }
  0x54   :  { %745 = vmatpush.bf16.msra.mxu0 %v1296_v33  ;;  %783 = vmatpush.bf16.msra.mxu3 %v1372_v16  ;;  %v1543_v33 = vld [vmem:[%s2361_s3 + $0x94] sm:$0xf]  ;;  %v1569_v16 = vld [vmem:[%s2363_s5 + $0x60] sm:$0xff]  ;;  %v1568_v18 = vld [vmem:[%s2363_s5 + $0x58] sm:$0xff] }
  0x55   :  { %v1348_v37 = vor.u32 %v1543_v33, %v1345_v35  ;;  %v1557_v22 = vld [vmem:[%s2363_s5] sm:$0xff] }
  0x56   :  { %771 = vmatpush.bf16.msra.mxu2 %v1300_v34  ;;  %v1344_v34 = vor.u32 %v1544_v32, %v1343_v31  ;;  %v1565_v24 = vld [vmem:[%s2363_s5 + $0x40] sm:$0xff] }
  0x57   :  { %758 = vmatpush.bf16.msra.mxu1 %v1360_v21  ;;  %v965_v2 = vld [vmem:[%s2365_s7] sm:$0x3] }
  0x58   :  { %746 = vmatpush.bf16.msra.mxu0 %v1288_v38  ;;  %784 = vmatpush.bf16.msra.mxu3 %v1364_v61 }
  0x59   :  { %967 = vrot.lane.b32.xlu0 %v965_v2, %s1632_s30 }
  0x5a   :  { %772 = vmatpush.bf16.msra.mxu2 %v1292_v40  ;;  %v1335_v40 = vld [vmem:[%s2361_s3 + $0x80] sm:$0xf] }
  0x5b   :  { %759 = vmatpush.bf16.msra.mxu1 %v1352_v26  ;;  %v1336_v45 = vor.u32 %v1542_v41, %v1335_v40  ;;  %v575_v26 = vld [vmem:[%s2362_s4] sm:$0x3]  ;;  %s1633_s4 = smov 121  }
  0x5c   :  { %747 = vmatpush.bf16.msra.mxu0 %v1280_v44  ;;  %785 = vmatpush.bf16.msra.mxu3 %v1356_v29  ;;  %v577_v62 = vperm.slane %v575_v26, 0  ;;  %v578_v29 = vperm.slane %v575_v26, 1  ;;  %v1577_v41 = vld [vmem:[%s2364_s6] ss:$0 sm:$0xff]  ;;  %s1635_s6 = smov [#allocation4]  }
  0x5d   :  { %s993_s0 = sshll.u32 %s1635_s6, 4  ;;  %s994_s0 = int_to_ptr.vmem [resolvable:$true] %s993_s0 }
  0x5e   :  { %773 = vmatpush.bf16.msra.mxu2 %v1284_v49 }
  0x5f   :  { %760 = vmatpush.bf16.msra.mxu1 %v1344_v34 }
  0x60   :  { %748 = vmatpush.bf16.msra.mxu0 %v1272_v57  ;;  %786 = vmatpush.bf16.msra.mxu3 %v1348_v37 }
  0x62   :  { %774 = vmatpush.bf16.msra.mxu2 %v1276_v1 }
  0x63   :  { %761 = vmatpush.bf16.msra.mxu1 %v1336_v45 }
  0x64   :  { %787 = vmatpush.bf16.msra.mxu3 %v1340_v48  ;;  %929 = vmatpush.bf16.msrb.mxu0 %v1564_v8 }
  0x67   :  { %942 = vmatpush.bf16.msrb.mxu1 %v1572_v10 }
  0x68   :  { %930 = vmatpush.bf16.msrb.mxu0 %v1563_v9 }
  0x6b   :  { %943 = vmatpush.bf16.msrb.mxu1 %v1571_v12 }
  0x6c   :  { %931 = vmatpush.bf16.msrb.mxu0 %v1562_v11 }
  0x6f   :  { %944 = vmatpush.bf16.msrb.mxu1 %v1570_v14 }
  0x70   :  { %932 = vmatpush.bf16.msrb.mxu0 %v1561_v13 }
  0x73   :  { %945 = vmatpush.bf16.msrb.mxu1 %v1569_v16 }
  0x74   :  { %933 = vmatpush.bf16.msrb.mxu0 %v1560_v15 }
  0x77   :  { %946 = vmatpush.bf16.msrb.mxu1 %v1568_v18 }
  0x78   :  { %934 = vmatpush.bf16.msrb.mxu0 %v1559_v17 }
  0x7b   :  { %947 = vmatpush.bf16.msrb.mxu1 %v1567_v20 }
  0x7c   :  { %935 = vmatpush.bf16.msrb.mxu0 %v1558_v19 }
  0x80   :  { %936 = vmatpush.bf16.msrb.mxu0 %v1557_v22 }
  0xa0   :  { %v444_v60 = vpop.f32.mrf.mxu0 }
  0xa1   :  { %v445_v27 = vadd.f32 %v444_v60, %v101_v23  ;;  %v457_v28 = vpop.f32.mrf.mxu1  ;;  %v1566_v23 = vld [vmem:[%s2363_s5 + $0x48] sm:$0xff] }
  0xa2   :  { %948 = vmatpush.bf16.msrb.mxu1 %v1566_v23 }
  0xa3   :  { %v458_v30 = vadd.f32 %v457_v28, %v445_v27 }
  0xa6   :  { %949 = vmatpush.bf16.msrb.mxu1 %v1565_v24 }
  0xa8   :  { %v470_v36 = vpop.f32.mrf.mxu2  ;;  %v446_v44 = vpop.f32.mrf.mxu0 }
  0xa9   :  { %v471_v38 = vadd.f32 %v470_v36, %v458_v30  ;;  %v483_v39 = vpop.f32.mrf.mxu3  ;;  %v459_v47 = vpop.f32.mrf.mxu1 }
  0xab   :  { %v484_v43 = vadd.f32 %v483_v39, %v471_v38 }
  0xad   :  { %v539_v49 = vmax.f32 %v484_v43, 0.0 }
  0xaf   :  { %v541_v50 = vpack.c.bf16 %v539_v49, %v539_v49 }
  0xb0   :  { %v472_v51 = vpop.f32.mrf.mxu2 }
  0xb1   :  { %749 = vmatmul.bf16.vlgmr.msra.gmra.mxu0 %v541_v50  ;;  %775 = vmatmul.bf16.vlgmr.msra.gmra.mxu2 %v541_v50  ;;  %v485_v52 = vpop.f32.mrf.mxu3 }
  0xc0   :  { %v496_v54 = vpop.f32.mrf.mxu0 }
  0xc1   :  { %v497_v55 = vadd.f32 %v496_v54, %v102_v53  ;;  %v509_v56 = vpop.f32.mrf.mxu1 }
  0xc3   :  { %v510_v57 = vadd.f32 %v509_v56, %v497_v55 }
  0xc8   :  { %v522_v58 = vpop.f32.mrf.mxu2  ;;  %v498_v0 = vpop.f32.mrf.mxu0 }
  0xc9   :  { %v523_v59 = vadd.f32 %v522_v58, %v510_v57  ;;  %v535_v63 = vpop.f32.mrf.mxu3  ;;  %v511_v1 = vpop.f32.mrf.mxu1 }
  0xcb   :  { %v536_v3 = vadd.f32 %v535_v63, %v523_v59  ;;  %v968_v49 = vpop.permute.xlu0 %967 }
  0xcd   :  { %v540_v4 = vmax.f32 %v536_v3, 0.0 }
  0xcf   :  { %v542_v5 = vpack.c.bf16 %v540_v4, %v540_v4 }
  0xd0   :  { %v524_v6 = vpop.f32.mrf.mxu2 }
  0xd1   :  { %v537_v7 = vpop.f32.mrf.mxu3  ;;  %762 = vmatmul.bf16.vlgmr.msra.gmra.mxu1 %v542_v5  ;;  %788 = vmatmul.bf16.vlgmr.msra.gmra.mxu3 %v542_v5 }
 0x12e   :  { %v750_v21 = vpop.f32.mrf.mxu0 }
 0x12f   :  { %v751_v27 = vadd.f32 %v750_v21, %v577_v62 }
 0x134   :  { %v776_v61 = vpop.f32.mrf.mxu2 }
 0x135   :  { %v777_v32 = vadd.f32 %v776_v61, %v578_v29 }
 0x136   :  { %v752_v25 = vpop.f32.mrf.mxu0 }
 0x13c   :  { %v778_v60 = vpop.f32.mrf.mxu2 }
 0x14e   :  { %v763_v28 = vpop.f32.mrf.mxu1 }
 0x14f   :  { %v764_v30 = vadd.f32 %v763_v28, %v751_v27 }
 0x151   :  { %v793_v31 = vmax.f32 %v764_v30, 0.0 }
 0x153   :  { %v795_v33 = vpack.c.bf16 %v793_v31, %v793_v31 }
 0x154   :  { %v789_v34 = vpop.f32.mrf.mxu3 }
 0x155   :  { %v790_v35 = vadd.f32 %v789_v34, %v777_v32  ;;  %937 = vmatmul.bf16.vlgmr.msrb.gmra.mxu0 %v795_v33 }
 0x156   :  { %v765_v36 = vpop.f32.mrf.mxu1 }
 0x157   :  { %v794_v37 = vmax.f32 %v790_v35, 0.0 }
 0x159   :  { %v796_v38 = vpack.c.bf16 %v794_v37, %v794_v37 }
 0x15b   :  { %950 = vmatmul.bf16.vlgmr.msrb.gmra.mxu1 %v796_v38 }
 0x15c   :  { %v791_v39 = vpop.f32.mrf.mxu3 }
 0x1d2   :  { %v938_v40 = vpop.f32.mrf.mxu0 }
 0x1d3   :  { %v939_v42 = vadd.f32 %v1577_v41, %v938_v40 }
 0x1d8   :  { %v951_v43 = vpop.f32.mrf.mxu1 }
 0x1d9   :  { %v952_v44 = vadd.f32 %v951_v43, %v939_v42 }
 0x1da   :  { %v940_v45 = vpop.f32.mrf.mxu0 }
 0x1db   :  { %958 = vrot.lane.b32.xlu1 %v952_v44, %s1633_s4  ;;  %v962_v46 = vmul.f32 0.5, %v952_v44  ;;  %956 = vst.msk [vmem:[#allocation2] sm:$0x3] %vm955_vm0, %v952_v44 }
 0x1dc   :  { %987 = dma.vmem_to_hbm [thread:$0]  %s983_s13, 32, %s985_s16, [#allocation3]  }
 0x1dd   :  { %v963_v47 = vmul.f32 1.442695, %v962_v46 }
 0x1df   :  { %1578 = vpow2.f32 %v963_v47 }
 0x1e0   :  { %v953_v48 = vpop.f32.mrf.mxu1 }
 0x1e5   :  { %v1579_v50 = vpop.eup %1578 }
 0x1e6   :  { %v970_v51 = vmul.f32 %v1579_v50, %v968_v49 }
 0x1e8   :  { %972 = vrot.lane.b32.xlu0 %v970_v51, %s1633_s4 }
 0x24d   :  { %v959_v52 = vpop.permute.xlu1 %958 }
 0x24e   :  { %961 = vst.msk [vmem:[#allocation4] sm:$0x3] %vm955_vm0, %v959_v52 }
 0x24f   :  { %998 = dma.vmem_to_hbm [thread:$0]  %s994_s0, 32, %s996_s19, [#allocation5]  }
 0x25a   :  { %v973_v53 = vpop.permute.xlu0 %972 }
 0x25b   :  { %v975_v54 = vadd.f32 %v973_v53, %v952_v44 }
 0x25d   :  { %976 = vst.msk [vmem:[%s2368_s10] sm:$0x3] %vm955_vm0, %v975_v54 }
 0x25e   :  { %1628 = dma.done.wait [#allocation3], 32  }
 0x25f   :  { %1629 = vsyncadd [#allocation3], 4294967264 }
 0x260   :  { %1630 = dma.done.wait [#allocation5], 32  }
 0x261   :  { %1631 = vsyncadd [#allocation5], 4294967264 }
 0x262   :  { %1011 = vsyncpa [#allocation3], 1 }
 0x263   :  { %1012 = vsyncpa [#allocation5], 1 }

// kernel: beta_vae_forward.15
= control target key start
LH: loop header
LB: loop body
LE: loop exit
PB: predicated region body
PF: predicated region fallthrough
CT: control target
= control target key end

     0   :  { %vm38_vm0 = vcmask 1042432   ;;  %vm39_vm1 = vcmask 1043456   ;;  %v1765_v1 = vmov 65535   ;;  %vm34_vm2 = vcmask 56320   ;;  %s2607_s1 = inlined_call_operand.vmem [shape: bf16[7,256], index: 1, kind: input, shape index: {}]   ;;  %s2608_s3 = inlined_call_operand.vmem [shape: bf16[256,1024], index: 3, kind: input, shape index: {}]   ;;  %s2609_s0 = inlined_call_operand.vmem [shape: bf16[2,7], index: 0, kind: input, shape index: {}]   ;;  %s2610_s2 = inlined_call_operand.vmem [shape: f32[1,256], index: 2, kind: input, shape index: {}]   ;;  %s2611_s4 = inlined_call_operand.vmem [shape: f32[1,1024], index: 4, kind: input, shape index: {}]   ;;  %s2612_s5 = inlined_call_operand.vmem [shape: bf16[2,1024], index: 5, kind: output, shape index: {}]  }
   0x1   :  { %v22_v0 = vld [vmem:[%s2607_s1] sm:$0xff]  ;;  %v40_v2 = vsel %vm38_vm0, 4294967295, %v1765_v1  ;;  %vm1099_vm3 = vcmask 1042434   ;;  %vm1095_vm4 = vcmask 1040384   ;;  %vm1103_vm5 = vcmask 1041408  }
   0x2   :  { %v1350_v3 = vld [vmem:[%s2608_s3 + $0x1c0] sm:$0xf]  ;;  %v30_v4 = vunpack.c.l.b16 %v22_v0  ;;  %v41_v5 = vsel %vm39_vm1, %v40_v2, 0  ;;  %v31_v6 = vunpack.c.h.b16 %v22_v0  ;;  %v1692_v11 = vld [vmem:[%s2608_s3 + $0x1c4] sm:$0xf]  ;;  %vm1105_vm6 = vcmask 1044484  }
   0x3   :  { %v1696_v7 = vld [vmem:[%s2608_s3 + $0x1dc] sm:$0xf0]  ;;  %v1352_v12 = vld [vmem:[%s2608_s3 + $0x1e0] sm:$0xf0]  ;;  %vm1109_vm7 = vcmask 1046534   ;;  %vm1113_vm8 = vcmask 1045508  }
   0x4   :  { %v1606_v8 = vld [vmem:[%s2608_s3 + $0x3c0] sm:$0xf]  ;;  %v1351_v9 = vor.u32 %v1696_v7, %v1350_v3  ;;  %v32_v13 = vpack.c.b16 %v30_v4, %v30_v4  ;;  %v33_v14 = vpack.c.b16 %v31_v6, %v31_v6  ;;  %v1756_v16 = vld [vmem:[%s2608_s3 + $0x3c4] sm:$0xf]  ;;  %v1355_v19 = vor.u32 %v1692_v11, %v1352_v12 }
   0x5   :  { %v1760_v10 = vld [vmem:[%s2608_s3 + $0x3dc] sm:$0xf0]  ;;  %v1608_v17 = vld [vmem:[%s2608_s3 + $0x3e0] sm:$0xf0] }
   0x6   :  { %v1607_v15 = vor.u32 %v1760_v10, %v1606_v8  ;;  %v1318_v18 = vld [vmem:[%s2608_s3 + $0x180] sm:$0xf]  ;;  %864 = vmatpush.bf16.msra.mxu2 %v1351_v9  ;;  %v1611_v20 = vor.u32 %v1756_v16, %v1608_v17  ;;  %v43_v24 = vand.u32 %v41_v5, %v32_v13  ;;  %v46_v25 = vand.u32 %v41_v5, %v33_v14  ;;  %v1684_v28 = vld [vmem:[%s2608_s3 + $0x184] sm:$0xf] }
   0x7   :  { %v1688_v21 = vld [vmem:[%s2608_s3 + $0x19c] sm:$0xf0]  ;;  %v1320_v29 = vld [vmem:[%s2608_s3 + $0x1a0] sm:$0xf0] }
   0x8   :  { %v1574_v22 = vld [vmem:[%s2608_s3 + $0x380] sm:$0xf]  ;;  %877 = vmatpush.bf16.msra.mxu3 %v1607_v15  ;;  %v1319_v26 = vor.u32 %v1688_v21, %v1318_v18  ;;  %v1748_v30 = vld [vmem:[%s2608_s3 + $0x384] sm:$0xf]  ;;  %55 = vmatpush.bf16.msra.mxu0 %v43_v24  ;;  %v1323_v37 = vor.u32 %v1684_v28, %v1320_v29 }
   0x9   :  { %v1752_v23 = vld [vmem:[%s2608_s3 + $0x39c] sm:$0xf0]  ;;  %v1576_v31 = vld [vmem:[%s2608_s3 + $0x3a0] sm:$0xf0]  ;;  %68 = vmatpush.bf16.msra.mxu1 %v46_v25 }
   0xa   :  { %v1575_v27 = vor.u32 %v1752_v23, %v1574_v22  ;;  %v1286_v32 = vld [vmem:[%s2608_s3 + $0x140] sm:$0xf]  ;;  %v1579_v38 = vor.u32 %v1748_v30, %v1576_v31  ;;  %v1676_v39 = vld [vmem:[%s2608_s3 + $0x144] sm:$0xf]  ;;  %865 = vmatpush.bf16.msra.mxu2 %v1319_v26 }
   0xb   :  { %v1680_v33 = vld [vmem:[%s2608_s3 + $0x15c] sm:$0xf0]  ;;  %v1288_v40 = vld [vmem:[%s2608_s3 + $0x160] sm:$0xf0] }
   0xc   :  { %v21_v34 = vld [vmem:[%s2609_s0] sm:$0x1]  ;;  %890 = vmatpush.bf16.msrb.mxu0 %v1355_v19  ;;  %878 = vmatpush.bf16.msra.mxu3 %v1575_v27  ;;  %v1287_v41 = vor.u32 %v1680_v33, %v1286_v32  ;;  %v1740_v43 = vld [vmem:[%s2608_s3 + $0x344] sm:$0xf]  ;;  %v1291_v49 = vor.u32 %v1676_v39, %v1288_v40  ;;  %v1358_v33 = vld [vmem:[%s2608_s3 + $0x1c8] sm:$0xf] }
   0xd   :  { %v1542_v35 = vld [vmem:[%s2608_s3 + $0x340] sm:$0xf]  ;;  %903 = vmatpush.bf16.msrb.mxu1 %v1611_v20  ;;  %v1544_v44 = vld [vmem:[%s2608_s3 + $0x360] sm:$0xf0]  ;;  %1122 = vmatmul.msk.bf16.vlgmr.msra.gmra.mxu0 %vm34_vm2, %v21_v34 }
   0xe   :  { %v1744_v36 = vld [vmem:[%s2608_s3 + $0x35c] sm:$0xf0]  ;;  %1123 = vmatmul.msk.bf16.vlgmr.msra.gmra.mxu1 %vm34_vm2, %v21_v34  ;;  %v1547_v50 = vor.u32 %v1740_v43, %v1544_v44  ;;  %v1668_v51 = vld [vmem:[%s2608_s3 + $0x104] sm:$0xf]  ;;  %866 = vmatpush.bf16.msra.mxu2 %v1287_v41  ;;  %v1697_v34 = vld [vmem:[%s2608_s3 + $0x1e4] sm:$0xf0] }
   0xf   :  { %v1543_v42 = vor.u32 %v1744_v36, %v1542_v35  ;;  %v1254_v45 = vld [vmem:[%s2608_s3 + $0x100] sm:$0xf]  ;;  %v1256_v52 = vld [vmem:[%s2608_s3 + $0x120] sm:$0xf0]  ;;  %v1614_v35 = vld [vmem:[%s2608_s3 + $0x3c8] sm:$0xf] }
  0x10   :  { %v1672_v46 = vld [vmem:[%s2608_s3 + $0x11c] sm:$0xf0]  ;;  %891 = vmatpush.bf16.msrb.mxu0 %v1323_v37  ;;  %v1732_v55 = vld [vmem:[%s2608_s3 + $0x304] sm:$0xf]  ;;  %v1259_v61 = vor.u32 %v1668_v51, %v1256_v52  ;;  %v1761_v36 = vld [vmem:[%s2608_s3 + $0x3e4] sm:$0xf0] }
  0x11   :  { %v1510_v47 = vld [vmem:[%s2608_s3 + $0x300] sm:$0xf]  ;;  %904 = vmatpush.bf16.msrb.mxu1 %v1579_v38  ;;  %879 = vmatpush.bf16.msra.mxu3 %v1543_v42  ;;  %v1255_v53 = vor.u32 %v1672_v46, %v1254_v45  ;;  %v1512_v56 = vld [vmem:[%s2608_s3 + $0x320] sm:$0xf0]  ;;  %v1693_v45 = vld [vmem:[%s2608_s3 + $0x1cc] sm:$0xf] }
  0x12   :  { %v1736_v48 = vld [vmem:[%s2608_s3 + $0x31c] sm:$0xf0]  ;;  %v1515_v62 = vor.u32 %v1732_v55, %v1512_v56  ;;  %v1660_v63 = vld [vmem:[%s2608_s3 + $0xc4] sm:$0xf]  ;;  %v1360_v46 = vld [vmem:[%s2608_s3 + $0x1e8] sm:$0xf0] }
  0x13   :  { %v1511_v54 = vor.u32 %v1736_v48, %v1510_v47  ;;  %v1222_v57 = vld [vmem:[%s2608_s3 + $0xc0] sm:$0xf]  ;;  %v1224_v0 = vld [vmem:[%s2608_s3 + $0xe0] sm:$0xf0]  ;;  %867 = vmatpush.bf16.msra.mxu2 %v1255_v53  ;;  %v1359_v47 = vor.u32 %v1697_v34, %v1358_v33  ;;  %v1615_v48 = vor.u32 %v1761_v36, %v1614_v35  ;;  %v1326_v51 = vld [vmem:[%s2608_s3 + $0x188] sm:$0xf] }
  0x14   :  { %v1664_v58 = vld [vmem:[%s2608_s3 + $0xdc] sm:$0xf0]  ;;  %892 = vmatpush.bf16.msrb.mxu0 %v1291_v49  ;;  %v1724_v3 = vld [vmem:[%s2608_s3 + $0x2c4] sm:$0xf]  ;;  %v1227_v9 = vor.u32 %v1660_v63, %v1224_v0  ;;  %v1757_v49 = vld [vmem:[%s2608_s3 + $0x3cc] sm:$0xf] }
  0x15   :  { %v1478_v59 = vld [vmem:[%s2608_s3 + $0x2c0] sm:$0xf]  ;;  %905 = vmatpush.bf16.msrb.mxu1 %v1547_v50  ;;  %880 = vmatpush.bf16.msra.mxu3 %v1511_v54  ;;  %v1223_v1 = vor.u32 %v1664_v58, %v1222_v57  ;;  %v1480_v4 = vld [vmem:[%s2608_s3 + $0x2e0] sm:$0xf0]  ;;  %v1616_v50 = vld [vmem:[%s2608_s3 + $0x3e8] sm:$0xf0]  ;;  %v1363_v57 = vor.u32 %v1693_v45, %v1360_v46 }
  0x16   :  { %v1728_v60 = vld [vmem:[%s2608_s3 + $0x2dc] sm:$0xf0]  ;;  %v1483_v10 = vor.u32 %v1724_v3, %v1480_v4  ;;  %v1652_v11 = vld [vmem:[%s2608_s3 + $0x84] sm:$0xf]  ;;  %v1689_v52 = vld [vmem:[%s2608_s3 + $0x1a4] sm:$0xf0]  ;;  %v1619_v58 = vor.u32 %v1757_v49, %v1616_v50 }
  0x17   :  { %v1479_v2 = vor.u32 %v1728_v60, %v1478_v59  ;;  %v1190_v5 = vld [vmem:[%s2608_s3 + $0x80] sm:$0xf]  ;;  %v1192_v12 = vld [vmem:[%s2608_s3 + $0xa0] sm:$0xf0]  ;;  %868 = vmatpush.bf16.msra.mxu2 %v1223_v1  ;;  %v1582_v53 = vld [vmem:[%s2608_s3 + $0x388] sm:$0xf] }
  0x18   :  { %v1656_v6 = vld [vmem:[%s2608_s3 + $0x9c] sm:$0xf0]  ;;  %893 = vmatpush.bf16.msrb.mxu0 %v1259_v61  ;;  %v1716_v15 = vld [vmem:[%s2608_s3 + $0x284] sm:$0xf]  ;;  %v1195_v21 = vor.u32 %v1652_v11, %v1192_v12  ;;  %v1753_v54 = vld [vmem:[%s2608_s3 + $0x3a4] sm:$0xf0]  ;;  %v1327_v61 = vor.u32 %v1689_v52, %v1326_v51 }
  0x19   :  { %v1446_v7 = vld [vmem:[%s2608_s3 + $0x280] sm:$0xf]  ;;  %906 = vmatpush.bf16.msrb.mxu1 %v1515_v62  ;;  %881 = vmatpush.bf16.msra.mxu3 %v1479_v2  ;;  %v1191_v13 = vor.u32 %v1656_v6, %v1190_v5  ;;  %v1448_v16 = vld [vmem:[%s2608_s3 + $0x2a0] sm:$0xf0]  ;;  %v1685_v59 = vld [vmem:[%s2608_s3 + $0x18c] sm:$0xf]  ;;  %v1583_v62 = vor.u32 %v1753_v54, %v1582_v53 }
  0x1a   :  { %v1720_v8 = vld [vmem:[%s2608_s3 + $0x29c] sm:$0xf0]  ;;  %v1451_v22 = vor.u32 %v1716_v15, %v1448_v16  ;;  %v1644_v23 = vld [vmem:[%s2608_s3 + $0x44] sm:$0xf]  ;;  %v1328_v60 = vld [vmem:[%s2608_s3 + $0x1a8] sm:$0xf0] }
  0x1b   :  { %v1447_v14 = vor.u32 %v1720_v8, %v1446_v7  ;;  %v1158_v17 = vld [vmem:[%s2608_s3 + $0x40] sm:$0xf]  ;;  %v1160_v24 = vld [vmem:[%s2608_s3 + $0x60] sm:$0xf0]  ;;  %869 = vmatpush.bf16.msra.mxu2 %v1191_v13  ;;  %v1749_v63 = vld [vmem:[%s2608_s3 + $0x38c] sm:$0xf]  ;;  %v1331_v5 = vor.u32 %v1685_v59, %v1328_v60 }
  0x1c   :  { %v1648_v18 = vld [vmem:[%s2608_s3 + $0x5c] sm:$0xf0]  ;;  %894 = vmatpush.bf16.msrb.mxu0 %v1227_v9  ;;  %v1708_v25 = vld [vmem:[%s2608_s3 + $0x244] sm:$0xf]  ;;  %v1163_v37 = vor.u32 %v1644_v23, %v1160_v24  ;;  %v1584_v0 = vld [vmem:[%s2608_s3 + $0x3a8] sm:$0xf0] }
  0x1d   :  { %v1414_v19 = vld [vmem:[%s2608_s3 + $0x240] sm:$0xf]  ;;  %907 = vmatpush.bf16.msrb.mxu1 %v1483_v10  ;;  %882 = vmatpush.bf16.msra.mxu3 %v1447_v14  ;;  %v1159_v26 = vor.u32 %v1648_v18, %v1158_v17  ;;  %v1416_v28 = vld [vmem:[%s2608_s3 + $0x260] sm:$0xf0]  ;;  %v1294_v1 = vld [vmem:[%s2608_s3 + $0x148] sm:$0xf]  ;;  %v1587_v6 = vor.u32 %v1749_v63, %v1584_v0 }
  0x1e   :  { %v1712_v20 = vld [vmem:[%s2608_s3 + $0x25c] sm:$0xf0]  ;;  %v1419_v38 = vor.u32 %v1708_v25, %v1416_v28  ;;  %v1636_v39 = vld [vmem:[%s2608_s3 + $0x4] sm:$0xf]  ;;  %v1681_v2 = vld [vmem:[%s2608_s3 + $0x164] sm:$0xf0] }
  0x1f   :  { %v1415_v27 = vor.u32 %v1712_v20, %v1414_v19  ;;  %v1126_v29 = vld [vmem:[%s2608_s3] sm:$0xf]  ;;  %v1128_v40 = vld [vmem:[%s2608_s3 + $0x20] sm:$0xf0]  ;;  %870 = vmatpush.bf16.msra.mxu2 %v1159_v26  ;;  %v1550_v3 = vld [vmem:[%s2608_s3 + $0x348] sm:$0xf]  ;;  %v1295_v9 = vor.u32 %v1681_v2, %v1294_v1 }
  0x20   :  { %v1640_v30 = vld [vmem:[%s2608_s3 + $0x1c] sm:$0xf0]  ;;  %895 = vmatpush.bf16.msrb.mxu0 %v1195_v21  ;;  %v1700_v41 = vld [vmem:[%s2608_s3 + $0x204] sm:$0xf]  ;;  %v1131_v55 = vor.u32 %v1636_v39, %v1128_v40  ;;  %v1745_v4 = vld [vmem:[%s2608_s3 + $0x364] sm:$0xf0] }
  0x21   :  { %v1382_v31 = vld [vmem:[%s2608_s3 + $0x200] sm:$0xf]  ;;  %908 = vmatpush.bf16.msrb.mxu1 %v1451_v22  ;;  %883 = vmatpush.bf16.msra.mxu3 %v1415_v27  ;;  %v1127_v42 = vor.u32 %v1640_v30, %v1126_v29  ;;  %v1384_v44 = vld [vmem:[%s2608_s3 + $0x220] sm:$0xf0]  ;;  %v1677_v7 = vld [vmem:[%s2608_s3 + $0x14c] sm:$0xf]  ;;  %v1551_v10 = vor.u32 %v1745_v4, %v1550_v3 }
  0x22   :  { %v1704_v32 = vld [vmem:[%s2608_s3 + $0x21c] sm:$0xf0]  ;;  %v1387_v56 = vor.u32 %v1700_v41, %v1384_v44  ;;  %v1296_v8 = vld [vmem:[%s2608_s3 + $0x168] sm:$0xf0]  ;;  %v1262_v13 = vld [vmem:[%s2608_s3 + $0x108] sm:$0xf] }
  0x23   :  { %v1383_v43 = vor.u32 %v1704_v32, %v1382_v31  ;;  %871 = vmatpush.bf16.msra.mxu2 %v1127_v42  ;;  %v1741_v11 = vld [vmem:[%s2608_s3 + $0x34c] sm:$0xf]  ;;  %v1673_v14 = vld [vmem:[%s2608_s3 + $0x124] sm:$0xf0]  ;;  %v1299_v17 = vor.u32 %v1677_v7, %v1296_v8 }
  0x24   :  { %896 = vmatpush.bf16.msrb.mxu0 %v1163_v37  ;;  %v1552_v12 = vld [vmem:[%s2608_s3 + $0x368] sm:$0xf0]  ;;  %v1518_v15 = vld [vmem:[%s2608_s3 + $0x308] sm:$0xf]  ;;  %v1263_v21 = vor.u32 %v1673_v14, %v1262_v13 }
  0x25   :  { %909 = vmatpush.bf16.msrb.mxu1 %v1419_v38  ;;  %884 = vmatpush.bf16.msra.mxu3 %v1383_v43  ;;  %v1737_v16 = vld [vmem:[%s2608_s3 + $0x324] sm:$0xf0]  ;;  %v1555_v18 = vor.u32 %v1741_v11, %v1552_v12  ;;  %v1669_v19 = vld [vmem:[%s2608_s3 + $0x10c] sm:$0xf]  ;;  %v23_v11 = vld [vmem:[%s2610_s2] sm:$0x3] }
  0x26   :  { %v1264_v20 = vld [vmem:[%s2608_s3 + $0x128] sm:$0xf0]  ;;  %v1519_v22 = vor.u32 %v1737_v16, %v1518_v15  ;;  %v1230_v25 = vld [vmem:[%s2608_s3 + $0xc8] sm:$0xf]  ;;  %v25_v12 = vperm.slane %v23_v11, 0  ;;  %v26_v13 = vperm.slane %v23_v11, 1 }
  0x27   :  { %916 = vmatpush.bf16.msrb.mxu2 %v1359_v47  ;;  %v1733_v23 = vld [vmem:[%s2608_s3 + $0x30c] sm:$0xf]  ;;  %v1665_v26 = vld [vmem:[%s2608_s3 + $0xe4] sm:$0xf0]  ;;  %v1267_v29 = vor.u32 %v1669_v19, %v1264_v20  ;;  %v1698_v19 = vld [vmem:[%s2608_s3 + $0x1ec] sm:$0xf0] }
  0x28   :  { %897 = vmatpush.bf16.msrb.mxu0 %v1131_v55  ;;  %v1520_v24 = vld [vmem:[%s2608_s3 + $0x328] sm:$0xf0]  ;;  %v1486_v27 = vld [vmem:[%s2608_s3 + $0x2c8] sm:$0xf]  ;;  %v1231_v33 = vor.u32 %v1665_v26, %v1230_v25  ;;  %v1622_v20 = vld [vmem:[%s2608_s3 + $0x3d0] sm:$0xf] }
  0x29   :  { %929 = vmatpush.bf16.msrb.mxu3 %v1615_v48  ;;  %910 = vmatpush.bf16.msrb.mxu1 %v1387_v56  ;;  %v1729_v28 = vld [vmem:[%s2608_s3 + $0x2e4] sm:$0xf0]  ;;  %v1523_v30 = vor.u32 %v1733_v23, %v1520_v24  ;;  %v1661_v31 = vld [vmem:[%s2608_s3 + $0xcc] sm:$0xf]  ;;  %v1368_v23 = vld [vmem:[%s2608_s3 + $0x1f0] sm:$0xf0] }
  0x2a   :  { %v1232_v32 = vld [vmem:[%s2608_s3 + $0xe8] sm:$0xf0]  ;;  %v1487_v34 = vor.u32 %v1729_v28, %v1486_v27  ;;  %v1198_v37 = vld [vmem:[%s2608_s3 + $0x88] sm:$0xf]  ;;  %v1758_v26 = vld [vmem:[%s2608_s3 + $0x3d4] sm:$0xf] }
  0x2b   :  { %917 = vmatpush.bf16.msrb.mxu2 %v1327_v61  ;;  %v1725_v35 = vld [vmem:[%s2608_s3 + $0x2cc] sm:$0xf]  ;;  %v1657_v38 = vld [vmem:[%s2608_s3 + $0xa4] sm:$0xf0]  ;;  %v1235_v41 = vor.u32 %v1661_v31, %v1232_v32  ;;  %v1624_v27 = vld [vmem:[%s2608_s3 + $0x3f0] sm:$0xf0] }
  0x2c   :  { %942 = vmatpush.bf16.msra.mxu0 %v1363_v57  ;;  %v1488_v36 = vld [vmem:[%s2608_s3 + $0x2e8] sm:$0xf0]  ;;  %v1454_v39 = vld [vmem:[%s2608_s3 + $0x288] sm:$0xf]  ;;  %v1199_v44 = vor.u32 %v1657_v38, %v1198_v37  ;;  %v1334_v32 = vld [vmem:[%s2608_s3 + $0x190] sm:$0xf] }
  0x2d   :  { %955 = vmatpush.bf16.msra.mxu1 %v1619_v58  ;;  %930 = vmatpush.bf16.msrb.mxu3 %v1583_v62  ;;  %v1721_v40 = vld [vmem:[%s2608_s3 + $0x2a4] sm:$0xf0]  ;;  %v1491_v42 = vor.u32 %v1725_v35, %v1488_v36  ;;  %v1653_v43 = vld [vmem:[%s2608_s3 + $0x8c] sm:$0xf]  ;;  %v1627_v35 = vor.u32 %v1758_v26, %v1624_v27  ;;  %v1590_v36 = vld [vmem:[%s2608_s3 + $0x390] sm:$0xf] }
  0x2e   :  { %v1455_v45 = vor.u32 %v1721_v40, %v1454_v39  ;;  %v1200_v46 = vld [vmem:[%s2608_s3 + $0xa8] sm:$0xf0]  ;;  %v1166_v51 = vld [vmem:[%s2608_s3 + $0x48] sm:$0xf]  ;;  %v1754_v37 = vld [vmem:[%s2608_s3 + $0x3ac] sm:$0xf0] }
  0x2f   :  { %918 = vmatpush.bf16.msrb.mxu2 %v1295_v9  ;;  %v1717_v47 = vld [vmem:[%s2608_s3 + $0x28c] sm:$0xf]  ;;  %v1203_v49 = vor.u32 %v1653_v43, %v1200_v46  ;;  %v1649_v52 = vld [vmem:[%s2608_s3 + $0x64] sm:$0xf0]  ;;  %v1686_v38 = vld [vmem:[%s2608_s3 + $0x194] sm:$0xf] }
  0x30   :  { %943 = vmatpush.bf16.msra.mxu0 %v1331_v5  ;;  %v1456_v48 = vld [vmem:[%s2608_s3 + $0x2a8] sm:$0xf0]  ;;  %v1167_v53 = vor.u32 %v1649_v52, %v1166_v51  ;;  %v1422_v54 = vld [vmem:[%s2608_s3 + $0x248] sm:$0xf]  ;;  %v1336_v39 = vld [vmem:[%s2608_s3 + $0x1b0] sm:$0xf0] }
  0x31   :  { %956 = vmatpush.bf16.msra.mxu1 %v1587_v6  ;;  %931 = vmatpush.bf16.msrb.mxu3 %v1551_v10  ;;  %v1459_v50 = vor.u32 %v1717_v47, %v1456_v48  ;;  %v1713_v55 = vld [vmem:[%s2608_s3 + $0x264] sm:$0xf0]  ;;  %v1645_v56 = vld [vmem:[%s2608_s3 + $0x4c] sm:$0xf]  ;;  %v1750_v40 = vld [vmem:[%s2608_s3 + $0x394] sm:$0xf]  ;;  %v1339_v48 = vor.u32 %v1686_v38, %v1336_v39 }
  0x32   :  { %v1423_v57 = vor.u32 %v1713_v55, %v1422_v54  ;;  %v1168_v58 = vld [vmem:[%s2608_s3 + $0x68] sm:$0xf0]  ;;  %v1134_v63 = vld [vmem:[%s2608_s3 + $0x8] sm:$0xf]  ;;  %v1302_v46 = vld [vmem:[%s2608_s3 + $0x150] sm:$0xf] }
  0x33   :  { %919 = vmatpush.bf16.msrb.mxu2 %v1263_v21  ;;  %v1709_v59 = vld [vmem:[%s2608_s3 + $0x24c] sm:$0xf]  ;;  %v1171_v61 = vor.u32 %v1645_v56, %v1168_v58  ;;  %v1641_v0 = vld [vmem:[%s2608_s3 + $0x24] sm:$0xf0]  ;;  %v1762_v21 = vld [vmem:[%s2608_s3 + $0x3ec] sm:$0xf0] }
  0x34   :  { %944 = vmatpush.bf16.msra.mxu0 %v1299_v17  ;;  %v1424_v60 = vld [vmem:[%s2608_s3 + $0x268] sm:$0xf0]  ;;  %v1390_v1 = vld [vmem:[%s2608_s3 + $0x208] sm:$0xf]  ;;  %v1135_v2 = vor.u32 %v1641_v0, %v1134_v63  ;;  %v1623_v31 = vor.u32 %v1762_v21, %v1622_v20  ;;  %v1682_v47 = vld [vmem:[%s2608_s3 + $0x16c] sm:$0xf0] }
  0x35   :  { %957 = vmatpush.bf16.msra.mxu1 %v1555_v18  ;;  %932 = vmatpush.bf16.msrb.mxu3 %v1519_v22  ;;  %v1427_v62 = vor.u32 %v1709_v59, %v1424_v60  ;;  %v1705_v3 = vld [vmem:[%s2608_s3 + $0x224] sm:$0xf0]  ;;  %v1637_v4 = vld [vmem:[%s2608_s3 + $0xc] sm:$0xf]  ;;  %v1366_v18 = vld [vmem:[%s2608_s3 + $0x1d0] sm:$0xf]  ;;  %v1303_v56 = vor.u32 %v1682_v47, %v1302_v46 }
  0x36   :  { %v1136_v5 = vld [vmem:[%s2608_s3 + $0x28] sm:$0xf0]  ;;  %v1391_v6 = vor.u32 %v1705_v3, %v1390_v1  ;;  %v1694_v22 = vld [vmem:[%s2608_s3 + $0x1d4] sm:$0xf]  ;;  %v1746_v51 = vld [vmem:[%s2608_s3 + $0x36c] sm:$0xf0] }
  0x37   :  { %920 = vmatpush.bf16.msrb.mxu2 %v1231_v33  ;;  %v1139_v7 = vor.u32 %v1637_v4, %v1136_v5  ;;  %v1701_v8 = vld [vmem:[%s2608_s3 + $0x20c] sm:$0xf]  ;;  %v1690_v33 = vld [vmem:[%s2608_s3 + $0x1ac] sm:$0xf0]  ;;  %v1678_v52 = vld [vmem:[%s2608_s3 + $0x154] sm:$0xf] }
  0x38   :  { %945 = vmatpush.bf16.msra.mxu0 %v1267_v29  ;;  %v1392_v9 = vld [vmem:[%s2608_s3 + $0x228] sm:$0xf0]  ;;  %v1742_v54 = vld [vmem:[%s2608_s3 + $0x354] sm:$0xf]  ;;  %v1270_v58 = vld [vmem:[%s2608_s3 + $0x110] sm:$0xf] }
  0x39   :  { %958 = vmatpush.bf16.msra.mxu1 %v1523_v30  ;;  %933 = vmatpush.bf16.msrb.mxu3 %v1487_v34  ;;  %v1395_v10 = vor.u32 %v1701_v8, %v1392_v9  ;;  %v1367_v30 = vor.u32 %v1698_v19, %v1366_v18  ;;  %v1371_v34 = vor.u32 %v1694_v22, %v1368_v23  ;;  %v1560_v55 = vld [vmem:[%s2608_s3 + $0x370] sm:$0xf0]  ;;  %v1674_v59 = vld [vmem:[%s2608_s3 + $0x12c] sm:$0xf0] }
  0x3a   :  { %v1738_v63 = vld [vmem:[%s2608_s3 + $0x32c] sm:$0xf0]  ;;  %v1670_v0 = vld [vmem:[%s2608_s3 + $0x114] sm:$0xf]  ;;  %v1271_v4 = vor.u32 %v1674_v59, %v1270_v58  ;;  %v1695_v58 = vld [vmem:[%s2608_s3 + $0x1dc] sm:$0xf] }
  0x3b   :  { %921 = vmatpush.bf16.msrb.mxu2 %v1199_v44  ;;  %v1335_v44 = vor.u32 %v1690_v33, %v1334_v32  ;;  %v1272_v1 = vld [vmem:[%s2608_s3 + $0x130] sm:$0xf0]  ;;  %v1730_v11 = vld [vmem:[%s2608_s3 + $0x2ec] sm:$0xf0] }
  0x3c   :  { %946 = vmatpush.bf16.msra.mxu0 %v1235_v41  ;;  %v1592_v41 = vld [vmem:[%s2608_s3 + $0x3b0] sm:$0xf0]  ;;  %v1275_v8 = vor.u32 %v1670_v0, %v1272_v1  ;;  %v1206_v18 = vld [vmem:[%s2608_s3 + $0x90] sm:$0xf] }
  0x3d   :  { %959 = vmatpush.bf16.msra.mxu1 %v1491_v42  ;;  %934 = vmatpush.bf16.msrb.mxu3 %v1455_v45  ;;  %v1591_v45 = vor.u32 %v1754_v37, %v1590_v36  ;;  %v1528_v3 = vld [vmem:[%s2608_s3 + $0x330] sm:$0xf0]  ;;  %v1658_v19 = vld [vmem:[%s2608_s3 + $0xac] sm:$0xf0] }
  0x3e   :  { %v1462_v22 = vld [vmem:[%s2608_s3 + $0x290] sm:$0xf]  ;;  %v1718_v26 = vld [vmem:[%s2608_s3 + $0x294] sm:$0xf] }
  0x3f   :  { %922 = vmatpush.bf16.msrb.mxu2 %v1167_v53  ;;  %v1304_v53 = vld [vmem:[%s2608_s3 + $0x170] sm:$0xf0]  ;;  %v1722_v23 = vld [vmem:[%s2608_s3 + $0x2ac] sm:$0xf0] }
  0x40   :  { %947 = vmatpush.bf16.msra.mxu0 %v1203_v49  ;;  %v1595_v49 = vor.u32 %v1750_v40, %v1592_v41  ;;  %v1307_v60 = vor.u32 %v1678_v52, %v1304_v53  ;;  %v1464_v27 = vld [vmem:[%s2608_s3 + $0x2b0] sm:$0xf0]  ;;  %v1174_v32 = vld [vmem:[%s2608_s3 + $0x50] sm:$0xf] }
  0x41   :  { %960 = vmatpush.bf16.msra.mxu1 %v1459_v50  ;;  %935 = vmatpush.bf16.msrb.mxu3 %v1423_v57  ;;  %v1558_v50 = vld [vmem:[%s2608_s3 + $0x350] sm:$0xf]  ;;  %v1646_v38 = vld [vmem:[%s2608_s3 + $0x54] sm:$0xf] }
  0x42   :  { %v1559_v57 = vor.u32 %v1746_v51, %v1558_v50  ;;  %v1650_v33 = vld [vmem:[%s2608_s3 + $0x6c] sm:$0xf0]  ;;  %v1176_v39 = vld [vmem:[%s2608_s3 + $0x70] sm:$0xf0] }
  0x43   :  { %923 = vmatpush.bf16.msrb.mxu2 %v1135_v2  ;;  %v1734_v2 = vld [vmem:[%s2608_s3 + $0x314] sm:$0xf]  ;;  %v1430_v36 = vld [vmem:[%s2608_s3 + $0x250] sm:$0xf] }
  0x44   :  { %948 = vmatpush.bf16.msra.mxu0 %v1171_v61  ;;  %v1563_v61 = vor.u32 %v1742_v54, %v1560_v55  ;;  %v1531_v9 = vor.u32 %v1734_v2, %v1528_v3  ;;  %v1714_v37 = vld [vmem:[%s2608_s3 + $0x26c] sm:$0xf0]  ;;  %v1710_v40 = vld [vmem:[%s2608_s3 + $0x254] sm:$0xf]  ;;  %v1374_v54 = vld [vmem:[%s2608_s3 + $0x1d8] sm:$0xf] }
  0x45   :  { %961 = vmatpush.bf16.msra.mxu1 %v1427_v62  ;;  %936 = vmatpush.bf16.msrb.mxu3 %v1391_v6  ;;  %v1526_v62 = vld [vmem:[%s2608_s3 + $0x310] sm:$0xf]  ;;  %v1432_v41 = vld [vmem:[%s2608_s3 + $0x270] sm:$0xf0]  ;;  %v1699_v55 = vld [vmem:[%s2608_s3 + $0x1f4] sm:$0xf0] }
  0x46   :  { %v1527_v5 = vor.u32 %v1738_v63, %v1526_v62  ;;  %v1238_v6 = vld [vmem:[%s2608_s3 + $0xd0] sm:$0xf]  ;;  %v1638_v50 = vld [vmem:[%s2608_s3 + $0x14] sm:$0xf]  ;;  %v1759_v62 = vld [vmem:[%s2608_s3 + $0x3dc] sm:$0xf]  ;;  %v1375_v2 = vor.u32 %v1699_v55, %v1374_v54 }
  0x47   :  { %v1398_v46 = vld [vmem:[%s2608_s3 + $0x210] sm:$0xf]  ;;  %v1144_v51 = vld [vmem:[%s2608_s3 + $0x30] sm:$0xf0]  ;;  %v1632_v63 = vld [vmem:[%s2608_s3 + $0x3f8] sm:$0xf0] }
  0x48   :  { %949 = vmatpush.bf16.msra.mxu0 %v1139_v7  ;;  %v1666_v7 = vld [vmem:[%s2608_s3 + $0xec] sm:$0xf0]  ;;  %v1702_v52 = vld [vmem:[%s2608_s3 + $0x214] sm:$0xf]  ;;  %v1147_v0 = vor.u32 %v1638_v50, %v1144_v51  ;;  %v1727_v50 = vld [vmem:[%s2608_s3 + $0x2dc] sm:$0xf] }
  0x49   :  { %962 = vmatpush.bf16.msra.mxu1 %v1395_v10  ;;  %v1494_v10 = vld [vmem:[%s2608_s3 + $0x2d0] sm:$0xf]  ;;  %v1400_v53 = vld [vmem:[%s2608_s3 + $0x230] sm:$0xf0]  ;;  %v1504_v51 = vld [vmem:[%s2608_s3 + $0x2f8] sm:$0xf0] }
  0x4a   :  { %v1706_v47 = vld [vmem:[%s2608_s3 + $0x22c] sm:$0xf0]  ;;  %v1403_v1 = vor.u32 %v1702_v52, %v1400_v53  ;;  %v1214_v54 = vld [vmem:[%s2608_s3 + $0x98] sm:$0xf] }
  0x4b   :  { %v1659_v55 = vld [vmem:[%s2608_s3 + $0xb4] sm:$0xf0] }
  0x8a   :  { %v57_v14 = vpop.f32.mrf.mxu0 }
  0x8b   :  { %v70_v15 = vpop.f32.mrf.mxu1  ;;  %v58_v16 = vadd.f32 %v57_v14, %v25_v12  ;;  %v1662_v12 = vld [vmem:[%s2608_s3 + $0xd4] sm:$0xf] }
  0x8c   :  { %v71_v17 = vadd.f32 %v70_v15, %v26_v13  ;;  %v1240_v13 = vld [vmem:[%s2608_s3 + $0xf0] sm:$0xf0] }
  0x8d   :  { %v74_v24 = vmax.f32 %v58_v16, 0.0  ;;  %v1726_v14 = vld [vmem:[%s2608_s3 + $0x2d4] sm:$0xf]  ;;  %v1239_v16 = vor.u32 %v1666_v7, %v1238_v6  ;;  %v1243_v20 = vor.u32 %v1662_v12, %v1240_v13  ;;  %v1635_v7 = vor.u32 %v1759_v62, %v1632_v63  ;;  %v1751_v12 = vld [vmem:[%s2608_s3 + $0x39c] sm:$0xf] }
  0x8e   :  { %v75_v25 = vmax.f32 %v71_v17, 0.0  ;;  %v1496_v15 = vld [vmem:[%s2608_s3 + $0x2f0] sm:$0xf0]  ;;  %v1495_v17 = vor.u32 %v1730_v11, %v1494_v10  ;;  %v1687_v10 = vld [vmem:[%s2608_s3 + $0x19c] sm:$0xf] }
  0x8f   :  { %v2216_v28 = vpack.c.bf16 %v74_v24, %v74_v24  ;;  %v1499_v21 = vor.u32 %v1726_v14, %v1496_v15  ;;  %v1654_v24 = vld [vmem:[%s2608_s3 + $0x94] sm:$0xf]  ;;  %v1344_v11 = vld [vmem:[%s2608_s3 + $0x1b8] sm:$0xf0] }
  0x90   :  { %v2218_v29 = vpack.c.bf16 %v75_v25, %v75_v25  ;;  %v1208_v25 = vld [vmem:[%s2608_s3 + $0xb0] sm:$0xf0]  ;;  %v1600_v13 = vld [vmem:[%s2608_s3 + $0x3b8] sm:$0xf0] }
  0x91   :  { %872 = vmatmul.bf16.vlgmr.msra.gmra.mxu2 %v2216_v28  ;;  %898 = vmatmul.bf16.vlgmr.msrb.gmra.mxu0 %v2216_v28  ;;  %v1719_v62 = vld [vmem:[%s2608_s3 + $0x29c] sm:$0xf] }
  0x92   :  { %885 = vmatmul.bf16.vlgmr.msra.gmra.mxu3 %v2218_v29  ;;  %911 = vmatmul.bf16.vlgmr.msrb.gmra.mxu1 %v2218_v29  ;;  %v59_v42 = vpop.f32.mrf.mxu0  ;;  %v1472_v63 = vld [vmem:[%s2608_s3 + $0x2b8] sm:$0xf0] }
  0x93   :  { %v72_v43 = vpop.f32.mrf.mxu1  ;;  %968 = vmatpush.bf16.msra.mxu2 %v1367_v30  ;;  %981 = vmatpush.bf16.msra.mxu3 %v1623_v31  ;;  %v1207_v30 = vor.u32 %v1658_v19, %v1206_v18  ;;  %v1463_v31 = vor.u32 %v1722_v23, %v1462_v22  ;;  %v1142_v42 = vld [vmem:[%s2608_s3 + $0x10] sm:$0xf]  ;;  %v1347_v18 = vor.u32 %v1687_v10, %v1344_v11  ;;  %v1679_v22 = vld [vmem:[%s2608_s3 + $0x15c] sm:$0xf] }
  0x94   :  { %994 = vmatpush.bf16.msrb.mxu0 %v1371_v34  ;;  %1007 = vmatpush.bf16.msrb.mxu1 %v1627_v35  ;;  %v1211_v34 = vor.u32 %v1654_v24, %v1208_v25  ;;  %v1467_v35 = vor.u32 %v1718_v26, %v1464_v27  ;;  %v1175_v43 = vor.u32 %v1650_v33, %v1174_v32  ;;  %v1312_v23 = vld [vmem:[%s2608_s3 + $0x178] sm:$0xf0] }
  0x95   :  { %v1603_v19 = vor.u32 %v1751_v12, %v1600_v13  ;;  %v1743_v24 = vld [vmem:[%s2608_s3 + $0x35c] sm:$0xf]  ;;  %v1315_v32 = vor.u32 %v1679_v22, %v1312_v23 }
  0x96   :  { %v1568_v25 = vld [vmem:[%s2608_s3 + $0x378] sm:$0xf0] }
  0x97   :  { %969 = vmatpush.bf16.msra.mxu2 %v1335_v44  ;;  %982 = vmatpush.bf16.msra.mxu3 %v1591_v45  ;;  %v1431_v44 = vor.u32 %v1714_v37, %v1430_v36  ;;  %v1642_v45 = vld [vmem:[%s2608_s3 + $0x2c] sm:$0xf0]  ;;  %v1571_v33 = vor.u32 %v1743_v24, %v1568_v25  ;;  %v1671_v36 = vld [vmem:[%s2608_s3 + $0x11c] sm:$0xf] }
  0x98   :  { %995 = vmatpush.bf16.msrb.mxu0 %v1339_v48  ;;  %1008 = vmatpush.bf16.msrb.mxu1 %v1595_v49  ;;  %v1179_v48 = vor.u32 %v1646_v38, %v1176_v39  ;;  %v1435_v49 = vor.u32 %v1710_v40, %v1432_v41  ;;  %v1143_v59 = vor.u32 %v1642_v45, %v1142_v42  ;;  %v1280_v37 = vld [vmem:[%s2608_s3 + $0x138] sm:$0xf0]  ;;  %v1246_v42 = vld [vmem:[%s2608_s3 + $0xd8] sm:$0xf] }
  0x99   :  { %v1735_v38 = vld [vmem:[%s2608_s3 + $0x31c] sm:$0xf] }
  0x9a   :  { %v1536_v39 = vld [vmem:[%s2608_s3 + $0x338] sm:$0xf0] }
  0x9b   :  { %970 = vmatpush.bf16.msra.mxu2 %v1303_v56  ;;  %983 = vmatpush.bf16.msra.mxu3 %v1559_v57  ;;  %v1630_v56 = vld [vmem:[%s2608_s3 + $0x3d8] sm:$0xf]  ;;  %v1539_v45 = vor.u32 %v1735_v38, %v1536_v39  ;;  %v1711_v10 = vld [vmem:[%s2608_s3 + $0x25c] sm:$0xf] }
  0x9c   :  { %996 = vmatpush.bf16.msrb.mxu0 %v1307_v60  ;;  %1009 = vmatpush.bf16.msrb.mxu1 %v1563_v61  ;;  %v1763_v57 = vld [vmem:[%s2608_s3 + $0x3f4] sm:$0xf0]  ;;  %v1399_v60 = vor.u32 %v1706_v47, %v1398_v46  ;;  %v1376_v61 = vld [vmem:[%s2608_s3 + $0x1f8] sm:$0xf0] }
  0x9d   :  { %v1631_v3 = vor.u32 %v1763_v57, %v1630_v56  ;;  %v1379_v6 = vor.u32 %v1695_v58, %v1376_v61  ;;  %v1502_v46 = vld [vmem:[%s2608_s3 + $0x2d8] sm:$0xf]  ;;  %v1507_v57 = vor.u32 %v1727_v50, %v1504_v51  ;;  %v1216_v61 = vld [vmem:[%s2608_s3 + $0xb8] sm:$0xf0] }
  0x9e   :  { %v1731_v47 = vld [vmem:[%s2608_s3 + $0x2f4] sm:$0xf0]  ;;  %v1440_v11 = vld [vmem:[%s2608_s3 + $0x278] sm:$0xf0] }
  0x9f   :  { %971 = vmatpush.bf16.msra.mxu2 %v1271_v4  ;;  %984 = vmatpush.bf16.msra.mxu3 %v1527_v5  ;;  %v1342_v4 = vld [vmem:[%s2608_s3 + $0x198] sm:$0xf]  ;;  %v1503_v53 = vor.u32 %v1731_v47, %v1502_v46  ;;  %v1703_v22 = vld [vmem:[%s2608_s3 + $0x21c] sm:$0xf] }
  0xa0   :  { %997 = vmatpush.bf16.msrb.mxu0 %v1275_v8  ;;  %1010 = vmatpush.bf16.msrb.mxu1 %v1531_v9  ;;  %v1691_v5 = vld [vmem:[%s2608_s3 + $0x1b4] sm:$0xf0]  ;;  %v1408_v23 = vld [vmem:[%s2608_s3 + $0x238] sm:$0xf0] }
  0xa1   :  { %924 = vmatmul.bf16.vlgmr.msrb.gmra.mxu2 %v2216_v28  ;;  %950 = vmatmul.bf16.vlgmr.msra.gmra.mxu0 %v2216_v28  ;;  %v1598_v8 = vld [vmem:[%s2608_s3 + $0x398] sm:$0xf]  ;;  %v1343_v14 = vor.u32 %v1691_v5, %v1342_v4  ;;  %v1475_v5 = vor.u32 %v1719_v62, %v1472_v63 }
  0xa2   :  { %937 = vmatmul.bf16.vlgmr.msrb.gmra.mxu3 %v2218_v29  ;;  %963 = vmatmul.bf16.vlgmr.msra.gmra.mxu1 %v2218_v29  ;;  %v1755_v9 = vld [vmem:[%s2608_s3 + $0x3b4] sm:$0xf0] }
  0xa3   :  { %972 = vmatpush.bf16.msra.mxu2 %v1239_v16  ;;  %985 = vmatpush.bf16.msra.mxu3 %v1495_v17  ;;  %v1599_v15 = vor.u32 %v1755_v9, %v1598_v8  ;;  %v1310_v16 = vld [vmem:[%s2608_s3 + $0x158] sm:$0xf]  ;;  %v1647_v8 = vld [vmem:[%s2608_s3 + $0x5c] sm:$0xf] }
  0xa4   :  { %998 = vmatpush.bf16.msrb.mxu0 %v1243_v20  ;;  %1011 = vmatpush.bf16.msrb.mxu1 %v1499_v21  ;;  %v1683_v17 = vld [vmem:[%s2608_s3 + $0x174] sm:$0xf0]  ;;  %v1184_v9 = vld [vmem:[%s2608_s3 + $0x78] sm:$0xf0] }
  0xa5   :  { %v1566_v20 = vld [vmem:[%s2608_s3 + $0x358] sm:$0xf]  ;;  %v1311_v26 = vor.u32 %v1683_v17, %v1310_v16  ;;  %v1187_v16 = vor.u32 %v1647_v8, %v1184_v9  ;;  %v1443_v17 = vor.u32 %v1711_v10, %v1440_v11 }
  0xa6   :  { %v1747_v21 = vld [vmem:[%s2608_s3 + $0x374] sm:$0xf0] }
  0xa7   :  { %973 = vmatpush.bf16.msra.mxu2 %v1207_v30  ;;  %986 = vmatpush.bf16.msra.mxu3 %v1463_v31  ;;  %v1567_v27 = vor.u32 %v1747_v21, %v1566_v20  ;;  %v1278_v30 = vld [vmem:[%s2608_s3 + $0x118] sm:$0xf]  ;;  %v1639_v20 = vld [vmem:[%s2608_s3 + $0x1c] sm:$0xf] }
  0xa8   :  { %999 = vmatpush.bf16.msrb.mxu0 %v1211_v34  ;;  %1012 = vmatpush.bf16.msrb.mxu1 %v1467_v35  ;;  %v1675_v31 = vld [vmem:[%s2608_s3 + $0x134] sm:$0xf0]  ;;  %v1152_v21 = vld [vmem:[%s2608_s3 + $0x38] sm:$0xf0] }
  0xa9   :  { %v1534_v34 = vld [vmem:[%s2608_s3 + $0x318] sm:$0xf]  ;;  %v1279_v40 = vor.u32 %v1675_v31, %v1278_v30  ;;  %v206_v30 = vld [vmem:[%s2611_s4] sm:$0xff] }
  0xaa   :  { %v1739_v35 = vld [vmem:[%s2608_s3 + $0x334] sm:$0xf0]  ;;  %v209_v31 = vperm.slane %v206_v30, 1  ;;  %v210_v62 = vperm.slane %v206_v30, 2  ;;  %v211_v63 = vperm.slane %v206_v30, 3 }
  0xab   :  { %974 = vmatpush.bf16.msra.mxu2 %v1175_v43  ;;  %987 = vmatpush.bf16.msra.mxu3 %v1431_v44  ;;  %v1535_v41 = vor.u32 %v1739_v35, %v1534_v34  ;;  %v1667_v43 = vld [vmem:[%s2608_s3 + $0xf4] sm:$0xf0]  ;;  %v1283_v44 = vor.u32 %v1671_v36, %v1280_v37  ;;  %v208_v35 = vperm.slane %v206_v30, 0 }
  0xac   :  { %1000 = vmatpush.bf16.msrb.mxu0 %v1179_v48  ;;  %1013 = vmatpush.bf16.msrb.mxu1 %v1435_v49  ;;  %v1663_v48 = vld [vmem:[%s2608_s3 + $0xdc] sm:$0xf]  ;;  %v1247_v52 = vor.u32 %v1667_v43, %v1246_v42  ;;  %v1470_v58 = vld [vmem:[%s2608_s3 + $0x298] sm:$0xf] }
  0xad   :  { %v1248_v49 = vld [vmem:[%s2608_s3 + $0xf8] sm:$0xf0] }
  0xae   :  { %v1251_v56 = vor.u32 %v1663_v48, %v1248_v49 }
  0xaf   :  { %975 = vmatpush.bf16.msra.mxu2 %v1143_v59  ;;  %988 = vmatpush.bf16.msra.mxu3 %v1399_v60  ;;  %v1723_v59 = vld [vmem:[%s2608_s3 + $0x2b4] sm:$0xf0]  ;;  %v1655_v60 = vld [vmem:[%s2608_s3 + $0x9c] sm:$0xf] }
  0xb0   :  { %1001 = vmatpush.bf16.msrb.mxu0 %v1147_v0  ;;  %1014 = vmatpush.bf16.msrb.mxu1 %v1403_v1  ;;  %v1215_v0 = vor.u32 %v1659_v55, %v1214_v54  ;;  %v1471_v1 = vor.u32 %v1723_v59, %v1470_v58  ;;  %v1219_v4 = vor.u32 %v1655_v60, %v1216_v61 }
  0xb2   :  { %976 = vmatmul.bf16.vlgmr.msra.gmra.mxu2 %v2216_v28  ;;  %989 = vmatmul.bf16.vlgmr.msra.gmra.mxu3 %v2218_v29 }
  0xb3   :  { %1020 = vmatpush.bf16.msrb.mxu2 %v1375_v2  ;;  %1033 = vmatpush.bf16.msrb.mxu3 %v1631_v3  ;;  %v1182_v2 = vld [vmem:[%s2608_s3 + $0x58] sm:$0xf] }
  0xb4   :  { %1046 = vmatpush.bf16.msra.mxu0 %v1379_v6  ;;  %1059 = vmatpush.bf16.msra.mxu1 %v1635_v7  ;;  %v1651_v3 = vld [vmem:[%s2608_s3 + $0x74] sm:$0xf0] }
  0xb5   :  { %1002 = vmatmul.bf16.vlgmr.msrb.gmra.mxu0 %v2216_v28  ;;  %1015 = vmatmul.bf16.vlgmr.msrb.gmra.mxu1 %v2218_v29  ;;  %v1438_v6 = vld [vmem:[%s2608_s3 + $0x258] sm:$0xf]  ;;  %v1183_v12 = vor.u32 %v1651_v3, %v1182_v2  ;;  %v213_v2 = vperm.slane %v206_v30, 5 }
  0xb6   :  { %v1715_v7 = vld [vmem:[%s2608_s3 + $0x274] sm:$0xf0] }
  0xb7   :  { %1021 = vmatpush.bf16.msrb.mxu2 %v1343_v14  ;;  %1034 = vmatpush.bf16.msrb.mxu3 %v1599_v15  ;;  %v1439_v13 = vor.u32 %v1715_v7, %v1438_v6  ;;  %v1150_v14 = vld [vmem:[%s2608_s3 + $0x18] sm:$0xf]  ;;  %v215_v7 = vperm.slane %v206_v30, 7 }
  0xb8   :  { %1047 = vmatpush.bf16.msra.mxu0 %v1347_v18  ;;  %1060 = vmatpush.bf16.msra.mxu1 %v1603_v19  ;;  %v1643_v15 = vld [vmem:[%s2608_s3 + $0x34] sm:$0xf0] }
  0xb9   :  { %v1406_v18 = vld [vmem:[%s2608_s3 + $0x218] sm:$0xf]  ;;  %v1151_v24 = vor.u32 %v1643_v15, %v1150_v14  ;;  %v214_v15 = vperm.slane %v206_v30, 6 }
  0xba   :  { %v1707_v19 = vld [vmem:[%s2608_s3 + $0x234] sm:$0xf0] }
  0xbb   :  { %1022 = vmatpush.bf16.msrb.mxu2 %v1311_v26  ;;  %1035 = vmatpush.bf16.msrb.mxu3 %v1567_v27  ;;  %v1407_v25 = vor.u32 %v1707_v19, %v1406_v18  ;;  %v1155_v26 = vor.u32 %v1639_v20, %v1152_v21  ;;  %v1411_v27 = vor.u32 %v1703_v22, %v1408_v23 }
  0xbc   :  { %1048 = vmatpush.bf16.msra.mxu0 %v1315_v32  ;;  %1061 = vmatpush.bf16.msra.mxu1 %v1571_v33 }
  0xbf   :  { %1023 = vmatpush.bf16.msrb.mxu2 %v1279_v40  ;;  %1036 = vmatpush.bf16.msrb.mxu3 %v1535_v41 }
  0xc0   :  { %1049 = vmatpush.bf16.msra.mxu0 %v1283_v44  ;;  %1062 = vmatpush.bf16.msra.mxu1 %v1539_v45 }
  0xc3   :  { %1024 = vmatpush.bf16.msrb.mxu2 %v1247_v52  ;;  %1037 = vmatpush.bf16.msrb.mxu3 %v1503_v53 }
  0xc4   :  { %1050 = vmatpush.bf16.msra.mxu0 %v1251_v56  ;;  %1063 = vmatpush.bf16.msra.mxu1 %v1507_v57 }
  0xc7   :  { %1025 = vmatpush.bf16.msrb.mxu2 %v1215_v0  ;;  %1038 = vmatpush.bf16.msrb.mxu3 %v1471_v1  ;;  %v212_v0 = vperm.slane %v206_v30, 4 }
  0xc8   :  { %1051 = vmatpush.bf16.msra.mxu0 %v1219_v4  ;;  %1064 = vmatpush.bf16.msra.mxu1 %v1475_v5 }
  0xcb   :  { %1026 = vmatpush.bf16.msrb.mxu2 %v1183_v12  ;;  %1039 = vmatpush.bf16.msrb.mxu3 %v1439_v13 }
  0xcc   :  { %1052 = vmatpush.bf16.msra.mxu0 %v1187_v16  ;;  %1065 = vmatpush.bf16.msra.mxu1 %v1443_v17 }
  0xcf   :  { %1027 = vmatpush.bf16.msrb.mxu2 %v1151_v24  ;;  %1040 = vmatpush.bf16.msrb.mxu3 %v1407_v25 }
  0xd0   :  { %1053 = vmatpush.bf16.msra.mxu0 %v1155_v26  ;;  %1066 = vmatpush.bf16.msra.mxu1 %v1411_v27 }
  0xd2   :  { %1028 = vmatmul.bf16.vlgmr.msrb.gmra.mxu2 %v2216_v28  ;;  %1041 = vmatmul.bf16.vlgmr.msrb.gmra.mxu3 %v2218_v29 }
  0xd3   :  { %1054 = vmatmul.bf16.vlgmr.msra.gmra.mxu0 %v2216_v28  ;;  %1067 = vmatmul.bf16.vlgmr.msra.gmra.mxu1 %v2218_v29 }
 0x10e   :  { %v899_v32 = vpop.f32.mrf.mxu0 }
 0x10f   :  { %v912_v33 = vpop.f32.mrf.mxu1  ;;  %v900_v34 = vadd.f32 %v899_v32, %v209_v31 }
 0x111   :  { %v913_v36 = vadd.f32 %v912_v33, %v900_v34 }
 0x113   :  { %v1073_v43 = vmax.f32 %v913_v36, 0.0 }
 0x114   :  { %v873_v37 = vpop.f32.mrf.mxu2 }
 0x115   :  { %v886_v38 = vpop.f32.mrf.mxu3  ;;  %v874_v39 = vadd.f32 %v873_v37, %v208_v35 }
 0x116   :  { %v901_v41 = vpop.f32.mrf.mxu0 }
 0x117   :  { %v887_v40 = vadd.f32 %v886_v38, %v874_v39  ;;  %v914_v42 = vpop.f32.mrf.mxu1 }
 0x119   :  { %v1072_v28 = vmax.f32 %v887_v40, 0.0 }
 0x11b   :  { %v2599_v44 = vpack.c.bf16 %v1073_v43, %v1072_v28 }
 0x11c   :  { %v875_v29 = vpop.f32.mrf.mxu2 }
 0x11d   :  { %v888_v45 = vpop.f32.mrf.mxu3  ;;  %v1088_v35 = vrot.slane %v2599_v44, 3 }
 0x11e   :  { %v951_v46 = vpop.f32.mrf.mxu0 }
 0x11f   :  { %v964_v47 = vpop.f32.mrf.mxu1  ;;  %v952_v3 = vadd.f32 %v951_v46, %v211_v63  ;;  %v1098_v43 = vsel %vm1095_vm4, %v2599_v44, %v1088_v35 }
 0x121   :  { %v965_v8 = vadd.f32 %v964_v47, %v952_v3 }
 0x123   :  { %v1075_v16 = vmax.f32 %v965_v8, 0.0 }
 0x124   :  { %v925_v48 = vpop.f32.mrf.mxu2 }
 0x125   :  { %v938_v49 = vpop.f32.mrf.mxu3  ;;  %v926_v1 = vadd.f32 %v925_v48, %v210_v62 }
 0x126   :  { %v953_v50 = vpop.f32.mrf.mxu0 }
 0x127   :  { %v966_v51 = vpop.f32.mrf.mxu1  ;;  %v939_v5 = vadd.f32 %v938_v49, %v926_v1 }
 0x129   :  { %v1074_v12 = vmax.f32 %v939_v5, 0.0 }
 0x12b   :  { %v1081_v20 = vpack.c.bf16 %v1075_v16, %v1074_v12 }
 0x12c   :  { %v927_v52 = vpop.f32.mrf.mxu2 }
 0x12d   :  { %v940_v53 = vpop.f32.mrf.mxu3  ;;  %v1089_v31 = vrot.slane %v1081_v20, 6  ;;  %v1090_v32 = vrot.slane %v1081_v20, 1 }
 0x12f   :  { %v1102_v40 = vsel %vm1099_vm3, %v1089_v31, %v1090_v32 }
 0x130   :  { %v1104_v45 = vsel %vm1103_vm5, %v1098_v43, %v1102_v40 }
 0x132   :  { %v1003_v54 = vpop.f32.mrf.mxu0  ;;  %v1016_v55 = vpop.f32.mrf.mxu1 }
 0x133   :  { %v1004_v6 = vadd.f32 %v1003_v54, %v213_v2 }
 0x135   :  { %v977_v56 = vpop.f32.mrf.mxu2  ;;  %v990_v57 = vpop.f32.mrf.mxu3  ;;  %v1017_v13 = vadd.f32 %v1016_v55, %v1004_v6 }
 0x136   :  { %v978_v4 = vadd.f32 %v977_v56, %v212_v0 }
 0x137   :  { %v1077_v21 = vmax.f32 %v1017_v13, 0.0 }
 0x138   :  { %v991_v9 = vadd.f32 %v990_v57, %v978_v4 }
 0x13a   :  { %v1005_v58 = vpop.f32.mrf.mxu0  ;;  %v1018_v59 = vpop.f32.mrf.mxu1  ;;  %v1076_v17 = vmax.f32 %v991_v9, 0.0 }
 0x13c   :  { %v1082_v24 = vpack.c.bf16 %v1077_v21, %v1076_v17 }
 0x13d   :  { %v979_v60 = vpop.f32.mrf.mxu2  ;;  %v992_v61 = vpop.f32.mrf.mxu3 }
 0x13e   :  { %v1091_v30 = vrot.slane %v1082_v24, 4  ;;  %v1092_v36 = vrot.slane %v1082_v24, 7 }
 0x140   :  { %v1108_v28 = vsel %vm1105_vm6, %v1091_v30, %v1092_v36 }
 0x150   :  { %v1055_v10 = vpop.f32.mrf.mxu0  ;;  %v1068_v11 = vpop.f32.mrf.mxu1 }
 0x151   :  { %v1056_v14 = vadd.f32 %v1055_v10, %v215_v7 }
 0x153   :  { %v1069_v22 = vadd.f32 %v1068_v11, %v1056_v14 }
 0x155   :  { %v1029_v18 = vpop.f32.mrf.mxu2  ;;  %v1042_v19 = vpop.f32.mrf.mxu3  ;;  %v1079_v33 = vmax.f32 %v1069_v22, 0.0 }
 0x156   :  { %v1030_v23 = vadd.f32 %v1029_v18, %v214_v15 }
 0x158   :  { %v1043_v25 = vadd.f32 %v1042_v19, %v1030_v23  ;;  %v1057_v26 = vpop.f32.mrf.mxu0  ;;  %v1070_v27 = vpop.f32.mrf.mxu1 }
 0x15a   :  { %v1078_v34 = vmax.f32 %v1043_v25, 0.0 }
 0x15c   :  { %v1083_v37 = vpack.c.bf16 %v1079_v33, %v1078_v34 }
 0x15d   :  { %v1031_v38 = vpop.f32.mrf.mxu2  ;;  %v1044_v39 = vpop.f32.mrf.mxu3 }
 0x15e   :  { %v1093_v41 = vrot.slane %v1083_v37, 2  ;;  %v1094_v42 = vrot.slane %v1083_v37, 5 }
 0x160   :  { %v1112_v29 = vsel %vm1109_vm7, %v1093_v41, %v1094_v42 }
 0x161   :  { %v1114_v46 = vsel %vm1113_vm8, %v1108_v28, %v1112_v29 }
 0x162   :  { %v1115_v47 = vsel %vm39_vm1, %v1104_v45, %v1114_v46 }
 0x163   :  { %1117 = vst [vmem:[%s2612_s5] sm:$0xff] %v1115_v47 }

// kernel: beta_vae_forward.16
= control target key start
LH: loop header
LB: loop body
LE: loop exit
PB: predicated region body
PF: predicated region fallthrough
CT: control target
= control target key end

     0   :  { %vm515_vm0 = vcmask 523264   ;;  %s1727_s1 = inlined_call_operand.vmem [shape: bf16[576,256], index: 1, kind: input, shape index: {}]   ;;  %s1728_s0 = inlined_call_operand.vmem [shape: bf16[32,576], index: 0, kind: input, shape index: {}]   ;;  %s1729_s2 = inlined_call_operand.vmem [shape: f32[1,256], index: 2, kind: input, shape index: {}]   ;;  %s1730_s3 = inlined_call_operand.vmem [shape: bf16[32,256], index: 3, kind: output, shape index: {}]  }
   0x1   :  { %v830_v0 = vld [vmem:[%s1727_s1 + $0x70] sm:$0xf]  ;;  %v1089_v1 = vld [vmem:[%s1727_s1 + $0x74] sm:$0xf0]  ;;  %v822_v11 = vld [vmem:[%s1727_s1 + $0x60] sm:$0xf] }
   0x2   :  { %v894_v2 = vld [vmem:[%s1727_s1 + $0xf0] sm:$0xf]  ;;  %v831_v3 = vor.u32 %v1089_v1, %v830_v0  ;;  %v1105_v4 = vld [vmem:[%s1727_s1 + $0xf4] sm:$0xf0]  ;;  %v1087_v13 = vld [vmem:[%s1727_s1 + $0x64] sm:$0xf0] }
   0x3   :  { %v958_v5 = vld [vmem:[%s1727_s1 + $0x170] sm:$0xf]  ;;  %v1121_v6 = vld [vmem:[%s1727_s1 + $0x174] sm:$0xf0]  ;;  %v895_v7 = vor.u32 %v1105_v4, %v894_v2  ;;  %v886_v14 = vld [vmem:[%s1727_s1 + $0xe0] sm:$0xf]  ;;  %v823_v16 = vor.u32 %v1087_v13, %v822_v11 }
   0x4   :  { %v959_v8 = vor.u32 %v1121_v6, %v958_v5  ;;  %v1022_v9 = vld [vmem:[%s1727_s1 + $0x1f0] sm:$0xf]  ;;  %v1137_v10 = vld [vmem:[%s1727_s1 + $0x1f4] sm:$0xf0]  ;;  %522 = vmatpush.bf16.msra.mxu0 %v831_v3  ;;  %v1103_v15 = vld [vmem:[%s1727_s1 + $0xe4] sm:$0xf0] }
   0x5   :  { %v1023_v12 = vor.u32 %v1137_v10, %v1022_v9  ;;  %541 = vmatpush.bf16.msra.mxu1 %v895_v7  ;;  %v887_v17 = vor.u32 %v1103_v15, %v886_v14  ;;  %v950_v18 = vld [vmem:[%s1727_s1 + $0x160] sm:$0xf]  ;;  %v1119_v19 = vld [vmem:[%s1727_s1 + $0x164] sm:$0xf0]  ;;  %v814_v23 = vld [vmem:[%s1727_s1 + $0x50] sm:$0xf] }
   0x6   :  { %560 = vmatpush.bf16.msra.mxu2 %v959_v8  ;;  %v1014_v20 = vld [vmem:[%s1727_s1 + $0x1e0] sm:$0xf]  ;;  %v951_v21 = vor.u32 %v1119_v19, %v950_v18  ;;  %v1135_v22 = vld [vmem:[%s1727_s1 + $0x1e4] sm:$0xf0]  ;;  %v1085_v24 = vld [vmem:[%s1727_s1 + $0x54] sm:$0xf0] }
   0x7   :  { %579 = vmatpush.bf16.msra.mxu3 %v1023_v12  ;;  %v1015_v25 = vor.u32 %v1135_v22, %v1014_v20  ;;  %v878_v26 = vld [vmem:[%s1727_s1 + $0xd0] sm:$0xf]  ;;  %v1101_v27 = vld [vmem:[%s1727_s1 + $0xd4] sm:$0xf0]  ;;  %v815_v29 = vor.u32 %v1085_v24, %v814_v23  ;;  %v806_v35 = vld [vmem:[%s1727_s1 + $0x40] sm:$0xf] }
   0x8   :  { %v942_v28 = vld [vmem:[%s1727_s1 + $0x150] sm:$0xf]  ;;  %523 = vmatpush.bf16.msra.mxu0 %v823_v16  ;;  %v1117_v30 = vld [vmem:[%s1727_s1 + $0x154] sm:$0xf0]  ;;  %v879_v33 = vor.u32 %v1101_v27, %v878_v26  ;;  %v1083_v36 = vld [vmem:[%s1727_s1 + $0x44] sm:$0xf0] }
   0x9   :  { %v1006_v31 = vld [vmem:[%s1727_s1 + $0x1d0] sm:$0xf]  ;;  %v1133_v32 = vld [vmem:[%s1727_s1 + $0x1d4] sm:$0xf0]  ;;  %542 = vmatpush.bf16.msra.mxu1 %v887_v17  ;;  %v943_v34 = vor.u32 %v1117_v30, %v942_v28  ;;  %v870_v37 = vld [vmem:[%s1727_s1 + $0xc0] sm:$0xf]  ;;  %v807_v44 = vor.u32 %v1083_v36, %v806_v35 }
   0xa   :  { %561 = vmatpush.bf16.msra.mxu2 %v951_v21  ;;  %v1007_v38 = vor.u32 %v1133_v32, %v1006_v31  ;;  %v1099_v39 = vld [vmem:[%s1727_s1 + $0xc4] sm:$0xf0]  ;;  %v934_v40 = vld [vmem:[%s1727_s1 + $0x140] sm:$0xf]  ;;  %v798_v47 = vld [vmem:[%s1727_s1 + $0x30] sm:$0xf] }
   0xb   :  { %580 = vmatpush.bf16.msra.mxu3 %v1015_v25  ;;  %v1115_v41 = vld [vmem:[%s1727_s1 + $0x144] sm:$0xf0]  ;;  %v998_v42 = vld [vmem:[%s1727_s1 + $0x1c0] sm:$0xf]  ;;  %v871_v45 = vor.u32 %v1099_v39, %v870_v37  ;;  %v1081_v48 = vld [vmem:[%s1727_s1 + $0x34] sm:$0xf0] }
   0xc   :  { %v1131_v43 = vld [vmem:[%s1727_s1 + $0x1c4] sm:$0xf0]  ;;  %524 = vmatpush.bf16.msra.mxu0 %v815_v29  ;;  %v935_v46 = vor.u32 %v1115_v41, %v934_v40  ;;  %v862_v49 = vld [vmem:[%s1727_s1 + $0xb0] sm:$0xf]  ;;  %v1097_v51 = vld [vmem:[%s1727_s1 + $0xb4] sm:$0xf0]  ;;  %v799_v56 = vor.u32 %v1081_v48, %v798_v47 }
   0xd   :  { %543 = vmatpush.bf16.msra.mxu1 %v879_v33  ;;  %v999_v50 = vor.u32 %v1131_v43, %v998_v42  ;;  %v926_v52 = vld [vmem:[%s1727_s1 + $0x130] sm:$0xf]  ;;  %v1113_v53 = vld [vmem:[%s1727_s1 + $0x134] sm:$0xf0]  ;;  %v863_v57 = vor.u32 %v1097_v51, %v862_v49  ;;  %v790_v59 = vld [vmem:[%s1727_s1 + $0x20] sm:$0xf] }
   0xe   :  { %562 = vmatpush.bf16.msra.mxu2 %v943_v34  ;;  %v990_v54 = vld [vmem:[%s1727_s1 + $0x1b0] sm:$0xf]  ;;  %v1129_v55 = vld [vmem:[%s1727_s1 + $0x1b4] sm:$0xf0]  ;;  %v927_v58 = vor.u32 %v1113_v53, %v926_v52  ;;  %v1079_v60 = vld [vmem:[%s1727_s1 + $0x24] sm:$0xf0] }
   0xf   :  { %581 = vmatpush.bf16.msra.mxu3 %v1007_v38  ;;  %v854_v61 = vld [vmem:[%s1727_s1 + $0xa0] sm:$0xf]  ;;  %v991_v62 = vor.u32 %v1129_v55, %v990_v54  ;;  %v1095_v63 = vld [vmem:[%s1727_s1 + $0xa4] sm:$0xf0]  ;;  %v791_v4 = vor.u32 %v1079_v60, %v790_v59  ;;  %v782_v7 = vld [vmem:[%s1727_s1 + $0x10] sm:$0xf] }
  0x10   :  { %525 = vmatpush.bf16.msra.mxu0 %v807_v44  ;;  %v918_v0 = vld [vmem:[%s1727_s1 + $0x120] sm:$0xf]  ;;  %v1111_v1 = vld [vmem:[%s1727_s1 + $0x124] sm:$0xf0]  ;;  %v855_v5 = vor.u32 %v1095_v63, %v854_v61  ;;  %v1077_v8 = vld [vmem:[%s1727_s1 + $0x14] sm:$0xf0] }
  0x11   :  { %544 = vmatpush.bf16.msra.mxu1 %v871_v45  ;;  %v982_v2 = vld [vmem:[%s1727_s1 + $0x1a0] sm:$0xf]  ;;  %v1127_v3 = vld [vmem:[%s1727_s1 + $0x1a4] sm:$0xf0]  ;;  %v919_v6 = vor.u32 %v1111_v1, %v918_v0  ;;  %v846_v9 = vld [vmem:[%s1727_s1 + $0x90] sm:$0xf]  ;;  %v783_v17 = vor.u32 %v1077_v8, %v782_v7 }
  0x12   :  { %563 = vmatpush.bf16.msra.mxu2 %v935_v46  ;;  %v983_v10 = vor.u32 %v1127_v3, %v982_v2  ;;  %v1093_v11 = vld [vmem:[%s1727_s1 + $0x94] sm:$0xf0]  ;;  %v910_v12 = vld [vmem:[%s1727_s1 + $0x110] sm:$0xf]  ;;  %v774_v16 = vld [vmem:[%s1727_s1] sm:$0xf] }
  0x13   :  { %582 = vmatpush.bf16.msra.mxu3 %v999_v50  ;;  %v1109_v13 = vld [vmem:[%s1727_s1 + $0x114] sm:$0xf0]  ;;  %v974_v14 = vld [vmem:[%s1727_s1 + $0x190] sm:$0xf]  ;;  %v1075_v18 = vld [vmem:[%s1727_s1 + $0x4] sm:$0xf0]  ;;  %v847_v21 = vor.u32 %v1093_v11, %v846_v9 }
  0x14   :  { %526 = vmatpush.bf16.msra.mxu0 %v799_v56  ;;  %v1125_v15 = vld [vmem:[%s1727_s1 + $0x194] sm:$0xf0]  ;;  %v838_v19 = vld [vmem:[%s1727_s1 + $0x80] sm:$0xf]  ;;  %v1091_v20 = vld [vmem:[%s1727_s1 + $0x84] sm:$0xf0]  ;;  %v911_v22 = vor.u32 %v1109_v13, %v910_v12  ;;  %v775_v34 = vor.u32 %v1075_v18, %v774_v16 }
  0x15   :  { %545 = vmatpush.bf16.msra.mxu1 %v863_v57  ;;  %v902_v23 = vld [vmem:[%s1727_s1 + $0x100] sm:$0xf]  ;;  %v1107_v24 = vld [vmem:[%s1727_s1 + $0x104] sm:$0xf0]  ;;  %v975_v26 = vor.u32 %v1125_v15, %v974_v14  ;;  %v1066_v29 = vld [vmem:[%s1728_s0 + $0x10] sm:$0xf0]  ;;  %v839_v38 = vor.u32 %v1091_v20, %v838_v19 }
  0x16   :  { %564 = vmatpush.bf16.msra.mxu2 %v927_v58  ;;  %v966_v25 = vld [vmem:[%s1727_s1 + $0x180] sm:$0xf]  ;;  %v1123_v27 = vld [vmem:[%s1727_s1 + $0x184] sm:$0xf0]  ;;  %v1064_v30 = vld [vmem:[%s1728_s0 + $0x4] sm:$0xf]  ;;  %v903_v39 = vor.u32 %v1107_v24, %v902_v23 }
  0x17   :  { %583 = vmatpush.bf16.msra.mxu3 %v991_v62  ;;  %v734_v28 = vld [vmem:[%s1728_s0] sm:$0xf]  ;;  %v736_v31 = vld [vmem:[%s1728_s0 + $0x14] sm:$0xf0]  ;;  %v1104_v32 = vld [vmem:[%s1727_s1 + $0xf4] sm:$0xf]  ;;  %v967_v43 = vor.u32 %v1123_v27, %v966_v25 }
  0x18   :  { %527 = vmatpush.bf16.msra.mxu0 %v791_v4  ;;  %v896_v33 = vld [vmem:[%s1727_s1 + $0xf8] sm:$0xf0]  ;;  %v742_v35 = vld [vmem:[%s1728_s0 + $0x8] sm:$0xf]  ;;  %v1088_v36 = vld [vmem:[%s1727_s1 + $0x74] sm:$0xf]  ;;  %v1415_v48 = vor.u32 %v1066_v29, %v734_v28  ;;  %v1426_v53 = vor.u32 %v1064_v30, %v736_v31 }
  0x19   :  { %546 = vmatpush.bf16.msra.mxu1 %v855_v5  ;;  %v832_v37 = vld [vmem:[%s1727_s1 + $0x78] sm:$0xf0]  ;;  %v1065_v41 = vld [vmem:[%s1728_s0 + $0xc] sm:$0xf]  ;;  %v744_v42 = vld [vmem:[%s1728_s0 + $0x1c] sm:$0xf0]  ;;  %v899_v44 = vor.u32 %v1104_v32, %v896_v33 }
  0x1a   :  { %565 = vmatpush.bf16.msra.mxu2 %v919_v6  ;;  %v1067_v40 = vld [vmem:[%s1728_s0 + $0x18] sm:$0xf0]  ;;  %v1120_v45 = vld [vmem:[%s1727_s1 + $0x174] sm:$0xf]  ;;  %v1054_v46 = vld [vmem:[%s1727_s1 + $0x230] sm:$0xf]  ;;  %v835_v49 = vor.u32 %v1088_v36, %v832_v37  ;;  %v1436_v57 = vor.u32 %v1065_v41, %v744_v42 }
  0x1b   :  { %584 = vmatpush.bf16.msra.mxu3 %v983_v10  ;;  %v1145_v47 = vld [vmem:[%s1727_s1 + $0x234] sm:$0xf0]  ;;  %v960_v50 = vld [vmem:[%s1727_s1 + $0x178] sm:$0xf0]  ;;  %v1102_v51 = vld [vmem:[%s1727_s1 + $0xe4] sm:$0xf]  ;;  %v1428_v54 = vor.u32 %v1067_v40, %v742_v35 }
  0x1c   :  { %528 = vmatpush.bf16.msra.mxu0 %v783_v17  ;;  %v888_v52 = vld [vmem:[%s1727_s1 + $0xe8] sm:$0xf0]  ;;  %v1086_v55 = vld [vmem:[%s1727_s1 + $0x64] sm:$0xf]  ;;  %v1055_v58 = vor.u32 %v1145_v47, %v1054_v46  ;;  %v963_v59 = vor.u32 %v1120_v45, %v960_v50  ;;  %v1046_v62 = vld [vmem:[%s1727_s1 + $0x220] sm:$0xf] }
  0x1d   :  { %547 = vmatpush.bf16.msra.mxu1 %v847_v21  ;;  %v824_v56 = vld [vmem:[%s1727_s1 + $0x68] sm:$0xf0]  ;;  %v891_v60 = vor.u32 %v1102_v51, %v888_v52  ;;  %v1118_v61 = vld [vmem:[%s1727_s1 + $0x164] sm:$0xf]  ;;  %v1143_v63 = vld [vmem:[%s1727_s1 + $0x224] sm:$0xf0] }
  0x1e   :  { %566 = vmatpush.bf16.msra.mxu2 %v911_v22  ;;  %v827_v0 = vor.u32 %v1086_v55, %v824_v56  ;;  %v952_v1 = vld [vmem:[%s1727_s1 + $0x168] sm:$0xf0]  ;;  %v1100_v2 = vld [vmem:[%s1727_s1 + $0xd4] sm:$0xf]  ;;  %v880_v3 = vld [vmem:[%s1727_s1 + $0xd8] sm:$0xf0]  ;;  %v1047_v6 = vor.u32 %v1143_v63, %v1046_v62 }
  0x1f   :  { %585 = vmatpush.bf16.msra.mxu3 %v975_v26  ;;  %v1084_v4 = vld [vmem:[%s1727_s1 + $0x54] sm:$0xf]  ;;  %v816_v5 = vld [vmem:[%s1727_s1 + $0x58] sm:$0xf0]  ;;  %v955_v7 = vor.u32 %v1118_v61, %v952_v1  ;;  %v883_v8 = vor.u32 %v1100_v2, %v880_v3  ;;  %v1098_v12 = vld [vmem:[%s1727_s1 + $0xc4] sm:$0xf] }
  0x20   :  { %529 = vmatpush.bf16.msra.mxu0 %v775_v34  ;;  %v1116_v9 = vld [vmem:[%s1727_s1 + $0x154] sm:$0xf]  ;;  %v819_v10 = vor.u32 %v1084_v4, %v816_v5  ;;  %v944_v11 = vld [vmem:[%s1727_s1 + $0x158] sm:$0xf0]  ;;  %v872_v13 = vld [vmem:[%s1727_s1 + $0xc8] sm:$0xf0] }
  0x21   :  { %548 = vmatpush.bf16.msra.mxu1 %v839_v38  ;;  %v1082_v14 = vld [vmem:[%s1727_s1 + $0x44] sm:$0xf]  ;;  %v808_v15 = vld [vmem:[%s1727_s1 + $0x48] sm:$0xf0]  ;;  %v1038_v17 = vld [vmem:[%s1727_s1 + $0x210] sm:$0xf]  ;;  %v947_v19 = vor.u32 %v1116_v9, %v944_v11  ;;  %v875_v20 = vor.u32 %v1098_v12, %v872_v13 }
  0x22   :  { %567 = vmatpush.bf16.msra.mxu2 %v903_v39  ;;  %v1114_v16 = vld [vmem:[%s1727_s1 + $0x144] sm:$0xf]  ;;  %v1141_v18 = vld [vmem:[%s1727_s1 + $0x214] sm:$0xf0]  ;;  %v936_v21 = vld [vmem:[%s1727_s1 + $0x148] sm:$0xf0]  ;;  %v811_v25 = vor.u32 %v1082_v14, %v808_v15 }
  0x23   :  { %586 = vmatpush.bf16.msra.mxu3 %v967_v43  ;;  %530 = vmatmul.bf16.vlgmr.msra.gmra.mxu0 %v1415_v48  ;;  %v754_v22 = vld [vmem:[%s1728_s0 + $0x28] sm:$0xf]  ;;  %v1071_v23 = vld [vmem:[%s1728_s0 + $0x38] sm:$0xf0]  ;;  %v1039_v24 = vor.u32 %v1141_v18, %v1038_v17  ;;  %v1069_v26 = vld [vmem:[%s1728_s0 + $0x2c] sm:$0xf]  ;;  %v939_v39 = vor.u32 %v1114_v16, %v936_v21 }
  0x24   :  { %549 = vmatmul.bf16.vlgmr.msra.gmra.mxu1 %v1426_v53  ;;  %602 = vmatpush.bf16.msrb.mxu0 %v1055_v58  ;;  %v756_v27 = vld [vmem:[%s1728_s0 + $0x3c] sm:$0xf0]  ;;  %v762_v28 = vld [vmem:[%s1728_s0 + $0x30] sm:$0xf]  ;;  %v1096_v29 = vld [vmem:[%s1727_s1 + $0xb4] sm:$0xf] }
  0x25   :  { %617 = vmatpush.bf16.msrb.mxu1 %v835_v49  ;;  %568 = vmatmul.bf16.vlgmr.msra.gmra.mxu2 %v1428_v54  ;;  %v864_v30 = vld [vmem:[%s1727_s1 + $0xb8] sm:$0xf0]  ;;  %v1080_v31 = vld [vmem:[%s1727_s1 + $0x34] sm:$0xf]  ;;  %v1030_v33 = vld [vmem:[%s1727_s1 + $0x200] sm:$0xf]  ;;  %v1558_v50 = vor.u32 %v1069_v26, %v756_v27 }
  0x26   :  { %636 = vmatpush.bf16.msrb.mxu2 %v899_v44  ;;  %587 = vmatmul.bf16.vlgmr.msra.gmra.mxu3 %v1436_v57  ;;  %v800_v32 = vld [vmem:[%s1727_s1 + $0x38] sm:$0xf0]  ;;  %v1139_v34 = vld [vmem:[%s1727_s1 + $0x204] sm:$0xf0]  ;;  %v1072_v35 = vld [vmem:[%s1728_s0 + $0x40] sm:$0xf0]  ;;  %v867_v40 = vor.u32 %v1096_v29, %v864_v30  ;;  %v1547_v44 = vor.u32 %v1071_v23, %v754_v22 }
  0x27   :  { %655 = vmatpush.bf16.msrb.mxu3 %v963_v59  ;;  %v1070_v36 = vld [vmem:[%s1728_s0 + $0x34] sm:$0xf]  ;;  %v764_v37 = vld [vmem:[%s1728_s0 + $0x44] sm:$0xf0]  ;;  %v1031_v38 = vor.u32 %v1139_v34, %v1030_v33  ;;  %v928_v42 = vld [vmem:[%s1727_s1 + $0x138] sm:$0xf0]  ;;  %v803_v45 = vor.u32 %v1080_v31, %v800_v32  ;;  %v1560_v51 = vor.u32 %v1072_v35, %v762_v28 }
  0x28   :  { %603 = vmatpush.bf16.msrb.mxu0 %v1047_v6  ;;  %v1112_v41 = vld [vmem:[%s1727_s1 + $0x134] sm:$0xf]  ;;  %v1094_v43 = vld [vmem:[%s1727_s1 + $0xa4] sm:$0xf]  ;;  %v856_v46 = vld [vmem:[%s1727_s1 + $0xa8] sm:$0xf0]  ;;  %v1568_v56 = vor.u32 %v1070_v36, %v764_v37 }
  0x29   :  { %618 = vmatpush.bf16.msrb.mxu1 %v827_v0  ;;  %v1136_v47 = vld [vmem:[%s1727_s1 + $0x1f4] sm:$0xf]  ;;  %v1024_v49 = vld [vmem:[%s1727_s1 + $0x1f8] sm:$0xf0]  ;;  %v1078_v52 = vld [vmem:[%s1727_s1 + $0x24] sm:$0xf]  ;;  %v931_v59 = vor.u32 %v1112_v41, %v928_v42 }
  0x2a   :  { %637 = vmatpush.bf16.msrb.mxu2 %v891_v60  ;;  %v792_v55 = vld [vmem:[%s1727_s1 + $0x28] sm:$0xf0]  ;;  %v1027_v58 = vor.u32 %v1136_v47, %v1024_v49  ;;  %v859_v60 = vor.u32 %v1094_v43, %v856_v46  ;;  %v1110_v61 = vld [vmem:[%s1727_s1 + $0x124] sm:$0xf]  ;;  %v1092_v2 = vld [vmem:[%s1727_s1 + $0x94] sm:$0xf] }
  0x2b   :  { %656 = vmatpush.bf16.msrb.mxu3 %v955_v7  ;;  %v1134_v62 = vld [vmem:[%s1727_s1 + $0x1e4] sm:$0xf]  ;;  %v1016_v63 = vld [vmem:[%s1727_s1 + $0x1e8] sm:$0xf0]  ;;  %v795_v0 = vor.u32 %v1078_v52, %v792_v55  ;;  %v848_v3 = vld [vmem:[%s1727_s1 + $0x98] sm:$0xf0] }
  0x2c   :  { %604 = vmatpush.bf16.msrb.mxu0 %v1039_v24  ;;  %v920_v1 = vld [vmem:[%s1727_s1 + $0x128] sm:$0xf0]  ;;  %v1076_v4 = vld [vmem:[%s1727_s1 + $0x14] sm:$0xf]  ;;  %v784_v5 = vld [vmem:[%s1727_s1 + $0x18] sm:$0xf0]  ;;  %v1019_v6 = vor.u32 %v1134_v62, %v1016_v63 }
  0x2d   :  { %619 = vmatpush.bf16.msrb.mxu1 %v819_v10  ;;  %v923_v7 = vor.u32 %v1110_v61, %v920_v1  ;;  %v1108_v9 = vld [vmem:[%s1727_s1 + $0x114] sm:$0xf]  ;;  %v1008_v11 = vld [vmem:[%s1727_s1 + $0x1d8] sm:$0xf0]  ;;  %v787_v12 = vor.u32 %v1076_v4, %v784_v5  ;;  %v1090_v14 = vld [vmem:[%s1727_s1 + $0x84] sm:$0xf] }
  0x2e   :  { %638 = vmatpush.bf16.msrb.mxu2 %v883_v8  ;;  %v851_v8 = vor.u32 %v1092_v2, %v848_v3  ;;  %v1132_v10 = vld [vmem:[%s1727_s1 + $0x1d4] sm:$0xf]  ;;  %v912_v13 = vld [vmem:[%s1727_s1 + $0x118] sm:$0xf0]  ;;  %v840_v15 = vld [vmem:[%s1727_s1 + $0x88] sm:$0xf0] }
  0x2f   :  { %657 = vmatpush.bf16.msrb.mxu3 %v947_v19  ;;  %v1074_v16 = vld [vmem:[%s1727_s1 + $0x4] sm:$0xf]  ;;  %v776_v17 = vld [vmem:[%s1727_s1 + $0x8] sm:$0xf0]  ;;  %v1144_v18 = vld [vmem:[%s1727_s1 + $0x234] sm:$0xf]  ;;  %v915_v21 = vor.u32 %v1108_v9, %v912_v13  ;;  %v843_v22 = vor.u32 %v1090_v14, %v840_v15 }
  0x30   :  { %605 = vmatpush.bf16.msrb.mxu0 %v1031_v38  ;;  %v1056_v19 = vld [vmem:[%s1727_s1 + $0x238] sm:$0xf0]  ;;  %v1130_v23 = vld [vmem:[%s1727_s1 + $0x1c4] sm:$0xf]  ;;  %v1000_v24 = vld [vmem:[%s1727_s1 + $0x1c8] sm:$0xf0] }
  0x31   :  { %620 = vmatpush.bf16.msrb.mxu1 %v811_v25  ;;  %v779_v25 = vor.u32 %v1074_v16, %v776_v17  ;;  %v1106_v26 = vld [vmem:[%s1727_s1 + $0x104] sm:$0xf]  ;;  %v904_v27 = vld [vmem:[%s1727_s1 + $0x108] sm:$0xf0]  ;;  %v750_v28 = vld [vmem:[%s1728_s0 + $0x10] sm:$0xf]  ;;  %v1059_v30 = vor.u32 %v1144_v18, %v1056_v19  ;;  %v1003_v31 = vor.u32 %v1130_v23, %v1000_v24 }
  0x32   :  { %639 = vmatpush.bf16.msrb.mxu2 %v875_v20  ;;  %v1011_v20 = vor.u32 %v1132_v10, %v1008_v11  ;;  %v1068_v29 = vld [vmem:[%s1728_s0 + $0x20] sm:$0xf0]  ;;  %v907_v32 = vor.u32 %v1106_v26, %v904_v27  ;;  %v1048_v35 = vld [vmem:[%s1727_s1 + $0x228] sm:$0xf0]  ;;  %v1128_v36 = vld [vmem:[%s1727_s1 + $0x1b4] sm:$0xf] }
  0x33   :  { %658 = vmatpush.bf16.msrb.mxu3 %v939_v39  ;;  %535 = vmatmul.bf16.gmra.mxu0 %v1547_v44  ;;  %v1142_v33 = vld [vmem:[%s1727_s1 + $0x224] sm:$0xf]  ;;  %v751_v34 = vor.u32 %v1068_v29, %v750_v28  ;;  %v992_v37 = vld [vmem:[%s1727_s1 + $0x1b8] sm:$0xf0]  ;;  %v984_v43 = vld [vmem:[%s1727_s1 + $0x1a8] sm:$0xf0] }
  0x34   :  { %554 = vmatmul.bf16.gmra.mxu1 %v1558_v50  ;;  %674 = vmatpush.bf16.msra.mxu0 %v1027_v58  ;;  %v1051_v38 = vor.u32 %v1142_v33, %v1048_v35  ;;  %v995_v39 = vor.u32 %v1128_v36, %v992_v37  ;;  %v1040_v41 = vld [vmem:[%s1727_s1 + $0x218] sm:$0xf0]  ;;  %v1126_v42 = vld [vmem:[%s1727_s1 + $0x1a4] sm:$0xf]  ;;  %v1124_v47 = vld [vmem:[%s1727_s1 + $0x194] sm:$0xf] }
  0x35   :  { %621 = vmatpush.bf16.msrb.mxu1 %v803_v45  ;;  %573 = vmatmul.bf16.gmra.mxu2 %v1560_v51  ;;  %v987_v46 = vor.u32 %v1126_v42, %v984_v43  ;;  %v976_v49 = vld [vmem:[%s1727_s1 + $0x198] sm:$0xf0]  ;;  %v1122_v55 = vld [vmem:[%s1727_s1 + $0x184] sm:$0xf]  ;;  %v99_v16 = vld [vmem:[%s1729_s2] sm:$0x3] }
  0x36   :  { %640 = vmatpush.bf16.msrb.mxu2 %v867_v40  ;;  %592 = vmatmul.bf16.gmra.mxu3 %v1568_v56  ;;  %v1140_v40 = vld [vmem:[%s1727_s1 + $0x214] sm:$0xf]  ;;  %v101_v17 = vperm.slane %v99_v16, 0  ;;  %v102_v23 = vperm.slane %v99_v16, 1 }
  0x37   :  { %659 = vmatpush.bf16.msrb.mxu3 %v931_v59  ;;  %v1043_v45 = vor.u32 %v1140_v40, %v1040_v41  ;;  %v770_v59 = vld [vmem:[%s1728_s0 + $0x38] sm:$0xf] }
  0x38   :  { %675 = vmatpush.bf16.msra.mxu0 %v1019_v6 }
  0x39   :  { %622 = vmatpush.bf16.msrb.mxu1 %v795_v0 }
  0x3a   :  { %641 = vmatpush.bf16.msrb.mxu2 %v859_v60  ;;  %v1073_v60 = vld [vmem:[%s1728_s0 + $0x48] sm:$0xf0] }
  0x3b   :  { %660 = vmatpush.bf16.msrb.mxu3 %v923_v7  ;;  %v771_v62 = vor.u32 %v1073_v60, %v770_v59 }
  0x3c   :  { %676 = vmatpush.bf16.msra.mxu0 %v1011_v20 }
  0x3d   :  { %623 = vmatpush.bf16.msrb.mxu1 %v787_v12 }
  0x3e   :  { %642 = vmatpush.bf16.msrb.mxu2 %v851_v8 }
  0x3f   :  { %661 = vmatpush.bf16.msrb.mxu3 %v915_v21 }
  0x40   :  { %677 = vmatpush.bf16.msra.mxu0 %v1003_v31 }
  0x41   :  { %624 = vmatpush.bf16.msrb.mxu1 %v779_v25 }
  0x42   :  { %643 = vmatpush.bf16.msrb.mxu2 %v843_v22 }
  0x43   :  { %662 = vmatpush.bf16.msrb.mxu3 %v907_v32  ;;  %1060 = vmatmul.msk.bf16.vlgmr.msrb.gmra.mxu0 %vm515_vm0, %v751_v34 }
  0x44   :  { %625 = vmatmul.bf16.vlgmr.msrb.gmra.mxu1 %v1415_v48  ;;  %678 = vmatpush.bf16.msra.mxu0 %v995_v39  ;;  %v1138_v48 = vld [vmem:[%s1727_s1 + $0x204] sm:$0xf] }
  0x45   :  { %697 = vmatpush.bf16.msra.mxu1 %v1059_v30  ;;  %644 = vmatmul.bf16.vlgmr.msrb.gmra.mxu2 %v1426_v53  ;;  %v1032_v53 = vld [vmem:[%s1727_s1 + $0x208] sm:$0xf0] }
  0x46   :  { %1146 = vmatpush.bf16.msra.mxu2 %v1027_v58  ;;  %663 = vmatmul.bf16.vlgmr.msrb.gmra.mxu3 %v1428_v54  ;;  %v979_v54 = vor.u32 %v1124_v47, %v976_v49  ;;  %v1035_v52 = vor.u32 %v1138_v48, %v1032_v53  ;;  %v968_v58 = vld [vmem:[%s1727_s1 + $0x188] sm:$0xf0] }
  0x47   :  { %1154 = vmatpush.bf16.msra.mxu3 %v1059_v30  ;;  %v971_v61 = vor.u32 %v1122_v55, %v968_v58 }
  0x48   :  { %679 = vmatpush.bf16.msra.mxu0 %v987_v46 }
  0x49   :  { %698 = vmatpush.bf16.msra.mxu1 %v1051_v38 }
  0x4a   :  { %1147 = vmatpush.bf16.msra.mxu2 %v1019_v6 }
  0x4b   :  { %1155 = vmatpush.bf16.msra.mxu3 %v1051_v38 }
  0x4c   :  { %680 = vmatpush.bf16.msra.mxu0 %v979_v54 }
  0x4d   :  { %699 = vmatpush.bf16.msra.mxu1 %v1043_v45 }
  0x4e   :  { %1148 = vmatpush.bf16.msra.mxu2 %v1011_v20 }
  0x4f   :  { %1156 = vmatpush.bf16.msra.mxu3 %v1043_v45 }
  0x50   :  { %681 = vmatpush.bf16.msra.mxu0 %v971_v61 }
  0x51   :  { %700 = vmatpush.bf16.msra.mxu1 %v1035_v52 }
  0x52   :  { %1149 = vmatpush.bf16.msra.mxu2 %v1003_v31 }
  0x53   :  { %1157 = vmatpush.bf16.msra.mxu3 %v1035_v52  ;;  %1061 = vmatmul.msk.bf16.gmra.mxu0 %vm515_vm0, %v771_v62 }
  0x54   :  { %630 = vmatmul.bf16.gmra.mxu1 %v1547_v44 }
  0x55   :  { %649 = vmatmul.bf16.gmra.mxu2 %v1558_v50 }
  0x56   :  { %1150 = vmatpush.bf16.msra.mxu2 %v995_v39  ;;  %668 = vmatmul.bf16.gmra.mxu3 %v1560_v51 }
  0x5a   :  { %1151 = vmatpush.bf16.msra.mxu2 %v987_v46 }
  0x5e   :  { %1152 = vmatpush.bf16.msra.mxu2 %v979_v54 }
  0x62   :  { %1153 = vmatpush.bf16.msra.mxu2 %v971_v61 }
  0x63   :  { %682 = vmatmul.bf16.vlgmr.msra.gmra.mxu0 %v1436_v57 }
  0x64   :  { %1062 = vmatmul.msk.bf16.vlgmr.msra.gmra.mxu1 %vm515_vm0, %v751_v34 }
  0x65   :  { %687 = vmatmul.bf16.vlgmr.msra.gmra.mxu2 %v1568_v56 }
  0x66   :  { %1063 = vmatmul.msk.bf16.vlgmr.msra.gmra.mxu3 %vm515_vm0, %v771_v62 }
  0xa0   :  { %v531_v63 = vpop.f32.mrf.mxu0 }
  0xa1   :  { %v550_v0 = vpop.f32.mrf.mxu1  ;;  %v532_v22 = vadd.f32 %v531_v63, %v101_v17 }
  0xa3   :  { %v551_v24 = vadd.f32 %v550_v0, %v532_v22 }
  0xa8   :  { %v569_v1 = vpop.f32.mrf.mxu2  ;;  %v533_v44 = vpop.f32.mrf.mxu0 }
  0xa9   :  { %v588_v2 = vpop.f32.mrf.mxu3  ;;  %v552_v3 = vpop.f32.mrf.mxu1  ;;  %v570_v31 = vadd.f32 %v569_v1, %v551_v24  ;;  %v534_v33 = vadd.f32 %v533_v44, %v101_v17 }
  0xab   :  { %v589_v36 = vadd.f32 %v588_v2, %v570_v31  ;;  %v553_v41 = vadd.f32 %v552_v3, %v534_v33 }
  0xb0   :  { %v571_v50 = vpop.f32.mrf.mxu2  ;;  %v536_v51 = vpop.f32.mrf.mxu0 }
  0xb1   :  { %v590_v4 = vpop.f32.mrf.mxu3  ;;  %v555_v5 = vpop.f32.mrf.mxu1  ;;  %v537_v30 = vadd.f32 %v536_v51, %v101_v17  ;;  %v572_v48 = vadd.f32 %v571_v50, %v553_v41 }
  0xb3   :  { %v556_v34 = vadd.f32 %v555_v5, %v537_v30  ;;  %v591_v61 = vadd.f32 %v590_v4, %v572_v48 }
  0xb8   :  { %v574_v6 = vpop.f32.mrf.mxu2  ;;  %v538_v8 = vpop.f32.mrf.mxu0 }
  0xb9   :  { %v593_v7 = vpop.f32.mrf.mxu3  ;;  %v557_v57 = vpop.f32.mrf.mxu1  ;;  %v575_v47 = vadd.f32 %v574_v6, %v556_v34  ;;  %v539_v52 = vadd.f32 %v538_v8, %v101_v17 }
  0xbb   :  { %v594_v59 = vadd.f32 %v593_v7, %v575_v47  ;;  %v558_v1 = vadd.f32 %v557_v57, %v539_v52 }
  0xc0   :  { %v1706_v9 = vpop.f32.mrf.mxu2  ;;  %v607_v10 = vpop.f32.mrf.mxu0 }
  0xc1   :  { %v1708_v56 = vpop.f32.mrf.mxu3  ;;  %v626_v11 = vpop.f32.mrf.mxu1  ;;  %v608_v42 = vadd.f32 %v607_v10, %v589_v36  ;;  %v577_v8 = vadd.f32 %v1706_v9, %v558_v1 }
  0xc2   :  { %v627_v25 = vadd.f32 %v626_v11, %v102_v23 }
  0xc3   :  { %v712_v55 = vmax.f32 %v608_v42, 0.0  ;;  %v596_v16 = vadd.f32 %v1708_v56, %v577_v8 }
  0xc8   :  { %v645_v12 = vpop.f32.mrf.mxu2  ;;  %v609_v14 = vpop.f32.mrf.mxu0 }
  0xc9   :  { %v664_v13 = vpop.f32.mrf.mxu3  ;;  %v628_v15 = vpop.f32.mrf.mxu1  ;;  %v646_v32 = vadd.f32 %v645_v12, %v627_v25  ;;  %v610_v6 = vadd.f32 %v609_v14, %v591_v61 }
  0xca   :  { %v629_v43 = vadd.f32 %v628_v15, %v102_v23 }
  0xcb   :  { %v665_v37 = vadd.f32 %v664_v13, %v646_v32  ;;  %v714_v57 = vmax.f32 %v610_v6, 0.0 }
  0xd0   :  { %v647_v18 = vpop.f32.mrf.mxu2  ;;  %v612_v20 = vpop.f32.mrf.mxu0 }
  0xd1   :  { %v666_v19 = vpop.f32.mrf.mxu3  ;;  %v631_v21 = vpop.f32.mrf.mxu1  ;;  %v648_v53 = vadd.f32 %v647_v18, %v629_v43  ;;  %v613_v2 = vadd.f32 %v612_v20, %v594_v59 }
  0xd2   :  { %v632_v35 = vadd.f32 %v631_v21, %v102_v23 }
  0xd3   :  { %v667_v62 = vadd.f32 %v666_v19, %v648_v53  ;;  %v716_v12 = vmax.f32 %v613_v2, 0.0 }
  0xd8   :  { %v650_v26 = vpop.f32.mrf.mxu2  ;;  %v614_v28 = vpop.f32.mrf.mxu0 }
  0xd9   :  { %v669_v27 = vpop.f32.mrf.mxu3  ;;  %v633_v29 = vpop.f32.mrf.mxu1  ;;  %v651_v49 = vadd.f32 %v650_v26, %v632_v35  ;;  %v615_v20 = vadd.f32 %v614_v28, %v596_v16 }
  0xda   :  { %v634_v44 = vadd.f32 %v633_v29, %v102_v23 }
  0xdb   :  { %v670_v60 = vadd.f32 %v669_v27, %v651_v49  ;;  %v718_v23 = vmax.f32 %v615_v20, 0.0 }
  0xe0   :  { %v652_v38 = vpop.f32.mrf.mxu2  ;;  %v683_v40 = vpop.f32.mrf.mxu0 }
  0xe1   :  { %v671_v39 = vpop.f32.mrf.mxu3  ;;  %v684_v45 = vadd.f32 %v683_v40, %v665_v37  ;;  %v702_v46 = vpop.f32.mrf.mxu1  ;;  %v653_v7 = vadd.f32 %v652_v38, %v634_v44 }
  0xe3   :  { %v703_v54 = vadd.f32 %v702_v46, %v684_v45  ;;  %v672_v17 = vadd.f32 %v671_v39, %v653_v7 }
  0xe5   :  { %v713_v58 = vmax.f32 %v703_v54, 0.0 }
  0xe7   :  { %v720_v63 = vpack.c.bf16 %v713_v58, %v712_v55 }
  0xe8   :  { %v688_v0 = vpop.f32.mrf.mxu2  ;;  %v685_v5 = vpop.f32.mrf.mxu0 }
  0xe9   :  { %v689_v3 = vadd.f32 %v688_v0, %v670_v60  ;;  %v707_v51 = vpop.f32.mrf.mxu3  ;;  %724 = vst [vmem:[%s1730_s3] sm:$0xff] %v720_v63  ;;  %v686_v50 = vadd.f32 %v685_v5, %v667_v62  ;;  %v704_v4 = vpop.f32.mrf.mxu1 }
  0xeb   :  { %v708_v10 = vadd.f32 %v707_v51, %v689_v3  ;;  %v705_v11 = vadd.f32 %v704_v4, %v686_v50 }
  0xed   :  { %v717_v13 = vmax.f32 %v708_v10, 0.0  ;;  %v715_v15 = vmax.f32 %v705_v11, 0.0 }
  0xef   :  { %v722_v18 = vpack.c.bf16 %v717_v13, %v716_v12  ;;  %v721_v14 = vpack.c.bf16 %v715_v15, %v714_v57 }
  0xf0   :  { %v690_v19 = vpop.f32.mrf.mxu2 }
  0xf1   :  { %726 = vst [vmem:[%s1730_s3 + $0x10] sm:$0xff] %v722_v18  ;;  %v691_v9 = vadd.f32 %v690_v19, %v672_v17  ;;  %v709_v21 = vpop.f32.mrf.mxu3 }
  0xf2   :  { %725 = vst [vmem:[%s1730_s3 + $0x8] sm:$0xff] %v721_v14 }
  0xf3   :  { %v710_v22 = vadd.f32 %v709_v21, %v691_v9 }
  0xf5   :  { %v719_v24 = vmax.f32 %v710_v22, 0.0 }
  0xf7   :  { %v723_v25 = vpack.c.bf16 %v719_v24, %v718_v23 }
  0xf9   :  { %727 = vst [vmem:[%s1730_s3 + $0x18] sm:$0xff] %v723_v25 }

// kernel: beta_vae_forward.17
= control target key start
LH: loop header
LB: loop body
LE: loop exit
PB: predicated region body
PF: predicated region fallthrough
CT: control target
= control target key end

     0   :  { %vm555_vm0 = vcmask 523264   ;;  %s1794_s1 = inlined_call_operand.vmem [shape: bf16[576,128], index: 1, kind: input, shape index: {}]   ;;  %s1795_s2 = inlined_call_operand.vmem [shape: f32[1,128], index: 2, kind: input, shape index: {}]   ;;  %s1796_s0 = inlined_call_operand.vmem [shape: bf16[128,576], index: 0, kind: input, shape index: {}]   ;;  %s1797_s3 = inlined_call_operand.vmem [shape: bf16[128,128], index: 3, kind: output, shape index: {}]  }
   0x1   :  { %v1236_v0 = vld [vmem:[%s1794_s1 + $0x38] sm:$0xff]  ;;  %v1235_v1 = vld [vmem:[%s1794_s1 + $0x30] sm:$0xff]  ;;  %v1234_v2 = vld [vmem:[%s1794_s1 + $0x28] sm:$0xff] }
   0x2   :  { %1312 = vmatpush.bf16.msra.mxu1 %v1236_v0  ;;  %1313 = vmatpush.bf16.msra.mxu2 %v1236_v0  ;;  %v1233_v3 = vld [vmem:[%s1794_s1 + $0x20] sm:$0xff]  ;;  %v1232_v4 = vld [vmem:[%s1794_s1 + $0x18] sm:$0xff]  ;;  %v1231_v5 = vld [vmem:[%s1794_s1 + $0x10] sm:$0xff] }
   0x3   :  { %1314 = vmatpush.bf16.msra.mxu3 %v1236_v0  ;;  %580 = vmatpush.bf16.msra.mxu0 %v1236_v0  ;;  %v1230_v6 = vld [vmem:[%s1794_s1 + $0x8] sm:$0xff]  ;;  %v1229_v7 = vld [vmem:[%s1794_s1] sm:$0xff]  ;;  %v919_v8 = vld [vmem:[%s1796_s0 + $0x50] sm:$0xf] }
   0x4   :  { %v1201_v9 = vld [vmem:[%s1796_s0 + $0x60] sm:$0xf0]  ;;  %v959_v10 = vld [vmem:[%s1796_s0 + $0xa0] sm:$0xf]  ;;  %v1211_v11 = vld [vmem:[%s1796_s0 + $0xb0] sm:$0xf0] }
   0x5   :  { %v999_v12 = vld [vmem:[%s1796_s0 + $0xf0] sm:$0xf]  ;;  %v1221_v13 = vld [vmem:[%s1796_s0 + $0x100] sm:$0xf0]  ;;  %v879_v14 = vld [vmem:[%s1796_s0] sm:$0xf]  ;;  %v920_v18 = vor.u32 %v1201_v9, %v919_v8  ;;  %v960_v19 = vor.u32 %v1211_v11, %v959_v10 }
   0x6   :  { %1315 = vmatpush.bf16.msra.mxu1 %v1235_v1  ;;  %1316 = vmatpush.bf16.msra.mxu2 %v1235_v1  ;;  %v1191_v15 = vld [vmem:[%s1796_s0 + $0x10] sm:$0xf0]  ;;  %v1252_v16 = vld [vmem:[%s1794_s1 + $0xb8] sm:$0xff]  ;;  %v1000_v20 = vor.u32 %v1221_v13, %v999_v12  ;;  %v1250_v28 = vld [vmem:[%s1794_s1 + $0xa8] sm:$0xff] }
   0x7   :  { %1317 = vmatpush.bf16.msra.mxu3 %v1235_v1  ;;  %581 = vmatpush.bf16.msra.mxu0 %v1235_v1  ;;  %v1244_v17 = vld [vmem:[%s1794_s1 + $0x78] sm:$0xff]  ;;  %v880_v21 = vor.u32 %v1191_v15, %v879_v14  ;;  %v1251_v24 = vld [vmem:[%s1794_s1 + $0xb0] sm:$0xff]  ;;  %v1242_v29 = vld [vmem:[%s1794_s1 + $0x68] sm:$0xff] }
   0x8   :  { %v1260_v22 = vld [vmem:[%s1794_s1 + $0xf8] sm:$0xff]  ;;  %v1243_v25 = vld [vmem:[%s1794_s1 + $0x70] sm:$0xff]  ;;  %v1258_v30 = vld [vmem:[%s1794_s1 + $0xe8] sm:$0xff] }
   0x9   :  { %v1264_v23 = vld [vmem:[%s1794_s1 + $0x118] sm:$0xff]  ;;  %v1259_v26 = vld [vmem:[%s1794_s1 + $0xf0] sm:$0xff]  ;;  %v1262_v31 = vld [vmem:[%s1794_s1 + $0x108] sm:$0xff] }
   0xa   :  { %1318 = vmatpush.bf16.msra.mxu1 %v1234_v2  ;;  %1319 = vmatpush.bf16.msra.mxu2 %v1234_v2  ;;  %v1263_v27 = vld [vmem:[%s1794_s1 + $0x110] sm:$0xff]  ;;  %v1249_v32 = vld [vmem:[%s1794_s1 + $0xa0] sm:$0xff]  ;;  %v939_v35 = vld [vmem:[%s1796_s0 + $0x78] sm:$0xf] }
   0xb   :  { %1320 = vmatpush.bf16.msra.mxu3 %v1234_v2  ;;  %582 = vmatpush.bf16.msra.mxu0 %v1234_v2  ;;  %v1241_v33 = vld [vmem:[%s1794_s1 + $0x60] sm:$0xff]  ;;  %v1206_v36 = vld [vmem:[%s1796_s0 + $0x88] sm:$0xf0]  ;;  %v979_v37 = vld [vmem:[%s1796_s0 + $0xc8] sm:$0xf] }
   0xc   :  { %v1257_v34 = vld [vmem:[%s1794_s1 + $0xe0] sm:$0xff]  ;;  %v1216_v38 = vld [vmem:[%s1796_s0 + $0xd8] sm:$0xf0]  ;;  %v1019_v39 = vld [vmem:[%s1796_s0 + $0x118] sm:$0xf]  ;;  %v940_v46 = vor.u32 %v1206_v36, %v939_v35 }
   0xd   :  { %v1226_v40 = vld [vmem:[%s1796_s0 + $0x128] sm:$0xf0]  ;;  %v899_v41 = vld [vmem:[%s1796_s0 + $0x28] sm:$0xf]  ;;  %v1196_v42 = vld [vmem:[%s1796_s0 + $0x38] sm:$0xf0]  ;;  %v980_v47 = vor.u32 %v1216_v38, %v979_v37 }
   0xe   :  { %1321 = vmatpush.bf16.msra.mxu1 %v1233_v3  ;;  %1322 = vmatpush.bf16.msra.mxu2 %v1233_v3  ;;  %v1261_v43 = vld [vmem:[%s1794_s1 + $0x100] sm:$0xff]  ;;  %v1248_v44 = vld [vmem:[%s1794_s1 + $0x98] sm:$0xff]  ;;  %v1020_v48 = vor.u32 %v1226_v40, %v1019_v39  ;;  %v900_v49 = vor.u32 %v1196_v42, %v899_v41  ;;  %v1247_v51 = vld [vmem:[%s1794_s1 + $0x90] sm:$0xff] }
   0xf   :  { %1323 = vmatpush.bf16.msra.mxu3 %v1233_v3  ;;  %583 = vmatpush.bf16.msra.mxu0 %v1233_v3  ;;  %v1240_v45 = vld [vmem:[%s1794_s1 + $0x58] sm:$0xff]  ;;  %v1239_v52 = vld [vmem:[%s1794_s1 + $0x50] sm:$0xff]  ;;  %v1246_v54 = vld [vmem:[%s1794_s1 + $0x88] sm:$0xff] }
  0x10   :  { %v1256_v50 = vld [vmem:[%s1794_s1 + $0xd8] sm:$0xff]  ;;  %v1255_v53 = vld [vmem:[%s1794_s1 + $0xd0] sm:$0xff]  ;;  %v1238_v55 = vld [vmem:[%s1794_s1 + $0x48] sm:$0xff] }
  0x11   :  { %v1254_v56 = vld [vmem:[%s1794_s1 + $0xc8] sm:$0xff]  ;;  %v1245_v57 = vld [vmem:[%s1794_s1 + $0x80] sm:$0xff]  ;;  %v881_v61 = vld [vmem:[%s1796_s0 + $0x14] sm:$0xf0] }
  0x12   :  { %1324 = vmatpush.bf16.msra.mxu1 %v1232_v4  ;;  %1325 = vmatpush.bf16.msra.mxu2 %v1232_v4  ;;  %v1237_v58 = vld [vmem:[%s1794_s1 + $0x40] sm:$0xff]  ;;  %v887_v62 = vld [vmem:[%s1796_s0 + $0x8] sm:$0xf]  ;;  %v1192_v63 = vld [vmem:[%s1796_s0 + $0x18] sm:$0xf0] }
  0x13   :  { %1326 = vmatpush.bf16.msra.mxu3 %v1232_v4  ;;  %584 = vmatpush.bf16.msra.mxu0 %v1232_v4  ;;  %v1253_v59 = vld [vmem:[%s1794_s1 + $0xc0] sm:$0xff]  ;;  %v1190_v0 = vld [vmem:[%s1796_s0 + $0xc] sm:$0xf]  ;;  %v895_v2 = vld [vmem:[%s1796_s0 + $0x10] sm:$0xf] }
  0x14   :  { %v1189_v60 = vld [vmem:[%s1796_s0 + $0x4] sm:$0xf]  ;;  %v889_v1 = vld [vmem:[%s1796_s0 + $0x1c] sm:$0xf0]  ;;  %v1194_v8 = vld [vmem:[%s1796_s0 + $0x2c] sm:$0xf] }
  0x15   :  { %v1193_v3 = vld [vmem:[%s1796_s0 + $0x20] sm:$0xf0]  ;;  %v884_v4 = vor.u32 %v1189_v60, %v881_v61  ;;  %v901_v9 = vld [vmem:[%s1796_s0 + $0x3c] sm:$0xf0]  ;;  %v907_v10 = vld [vmem:[%s1796_s0 + $0x30] sm:$0xf] }
  0x16   :  { %1327 = vmatpush.bf16.msra.mxu1 %v1231_v5  ;;  %1328 = vmatpush.bf16.msra.mxu2 %v1231_v5  ;;  %v1197_v11 = vld [vmem:[%s1796_s0 + $0x40] sm:$0xf0]  ;;  %v1195_v12 = vld [vmem:[%s1796_s0 + $0x34] sm:$0xf]  ;;  %v909_v13 = vld [vmem:[%s1796_s0 + $0x44] sm:$0xf0] }
  0x17   :  { %1329 = vmatpush.bf16.msra.mxu3 %v1231_v5  ;;  %585 = vmatpush.bf16.msra.mxu0 %v1231_v5  ;;  %v888_v5 = vor.u32 %v1192_v63, %v887_v62  ;;  %v915_v14 = vld [vmem:[%s1796_s0 + $0x38] sm:$0xf]  ;;  %v1198_v15 = vld [vmem:[%s1796_s0 + $0x48] sm:$0xf0]  ;;  %v1207_v35 = vld [vmem:[%s1796_s0 + $0x90] sm:$0xf0] }
  0x18   :  { %v1205_v36 = vld [vmem:[%s1796_s0 + $0x84] sm:$0xf]  ;;  %v949_v37 = vld [vmem:[%s1796_s0 + $0x94] sm:$0xf0]  ;;  %v955_v38 = vld [vmem:[%s1796_s0 + $0x88] sm:$0xf] }
  0x19   :  { %v1208_v39 = vld [vmem:[%s1796_s0 + $0x98] sm:$0xf0]  ;;  %v952_v42 = vor.u32 %v1205_v36, %v949_v37  ;;  %v1215_v60 = vld [vmem:[%s1796_s0 + $0xd4] sm:$0xf]  ;;  %v989_v61 = vld [vmem:[%s1796_s0 + $0xe4] sm:$0xf0] }
  0x1a   :  { %1330 = vmatpush.bf16.msra.mxu1 %v1230_v6  ;;  %1331 = vmatpush.bf16.msra.mxu2 %v1230_v6  ;;  %v995_v62 = vld [vmem:[%s1796_s0 + $0xd8] sm:$0xf]  ;;  %v1218_v63 = vld [vmem:[%s1796_s0 + $0xe8] sm:$0xf0] }
  0x1b   :  { %1332 = vmatpush.bf16.msra.mxu3 %v1230_v6  ;;  %586 = vmatpush.bf16.msra.mxu0 %v1230_v6  ;;  %v892_v6 = vor.u32 %v1190_v0, %v889_v1 }
  0x1e   :  { %1333 = vmatpush.bf16.msra.mxu1 %v1229_v7  ;;  %1334 = vmatpush.bf16.msra.mxu2 %v1229_v7 }
  0x1f   :  { %1335 = vmatpush.bf16.msra.mxu3 %v1229_v7  ;;  %587 = vmatpush.bf16.msra.mxu0 %v1229_v7  ;;  %v896_v7 = vor.u32 %v1193_v3, %v895_v2  ;;  %v992_v2 = vor.u32 %v1215_v60, %v989_v61  ;;  %v996_v3 = vor.u32 %v1218_v63, %v995_v62 }
  0x21   :  { %598 = vmatmul.bf16.vlgmr.msra.gmra.mxu1 %v920_v18  ;;  %608 = vmatmul.bf16.vlgmr.msra.gmra.mxu2 %v960_v19  ;;  %v912_v18 = vor.u32 %v1195_v12, %v909_v13  ;;  %v916_v19 = vor.u32 %v1198_v15, %v915_v14 }
  0x22   :  { %678 = vmatpush.bf16.msrb.mxu2 %v1252_v16  ;;  %629 = vmatpush.bf16.msrb.mxu1 %v1244_v17  ;;  %v904_v16 = vor.u32 %v1194_v8, %v901_v9  ;;  %v908_v17 = vor.u32 %v1197_v11, %v907_v10  ;;  %v1220_v8 = vld [vmem:[%s1796_s0 + $0xfc] sm:$0xf]  ;;  %v1009_v9 = vld [vmem:[%s1796_s0 + $0x10c] sm:$0xf0]  ;;  %v1015_v10 = vld [vmem:[%s1796_s0 + $0x100] sm:$0xf] }
  0x23   :  { %618 = vmatmul.bf16.vlgmr.msra.gmra.mxu3 %v1000_v20  ;;  %588 = vmatmul.bf16.vlgmr.msra.gmra.mxu0 %v880_v21  ;;  %v1199_v20 = vld [vmem:[%s1796_s0 + $0x54] sm:$0xf]  ;;  %v921_v21 = vld [vmem:[%s1796_s0 + $0x64] sm:$0xf0]  ;;  %v1012_v15 = vor.u32 %v1220_v8, %v1009_v9 }
  0x24   :  { %727 = vmatpush.bf16.msrb.mxu3 %v1260_v22  ;;  %780 = vmatpush.bf16.msrb.mxu0 %v1264_v23  ;;  %v927_v22 = vld [vmem:[%s1796_s0 + $0x58] sm:$0xf]  ;;  %v1202_v23 = vld [vmem:[%s1796_s0 + $0x68] sm:$0xf0]  ;;  %v1223_v11 = vld [vmem:[%s1796_s0 + $0x110] sm:$0xf0] }
  0x26   :  { %679 = vmatpush.bf16.msrb.mxu2 %v1251_v24  ;;  %630 = vmatpush.bf16.msrb.mxu1 %v1243_v25  ;;  %v1200_v24 = vld [vmem:[%s1796_s0 + $0x5c] sm:$0xf]  ;;  %v929_v25 = vld [vmem:[%s1796_s0 + $0x6c] sm:$0xf0] }
  0x28   :  { %728 = vmatpush.bf16.msrb.mxu3 %v1259_v26  ;;  %781 = vmatpush.bf16.msrb.mxu0 %v1263_v27  ;;  %v935_v26 = vld [vmem:[%s1796_s0 + $0x60] sm:$0xf]  ;;  %v1203_v27 = vld [vmem:[%s1796_s0 + $0x70] sm:$0xf0] }
  0x2a   :  { %680 = vmatpush.bf16.msrb.mxu2 %v1250_v28  ;;  %631 = vmatpush.bf16.msrb.mxu1 %v1242_v29  ;;  %v924_v28 = vor.u32 %v1199_v20, %v921_v21  ;;  %v928_v29 = vor.u32 %v1202_v23, %v927_v22 }
  0x2c   :  { %729 = vmatpush.bf16.msrb.mxu3 %v1258_v30  ;;  %782 = vmatpush.bf16.msrb.mxu0 %v1262_v31  ;;  %v932_v30 = vor.u32 %v1200_v24, %v929_v25  ;;  %v936_v31 = vor.u32 %v1203_v27, %v935_v26  ;;  %v1224_v25 = vld [vmem:[%s1796_s0 + $0x11c] sm:$0xf]  ;;  %v1021_v26 = vld [vmem:[%s1796_s0 + $0x12c] sm:$0xf0]  ;;  %v1027_v27 = vld [vmem:[%s1796_s0 + $0x120] sm:$0xf] }
  0x2d   :  { %v1024_v36 = vor.u32 %v1224_v25, %v1021_v26 }
  0x2e   :  { %681 = vmatpush.bf16.msrb.mxu2 %v1249_v32  ;;  %632 = vmatpush.bf16.msrb.mxu1 %v1241_v33  ;;  %v1204_v32 = vld [vmem:[%s1796_s0 + $0x7c] sm:$0xf]  ;;  %v941_v33 = vld [vmem:[%s1796_s0 + $0x8c] sm:$0xf0] }
  0x2f   :  { %v944_v40 = vor.u32 %v1204_v32, %v941_v33  ;;  %v1228_v32 = vld [vmem:[%s1796_s0 + $0x138] sm:$0xf0] }
  0x30   :  { %730 = vmatpush.bf16.msrb.mxu3 %v1257_v34  ;;  %783 = vmatpush.bf16.msrb.mxu0 %v1261_v43  ;;  %v947_v34 = vld [vmem:[%s1796_s0 + $0x80] sm:$0xf]  ;;  %v956_v43 = vor.u32 %v1208_v39, %v955_v38 }
  0x31   :  { %603 = vmatmul.bf16.gmra.mxu1 %v940_v46  ;;  %613 = vmatmul.bf16.gmra.mxu2 %v980_v47  ;;  %v948_v41 = vor.u32 %v1207_v35, %v947_v34  ;;  %v967_v46 = vld [vmem:[%s1796_s0 + $0xa8] sm:$0xf]  ;;  %v1212_v47 = vld [vmem:[%s1796_s0 + $0xb8] sm:$0xf0] }
  0x32   :  { %682 = vmatpush.bf16.msrb.mxu2 %v1248_v44  ;;  %633 = vmatpush.bf16.msrb.mxu1 %v1240_v45  ;;  %v1209_v44 = vld [vmem:[%s1796_s0 + $0xa4] sm:$0xf]  ;;  %v961_v45 = vld [vmem:[%s1796_s0 + $0xb4] sm:$0xf0] }
  0x33   :  { %623 = vmatmul.bf16.gmra.mxu3 %v1020_v48  ;;  %593 = vmatmul.bf16.gmra.mxu0 %v900_v49  ;;  %v1210_v48 = vld [vmem:[%s1796_s0 + $0xac] sm:$0xf]  ;;  %v969_v49 = vld [vmem:[%s1796_s0 + $0xbc] sm:$0xf0] }
  0x34   :  { %731 = vmatpush.bf16.msrb.mxu3 %v1256_v50  ;;  %v975_v50 = vld [vmem:[%s1796_s0 + $0xb0] sm:$0xf] }
  0x36   :  { %683 = vmatpush.bf16.msrb.mxu2 %v1247_v51  ;;  %634 = vmatpush.bf16.msrb.mxu1 %v1239_v52  ;;  %v1213_v51 = vld [vmem:[%s1796_s0 + $0xc0] sm:$0xf0]  ;;  %v964_v52 = vor.u32 %v1209_v44, %v961_v45 }
  0x38   :  { %732 = vmatpush.bf16.msrb.mxu3 %v1255_v53  ;;  %v968_v53 = vor.u32 %v1212_v47, %v967_v46 }
  0x3a   :  { %684 = vmatpush.bf16.msrb.mxu2 %v1246_v54  ;;  %635 = vmatpush.bf16.msrb.mxu1 %v1238_v55  ;;  %v972_v54 = vor.u32 %v1210_v48, %v969_v49  ;;  %v976_v55 = vor.u32 %v1213_v51, %v975_v50 }
  0x3c   :  { %733 = vmatpush.bf16.msrb.mxu3 %v1254_v56  ;;  %v1214_v56 = vld [vmem:[%s1796_s0 + $0xcc] sm:$0xf] }
  0x3e   :  { %685 = vmatpush.bf16.msrb.mxu2 %v1245_v57  ;;  %636 = vmatpush.bf16.msrb.mxu1 %v1237_v58  ;;  %v981_v57 = vld [vmem:[%s1796_s0 + $0xdc] sm:$0xf0]  ;;  %v987_v58 = vld [vmem:[%s1796_s0 + $0xd0] sm:$0xf] }
  0x3f   :  { %v984_v0 = vor.u32 %v1214_v56, %v981_v57 }
  0x40   :  { %734 = vmatpush.bf16.msrb.mxu3 %v1253_v59  ;;  %v1217_v59 = vld [vmem:[%s1796_s0 + $0xe0] sm:$0xf0] }
  0x41   :  { %637 = vmatmul.bf16.vlgmr.msrb.gmra.mxu1 %v884_v4  ;;  %686 = vmatmul.bf16.vlgmr.msrb.gmra.mxu2 %v888_v5  ;;  %v988_v1 = vor.u32 %v1217_v59, %v987_v58  ;;  %v1219_v4 = vld [vmem:[%s1796_s0 + $0xf4] sm:$0xf]  ;;  %v1001_v5 = vld [vmem:[%s1796_s0 + $0x104] sm:$0xf0] }
  0x42   :  { %v1004_v12 = vor.u32 %v1219_v4, %v1001_v5 }
  0x43   :  { %735 = vmatmul.bf16.vlgmr.msrb.gmra.mxu3 %v892_v6  ;;  %1181 = vmatmul.msk.bf16.vlgmr.msrb.gmra.mxu0 %vm555_vm0, %v896_v7  ;;  %v1007_v6 = vld [vmem:[%s1796_s0 + $0xf8] sm:$0xf]  ;;  %v1222_v7 = vld [vmem:[%s1796_s0 + $0x108] sm:$0xf0] }
  0x44   :  { %v1008_v13 = vor.u32 %v1222_v7, %v1007_v6 }
  0x51   :  { %642 = vmatmul.bf16.gmra.mxu1 %v904_v16  ;;  %691 = vmatmul.bf16.gmra.mxu2 %v908_v17  ;;  %v1016_v16 = vor.u32 %v1223_v11, %v1015_v10 }
  0x53   :  { %740 = vmatmul.bf16.gmra.mxu3 %v912_v18  ;;  %1182 = vmatmul.msk.bf16.gmra.mxu0 %vm555_vm0, %v916_v19  ;;  %v1693_v18 = vld [vmem:[%s1795_s2] ss:$0 sm:$0xff] }
  0x61   :  { %647 = vmatmul.bf16.gmra.mxu1 %v924_v28  ;;  %696 = vmatmul.bf16.gmra.mxu2 %v928_v29  ;;  %v1227_v28 = vld [vmem:[%s1796_s0 + $0x130] sm:$0xf0]  ;;  %v1225_v29 = vld [vmem:[%s1796_s0 + $0x124] sm:$0xf] }
  0x62   :  { %v1028_v37 = vor.u32 %v1227_v28, %v1027_v27 }
  0x63   :  { %745 = vmatmul.bf16.gmra.mxu3 %v932_v30  ;;  %1183 = vmatmul.msk.bf16.gmra.mxu0 %vm555_vm0, %v936_v31  ;;  %v1029_v30 = vld [vmem:[%s1796_s0 + $0x134] sm:$0xf0]  ;;  %v1035_v31 = vld [vmem:[%s1796_s0 + $0x128] sm:$0xf] }
  0x71   :  { %652 = vmatmul.bf16.gmra.mxu1 %v944_v40  ;;  %701 = vmatmul.bf16.gmra.mxu2 %v948_v41  ;;  %v1032_v40 = vor.u32 %v1225_v29, %v1029_v30  ;;  %v1036_v41 = vor.u32 %v1228_v32, %v1035_v31 }
  0x73   :  { %750 = vmatmul.bf16.gmra.mxu3 %v952_v42  ;;  %1184 = vmatmul.msk.bf16.gmra.mxu0 %vm555_vm0, %v956_v43 }
  0x81   :  { %657 = vmatmul.bf16.gmra.mxu1 %v964_v52  ;;  %706 = vmatmul.bf16.gmra.mxu2 %v968_v53 }
  0x83   :  { %755 = vmatmul.bf16.gmra.mxu3 %v972_v54  ;;  %1185 = vmatmul.msk.bf16.gmra.mxu0 %vm555_vm0, %v976_v55 }
  0x91   :  { %662 = vmatmul.bf16.gmra.mxu1 %v984_v0  ;;  %711 = vmatmul.bf16.gmra.mxu2 %v988_v1 }
  0x93   :  { %760 = vmatmul.bf16.gmra.mxu3 %v992_v2  ;;  %1186 = vmatmul.msk.bf16.gmra.mxu0 %vm555_vm0, %v996_v3 }
  0x9e   :  { %v1687_v14 = vpop.f32.mrf.mxu1 }
  0xa0   :  { %v589_v17 = vpop.f32.mrf.mxu0 }
  0xa1   :  { %667 = vmatmul.bf16.gmra.mxu1 %v1004_v12  ;;  %716 = vmatmul.bf16.gmra.mxu2 %v1008_v13  ;;  %v590_v55 = vadd.f32 %v1693_v18, %v589_v17 }
  0xa3   :  { %765 = vmatmul.bf16.gmra.mxu3 %v1012_v15  ;;  %1187 = vmatmul.msk.bf16.gmra.mxu0 %vm555_vm0, %v1016_v16 }
  0xa4   :  { %v609_v19 = vpop.f32.mrf.mxu2 }
  0xa5   :  { %v1696_v20 = vadd.f32 %v1693_v18, %v609_v19 }
  0xa6   :  { %v619_v21 = vpop.f32.mrf.mxu3  ;;  %v1701_v23 = vpop.f32.mrf.mxu1 }
  0xa7   :  { %v1699_v22 = vadd.f32 %v1693_v18, %v619_v21 }
  0xa8   :  { %v591_v24 = vpop.f32.mrf.mxu0 }
  0xa9   :  { %v592_v62 = vadd.f32 %v1693_v18, %v591_v24 }
  0xac   :  { %v611_v33 = vpop.f32.mrf.mxu2 }
  0xad   :  { %v1728_v34 = vadd.f32 %v1693_v18, %v611_v33 }
  0xae   :  { %v621_v35 = vpop.f32.mrf.mxu3  ;;  %v1733_v39 = vpop.f32.mrf.mxu1 }
  0xaf   :  { %v1731_v38 = vadd.f32 %v1693_v18, %v621_v35 }
  0xb0   :  { %v594_v42 = vpop.f32.mrf.mxu0 }
  0xb1   :  { %672 = vmatmul.bf16.gmra.mxu1 %v1024_v36  ;;  %721 = vmatmul.bf16.gmra.mxu2 %v1028_v37  ;;  %v595_v9 = vadd.f32 %v1693_v18, %v594_v42  ;;  %v600_v36 = vadd.f32 %v1693_v18, %v1687_v14 }
  0xb3   :  { %770 = vmatmul.bf16.gmra.mxu3 %v1032_v40  ;;  %1188 = vmatmul.msk.bf16.gmra.mxu0 %vm555_vm0, %v1036_v41 }
  0xb4   :  { %v614_v43 = vpop.f32.mrf.mxu2 }
  0xb5   :  { %v1737_v44 = vadd.f32 %v1693_v18, %v614_v43 }
  0xb6   :  { %v624_v45 = vpop.f32.mrf.mxu3  ;;  %v1742_v47 = vpop.f32.mrf.mxu1 }
  0xb7   :  { %v1740_v46 = vadd.f32 %v1693_v18, %v624_v45 }
  0xb8   :  { %v596_v48 = vpop.f32.mrf.mxu0 }
  0xb9   :  { %v597_v24 = vadd.f32 %v1693_v18, %v596_v48 }
  0xbc   :  { %v616_v49 = vpop.f32.mrf.mxu2 }
  0xbd   :  { %v1745_v50 = vadd.f32 %v1693_v18, %v616_v49 }
  0xbe   :  { %v626_v51 = vpop.f32.mrf.mxu3  ;;  %v638_v53 = vpop.f32.mrf.mxu1 }
  0xbf   :  { %v1748_v52 = vadd.f32 %v1693_v18, %v626_v51  ;;  %v639_v57 = vadd.f32 %v638_v53, %v590_v55  ;;  %v602_v53 = vadd.f32 %v1693_v18, %v1701_v23 }
  0xc0   :  { %v785_v54 = vpop.f32.mrf.mxu0 }
  0xc4   :  { %v687_v56 = vpop.f32.mrf.mxu2 }
  0xc5   :  { %v688_v60 = vadd.f32 %v687_v56, %v639_v57 }
  0xc6   :  { %v736_v58 = vpop.f32.mrf.mxu3  ;;  %v640_v59 = vpop.f32.mrf.mxu1 }
  0xc7   :  { %v737_v63 = vadd.f32 %v736_v58, %v688_v60  ;;  %v641_v0 = vadd.f32 %v640_v59, %v592_v62 }
  0xc8   :  { %v787_v61 = vpop.f32.mrf.mxu0 }
  0xc9   :  { %v786_v5 = vadd.f32 %v785_v54, %v737_v63  ;;  %v605_v63 = vadd.f32 %v1693_v18, %v1733_v39 }
  0xcb   :  { %v825_v10 = vmax.f32 %v786_v5, 0.0 }
  0xcc   :  { %v689_v1 = vpop.f32.mrf.mxu2 }
  0xcd   :  { %v690_v2 = vadd.f32 %v689_v1, %v641_v0 }
  0xce   :  { %v738_v3 = vpop.f32.mrf.mxu3  ;;  %v643_v4 = vpop.f32.mrf.mxu1 }
  0xcf   :  { %v739_v6 = vadd.f32 %v738_v3, %v690_v2  ;;  %v644_v15 = vadd.f32 %v643_v4, %v595_v9 }
  0xd0   :  { %v790_v7 = vpop.f32.mrf.mxu0 }
  0xd1   :  { %v788_v8 = vadd.f32 %v787_v61, %v739_v6 }
  0xd3   :  { %v826_v11 = vmax.f32 %v788_v8, 0.0  ;;  %v607_v8 = vadd.f32 %v1693_v18, %v1742_v47 }
  0xd4   :  { %v692_v12 = vpop.f32.mrf.mxu2 }
  0xd5   :  { %v1268_v13 = vpack.c.bf16 %v826_v11, %v825_v10  ;;  %v693_v19 = vadd.f32 %v692_v12, %v644_v15 }
  0xd6   :  { %v741_v16 = vpop.f32.mrf.mxu3  ;;  %v645_v17 = vpop.f32.mrf.mxu1 }
  0xd7   :  { %1269 = vst [vmem:[%s1797_s3] sm:$0xff] %v1268_v13   ;;  %v742_v25 = vadd.f32 %v741_v16, %v693_v19  ;;  %v646_v26 = vadd.f32 %v645_v17, %v597_v24 }
  0xd8   :  { %v792_v21 = vpop.f32.mrf.mxu0 }
  0xd9   :  { %v791_v31 = vadd.f32 %v790_v7, %v742_v25 }
  0xdb   :  { %v827_v37 = vmax.f32 %v791_v31, 0.0 }
  0xdc   :  { %v694_v27 = vpop.f32.mrf.mxu2 }
  0xdd   :  { %v695_v28 = vadd.f32 %v694_v27, %v646_v26 }
  0xde   :  { %v743_v29 = vpop.f32.mrf.mxu3  ;;  %v648_v30 = vpop.f32.mrf.mxu1 }
  0xdf   :  { %v744_v32 = vadd.f32 %v743_v29, %v695_v28  ;;  %v649_v43 = vadd.f32 %v648_v30, %v600_v36 }
  0xe0   :  { %v795_v33 = vpop.f32.mrf.mxu0 }
  0xe1   :  { %v793_v35 = vadd.f32 %v792_v21, %v744_v32 }
  0xe3   :  { %v828_v40 = vmax.f32 %v793_v35, 0.0 }
  0xe4   :  { %v697_v41 = vpop.f32.mrf.mxu2 }
  0xe5   :  { %v1273_v42 = vpack.c.bf16 %v828_v40, %v827_v37  ;;  %v698_v49 = vadd.f32 %v697_v41, %v649_v43 }
  0xe6   :  { %v746_v45 = vpop.f32.mrf.mxu3  ;;  %v650_v48 = vpop.f32.mrf.mxu1 }
  0xe7   :  { %1305 = vst [vmem:[%s1797_s3 + $0x8] sm:$0xff] %v1273_v42   ;;  %v747_v54 = vadd.f32 %v746_v45, %v698_v49  ;;  %v651_v55 = vadd.f32 %v650_v48, %v602_v53 }
  0xe8   :  { %v797_v51 = vpop.f32.mrf.mxu0 }
  0xe9   :  { %v796_v59 = vadd.f32 %v795_v33, %v747_v54 }
  0xeb   :  { %v829_v0 = vmax.f32 %v796_v59, 0.0 }
  0xec   :  { %v699_v56 = vpop.f32.mrf.mxu2 }
  0xed   :  { %v700_v14 = vadd.f32 %v699_v56, %v651_v55 }
  0xee   :  { %v748_v57 = vpop.f32.mrf.mxu3  ;;  %v653_v58 = vpop.f32.mrf.mxu1 }
  0xef   :  { %v749_v60 = vadd.f32 %v748_v57, %v700_v14  ;;  %v654_v4 = vadd.f32 %v653_v58, %v605_v63 }
  0xf0   :  { %v800_v61 = vpop.f32.mrf.mxu0 }
  0xf1   :  { %v798_v62 = vadd.f32 %v797_v51, %v749_v60 }
  0xf3   :  { %v830_v1 = vmax.f32 %v798_v62, 0.0 }
  0xf4   :  { %v702_v2 = vpop.f32.mrf.mxu2 }
  0xf5   :  { %v1278_v3 = vpack.c.bf16 %v830_v1, %v829_v0  ;;  %v703_v6 = vadd.f32 %v702_v2, %v654_v4 }
  0xf6   :  { %v751_v5 = vpop.f32.mrf.mxu3  ;;  %v655_v23 = vpop.f32.mrf.mxu1 }
  0xf7   :  { %1306 = vst [vmem:[%s1797_s3 + $0x10] sm:$0xff] %v1278_v3   ;;  %v752_v9 = vadd.f32 %v751_v5, %v703_v6  ;;  %v656_v10 = vadd.f32 %v655_v23, %v607_v8 }
  0xf8   :  { %v802_v7 = vpop.f32.mrf.mxu0 }
  0xf9   :  { %v801_v15 = vadd.f32 %v800_v61, %v752_v9 }
  0xfb   :  { %v831_v21 = vmax.f32 %v801_v15, 0.0 }
  0xfc   :  { %v704_v11 = vpop.f32.mrf.mxu2 }
  0xfd   :  { %v705_v39 = vadd.f32 %v704_v11, %v656_v10 }
  0xfe   :  { %v753_v12 = vpop.f32.mrf.mxu3  ;;  %v658_v13 = vpop.f32.mrf.mxu1 }
  0xff   :  { %v754_v16 = vadd.f32 %v753_v12, %v705_v39  ;;  %v659_v27 = vadd.f32 %v658_v13, %v1696_v20 }
 0x100   :  { %v805_v17 = vpop.f32.mrf.mxu0 }
 0x101   :  { %v803_v19 = vadd.f32 %v802_v7, %v754_v16 }
 0x103   :  { %v832_v24 = vmax.f32 %v803_v19, 0.0 }
 0x104   :  { %v707_v25 = vpop.f32.mrf.mxu2 }
 0x105   :  { %v1283_v26 = vpack.c.bf16 %v832_v24, %v831_v21  ;;  %v708_v18 = vadd.f32 %v707_v25, %v659_v27 }
 0x106   :  { %v756_v28 = vpop.f32.mrf.mxu3  ;;  %v660_v29 = vpop.f32.mrf.mxu1 }
 0x107   :  { %1307 = vst [vmem:[%s1797_s3 + $0x18] sm:$0xff] %v1283_v26   ;;  %v757_v30 = vadd.f32 %v756_v28, %v708_v18  ;;  %v661_v31 = vadd.f32 %v660_v29, %v1728_v34 }
 0x108   :  { %v807_v47 = vpop.f32.mrf.mxu0 }
 0x109   :  { %v806_v37 = vadd.f32 %v805_v17, %v757_v30 }
 0x10b   :  { %v833_v20 = vmax.f32 %v806_v37, 0.0 }
 0x10c   :  { %v709_v32 = vpop.f32.mrf.mxu2 }
 0x10d   :  { %v710_v33 = vadd.f32 %v709_v32, %v661_v31 }
 0x10e   :  { %v758_v35 = vpop.f32.mrf.mxu3  ;;  %v663_v36 = vpop.f32.mrf.mxu1 }
 0x10f   :  { %v759_v40 = vadd.f32 %v758_v35, %v710_v33  ;;  %v664_v49 = vadd.f32 %v663_v36, %v1737_v44 }
 0x110   :  { %v810_v41 = vpop.f32.mrf.mxu0 }
 0x111   :  { %v808_v42 = vadd.f32 %v807_v47, %v759_v40 }
 0x113   :  { %v834_v43 = vmax.f32 %v808_v42, 0.0 }
 0x114   :  { %v712_v45 = vpop.f32.mrf.mxu2 }
 0x115   :  { %v1288_v48 = vpack.c.bf16 %v834_v43, %v833_v20  ;;  %v713_v34 = vadd.f32 %v712_v45, %v664_v49 }
 0x116   :  { %v761_v51 = vpop.f32.mrf.mxu3  ;;  %v665_v53 = vpop.f32.mrf.mxu1 }
 0x117   :  { %1308 = vst [vmem:[%s1797_s3 + $0x20] sm:$0xff] %v1288_v48   ;;  %v762_v55 = vadd.f32 %v761_v51, %v713_v34  ;;  %v666_v56 = vadd.f32 %v665_v53, %v1745_v50 }
 0x118   :  { %v812_v54 = vpop.f32.mrf.mxu0 }
 0x119   :  { %v811_v60 = vadd.f32 %v810_v41, %v762_v55 }
 0x11b   :  { %v835_v44 = vmax.f32 %v811_v60, 0.0 }
 0x11c   :  { %v714_v14 = vpop.f32.mrf.mxu2 }
 0x11d   :  { %v715_v57 = vadd.f32 %v714_v14, %v666_v56 }
 0x11e   :  { %v763_v58 = vpop.f32.mrf.mxu3  ;;  %v668_v59 = vpop.f32.mrf.mxu1 }
 0x11f   :  { %v764_v61 = vadd.f32 %v763_v58, %v715_v57  ;;  %v669_v3 = vadd.f32 %v668_v59, %v1699_v22 }
 0x120   :  { %v815_v63 = vpop.f32.mrf.mxu0 }
 0x121   :  { %v813_v62 = vadd.f32 %v812_v54, %v764_v61 }
 0x123   :  { %v836_v0 = vmax.f32 %v813_v62, 0.0 }
 0x124   :  { %v717_v1 = vpop.f32.mrf.mxu2 }
 0x125   :  { %v1293_v2 = vpack.c.bf16 %v836_v0, %v835_v44  ;;  %v718_v50 = vadd.f32 %v717_v1, %v669_v3 }
 0x126   :  { %v766_v4 = vpop.f32.mrf.mxu3  ;;  %v670_v5 = vpop.f32.mrf.mxu1 }
 0x127   :  { %1309 = vst [vmem:[%s1797_s3 + $0x28] sm:$0xff] %v1293_v2   ;;  %v767_v23 = vadd.f32 %v766_v4, %v718_v50  ;;  %v671_v6 = vadd.f32 %v670_v5, %v1731_v38 }
 0x128   :  { %v817_v7 = vpop.f32.mrf.mxu0 }
 0x129   :  { %v816_v39 = vadd.f32 %v815_v63, %v767_v23 }
 0x12b   :  { %v837_v15 = vmax.f32 %v816_v39, 0.0 }
 0x12c   :  { %v719_v8 = vpop.f32.mrf.mxu2 }
 0x12d   :  { %v720_v9 = vadd.f32 %v719_v8, %v671_v6 }
 0x12e   :  { %v768_v10 = vpop.f32.mrf.mxu3  ;;  %v673_v11 = vpop.f32.mrf.mxu1 }
 0x12f   :  { %v769_v12 = vadd.f32 %v768_v10, %v720_v9  ;;  %v674_v19 = vadd.f32 %v673_v11, %v1740_v46 }
 0x130   :  { %v820_v24 = vpop.f32.mrf.mxu0 }
 0x131   :  { %v818_v13 = vadd.f32 %v817_v7, %v769_v12 }
 0x133   :  { %v838_v22 = vmax.f32 %v818_v13, 0.0 }
 0x134   :  { %v722_v16 = vpop.f32.mrf.mxu2 }
 0x135   :  { %v1298_v17 = vpack.c.bf16 %v838_v22, %v837_v15  ;;  %v723_v38 = vadd.f32 %v722_v16, %v674_v19 }
 0x136   :  { %v771_v21 = vpop.f32.mrf.mxu3  ;;  %v675_v25 = vpop.f32.mrf.mxu1 }
 0x137   :  { %1310 = vst [vmem:[%s1797_s3 + $0x30] sm:$0xff] %v1298_v17   ;;  %v772_v26 = vadd.f32 %v771_v21, %v723_v38  ;;  %v676_v27 = vadd.f32 %v675_v25, %v1748_v52 }
 0x138   :  { %v822_v31 = vpop.f32.mrf.mxu0 }
 0x139   :  { %v821_v47 = vadd.f32 %v820_v24, %v772_v26 }
 0x13b   :  { %v839_v33 = vmax.f32 %v821_v47, 0.0 }
 0x13c   :  { %v724_v28 = vpop.f32.mrf.mxu2 }
 0x13d   :  { %v725_v29 = vadd.f32 %v724_v28, %v676_v27 }
 0x13e   :  { %v773_v18 = vpop.f32.mrf.mxu3 }
 0x13f   :  { %v774_v30 = vadd.f32 %v773_v18, %v725_v29 }
 0x141   :  { %v823_v32 = vadd.f32 %v822_v31, %v774_v30 }
 0x143   :  { %v840_v46 = vmax.f32 %v823_v32, 0.0 }
 0x145   :  { %v1303_v35 = vpack.c.bf16 %v840_v46, %v839_v33 }
 0x147   :  { %1311 = vst [vmem:[%s1797_s3 + $0x38] sm:$0xff] %v1303_v35  }

// kernel: beta_vae_forward.18
= control target key start
LH: loop header
LB: loop body
LE: loop exit
PB: predicated region body
PF: predicated region fallthrough
CT: control target
= control target key end

     0   :  { %vm771_vm0 = vcmask 261120   ;;  %s3340_s1 = inlined_call_operand.vmem [shape: bf16[288,128], index: 1, kind: input, shape index: {}]   ;;  %s3341_s0 = inlined_call_operand.vmem [shape: bf16[512,288], index: 0, kind: input, shape index: {}]   ;;  %s3342_s2 = inlined_call_operand.vmem [shape: f32[1,128], index: 2, kind: input, shape index: {}]   ;;  %s3343_s3 = inlined_call_operand.vmem [shape: bf16[512,128], index: 3, kind: output, shape index: {}]  }
   0x1   :  { %v2162_v0 = vld [vmem:[%s3340_s1 + $0x38] sm:$0xff]  ;;  %v2410_v1 = vld [vmem:[%s3340_s1 + $0x88] sm:$0xff]  ;;  %v2161_v3 = vld [vmem:[%s3340_s1 + $0x30] sm:$0xff] }
   0x2   :  { %v2170_v2 = vld [vmem:[%s3340_s1 + $0x78] sm:$0xff]  ;;  %868 = vmatpush.bf16.msra.mxu0 %v2162_v0  ;;  %2364 = vmatpush.bf16.msra.mxu3 %v2162_v0  ;;  %v2421_v4 = vld [vmem:[%s3340_s1 + $0x80] sm:$0xff]  ;;  %v2169_v5 = vld [vmem:[%s3340_s1 + $0x70] sm:$0xff] }
   0x3   :  { %1212 = vmatpush.bf16.msra.mxu2 %v2410_v1  ;;  %1037 = vmatpush.bf16.msra.mxu1 %v2170_v2  ;;  %v1581_v6 = vld [vmem:[%s3341_s0 + $0x8] sm:$0xf]  ;;  %v2061_v7 = vld [vmem:[%s3341_s0 + $0x10] sm:$0xf0]  ;;  %v2159_v11 = vld [vmem:[%s3340_s1 + $0x20] sm:$0xff] }
   0x4   :  { %v1582_v8 = vor.u32 %v2061_v7, %v1581_v6  ;;  %v2160_v9 = vld [vmem:[%s3340_s1 + $0x28] sm:$0xff]  ;;  %v2167_v12 = vld [vmem:[%s3340_s1 + $0x60] sm:$0xff]  ;;  %v2158_v13 = vld [vmem:[%s3340_s1 + $0x18] sm:$0xff] }
   0x5   :  { %v2168_v10 = vld [vmem:[%s3340_s1 + $0x68] sm:$0xff]  ;;  %v2166_v14 = vld [vmem:[%s3340_s1 + $0x58] sm:$0xff]  ;;  %v2157_v15 = vld [vmem:[%s3340_s1 + $0x10] sm:$0xff] }
   0x6   :  { %869 = vmatpush.bf16.msra.mxu0 %v2161_v3  ;;  %2365 = vmatpush.bf16.msra.mxu3 %v2161_v3  ;;  %v2165_v16 = vld [vmem:[%s3340_s1 + $0x50] sm:$0xff]  ;;  %v1593_v17 = vld [vmem:[%s3341_s0 + $0x20] sm:$0xf]  ;;  %v2064_v18 = vld [vmem:[%s3341_s0 + $0x28] sm:$0xf0] }
   0x7   :  { %1213 = vmatpush.bf16.msra.mxu2 %v2421_v4  ;;  %1038 = vmatpush.bf16.msra.mxu1 %v2169_v5  ;;  %v1594_v19 = vor.u32 %v2064_v18, %v1593_v17  ;;  %v2156_v20 = vld [vmem:[%s3340_s1 + $0x8] sm:$0xff]  ;;  %v2155_v22 = vld [vmem:[%s3340_s1] sm:$0xff]  ;;  %v1575_v29 = vld [vmem:[%s3341_s0 + $0xc] sm:$0xf0] }
   0x8   :  { %v2164_v21 = vld [vmem:[%s3340_s1 + $0x48] sm:$0xff]  ;;  %v2163_v23 = vld [vmem:[%s3340_s1 + $0x40] sm:$0xff]  ;;  %v1605_v33 = vld [vmem:[%s3341_s0 + $0x38] sm:$0xf] }
   0x9   :  { %v1573_v24 = vld [vmem:[%s3341_s0] sm:$0xf]  ;;  %v2060_v25 = vld [vmem:[%s3341_s0 + $0x8] sm:$0xf0]  ;;  %v2059_v28 = vld [vmem:[%s3341_s0 + $0x4] sm:$0xf] }
   0xa   :  { %2027 = vmatmul.msk.bf16.vlgmr.msra.gmra.mxu2 %vm771_vm0, %v1582_v8  ;;  %870 = vmatpush.bf16.msra.mxu0 %v2160_v9  ;;  %v1861_v26 = vld [vmem:[%s3341_s0 + $0x240] sm:$0xf]  ;;  %v2132_v27 = vld [vmem:[%s3341_s0 + $0x248] sm:$0xf0]  ;;  %v1574_v30 = vor.u32 %v2060_v25, %v1573_v24  ;;  %v1578_v32 = vor.u32 %v2059_v28, %v1575_v29  ;;  %v2067_v34 = vld [vmem:[%s3341_s0 + $0x40] sm:$0xf0] }
   0xb   :  { %2366 = vmatpush.bf16.msra.mxu3 %v2160_v9  ;;  %1039 = vmatpush.bf16.msra.mxu1 %v2168_v10  ;;  %v1862_v31 = vor.u32 %v2132_v27, %v1861_v26  ;;  %v1606_v35 = vor.u32 %v2067_v34, %v1605_v33  ;;  %v1585_v36 = vld [vmem:[%s3341_s0 + $0x18] sm:$0xf]  ;;  %v2063_v37 = vld [vmem:[%s3341_s0 + $0x20] sm:$0xf0]  ;;  %v2062_v40 = vld [vmem:[%s3341_s0 + $0x1c] sm:$0xf] }
   0xc   :  { %v1873_v38 = vld [vmem:[%s3341_s0 + $0x258] sm:$0xf]  ;;  %v2135_v39 = vld [vmem:[%s3341_s0 + $0x260] sm:$0xf0]  ;;  %v1587_v41 = vld [vmem:[%s3341_s0 + $0x24] sm:$0xf0]  ;;  %v1586_v42 = vor.u32 %v2063_v37, %v1585_v36 }
   0xd   :  { %v1874_v43 = vor.u32 %v2135_v39, %v1873_v38  ;;  %v1590_v44 = vor.u32 %v2062_v40, %v1587_v41  ;;  %v1617_v45 = vld [vmem:[%s3341_s0 + $0x50] sm:$0xf]  ;;  %v2070_v46 = vld [vmem:[%s3341_s0 + $0x58] sm:$0xf0]  ;;  %v2065_v52 = vld [vmem:[%s3341_s0 + $0x34] sm:$0xf] }
   0xe   :  { %871 = vmatpush.bf16.msra.mxu0 %v2159_v11  ;;  %v1618_v47 = vor.u32 %v2070_v46, %v1617_v45  ;;  %v1597_v48 = vld [vmem:[%s3341_s0 + $0x30] sm:$0xf]  ;;  %v2066_v49 = vld [vmem:[%s3341_s0 + $0x38] sm:$0xf0]  ;;  %v1599_v53 = vld [vmem:[%s3341_s0 + $0x3c] sm:$0xf0] }
   0xf   :  { %2367 = vmatpush.bf16.msra.mxu3 %v2159_v11  ;;  %1040 = vmatpush.bf16.msra.mxu1 %v2167_v12  ;;  %v1885_v50 = vld [vmem:[%s3341_s0 + $0x270] sm:$0xf]  ;;  %v2138_v51 = vld [vmem:[%s3341_s0 + $0x278] sm:$0xf0]  ;;  %v1598_v54 = vor.u32 %v2066_v49, %v1597_v48  ;;  %v1602_v56 = vor.u32 %v2065_v52, %v1599_v53  ;;  %v1629_v57 = vld [vmem:[%s3341_s0 + $0x68] sm:$0xf] }
  0x10   :  { %v1886_v55 = vor.u32 %v2138_v51, %v1885_v50  ;;  %v2073_v58 = vld [vmem:[%s3341_s0 + $0x70] sm:$0xf0]  ;;  %v1609_v60 = vld [vmem:[%s3341_s0 + $0x48] sm:$0xf]  ;;  %v2068_v0 = vld [vmem:[%s3341_s0 + $0x4c] sm:$0xf] }
  0x11   :  { %v1630_v59 = vor.u32 %v2073_v58, %v1629_v57  ;;  %v2069_v61 = vld [vmem:[%s3341_s0 + $0x50] sm:$0xf0]  ;;  %v1897_v62 = vld [vmem:[%s3341_s0 + $0x288] sm:$0xf]  ;;  %v2076_v6 = vld [vmem:[%s3341_s0 + $0x88] sm:$0xf0] }
  0x12   :  { %872 = vmatpush.bf16.msra.mxu0 %v2158_v13  ;;  %v2141_v63 = vld [vmem:[%s3341_s0 + $0x290] sm:$0xf0]  ;;  %v1621_v8 = vld [vmem:[%s3341_s0 + $0x60] sm:$0xf]  ;;  %v2072_v9 = vld [vmem:[%s3341_s0 + $0x68] sm:$0xf0] }
  0x13   :  { %2368 = vmatpush.bf16.msra.mxu3 %v2158_v13  ;;  %1041 = vmatpush.bf16.msra.mxu1 %v2166_v14  ;;  %v1898_v3 = vor.u32 %v2141_v63, %v1897_v62  ;;  %v2144_v11 = vld [vmem:[%s3341_s0 + $0x2a8] sm:$0xf0]  ;;  %v1623_v13 = vld [vmem:[%s3341_s0 + $0x6c] sm:$0xf0]  ;;  %v1653_v17 = vld [vmem:[%s3341_s0 + $0x98] sm:$0xf] }
  0x14   :  { %v2079_v18 = vld [vmem:[%s3341_s0 + $0xa0] sm:$0xf0]  ;;  %v2074_v24 = vld [vmem:[%s3341_s0 + $0x7c] sm:$0xf]  ;;  %v1635_v25 = vld [vmem:[%s3341_s0 + $0x84] sm:$0xf0] }
  0x15   :  { %v1638_v28 = vor.u32 %v2074_v24, %v1635_v25  ;;  %v1665_v29 = vld [vmem:[%s3341_s0 + $0xb0] sm:$0xf]  ;;  %v2078_v33 = vld [vmem:[%s3341_s0 + $0x98] sm:$0xf0]  ;;  %v2077_v36 = vld [vmem:[%s3341_s0 + $0x94] sm:$0xf] }
  0x16   :  { %873 = vmatpush.bf16.msra.mxu0 %v2157_v15  ;;  %v1933_v34 = vld [vmem:[%s3341_s0 + $0x2d0] sm:$0xf]  ;;  %v1647_v37 = vld [vmem:[%s3341_s0 + $0x9c] sm:$0xf0]  ;;  %v1677_v41 = vld [vmem:[%s3341_s0 + $0xc8] sm:$0xf] }
  0x17   :  { %2369 = vmatpush.bf16.msra.mxu3 %v2157_v15  ;;  %1042 = vmatpush.bf16.msra.mxu1 %v2165_v16  ;;  %v1650_v40 = vor.u32 %v2077_v36, %v1647_v37  ;;  %v2081_v45 = vld [vmem:[%s3341_s0 + $0xb0] sm:$0xf0]  ;;  %v1945_v46 = vld [vmem:[%s3341_s0 + $0x2e8] sm:$0xf]  ;;  %v2080_v48 = vld [vmem:[%s3341_s0 + $0xac] sm:$0xf] }
  0x18   :  { %v1659_v49 = vld [vmem:[%s3341_s0 + $0xb4] sm:$0xf0]  ;;  %v1669_v58 = vld [vmem:[%s3341_s0 + $0xc0] sm:$0xf]  ;;  %v2083_v62 = vld [vmem:[%s3341_s0 + $0xc4] sm:$0xf] }
  0x19   :  { %v1662_v53 = vor.u32 %v2080_v48, %v1659_v49  ;;  %v1671_v63 = vld [vmem:[%s3341_s0 + $0xcc] sm:$0xf0]  ;;  %v2086_v24 = vld [vmem:[%s3341_s0 + $0xdc] sm:$0xf]  ;;  %v1683_v25 = vld [vmem:[%s3341_s0 + $0xe4] sm:$0xf0] }
  0x1a   :  { %2028 = vmatmul.msk.bf16.gmra.mxu2 %vm771_vm0, %v1594_v19  ;;  %874 = vmatpush.bf16.msra.mxu0 %v2156_v20  ;;  %v1654_v19 = vor.u32 %v2079_v18, %v1653_v17  ;;  %v1713_v37 = vld [vmem:[%s3341_s0 + $0x110] sm:$0xf]  ;;  %v2090_v49 = vld [vmem:[%s3341_s0 + $0xf8] sm:$0xf0] }
  0x1b   :  { %2370 = vmatpush.bf16.msra.mxu3 %v2156_v20  ;;  %1043 = vmatpush.bf16.msra.mxu1 %v2164_v21  ;;  %v1633_v20 = vld [vmem:[%s3341_s0 + $0x78] sm:$0xf]  ;;  %v1693_v48 = vld [vmem:[%s3341_s0 + $0xf0] sm:$0xf] }
  0x1e   :  { %875 = vmatpush.bf16.msra.mxu0 %v2155_v22 }
  0x1f   :  { %2371 = vmatpush.bf16.msra.mxu3 %v2155_v22  ;;  %1044 = vmatpush.bf16.msra.mxu1 %v2163_v23  ;;  %v1921_v22 = vld [vmem:[%s3341_s0 + $0x2b8] sm:$0xf] }
  0x21   :  { %876 = vmatmul.bf16.vlgmr.msra.gmra.mxu0 %v1574_v30  ;;  %v2082_v30 = vld [vmem:[%s3341_s0 + $0xb8] sm:$0xf0] }
  0x22   :  { %996 = vmatmul.bf16.vlgmr.msra.gmra.mxu3 %v1862_v31  ;;  %1045 = vmatmul.bf16.vlgmr.msra.gmra.mxu1 %v1578_v32  ;;  %v1666_v31 = vor.u32 %v2082_v30, %v1665_v29  ;;  %v1645_v32 = vld [vmem:[%s3341_s0 + $0x90] sm:$0xf] }
  0x23   :  { %2372 = vmatpush.bf16.msrb.mxu3 %v2170_v2  ;;  %v1610_v2 = vor.u32 %v2069_v61, %v1609_v60  ;;  %v1646_v38 = vor.u32 %v2078_v33, %v1645_v32  ;;  %v2131_v60 = vld [vmem:[%s3341_s0 + $0x244] sm:$0xf]  ;;  %v1863_v61 = vld [vmem:[%s3341_s0 + $0x24c] sm:$0xf0]  ;;  %v1686_v33 = vor.u32 %v2086_v24, %v1683_v25 }
  0x27   :  { %2373 = vmatpush.bf16.msrb.mxu3 %v2169_v5  ;;  %v1641_v5 = vld [vmem:[%s3341_s0 + $0x80] sm:$0xf] }
  0x28   :  { %v1642_v7 = vor.u32 %v2076_v6, %v1641_v5  ;;  %v1674_v5 = vor.u32 %v2083_v62, %v1671_v63 }
  0x2a   :  { %2029 = vmatmul.msk.bf16.gmra.mxu2 %vm771_vm0, %v1606_v35  ;;  %v2150_v35 = vld [vmem:[%s3341_s0 + $0x2d8] sm:$0xf0] }
  0x2b   :  { %2374 = vmatpush.bf16.msrb.mxu3 %v2168_v10  ;;  %v1909_v10 = vld [vmem:[%s3341_s0 + $0x2a0] sm:$0xf]  ;;  %v1934_v39 = vor.u32 %v2150_v35, %v1933_v34 }
  0x2c   :  { %v1910_v15 = vor.u32 %v2144_v11, %v1909_v10 }
  0x2f   :  { %2375 = vmatpush.bf16.msrb.mxu3 %v2167_v12  ;;  %v2071_v12 = vld [vmem:[%s3341_s0 + $0x64] sm:$0xf] }
  0x31   :  { %881 = vmatmul.bf16.gmra.mxu0 %v1586_v42  ;;  %v2085_v42 = vld [vmem:[%s3341_s0 + $0xd0] sm:$0xf0] }
  0x32   :  { %1001 = vmatmul.bf16.gmra.mxu3 %v1874_v43  ;;  %1050 = vmatmul.bf16.gmra.mxu1 %v1590_v44  ;;  %v1678_v43 = vor.u32 %v2085_v42, %v1677_v41  ;;  %v1657_v44 = vld [vmem:[%s3341_s0 + $0xa8] sm:$0xf] }
  0x33   :  { %2376 = vmatpush.bf16.msrb.mxu3 %v2166_v14  ;;  %v1622_v14 = vor.u32 %v2072_v9, %v1621_v8  ;;  %v1658_v51 = vor.u32 %v2081_v45, %v1657_v44  ;;  %v1701_v8 = vld [vmem:[%s3341_s0 + $0xf8] sm:$0xf]  ;;  %v2091_v9 = vld [vmem:[%s3341_s0 + $0x100] sm:$0xf0] }
  0x37   :  { %2377 = vmatpush.bf16.msrb.mxu3 %v2165_v16  ;;  %v1626_v16 = vor.u32 %v2071_v12, %v1623_v13 }
  0x3a   :  { %2030 = vmatmul.msk.bf16.gmra.mxu2 %vm771_vm0, %v1618_v47  ;;  %v2153_v47 = vld [vmem:[%s3341_s0 + $0x2f0] sm:$0xf0] }
  0x3b   :  { %2378 = vmatpush.bf16.msrb.mxu3 %v2164_v21  ;;  %v2075_v21 = vld [vmem:[%s3341_s0 + $0x80] sm:$0xf0]  ;;  %v1946_v52 = vor.u32 %v2153_v47, %v1945_v46 }
  0x3c   :  { %v1634_v26 = vor.u32 %v2075_v21, %v1633_v20  ;;  %v2087_v20 = vld [vmem:[%s3341_s0 + $0xe0] sm:$0xf0]  ;;  %v2134_v21 = vld [vmem:[%s3341_s0 + $0x25c] sm:$0xf] }
  0x3f   :  { %2379 = vmatpush.bf16.msrb.mxu3 %v2163_v23  ;;  %v2147_v23 = vld [vmem:[%s3341_s0 + $0x2c0] sm:$0xf0] }
  0x40   :  { %v1922_v27 = vor.u32 %v2147_v23, %v1921_v22  ;;  %v1875_v23 = vld [vmem:[%s3341_s0 + $0x264] sm:$0xf0] }
  0x41   :  { %886 = vmatmul.bf16.gmra.mxu0 %v1598_v54  ;;  %v1689_v54 = vld [vmem:[%s3341_s0 + $0xe0] sm:$0xf]  ;;  %v1878_v32 = vor.u32 %v2134_v21, %v1875_v23  ;;  %v1707_v21 = vld [vmem:[%s3341_s0 + $0x114] sm:$0xf0] }
  0x42   :  { %1006 = vmatmul.bf16.gmra.mxu3 %v1886_v55  ;;  %1055 = vmatmul.bf16.gmra.mxu1 %v1602_v56  ;;  %v2088_v55 = vld [vmem:[%s3341_s0 + $0xe8] sm:$0xf0] }
  0x43   :  { %2380 = vmatpush.bf16.msra.mxu3 %v2410_v1  ;;  %v1611_v1 = vld [vmem:[%s3341_s0 + $0x54] sm:$0xf0]  ;;  %v1690_v57 = vor.u32 %v2088_v55, %v1689_v54  ;;  %v1695_v54 = vld [vmem:[%s3341_s0 + $0xfc] sm:$0xf0] }
  0x47   :  { %2381 = vmatpush.bf16.msra.mxu3 %v2421_v4  ;;  %v1614_v4 = vor.u32 %v2068_v0, %v1611_v1  ;;  %v2701_v1 = vld [vmem:[%s3342_s2] ss:$0 sm:$0xff] }
  0x4a   :  { %2031 = vmatmul.msk.bf16.gmra.mxu2 %vm771_vm0, %v1630_v59  ;;  %v2084_v59 = vld [vmem:[%s3341_s0 + $0xc8] sm:$0xf0] }
  0x51   :  { %891 = vmatmul.bf16.gmra.mxu0 %v1610_v2  ;;  %v1670_v2 = vor.u32 %v2084_v59, %v1669_v58  ;;  %v1694_v59 = vor.u32 %v2090_v49, %v1693_v48  ;;  %v2143_v48 = vld [vmem:[%s3341_s0 + $0x2a4] sm:$0xf] }
  0x52   :  { %1011 = vmatmul.bf16.gmra.mxu3 %v1898_v3  ;;  %1060 = vmatmul.bf16.gmra.mxu1 %v1614_v4  ;;  %v1866_v4 = vor.u32 %v2131_v60, %v1863_v61 }
  0x5a   :  { %2032 = vmatmul.msk.bf16.gmra.mxu2 %vm771_vm0, %v1642_v7 }
  0x61   :  { %896 = vmatmul.bf16.gmra.mxu0 %v1622_v14  ;;  %v1702_v14 = vor.u32 %v2091_v9, %v1701_v8 }
  0x62   :  { %1016 = vmatmul.bf16.gmra.mxu3 %v1910_v15  ;;  %1065 = vmatmul.bf16.gmra.mxu1 %v1626_v16 }
  0x6a   :  { %2033 = vmatmul.msk.bf16.gmra.mxu2 %vm771_vm0, %v1654_v19  ;;  %v1681_v19 = vld [vmem:[%s3341_s0 + $0xd8] sm:$0xf] }
  0x6b   :  { %v1682_v30 = vor.u32 %v2087_v20, %v1681_v19  ;;  %v1899_v19 = vld [vmem:[%s3341_s0 + $0x294] sm:$0xf0]  ;;  %v2092_v20 = vld [vmem:[%s3341_s0 + $0x10c] sm:$0xf] }
  0x71   :  { %901 = vmatmul.bf16.gmra.mxu0 %v1634_v26 }
  0x72   :  { %1021 = vmatmul.bf16.gmra.mxu3 %v1922_v27  ;;  %1070 = vmatmul.bf16.gmra.mxu1 %v1638_v28 }
  0x7a   :  { %2034 = vmatmul.msk.bf16.gmra.mxu2 %vm771_vm0, %v1666_v31 }
  0x81   :  { %906 = vmatmul.bf16.gmra.mxu0 %v1646_v38  ;;  %v2094_v38 = vld [vmem:[%s3341_s0 + $0x118] sm:$0xf0] }
  0x82   :  { %1026 = vmatmul.bf16.gmra.mxu3 %v1934_v39  ;;  %1075 = vmatmul.bf16.gmra.mxu1 %v1650_v40 }
  0x8a   :  { %2035 = vmatmul.msk.bf16.gmra.mxu2 %vm771_vm0, %v1678_v43  ;;  %v1714_v43 = vor.u32 %v2094_v38, %v1713_v37 }
  0x8d   :  { %v1215_v50 = vpop.f32.mrf.mxu2 }
  0x91   :  { %911 = vmatmul.bf16.gmra.mxu0 %v1658_v51 }
  0x92   :  { %1031 = vmatmul.bf16.gmra.mxu3 %v1946_v52  ;;  %1080 = vmatmul.bf16.gmra.mxu1 %v1662_v53  ;;  %v1887_v52 = vld [vmem:[%s3341_s0 + $0x27c] sm:$0xf0]  ;;  %v2089_v53 = vld [vmem:[%s3341_s0 + $0xf4] sm:$0xf] }
  0x93   :  { %v1698_v62 = vor.u32 %v2089_v53, %v1695_v54 }
  0x95   :  { %v1217_v56 = vpop.f32.mrf.mxu2 }
  0x9a   :  { %2036 = vmatmul.msk.bf16.gmra.mxu2 %vm771_vm0, %v1690_v57 }
  0x9d   :  { %v1220_v0 = vpop.f32.mrf.mxu2 }
  0x9e   :  { %v877_v3 = vpop.f32.mrf.mxu0 }
  0x9f   :  { %v1046_v6 = vpop.f32.mrf.mxu1  ;;  %v878_v7 = vadd.f32 %v2701_v1, %v877_v3  ;;  %v1725_v3 = vld [vmem:[%s3341_s0 + $0x128] sm:$0xf] }
  0xa1   :  { %916 = vmatmul.bf16.gmra.mxu0 %v1670_v2  ;;  %v1047_v10 = vadd.f32 %v1046_v6, %v878_v7 }
  0xa2   :  { %1165 = vmatmul.bf16.vlgmr.msrb.gmra.mxu3 %v1866_v4  ;;  %1085 = vmatmul.bf16.gmra.mxu1 %v1674_v5  ;;  %v2097_v4 = vld [vmem:[%s3341_s0 + $0x130] sm:$0xf0] }
  0xa3   :  { %v1216_v17 = vadd.f32 %v1215_v50, %v1047_v10  ;;  %v2137_v50 = vld [vmem:[%s3341_s0 + $0x274] sm:$0xf]  ;;  %v1726_v9 = vor.u32 %v2097_v4, %v1725_v3  ;;  %v2103_v3 = vld [vmem:[%s3341_s0 + $0x160] sm:$0xf0] }
  0xa4   :  { %v1890_v61 = vor.u32 %v2137_v50, %v1887_v52  ;;  %v1911_v50 = vld [vmem:[%s3341_s0 + $0x2ac] sm:$0xf0] }
  0xa5   :  { %v2710_v11 = vpop.f32.mrf.mxu3  ;;  %v1222_v12 = vpop.f32.mrf.mxu2  ;;  %v1375_v26 = vmax.f32 %v1216_v17, 0.0  ;;  %v2140_v17 = vld [vmem:[%s3341_s0 + $0x28c] sm:$0xf]  ;;  %v1719_v52 = vld [vmem:[%s3341_s0 + $0x12c] sm:$0xf0] }
  0xa6   :  { %v879_v13 = vpop.f32.mrf.mxu0 }
  0xa7   :  { %v880_v15 = vadd.f32 %v2701_v1, %v879_v13  ;;  %v1048_v16 = vpop.f32.mrf.mxu1 }
  0xa9   :  { %v1049_v18 = vadd.f32 %v1048_v16, %v880_v15  ;;  %v1705_v15 = vld [vmem:[%s3341_s0 + $0x108] sm:$0xf]  ;;  %v2093_v16 = vld [vmem:[%s3341_s0 + $0x110] sm:$0xf0] }
  0xaa   :  { %2037 = vmatmul.msk.bf16.gmra.mxu2 %vm771_vm0, %v1702_v14 }
  0xab   :  { %v1218_v22 = vadd.f32 %v1217_v56, %v1049_v18 }
  0xad   :  { %v1376_v27 = vmax.f32 %v1218_v22, 0.0  ;;  %v2732_v28 = vpop.f32.mrf.mxu3  ;;  %v1225_v29 = vpop.f32.mrf.mxu2 }
  0xae   :  { %v882_v31 = vpop.f32.mrf.mxu0 }
  0xaf   :  { %v2176_v34 = vpack.c.bf16 %v1376_v27, %v1375_v26  ;;  %v1051_v35 = vpop.f32.mrf.mxu1  ;;  %v883_v36 = vadd.f32 %v2701_v1, %v882_v31  ;;  %v1706_v26 = vor.u32 %v2093_v16, %v1705_v15  ;;  %v1729_v15 = vld [vmem:[%s3341_s0 + $0x138] sm:$0xf]  ;;  %v2099_v16 = vld [vmem:[%s3341_s0 + $0x140] sm:$0xf0] }
  0xb1   :  { %2177 = vst [vmem:[%s3343_s3] sm:$0xff] %v2176_v34   ;;  %921 = vmatmul.bf16.gmra.mxu0 %v1682_v30  ;;  %v1052_v39 = vadd.f32 %v1051_v35, %v883_v36  ;;  %v1710_v30 = vor.u32 %v2092_v20, %v1707_v21  ;;  %v1737_v34 = vld [vmem:[%s3341_s0 + $0x140] sm:$0xf]  ;;  %v2100_v35 = vld [vmem:[%s3341_s0 + $0x148] sm:$0xf0]  ;;  %v2098_v20 = vld [vmem:[%s3341_s0 + $0x13c] sm:$0xf] }
  0xb2   :  { %1170 = vmatmul.bf16.gmra.mxu3 %v1878_v32  ;;  %1090 = vmatmul.bf16.gmra.mxu1 %v1686_v33  ;;  %v1731_v21 = vld [vmem:[%s3341_s0 + $0x144] sm:$0xf0] }
  0xb3   :  { %v1221_v46 = vadd.f32 %v1220_v0, %v1052_v39 }
  0xb5   :  { %v2744_v40 = vpop.f32.mrf.mxu3  ;;  %v1227_v41 = vpop.f32.mrf.mxu2  ;;  %v1377_v55 = vmax.f32 %v1221_v46, 0.0  ;;  %v1717_v46 = vld [vmem:[%s3341_s0 + $0x120] sm:$0xf] }
  0xb6   :  { %v884_v42 = vpop.f32.mrf.mxu0 }
  0xb7   :  { %v885_v44 = vadd.f32 %v2701_v1, %v884_v42  ;;  %v1053_v45 = vpop.f32.mrf.mxu1 }
  0xb9   :  { %v1054_v47 = vadd.f32 %v1053_v45, %v885_v44 }
  0xba   :  { %2038 = vmatmul.msk.bf16.gmra.mxu2 %vm771_vm0, %v1714_v43 }
  0xbb   :  { %v1223_v51 = vadd.f32 %v1222_v12, %v1054_v47  ;;  %v2096_v47 = vld [vmem:[%s3341_s0 + $0x128] sm:$0xf0] }
  0xbd   :  { %v1378_v56 = vmax.f32 %v1223_v51, 0.0  ;;  %v2766_v57 = vpop.f32.mrf.mxu3  ;;  %v1230_v58 = vpop.f32.mrf.mxu2  ;;  %v2095_v51 = vld [vmem:[%s3341_s0 + $0x124] sm:$0xf] }
  0xbe   :  { %v887_v60 = vpop.f32.mrf.mxu0 }
  0xbf   :  { %v2181_v63 = vpack.c.bf16 %v1378_v56, %v1377_v55  ;;  %v1056_v0 = vpop.f32.mrf.mxu1  ;;  %v888_v2 = vadd.f32 %v2701_v1, %v887_v60  ;;  %v1914_v60 = vor.u32 %v2143_v48, %v1911_v50  ;;  %v1741_v48 = vld [vmem:[%s3341_s0 + $0x150] sm:$0xf]  ;;  %v2149_v50 = vld [vmem:[%s3341_s0 + $0x2d4] sm:$0xf] }
  0xc1   :  { %2333 = vst [vmem:[%s3343_s3 + $0x8] sm:$0xff] %v2181_v63   ;;  %926 = vmatmul.bf16.gmra.mxu0 %v1694_v59  ;;  %v1057_v5 = vadd.f32 %v1056_v0, %v888_v2  ;;  %v1749_v2 = vld [vmem:[%s3341_s0 + $0x158] sm:$0xf] }
  0xc2   :  { %1175 = vmatmul.bf16.gmra.mxu3 %v1890_v61  ;;  %1095 = vmatmul.bf16.gmra.mxu1 %v1698_v62  ;;  %v1722_v61 = vor.u32 %v2095_v51, %v1719_v52  ;;  %v1935_v52 = vld [vmem:[%s3341_s0 + $0x2dc] sm:$0xf0] }
  0xc3   :  { %v1226_v13 = vadd.f32 %v1225_v29, %v1057_v5  ;;  %v1902_v29 = vor.u32 %v2140_v17, %v1899_v19  ;;  %v2146_v17 = vld [vmem:[%s3341_s0 + $0x2bc] sm:$0xf]  ;;  %v1923_v19 = vld [vmem:[%s3341_s0 + $0x2c4] sm:$0xf0] }
  0xc5   :  { %v2778_v6 = vpop.f32.mrf.mxu3  ;;  %v1232_v7 = vpop.f32.mrf.mxu2  ;;  %v1379_v22 = vmax.f32 %v1226_v13, 0.0 }
  0xc6   :  { %v889_v8 = vpop.f32.mrf.mxu0 }
  0xc7   :  { %v890_v10 = vadd.f32 %v2701_v1, %v889_v8  ;;  %v1058_v12 = vpop.f32.mrf.mxu1 }
  0xc9   :  { %v1059_v14 = vadd.f32 %v1058_v12, %v890_v10 }
  0xca   :  { %2039 = vmatmul.msk.bf16.gmra.mxu2 %vm771_vm0, %v1726_v9  ;;  %v1750_v9 = vor.u32 %v2103_v3, %v1749_v2 }
  0xcb   :  { %v1228_v18 = vadd.f32 %v1227_v41, %v1059_v14  ;;  %v1738_v41 = vor.u32 %v2100_v35, %v1737_v34  ;;  %v1761_v35 = vld [vmem:[%s3341_s0 + $0x170] sm:$0xf] }
  0xcd   :  { %v1380_v23 = vmax.f32 %v1228_v18, 0.0  ;;  %v2800_v24 = vpop.f32.mrf.mxu3  ;;  %v1235_v25 = vpop.f32.mrf.mxu2 }
  0xce   :  { %v892_v27 = vpop.f32.mrf.mxu0 }
  0xcf   :  { %v2186_v31 = vpack.c.bf16 %v1380_v23, %v1379_v22  ;;  %v1061_v32 = vpop.f32.mrf.mxu1  ;;  %v893_v33 = vadd.f32 %v2701_v1, %v892_v27  ;;  %v1730_v27 = vor.u32 %v2099_v16, %v1729_v15 }
  0xd1   :  { %2334 = vst [vmem:[%s3343_s3 + $0x10] sm:$0xff] %v2186_v31   ;;  %931 = vmatmul.bf16.gmra.mxu0 %v1706_v26  ;;  %v1062_v36 = vadd.f32 %v1061_v32, %v893_v33  ;;  %v1734_v31 = vor.u32 %v2098_v20, %v1731_v21  ;;  %v2105_v20 = vld [vmem:[%s3341_s0 + $0x170] sm:$0xf0]  ;;  %v2152_v21 = vld [vmem:[%s3341_s0 + $0x2ec] sm:$0xf] }
  0xd2   :  { %1180 = vmatmul.bf16.gmra.mxu3 %v1902_v29  ;;  %1100 = vmatmul.bf16.gmra.mxu1 %v1710_v30  ;;  %v1926_v30 = vor.u32 %v2146_v17, %v1923_v19  ;;  %v1753_v19 = vld [vmem:[%s3341_s0 + $0x168] sm:$0xf] }
  0xd3   :  { %v1231_v44 = vadd.f32 %v1230_v58, %v1062_v36  ;;  %v1718_v58 = vor.u32 %v2096_v47, %v1717_v46  ;;  %v2106_v36 = vld [vmem:[%s3341_s0 + $0x178] sm:$0xf0] }
  0xd5   :  { %v2812_v37 = vpop.f32.mrf.mxu3  ;;  %v1237_v38 = vpop.f32.mrf.mxu2  ;;  %v1381_v53 = vmax.f32 %v1231_v44, 0.0 }
  0xd6   :  { %v894_v39 = vpop.f32.mrf.mxu0 }
  0xd7   :  { %v895_v42 = vadd.f32 %v2701_v1, %v894_v39  ;;  %v1063_v43 = vpop.f32.mrf.mxu1 }
  0xd9   :  { %v1064_v45 = vadd.f32 %v1063_v43, %v895_v42  ;;  %v1762_v43 = vor.u32 %v2106_v36, %v1761_v35 }
  0xda   :  { %2040 = vmatmul.msk.bf16.gmra.mxu2 %vm771_vm0, %v1738_v41 }
  0xdb   :  { %v1233_v49 = vadd.f32 %v1232_v7, %v1064_v45 }
  0xdd   :  { %v1382_v54 = vmax.f32 %v1233_v49, 0.0  ;;  %v2834_v55 = vpop.f32.mrf.mxu3  ;;  %v1240_v56 = vpop.f32.mrf.mxu2  ;;  %v2102_v49 = vld [vmem:[%s3341_s0 + $0x158] sm:$0xf0] }
  0xde   :  { %v897_v59 = vpop.f32.mrf.mxu0 }
  0xdf   :  { %v2191_v62 = vpack.c.bf16 %v1382_v54, %v1381_v53  ;;  %v1066_v63 = vpop.f32.mrf.mxu1  ;;  %v898_v0 = vadd.f32 %v2701_v1, %v897_v59  ;;  %v2101_v53 = vld [vmem:[%s3341_s0 + $0x154] sm:$0xf]  ;;  %v1743_v54 = vld [vmem:[%s3341_s0 + $0x15c] sm:$0xf0] }
  0xe1   :  { %2335 = vst [vmem:[%s3343_s3 + $0x18] sm:$0xff] %v2191_v62   ;;  %936 = vmatmul.bf16.gmra.mxu0 %v1718_v58  ;;  %v1067_v4 = vadd.f32 %v1066_v63, %v898_v0  ;;  %v1938_v63 = vor.u32 %v2149_v50, %v1935_v52  ;;  %v1746_v0 = vor.u32 %v2101_v53, %v1743_v54  ;;  %v1765_v54 = vld [vmem:[%s3341_s0 + $0x180] sm:$0xf] }
  0xe2   :  { %1185 = vmatmul.bf16.gmra.mxu3 %v1914_v60  ;;  %1105 = vmatmul.bf16.gmra.mxu1 %v1722_v61  ;;  %v1742_v61 = vor.u32 %v2102_v49, %v1741_v48 }
  0xe3   :  { %v1236_v13 = vadd.f32 %v1235_v25, %v1067_v4 }
  0xe5   :  { %v2846_v5 = vpop.f32.mrf.mxu3  ;;  %v1242_v7 = vpop.f32.mrf.mxu2  ;;  %v1383_v22 = vmax.f32 %v1236_v13, 0.0 }
  0xe6   :  { %v899_v8 = vpop.f32.mrf.mxu0 }
  0xe7   :  { %v900_v10 = vadd.f32 %v2701_v1, %v899_v8  ;;  %v1068_v12 = vpop.f32.mrf.mxu1  ;;  %v2109_v8 = vld [vmem:[%s3341_s0 + $0x190] sm:$0xf0] }
  0xe9   :  { %v1069_v14 = vadd.f32 %v1068_v12, %v900_v10 }
  0xea   :  { %2041 = vmatmul.msk.bf16.gmra.mxu2 %vm771_vm0, %v1750_v9 }
  0xeb   :  { %v1238_v18 = vadd.f32 %v1237_v38, %v1069_v14 }
  0xed   :  { %v1384_v23 = vmax.f32 %v1238_v18, 0.0  ;;  %v2868_v25 = vpop.f32.mrf.mxu3  ;;  %v1245_v26 = vpop.f32.mrf.mxu2 }
  0xee   :  { %v902_v29 = vpop.f32.mrf.mxu0 }
  0xef   :  { %v2196_v32 = vpack.c.bf16 %v1384_v23, %v1383_v22  ;;  %v1071_v33 = vpop.f32.mrf.mxu1  ;;  %v903_v34 = vadd.f32 %v2701_v1, %v902_v29  ;;  %v1947_v23 = vld [vmem:[%s3341_s0 + $0x2f4] sm:$0xf0] }
  0xf0   :  { %v1950_v35 = vor.u32 %v2152_v21, %v1947_v23 }
  0xf1   :  { %2336 = vst [vmem:[%s3343_s3 + $0x20] sm:$0xff] %v2196_v32   ;;  %941 = vmatmul.bf16.gmra.mxu0 %v1730_v27  ;;  %v1072_v38 = vadd.f32 %v1071_v33, %v903_v34  ;;  %v1755_v27 = vld [vmem:[%s3341_s0 + $0x174] sm:$0xf0]  ;;  %v1754_v33 = vor.u32 %v2105_v20, %v1753_v19 }
  0xf2   :  { %1190 = vmatmul.bf16.gmra.mxu3 %v1926_v30  ;;  %1110 = vmatmul.bf16.gmra.mxu1 %v1734_v31 }
  0xf3   :  { %v1241_v46 = vadd.f32 %v1240_v56, %v1072_v38 }
  0xf5   :  { %v2880_v39 = vpop.f32.mrf.mxu3  ;;  %v1247_v41 = vpop.f32.mrf.mxu2  ;;  %v1385_v56 = vmax.f32 %v1241_v46, 0.0 }
  0xf6   :  { %v904_v42 = vpop.f32.mrf.mxu0 }
  0xf7   :  { %v905_v44 = vadd.f32 %v2701_v1, %v904_v42  ;;  %v1073_v45 = vpop.f32.mrf.mxu1 }
  0xf9   :  { %v1074_v47 = vadd.f32 %v1073_v45, %v905_v44  ;;  %v2112_v44 = vld [vmem:[%s3341_s0 + $0x1a8] sm:$0xf0] }
  0xfa   :  { %2042 = vmatmul.msk.bf16.gmra.mxu2 %vm771_vm0, %v1762_v43  ;;  %v1785_v43 = vld [vmem:[%s3341_s0 + $0x1a0] sm:$0xf] }
  0xfb   :  { %v1243_v51 = vadd.f32 %v1242_v7, %v1074_v47  ;;  %v1773_v7 = vld [vmem:[%s3341_s0 + $0x188] sm:$0xf]  ;;  %v1786_v49 = vor.u32 %v2112_v44, %v1785_v43 }
  0xfc   :  { %v1774_v14 = vor.u32 %v2109_v8, %v1773_v7 }
  0xfd   :  { %v1386_v58 = vmax.f32 %v1243_v51, 0.0  ;;  %v2902_v59 = vpop.f32.mrf.mxu3  ;;  %v1250_v60 = vpop.f32.mrf.mxu2 }
  0xfe   :  { %v907_v62 = vpop.f32.mrf.mxu0 }
  0xff   :  { %v2201_v2 = vpack.c.bf16 %v1386_v58, %v1385_v56  ;;  %v1076_v3 = vpop.f32.mrf.mxu1  ;;  %v908_v4 = vadd.f32 %v2701_v1, %v907_v62  ;;  %v2108_v56 = vld [vmem:[%s3341_s0 + $0x188] sm:$0xf0]  ;;  %v1893_v58 = vld [vmem:[%s3341_s0 + $0x278] sm:$0xf]  ;;  %v2107_v62 = vld [vmem:[%s3341_s0 + $0x184] sm:$0xf] }
 0x100   :  { %v1766_v7 = vor.u32 %v2108_v56, %v1765_v54 }
 0x101   :  { %2337 = vst [vmem:[%s3343_s3 + $0x28] sm:$0xff] %v2201_v2   ;;  %946 = vmatmul.bf16.gmra.mxu0 %v1742_v61  ;;  %v1077_v9 = vadd.f32 %v1076_v3, %v908_v4 }
 0x102   :  { %1195 = vmatmul.bf16.gmra.mxu3 %v1938_v63  ;;  %1115 = vmatmul.bf16.gmra.mxu1 %v1746_v0  ;;  %v1767_v63 = vld [vmem:[%s3341_s0 + $0x18c] sm:$0xf0] }
 0x103   :  { %v1246_v17 = vadd.f32 %v1245_v26, %v1077_v9  ;;  %v2104_v26 = vld [vmem:[%s3341_s0 + $0x16c] sm:$0xf] }
 0x104   :  { %v1758_v36 = vor.u32 %v2104_v26, %v1755_v27 }
 0x105   :  { %v2914_v10 = vpop.f32.mrf.mxu3  ;;  %v1252_v12 = vpop.f32.mrf.mxu2  ;;  %v1387_v29 = vmax.f32 %v1246_v17, 0.0  ;;  %v2115_v17 = vld [vmem:[%s3341_s0 + $0x1c0] sm:$0xf0] }
 0x106   :  { %v909_v13 = vpop.f32.mrf.mxu0 }
 0x107   :  { %v910_v15 = vadd.f32 %v2701_v1, %v909_v13  ;;  %v1078_v16 = vpop.f32.mrf.mxu1 }
 0x109   :  { %v1079_v18 = vadd.f32 %v1078_v16, %v910_v15  ;;  %v1797_v16 = vld [vmem:[%s3341_s0 + $0x1b8] sm:$0xf] }
 0x10a   :  { %2043 = vmatmul.msk.bf16.gmra.mxu2 %vm771_vm0, %v1774_v14  ;;  %v1798_v26 = vor.u32 %v2115_v17, %v1797_v16  ;;  %v2113_v17 = vld [vmem:[%s3341_s0 + $0x1b4] sm:$0xf] }
 0x10b   :  { %v1248_v22 = vadd.f32 %v1247_v41, %v1079_v18  ;;  %v998_v18 = vadd.f32 %v2701_v1, %v2710_v11  ;;  %v2111_v11 = vld [vmem:[%s3341_s0 + $0x1a0] sm:$0xf0] }
 0x10d   :  { %v1388_v30 = vmax.f32 %v1248_v22, 0.0  ;;  %v2936_v31 = vpop.f32.mrf.mxu3  ;;  %v1255_v32 = vpop.f32.mrf.mxu2 }
 0x10e   :  { %v912_v34 = vpop.f32.mrf.mxu0 }
 0x10f   :  { %v2206_v38 = vpack.c.bf16 %v1388_v30, %v1387_v29  ;;  %v1081_v41 = vpop.f32.mrf.mxu1  ;;  %v913_v42 = vadd.f32 %v2701_v1, %v912_v34  ;;  %v1777_v34 = vld [vmem:[%s3341_s0 + $0x198] sm:$0xf] }
 0x111   :  { %2338 = vst [vmem:[%s3343_s3 + $0x30] sm:$0xff] %v2206_v38   ;;  %951 = vmatmul.bf16.gmra.mxu0 %v1754_v33  ;;  %v1082_v45 = vadd.f32 %v1081_v41, %v913_v42  ;;  %v2110_v38 = vld [vmem:[%s3341_s0 + $0x19c] sm:$0xf]  ;;  %v1779_v41 = vld [vmem:[%s3341_s0 + $0x1a4] sm:$0xf0]  ;;  %v1000_v42 = vadd.f32 %v2701_v1, %v2732_v28 }
 0x112   :  { %1200 = vmatmul.bf16.gmra.mxu3 %v1950_v35  ;;  %1120 = vmatmul.bf16.gmra.mxu1 %v1758_v36  ;;  %v1905_v35 = vld [vmem:[%s3341_s0 + $0x290] sm:$0xf] }
 0x113   :  { %v1251_v52 = vadd.f32 %v1250_v60, %v1082_v45  ;;  %v2139_v60 = vld [vmem:[%s3341_s0 + $0x280] sm:$0xf0]  ;;  %v1809_v28 = vld [vmem:[%s3341_s0 + $0x1d0] sm:$0xf] }
 0x114   :  { %v1894_v9 = vor.u32 %v2139_v60, %v1893_v58  ;;  %v2118_v58 = vld [vmem:[%s3341_s0 + $0x1d8] sm:$0xf0] }
 0x115   :  { %v2948_v46 = vpop.f32.mrf.mxu3  ;;  %v1257_v47 = vpop.f32.mrf.mxu2  ;;  %v1389_v0 = vmax.f32 %v1251_v52, 0.0  ;;  %v1782_v52 = vor.u32 %v2110_v38, %v1779_v41  ;;  %v1008_v38 = vadd.f32 %v2701_v1, %v2778_v6  ;;  %v2117_v6 = vld [vmem:[%s3341_s0 + $0x1d0] sm:$0xf0] }
 0x116   :  { %v914_v48 = vpop.f32.mrf.mxu0 }
 0x117   :  { %v915_v50 = vadd.f32 %v2701_v1, %v914_v48  ;;  %v1083_v51 = vpop.f32.mrf.mxu1 }
 0x119   :  { %v1084_v53 = vadd.f32 %v1083_v51, %v915_v50 }
 0x11a   :  { %2044 = vmatmul.msk.bf16.gmra.mxu2 %vm771_vm0, %v1786_v49 }
 0x11b   :  { %v1253_v61 = vadd.f32 %v1252_v12, %v1084_v53  ;;  %v1770_v12 = vor.u32 %v2107_v62, %v1767_v63 }
 0x11d   :  { %v1390_v2 = vmax.f32 %v1253_v61, 0.0  ;;  %v2970_v3 = vpop.f32.mrf.mxu3  ;;  %v1260_v4 = vpop.f32.mrf.mxu2  ;;  %v1003_v61 = vadd.f32 %v2701_v1, %v2744_v40  ;;  %v2114_v40 = vld [vmem:[%s3341_s0 + $0x1b8] sm:$0xf0] }
 0x11e   :  { %v917_v8 = vpop.f32.mrf.mxu0 }
 0x11f   :  { %v2211_v13 = vpack.c.bf16 %v1390_v2, %v1389_v0  ;;  %v1086_v14 = vpop.f32.mrf.mxu1  ;;  %v918_v15 = vadd.f32 %v2701_v1, %v917_v8 }
 0x121   :  { %2339 = vst [vmem:[%s3343_s3 + $0x38] sm:$0xff] %v2211_v13   ;;  %956 = vmatmul.bf16.gmra.mxu0 %v1766_v7  ;;  %v1087_v19 = vadd.f32 %v1086_v14, %v918_v15  ;;  %v1810_v7 = vor.u32 %v2118_v58, %v1809_v28  ;;  %v1789_v14 = vld [vmem:[%s3341_s0 + $0x1b0] sm:$0xf]  ;;  %v1917_v15 = vld [vmem:[%s3341_s0 + $0x2a8] sm:$0xf] }
 0x122   :  { %2053 = vmatmul.msk.bf16.vlgmr.msra.gmra.mxu3 %vm771_vm0, %v1894_v9  ;;  %1125 = vmatmul.bf16.gmra.mxu1 %v1770_v12  ;;  %v2116_v58 = vld [vmem:[%s3341_s0 + $0x1cc] sm:$0xf] }
 0x123   :  { %v1256_v30 = vadd.f32 %v1255_v32, %v1087_v19  ;;  %v2142_v32 = vld [vmem:[%s3341_s0 + $0x298] sm:$0xf0]  ;;  %v1005_v19 = vadd.f32 %v2701_v1, %v2766_v57  ;;  %v1821_v57 = vld [vmem:[%s3341_s0 + $0x1e8] sm:$0xf] }
 0x124   :  { %v1906_v51 = vor.u32 %v2142_v32, %v1905_v35  ;;  %v2121_v32 = vld [vmem:[%s3341_s0 + $0x1f0] sm:$0xf0] }
 0x125   :  { %v1166_v20 = vpop.f32.mrf.mxu3  ;;  %v1262_v21 = vpop.f32.mrf.mxu2  ;;  %v1391_v43 = vmax.f32 %v1256_v30, 0.0 }
 0x126   :  { %v2985_v22 = vadd.f32 %v1166_v20, %v998_v18  ;;  %v919_v23 = vpop.f32.mrf.mxu0  ;;  %v1791_v18 = vld [vmem:[%s3341_s0 + $0x1bc] sm:$0xf0] }
 0x127   :  { %v920_v27 = vadd.f32 %v2701_v1, %v919_v23  ;;  %v1088_v29 = vpop.f32.mrf.mxu1 }
 0x129   :  { %v1089_v33 = vadd.f32 %v1088_v29, %v920_v27 }
 0x12a   :  { %2045 = vmatmul.msk.bf16.gmra.mxu2 %vm771_vm0, %v1798_v26 }
 0x12b   :  { %v1258_v36 = vadd.f32 %v1257_v47, %v1089_v33  ;;  %v1778_v47 = vor.u32 %v2111_v11, %v1777_v34  ;;  %v1794_v34 = vor.u32 %v2113_v17, %v1791_v18  ;;  %v1013_v17 = vadd.f32 %v2701_v1, %v2812_v37  ;;  %v2120_v37 = vld [vmem:[%s3341_s0 + $0x1e8] sm:$0xf0] }
 0x12d   :  { %v1392_v44 = vmax.f32 %v1258_v36, 0.0  ;;  %v1168_v45 = vpop.f32.mrf.mxu3  ;;  %v1265_v48 = vpop.f32.mrf.mxu2 }
 0x12e   :  { %v3009_v49 = vadd.f32 %v1168_v45, %v1000_v42  ;;  %v922_v50 = vpop.f32.mrf.mxu0 }
 0x12f   :  { %v2216_v53 = vpack.c.bf16 %v1392_v44, %v1391_v43  ;;  %v1091_v54 = vpop.f32.mrf.mxu1  ;;  %v923_v56 = vadd.f32 %v2701_v1, %v922_v50 }
 0x131   :  { %2340 = vst [vmem:[%s3343_s3 + $0x40] sm:$0xff] %v2216_v53   ;;  %961 = vmatmul.bf16.gmra.mxu0 %v1778_v47  ;;  %v1092_v60 = vadd.f32 %v1091_v54, %v923_v56  ;;  %v1822_v47 = vor.u32 %v2121_v32, %v1821_v57  ;;  %v1801_v54 = vld [vmem:[%s3341_s0 + $0x1c8] sm:$0xf]  ;;  %v1929_v56 = vld [vmem:[%s3341_s0 + $0x2c0] sm:$0xf] }
 0x132   :  { %2054 = vmatmul.msk.bf16.gmra.mxu3 %vm771_vm0, %v1906_v51  ;;  %1130 = vmatmul.bf16.gmra.mxu1 %v1782_v52  ;;  %v2119_v32 = vld [vmem:[%s3341_s0 + $0x1e4] sm:$0xf] }
 0x133   :  { %v1261_v12 = vadd.f32 %v1260_v4, %v1092_v60  ;;  %v2145_v4 = vld [vmem:[%s3341_s0 + $0x2b0] sm:$0xf0]  ;;  %v1010_v60 = vadd.f32 %v2701_v1, %v2800_v24  ;;  %v1833_v24 = vld [vmem:[%s3341_s0 + $0x200] sm:$0xf] }
 0x134   :  { %v1918_v33 = vor.u32 %v2145_v4, %v1917_v15  ;;  %v2124_v4 = vld [vmem:[%s3341_s0 + $0x208] sm:$0xf0] }
 0x135   :  { %v1171_v62 = vpop.f32.mrf.mxu3  ;;  %v1267_v63 = vpop.f32.mrf.mxu2  ;;  %v1393_v20 = vmax.f32 %v1261_v12, 0.0 }
 0x136   :  { %v3024_v0 = vadd.f32 %v1171_v62, %v1003_v61  ;;  %v924_v2 = vpop.f32.mrf.mxu0  ;;  %v1803_v61 = vld [vmem:[%s3341_s0 + $0x1d4] sm:$0xf0] }
 0x137   :  { %v925_v8 = vadd.f32 %v2701_v1, %v924_v2  ;;  %v1093_v9 = vpop.f32.mrf.mxu1 }
 0x139   :  { %v1094_v13 = vadd.f32 %v1093_v9, %v925_v8 }
 0x13a   :  { %2046 = vmatmul.msk.bf16.gmra.mxu2 %vm771_vm0, %v1810_v7 }
 0x13b   :  { %v1263_v16 = vadd.f32 %v1262_v21, %v1094_v13  ;;  %v1790_v21 = vor.u32 %v2114_v40, %v1789_v14  ;;  %v1806_v14 = vor.u32 %v2116_v58, %v1803_v61  ;;  %v1018_v58 = vadd.f32 %v2701_v1, %v2846_v5  ;;  %v2123_v5 = vld [vmem:[%s3341_s0 + $0x200] sm:$0xf0] }
 0x13d   :  { %v1394_v23 = vmax.f32 %v1263_v16, 0.0  ;;  %v1173_v26 = vpop.f32.mrf.mxu3  ;;  %v1270_v27 = vpop.f32.mrf.mxu2 }
 0x13e   :  { %v3048_v29 = vadd.f32 %v1173_v26, %v1005_v19  ;;  %v927_v30 = vpop.f32.mrf.mxu0 }
 0x13f   :  { %v2221_v11 = vpack.c.bf16 %v1394_v23, %v1393_v20  ;;  %v1096_v35 = vpop.f32.mrf.mxu1  ;;  %v928_v36 = vadd.f32 %v2701_v1, %v927_v30 }
 0x141   :  { %2341 = vst [vmem:[%s3343_s3 + $0x48] sm:$0xff] %v2221_v11   ;;  %966 = vmatmul.bf16.gmra.mxu0 %v1790_v21  ;;  %v1097_v41 = vadd.f32 %v1096_v35, %v928_v36  ;;  %v1834_v21 = vor.u32 %v2124_v4, %v1833_v24  ;;  %v1813_v35 = vld [vmem:[%s3341_s0 + $0x1e0] sm:$0xf]  ;;  %v1941_v36 = vld [vmem:[%s3341_s0 + $0x2d8] sm:$0xf] }
 0x142   :  { %2055 = vmatmul.msk.bf16.gmra.mxu3 %vm771_vm0, %v1918_v33  ;;  %1135 = vmatmul.bf16.gmra.mxu1 %v1794_v34  ;;  %v2122_v4 = vld [vmem:[%s3341_s0 + $0x1fc] sm:$0xf] }
 0x143   :  { %v1266_v52 = vadd.f32 %v1265_v48, %v1097_v41  ;;  %v2148_v48 = vld [vmem:[%s3341_s0 + $0x2c8] sm:$0xf0]  ;;  %v1015_v41 = vadd.f32 %v2701_v1, %v2834_v55  ;;  %v1845_v55 = vld [vmem:[%s3341_s0 + $0x218] sm:$0xf] }
 0x144   :  { %v1930_v13 = vor.u32 %v2148_v48, %v1929_v56  ;;  %v2127_v48 = vld [vmem:[%s3341_s0 + $0x220] sm:$0xf0] }
 0x145   :  { %v1176_v42 = vpop.f32.mrf.mxu3  ;;  %v1272_v43 = vpop.f32.mrf.mxu2  ;;  %v1395_v62 = vmax.f32 %v1266_v52, 0.0 }
 0x146   :  { %v3063_v44 = vadd.f32 %v1176_v42, %v1008_v38  ;;  %v929_v45 = vpop.f32.mrf.mxu0  ;;  %v1815_v38 = vld [vmem:[%s3341_s0 + $0x1ec] sm:$0xf0] }
 0x147   :  { %v930_v50 = vadd.f32 %v2701_v1, %v929_v45  ;;  %v1098_v51 = vpop.f32.mrf.mxu1 }
 0x149   :  { %v1099_v53 = vadd.f32 %v1098_v51, %v930_v50 }
 0x14a   :  { %2047 = vmatmul.msk.bf16.gmra.mxu2 %vm771_vm0, %v1822_v47 }
 0x14b   :  { %v1268_v28 = vadd.f32 %v1267_v63, %v1099_v53  ;;  %v1802_v63 = vor.u32 %v2117_v6, %v1801_v54  ;;  %v1818_v54 = vor.u32 %v2119_v32, %v1815_v38  ;;  %v1023_v32 = vadd.f32 %v2701_v1, %v2880_v39  ;;  %v2126_v39 = vld [vmem:[%s3341_s0 + $0x218] sm:$0xf0] }
 0x14d   :  { %v1396_v2 = vmax.f32 %v1268_v28, 0.0  ;;  %v1178_v7 = vpop.f32.mrf.mxu3  ;;  %v1275_v8 = vpop.f32.mrf.mxu2 }
 0x14e   :  { %v3087_v9 = vadd.f32 %v1178_v7, %v1010_v60  ;;  %v932_v12 = vpop.f32.mrf.mxu0 }
 0x14f   :  { %v2226_v40 = vpack.c.bf16 %v1396_v2, %v1395_v62  ;;  %v1101_v15 = vpop.f32.mrf.mxu1  ;;  %v933_v16 = vadd.f32 %v2701_v1, %v932_v12 }
 0x151   :  { %2342 = vst [vmem:[%s3343_s3 + $0x50] sm:$0xff] %v2226_v40   ;;  %971 = vmatmul.bf16.gmra.mxu0 %v1802_v63  ;;  %v1102_v18 = vadd.f32 %v1101_v15, %v933_v16  ;;  %v1846_v63 = vor.u32 %v2127_v48, %v1845_v55  ;;  %v1825_v15 = vld [vmem:[%s3341_s0 + $0x1f8] sm:$0xf]  ;;  %v1953_v16 = vld [vmem:[%s3341_s0 + $0x2f0] sm:$0xf]  ;;  %v1025_v48 = vadd.f32 %v2701_v1, %v2902_v59 }
 0x152   :  { %2056 = vmatmul.msk.bf16.gmra.mxu3 %vm771_vm0, %v1930_v13  ;;  %1140 = vmatmul.bf16.gmra.mxu1 %v1806_v14  ;;  %v2125_v55 = vld [vmem:[%s3341_s0 + $0x214] sm:$0xf]  ;;  %v1869_v59 = vld [vmem:[%s3341_s0 + $0x248] sm:$0xf] }
 0x153   :  { %v1271_v34 = vadd.f32 %v1270_v27, %v1102_v18  ;;  %v2151_v27 = vld [vmem:[%s3341_s0 + $0x2e0] sm:$0xf0]  ;;  %v1020_v18 = vadd.f32 %v2701_v1, %v2868_v25  ;;  %v1857_v25 = vld [vmem:[%s3341_s0 + $0x230] sm:$0xf] }
 0x154   :  { %v1942_v53 = vor.u32 %v2151_v27, %v1941_v36  ;;  %v2130_v27 = vld [vmem:[%s3341_s0 + $0x238] sm:$0xf0] }
 0x155   :  { %v1181_v19 = vpop.f32.mrf.mxu3  ;;  %v1277_v20 = vpop.f32.mrf.mxu2  ;;  %v1397_v42 = vmax.f32 %v1271_v34, 0.0 }
 0x156   :  { %v3102_v23 = vadd.f32 %v1181_v19, %v1013_v17  ;;  %v934_v26 = vpop.f32.mrf.mxu0  ;;  %v1827_v17 = vld [vmem:[%s3341_s0 + $0x204] sm:$0xf0] }
 0x157   :  { %v935_v30 = vadd.f32 %v2701_v1, %v934_v26  ;;  %v1103_v33 = vpop.f32.mrf.mxu1 }
 0x159   :  { %v1104_v11 = vadd.f32 %v1103_v33, %v935_v30 }
 0x15a   :  { %2048 = vmatmul.msk.bf16.gmra.mxu2 %vm771_vm0, %v1834_v21 }
 0x15b   :  { %v1273_v57 = vadd.f32 %v1272_v43, %v1104_v11  ;;  %v1814_v43 = vor.u32 %v2120_v37, %v1813_v35  ;;  %v1830_v35 = vor.u32 %v2122_v4, %v1827_v17 }
 0x15d   :  { %v1398_v45 = vmax.f32 %v1273_v57, 0.0  ;;  %v1183_v47 = vpop.f32.mrf.mxu3  ;;  %v1280_v50 = vpop.f32.mrf.mxu2 }
 0x15e   :  { %v3126_v51 = vadd.f32 %v1183_v47, %v1015_v41  ;;  %v937_v52 = vpop.f32.mrf.mxu0 }
 0x15f   :  { %v2231_v6 = vpack.c.bf16 %v1398_v45, %v1397_v42  ;;  %v1106_v56 = vpop.f32.mrf.mxu1  ;;  %v938_v28 = vadd.f32 %v2701_v1, %v937_v52 }
 0x161   :  { %2343 = vst [vmem:[%s3343_s3 + $0x58] sm:$0xff] %v2231_v6   ;;  %976 = vmatmul.bf16.gmra.mxu0 %v1814_v43  ;;  %v1107_v61 = vadd.f32 %v1106_v56, %v938_v28  ;;  %v1858_v43 = vor.u32 %v2130_v27, %v1857_v25  ;;  %v1837_v56 = vld [vmem:[%s3341_s0 + $0x210] sm:$0xf] }
 0x162   :  { %2057 = vmatmul.msk.bf16.gmra.mxu3 %vm771_vm0, %v1942_v53  ;;  %1145 = vmatmul.bf16.gmra.mxu1 %v1818_v54 }
 0x163   :  { %v1276_v14 = vadd.f32 %v1275_v8, %v1107_v61  ;;  %v2154_v8 = vld [vmem:[%s3341_s0 + $0x2f8] sm:$0xf0] }
 0x164   :  { %v1954_v11 = vor.u32 %v2154_v8, %v1953_v16  ;;  %v1028_v16 = vadd.f32 %v2701_v1, %v2914_v10  ;;  %v2129_v10 = vld [vmem:[%s3341_s0 + $0x230] sm:$0xf0] }
 0x165   :  { %v1186_v60 = vpop.f32.mrf.mxu3  ;;  %v1282_v62 = vpop.f32.mrf.mxu2  ;;  %v1399_v19 = vmax.f32 %v1276_v14, 0.0 }
 0x166   :  { %v3141_v2 = vadd.f32 %v1186_v60, %v1018_v58  ;;  %v939_v7 = vpop.f32.mrf.mxu0 }
 0x167   :  { %v940_v12 = vadd.f32 %v2701_v1, %v939_v7  ;;  %v1108_v13 = vpop.f32.mrf.mxu1 }
 0x169   :  { %v1109_v40 = vadd.f32 %v1108_v13, %v940_v12 }
 0x16a   :  { %2049 = vmatmul.msk.bf16.gmra.mxu2 %vm771_vm0, %v1846_v63  ;;  %v1838_v63 = vor.u32 %v2126_v39, %v1837_v56 }
 0x16b   :  { %v1278_v24 = vadd.f32 %v1277_v20, %v1109_v40  ;;  %v1826_v20 = vor.u32 %v2123_v5, %v1825_v15  ;;  %v2133_v5 = vld [vmem:[%s3341_s0 + $0x250] sm:$0xf0] }
 0x16d   :  { %v1400_v26 = vmax.f32 %v1278_v24, 0.0  ;;  %v1188_v21 = vpop.f32.mrf.mxu3  ;;  %v1285_v30 = vpop.f32.mrf.mxu2 }
 0x16e   :  { %v3165_v33 = vadd.f32 %v1188_v21, %v1020_v18  ;;  %v942_v34 = vpop.f32.mrf.mxu0 }
 0x16f   :  { %v2236_v37 = vpack.c.bf16 %v1400_v26, %v1399_v19  ;;  %v1111_v36 = vpop.f32.mrf.mxu1  ;;  %v943_v57 = vadd.f32 %v2701_v1, %v942_v34  ;;  %v1870_v19 = vor.u32 %v2133_v5, %v1869_v59  ;;  %v3217_v26 = vld [vmem:[%s3342_s2] ss:$0 sm:$0xff] }
 0x171   :  { %2344 = vst [vmem:[%s3343_s3 + $0x60] sm:$0xff] %v2236_v37   ;;  %981 = vmatmul.bf16.gmra.mxu0 %v1826_v20  ;;  %v1112_v38 = vadd.f32 %v1111_v36, %v943_v57  ;;  %v2128_v37 = vld [vmem:[%s3341_s0 + $0x22c] sm:$0xf]  ;;  %v1030_v36 = vadd.f32 %v3217_v26, %v2936_v31  ;;  %v1881_v31 = vld [vmem:[%s3341_s0 + $0x260] sm:$0xf] }
 0x172   :  { %2058 = vmatmul.msk.bf16.gmra.mxu3 %vm771_vm0, %v1954_v11  ;;  %1150 = vmatmul.bf16.gmra.mxu1 %v1830_v35 }
 0x173   :  { %v1281_v54 = vadd.f32 %v1280_v50, %v1112_v38  ;;  %v1839_v50 = vld [vmem:[%s3341_s0 + $0x21c] sm:$0xf0] }
 0x175   :  { %v1191_v41 = vpop.f32.mrf.mxu3  ;;  %v1287_v42 = vpop.f32.mrf.mxu2  ;;  %v1401_v58 = vmax.f32 %v1281_v54, 0.0  ;;  %v2136_v54 = vld [vmem:[%s3341_s0 + $0x268] sm:$0xf0] }
 0x176   :  { %v3180_v45 = vadd.f32 %v1191_v41, %v1023_v32  ;;  %v944_v47 = vpop.f32.mrf.mxu0 }
 0x177   :  { %v945_v52 = vadd.f32 %v2701_v1, %v944_v47  ;;  %v1113_v53 = vpop.f32.mrf.mxu1 }
 0x179   :  { %v1114_v6 = vadd.f32 %v1113_v53, %v945_v52 }
 0x17a   :  { %2050 = vmatmul.msk.bf16.gmra.mxu2 %vm771_vm0, %v1858_v43 }
 0x17b   :  { %v1283_v28 = vadd.f32 %v1282_v62, %v1114_v6  ;;  %v1842_v62 = vor.u32 %v2125_v55, %v1839_v50  ;;  %v1033_v6 = vadd.f32 %v3217_v26, %v2948_v46 }
 0x17d   :  { %v1402_v61 = vmax.f32 %v1283_v28, 0.0  ;;  %v1193_v60 = vpop.f32.mrf.mxu3  ;;  %v1290_v7 = vpop.f32.mrf.mxu2 }
 0x17e   :  { %v3198_v12 = vadd.f32 %v1193_v60, %v1025_v48  ;;  %v947_v13 = vpop.f32.mrf.mxu0  ;;  %v1882_v48 = vor.u32 %v2136_v54, %v1881_v31 }
 0x17f   :  { %v2241_v14 = vpack.c.bf16 %v1402_v61, %v1401_v58  ;;  %v1116_v40 = vpop.f32.mrf.mxu1  ;;  %v948_v15 = vadd.f32 %v2701_v1, %v947_v13  ;;  %v1849_v1 = vld [vmem:[%s3341_s0 + $0x228] sm:$0xf] }
 0x180   :  { %v1850_v38 = vor.u32 %v2129_v10, %v1849_v1 }
 0x181   :  { %2345 = vst [vmem:[%s3343_s3 + $0x68] sm:$0xff] %v2241_v14   ;;  %986 = vmatmul.bf16.gmra.mxu0 %v1838_v63  ;;  %v1117_v24 = vadd.f32 %v1116_v40, %v948_v15 }
 0x182   :  { %1155 = vmatmul.bf16.gmra.mxu1 %v1842_v62  ;;  %v1035_v62 = vadd.f32 %v3217_v26, %v2970_v3 }
 0x183   :  { %v1286_v34 = vadd.f32 %v1285_v30, %v1117_v24  ;;  %v1851_v30 = vld [vmem:[%s3341_s0 + $0x234] sm:$0xf0] }
 0x185   :  { %v1196_v8 = vpop.f32.mrf.mxu3  ;;  %v1292_v4 = vpop.f32.mrf.mxu2  ;;  %v1403_v57 = vmax.f32 %v1286_v34, 0.0 }
 0x186   :  { %v3212_v17 = vadd.f32 %v1196_v8, %v1028_v16  ;;  %v949_v18 = vpop.f32.mrf.mxu0 }
 0x187   :  { %v950_v21 = vadd.f32 %v3217_v26, %v949_v18  ;;  %v1118_v20 = vpop.f32.mrf.mxu1 }
 0x189   :  { %v1119_v11 = vadd.f32 %v1118_v20, %v950_v21 }
 0x18a   :  { %2051 = vmatmul.msk.bf16.gmra.mxu2 %vm771_vm0, %v1870_v19 }
 0x18b   :  { %v1288_v35 = vadd.f32 %v1287_v42, %v1119_v11  ;;  %v1854_v42 = vor.u32 %v2128_v37, %v1851_v30 }
 0x18d   :  { %v1404_v25 = vmax.f32 %v1288_v35, 0.0  ;;  %v1198_v27 = vpop.f32.mrf.mxu3  ;;  %v1295_v32 = vpop.f32.mrf.mxu2 }
 0x18e   :  { %v3235_v41 = vadd.f32 %v1198_v27, %v1030_v36  ;;  %v952_v47 = vpop.f32.mrf.mxu0 }
 0x18f   :  { %v2246_v43 = vpack.c.bf16 %v1404_v25, %v1403_v57  ;;  %v1121_v52 = vpop.f32.mrf.mxu1  ;;  %v953_v53 = vadd.f32 %v3217_v26, %v952_v47 }
 0x191   :  { %2346 = vst [vmem:[%s3343_s3 + $0x70] sm:$0xff] %v2246_v43   ;;  %991 = vmatmul.bf16.gmra.mxu0 %v1850_v38  ;;  %v1122_v56 = vadd.f32 %v1121_v52, %v953_v53 }
 0x192   :  { %1160 = vmatmul.bf16.gmra.mxu1 %v1854_v42 }
 0x193   :  { %v1291_v60 = vadd.f32 %v1290_v7, %v1122_v56 }
 0x195   :  { %v1201_v39 = vpop.f32.mrf.mxu3  ;;  %v1297_v28 = vpop.f32.mrf.mxu2  ;;  %v1405_v14 = vmax.f32 %v1291_v60, 0.0 }
 0x196   :  { %v3249_v55 = vadd.f32 %v1201_v39, %v1033_v6  ;;  %v954_v50 = vpop.f32.mrf.mxu0 }
 0x197   :  { %v955_v58 = vadd.f32 %v3217_v26, %v954_v50  ;;  %v1123_v61 = vpop.f32.mrf.mxu1 }
 0x199   :  { %v1124_v63 = vadd.f32 %v1123_v61, %v955_v58 }
 0x19a   :  { %2052 = vmatmul.msk.bf16.gmra.mxu2 %vm771_vm0, %v1882_v48 }
 0x19b   :  { %v1293_v13 = vadd.f32 %v1292_v4, %v1124_v63 }
 0x19d   :  { %v1406_v46 = vmax.f32 %v1293_v13, 0.0  ;;  %v1203_v40 = vpop.f32.mrf.mxu3  ;;  %v1300_v15 = vpop.f32.mrf.mxu2 }
 0x19e   :  { %v3255_v59 = vadd.f32 %v1203_v40, %v1035_v62  ;;  %v957_v5 = vpop.f32.mrf.mxu0 }
 0x19f   :  { %v2251_v16 = vpack.c.bf16 %v1406_v46, %v1405_v14  ;;  %v1126_v24 = vpop.f32.mrf.mxu1  ;;  %v958_v7 = vadd.f32 %v3217_v26, %v957_v5 }
 0x1a1   :  { %2347 = vst [vmem:[%s3343_s3 + $0x78] sm:$0xff] %v2251_v16   ;;  %v1127_v8 = vadd.f32 %v1126_v24, %v958_v7 }
 0x1a3   :  { %v1296_v20 = vadd.f32 %v1295_v32, %v1127_v8 }
 0x1a5   :  { %v1302_v4 = vpop.f32.mrf.mxu2  ;;  %v1345_v18 = vpop.f32.mrf.mxu3  ;;  %v1407_v10 = vmax.f32 %v1296_v20, 0.0 }
 0x1a6   :  { %v959_v19 = vpop.f32.mrf.mxu0  ;;  %v1346_v1 = vadd.f32 %v1345_v18, %v3063_v44 }
 0x1a7   :  { %v960_v3 = vadd.f32 %v3217_v26, %v959_v19  ;;  %v1128_v21 = vpop.f32.mrf.mxu1 }
 0x1a8   :  { %v1427_v38 = vmax.f32 %v1346_v1, 0.0 }
 0x1a9   :  { %v1129_v34 = vadd.f32 %v1128_v21, %v960_v3 }
 0x1ab   :  { %v1298_v11 = vadd.f32 %v1297_v28, %v1129_v34 }
 0x1ad   :  { %v1408_v35 = vmax.f32 %v1298_v11, 0.0  ;;  %v1305_v37 = vpop.f32.mrf.mxu2  ;;  %v1347_v30 = vpop.f32.mrf.mxu3 }
 0x1ae   :  { %v1348_v36 = vadd.f32 %v1347_v30, %v3087_v9  ;;  %v962_v57 = vpop.f32.mrf.mxu0 }
 0x1af   :  { %v2256_v25 = vpack.c.bf16 %v1408_v35, %v1407_v10  ;;  %v1131_v27 = vpop.f32.mrf.mxu1  ;;  %v963_v32 = vadd.f32 %v3217_v26, %v962_v57 }
 0x1b0   :  { %v1428_v47 = vmax.f32 %v1348_v36, 0.0 }
 0x1b1   :  { %2348 = vst [vmem:[%s3343_s3 + $0x80] sm:$0xff] %v2256_v25   ;;  %v1132_v44 = vadd.f32 %v1131_v27, %v963_v32 }
 0x1b2   :  { %v2306_v42 = vpack.c.bf16 %v1428_v47, %v1427_v38 }
 0x1b3   :  { %v1301_v54 = vadd.f32 %v1300_v15, %v1132_v44 }
 0x1b4   :  { %2358 = vst [vmem:[%s3343_s3 + $0xd0] sm:$0xff] %v2306_v42  }
 0x1b5   :  { %v1307_v43 = vpop.f32.mrf.mxu2  ;;  %v1350_v52 = vpop.f32.mrf.mxu3  ;;  %v1409_v28 = vmax.f32 %v1301_v54, 0.0 }
 0x1b6   :  { %v964_v9 = vpop.f32.mrf.mxu0  ;;  %v1351_v39 = vadd.f32 %v1350_v52, %v3102_v23 }
 0x1b7   :  { %v965_v53 = vadd.f32 %v3217_v26, %v964_v9  ;;  %v1133_v31 = vpop.f32.mrf.mxu1 }
 0x1b8   :  { %v1429_v62 = vmax.f32 %v1351_v39, 0.0 }
 0x1b9   :  { %v1134_v6 = vadd.f32 %v1133_v31, %v965_v53 }
 0x1bb   :  { %v1303_v56 = vadd.f32 %v1302_v4, %v1134_v6 }
 0x1bd   :  { %v1410_v50 = vmax.f32 %v1303_v56, 0.0  ;;  %v1310_v48 = vpop.f32.mrf.mxu2  ;;  %v1352_v58 = vpop.f32.mrf.mxu3 }
 0x1be   :  { %v1353_v61 = vadd.f32 %v1352_v58, %v3126_v51  ;;  %v967_v60 = vpop.f32.mrf.mxu0 }
 0x1bf   :  { %v2261_v63 = vpack.c.bf16 %v1410_v50, %v1409_v28  ;;  %v1136_v13 = vpop.f32.mrf.mxu1  ;;  %v968_v46 = vadd.f32 %v3217_v26, %v967_v60 }
 0x1c0   :  { %v1430_v14 = vmax.f32 %v1353_v61, 0.0 }
 0x1c1   :  { %2349 = vst [vmem:[%s3343_s3 + $0x88] sm:$0xff] %v2261_v63   ;;  %v1137_v23 = vadd.f32 %v1136_v13, %v968_v46 }
 0x1c2   :  { %v2311_v40 = vpack.c.bf16 %v1430_v14, %v1429_v62 }
 0x1c3   :  { %v1306_v7 = vadd.f32 %v1305_v37, %v1137_v23 }
 0x1c4   :  { %2359 = vst [vmem:[%s3343_s3 + $0xd8] sm:$0xff] %v2311_v40  }
 0x1c5   :  { %v1312_v15 = vpop.f32.mrf.mxu2  ;;  %v1355_v5 = vpop.f32.mrf.mxu3  ;;  %v1411_v19 = vmax.f32 %v1306_v7, 0.0 }
 0x1c6   :  { %v969_v51 = vpop.f32.mrf.mxu0  ;;  %v1356_v18 = vadd.f32 %v1355_v5, %v3141_v2 }
 0x1c7   :  { %v970_v16 = vadd.f32 %v3217_v26, %v969_v51  ;;  %v1138_v24 = vpop.f32.mrf.mxu1 }
 0x1c8   :  { %v1431_v35 = vmax.f32 %v1356_v18, 0.0 }
 0x1c9   :  { %v1139_v8 = vadd.f32 %v1138_v24, %v970_v16 }
 0x1cb   :  { %v1308_v4 = vadd.f32 %v1307_v43, %v1139_v8 }
 0x1cd   :  { %v1412_v3 = vmax.f32 %v1308_v4, 0.0  ;;  %v1315_v21 = vpop.f32.mrf.mxu2  ;;  %v1357_v20 = vpop.f32.mrf.mxu3 }
 0x1ce   :  { %v1358_v34 = vadd.f32 %v1357_v20, %v3165_v33  ;;  %v972_v11 = vpop.f32.mrf.mxu0 }
 0x1cf   :  { %v2266_v1 = vpack.c.bf16 %v1412_v3, %v1411_v19  ;;  %v1141_v10 = vpop.f32.mrf.mxu1  ;;  %v973_v37 = vadd.f32 %v3217_v26, %v972_v11 }
 0x1d0   :  { %v1432_v30 = vmax.f32 %v1358_v34, 0.0 }
 0x1d1   :  { %2350 = vst [vmem:[%s3343_s3 + $0x90] sm:$0xff] %v2266_v1   ;;  %v1142_v2 = vadd.f32 %v1141_v10, %v973_v37 }
 0x1d2   :  { %v2316_v36 = vpack.c.bf16 %v1432_v30, %v1431_v35 }
 0x1d3   :  { %v1311_v47 = vadd.f32 %v1310_v48, %v1142_v2 }
 0x1d4   :  { %2360 = vst [vmem:[%s3343_s3 + $0xe0] sm:$0xff] %v2316_v36  }
 0x1d5   :  { %v1317_v57 = vpop.f32.mrf.mxu2  ;;  %v1360_v25 = vpop.f32.mrf.mxu3  ;;  %v1413_v43 = vmax.f32 %v1311_v47, 0.0 }
 0x1d6   :  { %v974_v33 = vpop.f32.mrf.mxu0  ;;  %v1361_v44 = vadd.f32 %v1360_v25, %v3180_v45 }
 0x1d7   :  { %v975_v27 = vadd.f32 %v3217_v26, %v974_v33  ;;  %v1143_v38 = vpop.f32.mrf.mxu1 }
 0x1d8   :  { %v1433_v39 = vmax.f32 %v1361_v44, 0.0 }
 0x1d9   :  { %v1144_v32 = vadd.f32 %v1143_v38, %v975_v27 }
 0x1db   :  { %v1313_v42 = vadd.f32 %v1312_v15, %v1144_v32 }
 0x1dd   :  { %v1414_v52 = vmax.f32 %v1313_v42, 0.0  ;;  %v1320_v9 = vpop.f32.mrf.mxu2  ;;  %v1362_v53 = vpop.f32.mrf.mxu3 }
 0x1de   :  { %v1363_v31 = vadd.f32 %v1362_v53, %v3198_v12  ;;  %v977_v54 = vpop.f32.mrf.mxu0 }
 0x1df   :  { %v2271_v6 = vpack.c.bf16 %v1414_v52, %v1413_v43  ;;  %v1146_v56 = vpop.f32.mrf.mxu1  ;;  %v978_v50 = vadd.f32 %v3217_v26, %v977_v54 }
 0x1e0   :  { %v1434_v28 = vmax.f32 %v1363_v31, 0.0 }
 0x1e1   :  { %2351 = vst [vmem:[%s3343_s3 + $0x98] sm:$0xff] %v2271_v6   ;;  %v1147_v45 = vadd.f32 %v1146_v56, %v978_v50 }
 0x1e2   :  { %v2321_v48 = vpack.c.bf16 %v1434_v28, %v1433_v39 }
 0x1e3   :  { %v1316_v13 = vadd.f32 %v1315_v21, %v1147_v45 }
 0x1e4   :  { %2361 = vst [vmem:[%s3343_s3 + $0xe8] sm:$0xff] %v2321_v48  }
 0x1e5   :  { %v1322_v58 = vpop.f32.mrf.mxu2  ;;  %v1365_v61 = vpop.f32.mrf.mxu3  ;;  %v1415_v40 = vmax.f32 %v1316_v13, 0.0 }
 0x1e6   :  { %v979_v12 = vpop.f32.mrf.mxu0  ;;  %v1366_v46 = vadd.f32 %v1365_v61, %v3212_v17 }
 0x1e7   :  { %v980_v60 = vadd.f32 %v3217_v26, %v979_v12  ;;  %v1148_v63 = vpop.f32.mrf.mxu1 }
 0x1e8   :  { %v1435_v8 = vmax.f32 %v1366_v46, 0.0 }
 0x1e9   :  { %v1149_v62 = vadd.f32 %v1148_v63, %v980_v60 }
 0x1eb   :  { %v1318_v14 = vadd.f32 %v1317_v57, %v1149_v62 }
 0x1ed   :  { %v1416_v23 = vmax.f32 %v1318_v14, 0.0  ;;  %v1325_v15 = vpop.f32.mrf.mxu2  ;;  %v1367_v5 = vpop.f32.mrf.mxu3 }
 0x1ee   :  { %v1368_v51 = vadd.f32 %v1367_v5, %v3235_v41  ;;  %v982_v16 = vpop.f32.mrf.mxu0 }
 0x1ef   :  { %v2276_v24 = vpack.c.bf16 %v1416_v23, %v1415_v40  ;;  %v1151_v7 = vpop.f32.mrf.mxu1  ;;  %v983_v18 = vadd.f32 %v3217_v26, %v982_v16 }
 0x1f0   :  { %v1436_v4 = vmax.f32 %v1368_v51, 0.0 }
 0x1f1   :  { %2352 = vst [vmem:[%s3343_s3 + $0xa0] sm:$0xff] %v2276_v24   ;;  %v1152_v17 = vadd.f32 %v1151_v7, %v983_v18 }
 0x1f2   :  { %v2326_v19 = vpack.c.bf16 %v1436_v4, %v1435_v8 }
 0x1f3   :  { %v1321_v11 = vadd.f32 %v1320_v9, %v1152_v17 }
 0x1f4   :  { %2362 = vst [vmem:[%s3343_s3 + $0xf0] sm:$0xff] %v2326_v19  }
 0x1f5   :  { %v1327_v3 = vpop.f32.mrf.mxu2  ;;  %v1370_v21 = vpop.f32.mrf.mxu3  ;;  %v1417_v30 = vmax.f32 %v1321_v11, 0.0 }
 0x1f6   :  { %v984_v41 = vpop.f32.mrf.mxu0  ;;  %v1371_v35 = vadd.f32 %v1370_v21, %v3249_v55 }
 0x1f7   :  { %v985_v20 = vadd.f32 %v3217_v26, %v984_v41  ;;  %v1153_v34 = vpop.f32.mrf.mxu1 }
 0x1f8   :  { %v1437_v38 = vmax.f32 %v1371_v35, 0.0 }
 0x1f9   :  { %v1154_v1 = vadd.f32 %v1153_v34, %v985_v20 }
 0x1fb   :  { %v1323_v10 = vadd.f32 %v1322_v58, %v1154_v1 }
 0x1fd   :  { %v1418_v37 = vmax.f32 %v1323_v10, 0.0  ;;  %v1330_v36 = vpop.f32.mrf.mxu2  ;;  %v1372_v2 = vpop.f32.mrf.mxu3 }
 0x1fe   :  { %v1373_v57 = vadd.f32 %v1372_v2, %v3255_v59  ;;  %v987_v25 = vpop.f32.mrf.mxu0 }
 0x1ff   :  { %v2281_v33 = vpack.c.bf16 %v1418_v37, %v1417_v30  ;;  %v1156_v27 = vpop.f32.mrf.mxu1  ;;  %v988_v32 = vadd.f32 %v3217_v26, %v987_v25 }
 0x200   :  { %v1438_v47 = vmax.f32 %v1373_v57, 0.0 }
 0x201   :  { %2353 = vst [vmem:[%s3343_s3 + $0xa8] sm:$0xff] %v2281_v33   ;;  %v1157_v55 = vadd.f32 %v1156_v27, %v988_v32 }
 0x202   :  { %v2331_v42 = vpack.c.bf16 %v1438_v47, %v1437_v38 }
 0x203   :  { %v1326_v9 = vadd.f32 %v1325_v15, %v1157_v55 }
 0x204   :  { %2363 = vst [vmem:[%s3343_s3 + $0xf8] sm:$0xff] %v2331_v42  }
 0x205   :  { %v1332_v44 = vpop.f32.mrf.mxu2  ;;  %v1419_v54 = vmax.f32 %v1326_v9, 0.0 }
 0x206   :  { %v989_v43 = vpop.f32.mrf.mxu0 }
 0x207   :  { %v990_v59 = vadd.f32 %v3217_v26, %v989_v43  ;;  %v1158_v52 = vpop.f32.mrf.mxu1 }
 0x209   :  { %v1159_v53 = vadd.f32 %v1158_v52, %v990_v59 }
 0x20b   :  { %v1328_v31 = vadd.f32 %v1327_v3, %v1159_v53 }
 0x20d   :  { %v1420_v6 = vmax.f32 %v1328_v31, 0.0  ;;  %v1335_v56 = vpop.f32.mrf.mxu2 }
 0x20e   :  { %v992_v39 = vpop.f32.mrf.mxu0  ;;  %v1336_v45 = vadd.f32 %v1335_v56, %v2985_v22 }
 0x20f   :  { %v2286_v28 = vpack.c.bf16 %v1420_v6, %v1419_v54  ;;  %v1161_v50 = vpop.f32.mrf.mxu1  ;;  %v993_v48 = vadd.f32 %v3217_v26, %v992_v39 }
 0x210   :  { %v1423_v62 = vmax.f32 %v1336_v45, 0.0 }
 0x211   :  { %2354 = vst [vmem:[%s3343_s3 + $0xb0] sm:$0xff] %v2286_v28   ;;  %v1162_v58 = vadd.f32 %v1161_v50, %v993_v48 }
 0x213   :  { %v1331_v46 = vadd.f32 %v1330_v36, %v1162_v58 }
 0x215   :  { %v1337_v61 = vpop.f32.mrf.mxu2  ;;  %v1421_v5 = vmax.f32 %v1331_v46, 0.0 }
 0x216   :  { %v1338_v12 = vadd.f32 %v1337_v61, %v3009_v49  ;;  %v994_v60 = vpop.f32.mrf.mxu0 }
 0x217   :  { %v995_v63 = vadd.f32 %v3217_v26, %v994_v60  ;;  %v1163_v13 = vpop.f32.mrf.mxu1 }
 0x218   :  { %v1424_v14 = vmax.f32 %v1338_v12, 0.0 }
 0x219   :  { %v1164_v40 = vadd.f32 %v1163_v13, %v995_v63 }
 0x21a   :  { %v2296_v23 = vpack.c.bf16 %v1424_v14, %v1423_v62 }
 0x21b   :  { %v1333_v15 = vadd.f32 %v1332_v44, %v1164_v40 }
 0x21c   :  { %2356 = vst [vmem:[%s3343_s3 + $0xc0] sm:$0xff] %v2296_v23  }
 0x21d   :  { %v1422_v22 = vmax.f32 %v1333_v15, 0.0  ;;  %v1340_v51 = vpop.f32.mrf.mxu2 }
 0x21e   :  { %v1341_v49 = vadd.f32 %v1340_v51, %v3024_v0 }
 0x21f   :  { %v2291_v16 = vpack.c.bf16 %v1422_v22, %v1421_v5 }
 0x220   :  { %v1425_v7 = vmax.f32 %v1341_v49, 0.0 }
 0x221   :  { %2355 = vst [vmem:[%s3343_s3 + $0xb8] sm:$0xff] %v2291_v16  }
 0x225   :  { %v1342_v26 = vpop.f32.mrf.mxu2 }
 0x226   :  { %v1343_v24 = vadd.f32 %v1342_v26, %v3048_v29 }
 0x228   :  { %v1426_v8 = vmax.f32 %v1343_v24, 0.0 }
 0x22a   :  { %v2301_v4 = vpack.c.bf16 %v1426_v8, %v1425_v7 }
 0x22c   :  { %2357 = vst [vmem:[%s3343_s3 + $0xc8] sm:$0xff] %v2301_v4  }

// kernel: beta_vae_forward.19
= control target key start
LH: loop header
LB: loop body
LE: loop exit
PB: predicated region body
PF: predicated region fallthrough
CT: control target
= control target key end

     0   :  { %s4089_s12 = smov 0   ;;  %s5091_s0 = inlined_call_operand.vmem [shape: bf16[2048,288], index: 0, kind: input, shape index: {}]   ;;  %s5092_s1 = inlined_call_operand.vmem [shape: bf16[288,128], index: 1, kind: input, shape index: {}]   ;;  %s5093_s2 = inlined_call_operand.vmem [shape: f32[1,128], index: 2, kind: input, shape index: {}]   ;;  %s5094_s3 = inlined_call_operand.vmem [shape: f32[2048,128], index: 3, kind: output, shape index: {}]  }
   0x1 LB: > { %s2906_s13 = sadd.s32 4294967295, %s4067_s12   ;;  %p2910_p0 = scmp.ge.s32.totalorder %s4067_s12, 1  ;;  %s4067_s12 = sphi %s4089_s12, %s13_s12  }
   0x2   : > { %p139_p1 = scmp.lt.s32.totalorder %s4067_s12, 3 }
   0x4   : > { %p140_p2 = pnand %p2910_p0, %p139_p1 }
   0x5   : > { %s2911_s20 = sshll.u32 (!%p140_p2), %s2906_s13, 7 }
   0x6   : > { %143 = sbr.rel (%p140_p2) target bundleno = 948 (0x3b4), region = 32  ;;  %p165_p3 = scmp.lt.s32.totalorder (!%p140_p2), %s2911_s20, 255 }
   0xb   : > { %v4020_v0 = vld [vmem:[%s5092_s1 + $0x38] sm:$0xff]  ;;  %v4103_v1 = vld [vmem:[%s5092_s1 + $0x88] sm:$0xff]  ;;  %v4019_v3 = vld [vmem:[%s5092_s1 + $0x30] sm:$0xff]  ;;  %s5096_s20 = smov (!%p165_p3, %s2911_s20), 255  ;;  %vm1542_vm0 = vcmask 261120  }
   0xc   : > { %v4108_v2 = vld [vmem:[%s5092_s1 + $0x78] sm:$0xff]  ;;  %1735 = vmatpush.bf16.msra.mxu0 %v4020_v0  ;;  %4031 = vmatpush.bf16.msra.mxu3 %v4020_v0  ;;  %v4118_v4 = vld [vmem:[%s5092_s1 + $0x80] sm:$0xff]  ;;  %v4027_v5 = vld [vmem:[%s5092_s1 + $0x70] sm:$0xff]  ;;  %s4049_s27 = smul.u32 12, %s5096_s20  ;;  %s2914_s6 = sshll.u32 %s5096_s20, 3 }
   0xd   : > { %2399 = vmatpush.bf16.msra.mxu2 %v4103_v1  ;;  %2064 = vmatpush.bf16.msra.mxu1 %v4108_v2  ;;  %v4018_v6 = vld [vmem:[%s5092_s1 + $0x28] sm:$0xff]  ;;  %v4017_v11 = vld [vmem:[%s5092_s1 + $0x20] sm:$0xff]  ;;  %v4016_v13 = vld [vmem:[%s5092_s1 + $0x18] sm:$0xff]  ;;  %s4265_s9 = scalar_lea.vmem %s5094_s3, %s2914_s6 }
   0xe   : > { %s4133_s5 = scalar_lea.vmem %s5091_s0, %s4049_s27  ;;  %v4026_v7 = vld [vmem:[%s5092_s1 + $0x68] sm:$0xff]  ;;  %v4025_v12 = vld [vmem:[%s5092_s1 + $0x60] sm:$0xff]  ;;  %v4024_v14 = vld [vmem:[%s5092_s1 + $0x58] sm:$0xff] }
   0xf   : > { %v2925_v8 = vld [vmem:[%s4133_s5 + $0x8] sm:$0xf]  ;;  %v3823_v9 = vld [vmem:[%s4133_s5 + $0x10] sm:$0xf0]  ;;  %v2937_v17 = vld [vmem:[%s4133_s5 + $0x20] sm:$0xf] }
  0x10   : > { %1736 = vmatpush.bf16.msra.mxu0 %v4019_v3  ;;  %4032 = vmatpush.bf16.msra.mxu3 %v4019_v3  ;;  %v2926_v10 = vor.u32 %v3823_v9, %v2925_v8  ;;  %v4015_v15 = vld [vmem:[%s5092_s1 + $0x10] sm:$0xff]  ;;  %v3826_v18 = vld [vmem:[%s4133_s5 + $0x28] sm:$0xf0]  ;;  %v4013_v22 = vld [vmem:[%s5092_s1] sm:$0xff] }
  0x11   : > { %2400 = vmatpush.bf16.msra.mxu2 %v4118_v4  ;;  %2065 = vmatpush.bf16.msra.mxu1 %v4027_v5  ;;  %v4023_v16 = vld [vmem:[%s5092_s1 + $0x50] sm:$0xff]  ;;  %v4014_v19 = vld [vmem:[%s5092_s1 + $0x8] sm:$0xff]  ;;  %v2938_v20 = vor.u32 %v3826_v18, %v2937_v17  ;;  %v2917_v23 = vld [vmem:[%s4133_s5] sm:$0xf] }
  0x12   : > { %v4022_v21 = vld [vmem:[%s5092_s1 + $0x48] sm:$0xff]  ;;  %v3493_v25 = vld [vmem:[%s4133_s5 + $0x480] sm:$0xf]  ;;  %v3821_v28 = vld [vmem:[%s4133_s5 + $0x4] sm:$0xf] }
  0x13   : > { %v3822_v24 = vld [vmem:[%s4133_s5 + $0x8] sm:$0xf0]  ;;  %v4021_v27 = vld [vmem:[%s5092_s1 + $0x40] sm:$0xff]  ;;  %v2919_v29 = vld [vmem:[%s4133_s5 + $0xc] sm:$0xf0] }
  0x14   : > { %1737 = vmatpush.bf16.msra.mxu0 %v4018_v6  ;;  %4033 = vmatpush.bf16.msra.mxu3 %v4018_v6  ;;  %v3966_v26 = vld [vmem:[%s4133_s5 + $0x488] sm:$0xf0]  ;;  %v2918_v30 = vor.u32 %v3822_v24, %v2917_v23  ;;  %v2922_v32 = vor.u32 %v3821_v28, %v2919_v29  ;;  %v2949_v33 = vld [vmem:[%s4133_s5 + $0x38] sm:$0xf]  ;;  %v3829_v34 = vld [vmem:[%s4133_s5 + $0x40] sm:$0xf0] }
  0x15   : > { %3755 = vmatmul.msk.bf16.vlgmr.msra.gmra.mxu2 %vm1542_vm0, %v2926_v10  ;;  %2066 = vmatpush.bf16.msra.mxu1 %v4026_v7  ;;  %v3494_v31 = vor.u32 %v3966_v26, %v3493_v25  ;;  %v2950_v35 = vor.u32 %v3829_v34, %v2949_v33  ;;  %v2929_v36 = vld [vmem:[%s4133_s5 + $0x18] sm:$0xf]  ;;  %v3825_v37 = vld [vmem:[%s4133_s5 + $0x20] sm:$0xf0]  ;;  %v3824_v40 = vld [vmem:[%s4133_s5 + $0x1c] sm:$0xf] }
  0x16   : > { %v3505_v38 = vld [vmem:[%s4133_s5 + $0x498] sm:$0xf]  ;;  %v3969_v39 = vld [vmem:[%s4133_s5 + $0x4a0] sm:$0xf0]  ;;  %v2931_v41 = vld [vmem:[%s4133_s5 + $0x24] sm:$0xf0]  ;;  %v2930_v42 = vor.u32 %v3825_v37, %v2929_v36 }
  0x17   : > { %v3506_v43 = vor.u32 %v3969_v39, %v3505_v38  ;;  %v2934_v44 = vor.u32 %v3824_v40, %v2931_v41  ;;  %v2961_v45 = vld [vmem:[%s4133_s5 + $0x50] sm:$0xf]  ;;  %v3832_v46 = vld [vmem:[%s4133_s5 + $0x58] sm:$0xf0]  ;;  %v3827_v52 = vld [vmem:[%s4133_s5 + $0x34] sm:$0xf] }
  0x18   : > { %1738 = vmatpush.bf16.msra.mxu0 %v4017_v11  ;;  %4034 = vmatpush.bf16.msra.mxu3 %v4017_v11  ;;  %v2962_v47 = vor.u32 %v3832_v46, %v2961_v45  ;;  %v2941_v48 = vld [vmem:[%s4133_s5 + $0x30] sm:$0xf]  ;;  %v3828_v49 = vld [vmem:[%s4133_s5 + $0x38] sm:$0xf0]  ;;  %v2943_v53 = vld [vmem:[%s4133_s5 + $0x3c] sm:$0xf0] }
  0x19   : > { %2067 = vmatpush.bf16.msra.mxu1 %v4025_v12  ;;  %v3517_v50 = vld [vmem:[%s4133_s5 + $0x4b0] sm:$0xf]  ;;  %v3972_v51 = vld [vmem:[%s4133_s5 + $0x4b8] sm:$0xf0]  ;;  %v2942_v54 = vor.u32 %v3828_v49, %v2941_v48  ;;  %v2946_v56 = vor.u32 %v3827_v52, %v2943_v53  ;;  %v2973_v57 = vld [vmem:[%s4133_s5 + $0x68] sm:$0xf] }
  0x1a   : > { %v3518_v55 = vor.u32 %v3972_v51, %v3517_v50  ;;  %v3835_v58 = vld [vmem:[%s4133_s5 + $0x70] sm:$0xf0]  ;;  %v2953_v60 = vld [vmem:[%s4133_s5 + $0x48] sm:$0xf]  ;;  %v3830_v0 = vld [vmem:[%s4133_s5 + $0x4c] sm:$0xf] }
  0x1b   : > { %v2974_v59 = vor.u32 %v3835_v58, %v2973_v57  ;;  %v3831_v61 = vld [vmem:[%s4133_s5 + $0x50] sm:$0xf0]  ;;  %v3529_v62 = vld [vmem:[%s4133_s5 + $0x4c8] sm:$0xf]  ;;  %v3838_v6 = vld [vmem:[%s4133_s5 + $0x88] sm:$0xf0] }
  0x1c   : > { %1739 = vmatpush.bf16.msra.mxu0 %v4016_v13  ;;  %4035 = vmatpush.bf16.msra.mxu3 %v4016_v13  ;;  %v3975_v63 = vld [vmem:[%s4133_s5 + $0x4d0] sm:$0xf0]  ;;  %v2965_v8 = vld [vmem:[%s4133_s5 + $0x60] sm:$0xf]  ;;  %v3834_v9 = vld [vmem:[%s4133_s5 + $0x68] sm:$0xf0] }
  0x1d   : > { %2068 = vmatpush.bf16.msra.mxu1 %v4024_v14  ;;  %v3530_v3 = vor.u32 %v3975_v63, %v3529_v62  ;;  %v3541_v10 = vld [vmem:[%s4133_s5 + $0x4e0] sm:$0xf]  ;;  %v3978_v11 = vld [vmem:[%s4133_s5 + $0x4e8] sm:$0xf0]  ;;  %v2967_v13 = vld [vmem:[%s4133_s5 + $0x6c] sm:$0xf0] }
  0x1e   : > { %v2997_v17 = vld [vmem:[%s4133_s5 + $0x98] sm:$0xf]  ;;  %v3841_v18 = vld [vmem:[%s4133_s5 + $0xa0] sm:$0xf0]  ;;  %v3836_v24 = vld [vmem:[%s4133_s5 + $0x7c] sm:$0xf] }
  0x1f   : > { %v3981_v23 = vld [vmem:[%s4133_s5 + $0x500] sm:$0xf0]  ;;  %v2979_v25 = vld [vmem:[%s4133_s5 + $0x84] sm:$0xf0]  ;;  %v3009_v29 = vld [vmem:[%s4133_s5 + $0xb0] sm:$0xf] }
  0x20   : > { %1740 = vmatpush.bf16.msra.mxu0 %v4015_v15  ;;  %4036 = vmatpush.bf16.msra.mxu3 %v4015_v15  ;;  %v3542_v15 = vor.u32 %v3978_v11, %v3541_v10  ;;  %v2982_v28 = vor.u32 %v3836_v24, %v2979_v25  ;;  %v3840_v33 = vld [vmem:[%s4133_s5 + $0x98] sm:$0xf0]  ;;  %v3565_v34 = vld [vmem:[%s4133_s5 + $0x510] sm:$0xf]  ;;  %v3839_v36 = vld [vmem:[%s4133_s5 + $0x94] sm:$0xf] }
  0x21   : > { %2069 = vmatpush.bf16.msra.mxu1 %v4023_v16  ;;  %v2991_v37 = vld [vmem:[%s4133_s5 + $0x9c] sm:$0xf0]  ;;  %v3021_v41 = vld [vmem:[%s4133_s5 + $0xc8] sm:$0xf]  ;;  %v3843_v45 = vld [vmem:[%s4133_s5 + $0xb0] sm:$0xf0] }
  0x22   : > { %v2994_v40 = vor.u32 %v3839_v36, %v2991_v37  ;;  %v3577_v46 = vld [vmem:[%s4133_s5 + $0x528] sm:$0xf]  ;;  %v3842_v48 = vld [vmem:[%s4133_s5 + $0xac] sm:$0xf]  ;;  %v3003_v49 = vld [vmem:[%s4133_s5 + $0xb4] sm:$0xf0] }
  0x23   : > { %v3006_v53 = vor.u32 %v3842_v48, %v3003_v49  ;;  %v3013_v58 = vld [vmem:[%s4133_s5 + $0xc0] sm:$0xf]  ;;  %v3845_v63 = vld [vmem:[%s4133_s5 + $0xc4] sm:$0xf]  ;;  %v3045_v11 = vld [vmem:[%s4133_s5 + $0xf8] sm:$0xf] }
  0x24   : > { %1741 = vmatpush.bf16.msra.mxu0 %v4014_v19  ;;  %4037 = vmatpush.bf16.msra.mxu3 %v4014_v19  ;;  %v2998_v19 = vor.u32 %v3841_v18, %v2997_v17  ;;  %v4256_v62 = vld [vmem:[%s5093_s2] ss:$0 sm:$0xff]  ;;  %v3848_v24 = vld [vmem:[%s4133_s5 + $0xdc] sm:$0xf]  ;;  %v3027_v25 = vld [vmem:[%s4133_s5 + $0xe4] sm:$0xf0] }
  0x25   : > { %3756 = vmatmul.msk.bf16.gmra.mxu2 %vm1542_vm0, %v2938_v20  ;;  %2070 = vmatpush.bf16.msra.mxu1 %v4022_v21  ;;  %v2977_v20 = vld [vmem:[%s4133_s5 + $0x78] sm:$0xf]  ;;  %v3057_v37 = vld [vmem:[%s4133_s5 + $0x110] sm:$0xf]  ;;  %v3996_v48 = vld [vmem:[%s4133_s5 + $0x578] sm:$0xf0] }
  0x28   : > { %1742 = vmatpush.bf16.msra.mxu0 %v4013_v22  ;;  %4038 = vmatpush.bf16.msra.mxu3 %v4013_v22  ;;  %v3553_v22 = vld [vmem:[%s4133_s5 + $0x4f8] sm:$0xf] }
  0x29   : > { %2071 = vmatpush.bf16.msra.mxu1 %v4021_v27 }
  0x2b   : > { %1743 = vmatmul.bf16.vlgmr.msra.gmra.mxu0 %v2918_v30  ;;  %1983 = vmatmul.bf16.vlgmr.msra.gmra.mxu3 %v3494_v31  ;;  %v3844_v30 = vld [vmem:[%s4133_s5 + $0xb8] sm:$0xf0] }
  0x2c   : > { %4039 = vmatpush.bf16.msrb.mxu3 %v4108_v2  ;;  %2072 = vmatmul.bf16.vlgmr.msra.gmra.mxu1 %v2922_v32  ;;  %v2954_v2 = vor.u32 %v3831_v61, %v2953_v60  ;;  %v3010_v31 = vor.u32 %v3844_v30, %v3009_v29  ;;  %v2989_v32 = vld [vmem:[%s4133_s5 + $0x90] sm:$0xf]  ;;  %v3589_v60 = vld [vmem:[%s4133_s5 + $0x540] sm:$0xf]  ;;  %v3990_v61 = vld [vmem:[%s4133_s5 + $0x548] sm:$0xf0] }
  0x2d   : > { %v2990_v38 = vor.u32 %v3840_v33, %v2989_v32 }
  0x30   : > { %4040 = vmatpush.bf16.msrb.mxu3 %v4027_v5  ;;  %v2985_v5 = vld [vmem:[%s4133_s5 + $0x80] sm:$0xf] }
  0x34   : > { %4041 = vmatpush.bf16.msrb.mxu3 %v4026_v7  ;;  %v2986_v7 = vor.u32 %v3838_v6, %v2985_v5 }
  0x35   : > { %3757 = vmatmul.msk.bf16.gmra.mxu2 %vm1542_vm0, %v2950_v35  ;;  %v3984_v35 = vld [vmem:[%s4133_s5 + $0x518] sm:$0xf0] }
  0x36   : > { %v3566_v39 = vor.u32 %v3984_v35, %v3565_v34 }
  0x38   : > { %4042 = vmatpush.bf16.msrb.mxu3 %v4025_v12  ;;  %v3833_v12 = vld [vmem:[%s4133_s5 + $0x64] sm:$0xf] }
  0x3b   : > { %1748 = vmatmul.bf16.gmra.mxu0 %v2930_v42  ;;  %1988 = vmatmul.bf16.gmra.mxu3 %v3506_v43  ;;  %v3847_v42 = vld [vmem:[%s4133_s5 + $0xd0] sm:$0xf0] }
  0x3c   : > { %4043 = vmatpush.bf16.msrb.mxu3 %v4024_v14  ;;  %2077 = vmatmul.bf16.gmra.mxu1 %v2934_v44  ;;  %v2966_v14 = vor.u32 %v3834_v9, %v2965_v8  ;;  %v3022_v43 = vor.u32 %v3847_v42, %v3021_v41  ;;  %v3001_v44 = vld [vmem:[%s4133_s5 + $0xa8] sm:$0xf] }
  0x3d   : > { %v3002_v50 = vor.u32 %v3843_v45, %v3001_v44  ;;  %v3037_v45 = vld [vmem:[%s4133_s5 + $0xf0] sm:$0xf] }
  0x40   : > { %4044 = vmatpush.bf16.msrb.mxu3 %v4023_v16  ;;  %v2970_v16 = vor.u32 %v3833_v12, %v2967_v13  ;;  %v3853_v12 = vld [vmem:[%s4133_s5 + $0x100] sm:$0xf0] }
  0x41   : > { %v3046_v17 = vor.u32 %v3853_v12, %v3045_v11  ;;  %v3625_v11 = vld [vmem:[%s4133_s5 + $0x588] sm:$0xf]  ;;  %v3999_v12 = vld [vmem:[%s4133_s5 + $0x590] sm:$0xf0] }
  0x44   : > { %4045 = vmatpush.bf16.msrb.mxu3 %v4022_v21  ;;  %v3837_v21 = vld [vmem:[%s4133_s5 + $0x80] sm:$0xf0] }
  0x45   : > { %3758 = vmatmul.msk.bf16.gmra.mxu2 %vm1542_vm0, %v2962_v47  ;;  %v2978_v26 = vor.u32 %v3837_v21, %v2977_v20  ;;  %v3987_v47 = vld [vmem:[%s4133_s5 + $0x530] sm:$0xf0]  ;;  %v3849_v20 = vld [vmem:[%s4133_s5 + $0xe0] sm:$0xf0]  ;;  %v3601_v21 = vld [vmem:[%s4133_s5 + $0x558] sm:$0xf] }
  0x46   : > { %v3578_v51 = vor.u32 %v3987_v47, %v3577_v46  ;;  %v3852_v46 = vld [vmem:[%s4133_s5 + $0xf8] sm:$0xf0]  ;;  %v3613_v47 = vld [vmem:[%s4133_s5 + $0x570] sm:$0xf] }
  0x48   : > { %4046 = vmatpush.bf16.msrb.mxu3 %v4021_v27  ;;  %v3554_v27 = vor.u32 %v3981_v23, %v3553_v22  ;;  %v3993_v22 = vld [vmem:[%s4133_s5 + $0x560] sm:$0xf0] }
  0x4b   : > { %1753 = vmatmul.bf16.gmra.mxu0 %v2942_v54  ;;  %1993 = vmatmul.bf16.gmra.mxu3 %v3518_v55  ;;  %v3033_v54 = vld [vmem:[%s4133_s5 + $0xe0] sm:$0xf]  ;;  %v3850_v55 = vld [vmem:[%s4133_s5 + $0xe8] sm:$0xf0] }
  0x4c   : > { %4047 = vmatpush.bf16.msra.mxu3 %v4103_v1  ;;  %2082 = vmatmul.bf16.gmra.mxu1 %v2946_v56  ;;  %v2955_v1 = vld [vmem:[%s4133_s5 + $0x54] sm:$0xf0]  ;;  %v3034_v57 = vor.u32 %v3850_v55, %v3033_v54  ;;  %v3614_v54 = vor.u32 %v3996_v48, %v3613_v47 }
  0x50   : > { %4048 = vmatpush.bf16.msra.mxu3 %v4118_v4  ;;  %v2958_v4 = vor.u32 %v3830_v0, %v2955_v1  ;;  %v3015_v0 = vld [vmem:[%s4133_s5 + $0xcc] sm:$0xf0] }
  0x51   : > { %v3018_v5 = vor.u32 %v3845_v63, %v3015_v0  ;;  %v3069_v0 = vld [vmem:[%s4133_s5 + $0x128] sm:$0xf] }
  0x55   : > { %3759 = vmatmul.msk.bf16.gmra.mxu2 %vm1542_vm0, %v2974_v59  ;;  %v3846_v59 = vld [vmem:[%s4133_s5 + $0xc8] sm:$0xf0] }
  0x56   : > { %v3014_v1 = vor.u32 %v3846_v59, %v3013_v58 }
  0x5b   : > { %1758 = vmatmul.bf16.gmra.mxu0 %v2954_v2  ;;  %1998 = vmatmul.bf16.gmra.mxu3 %v3530_v3  ;;  %v3590_v2 = vor.u32 %v3990_v61, %v3589_v60 }
  0x5c   : > { %2087 = vmatmul.bf16.gmra.mxu1 %v2958_v4 }
  0x65   : > { %3760 = vmatmul.msk.bf16.gmra.mxu2 %vm1542_vm0, %v2986_v7 }
  0x6b   : > { %1763 = vmatmul.bf16.gmra.mxu0 %v2966_v14  ;;  %2003 = vmatmul.bf16.gmra.mxu3 %v3542_v15 }
  0x6c   : > { %2092 = vmatmul.bf16.gmra.mxu1 %v2970_v16 }
  0x75   : > { %3761 = vmatmul.msk.bf16.gmra.mxu2 %vm1542_vm0, %v2998_v19  ;;  %v3025_v19 = vld [vmem:[%s4133_s5 + $0xd8] sm:$0xf] }
  0x7b   : > { %1768 = vmatmul.bf16.gmra.mxu0 %v2978_v26  ;;  %2008 = vmatmul.bf16.gmra.mxu3 %v3554_v27  ;;  %v3026_v27 = vor.u32 %v3849_v20, %v3025_v19 }
  0x7c   : > { %2097 = vmatmul.bf16.gmra.mxu1 %v2982_v28  ;;  %v3602_v28 = vor.u32 %v3993_v22, %v3601_v21 }
  0x85   : > { %3762 = vmatmul.msk.bf16.gmra.mxu2 %vm1542_vm0, %v3010_v31  ;;  %v3030_v31 = vor.u32 %v3848_v24, %v3027_v25 }
  0x8b   : > { %1773 = vmatmul.bf16.gmra.mxu0 %v2990_v38  ;;  %2013 = vmatmul.bf16.gmra.mxu3 %v3566_v39  ;;  %v3856_v38 = vld [vmem:[%s4133_s5 + $0x118] sm:$0xf0] }
  0x8c   : > { %2102 = vmatmul.bf16.gmra.mxu1 %v2994_v40 }
  0x95   : > { %3763 = vmatmul.msk.bf16.gmra.mxu2 %vm1542_vm0, %v3022_v43  ;;  %v3058_v43 = vor.u32 %v3856_v38, %v3057_v37  ;;  %v3061_v37 = vld [vmem:[%s4133_s5 + $0x120] sm:$0xf]  ;;  %v3858_v38 = vld [vmem:[%s4133_s5 + $0x128] sm:$0xf0] }
  0x98   : > { %v2402_v52 = vpop.f32.mrf.mxu2 }
  0x9b   : > { %1778 = vmatmul.bf16.gmra.mxu0 %v3002_v50  ;;  %2018 = vmatmul.bf16.gmra.mxu3 %v3578_v51  ;;  %v3851_v50 = vld [vmem:[%s4133_s5 + $0xf4] sm:$0xf]  ;;  %v3039_v51 = vld [vmem:[%s4133_s5 + $0xfc] sm:$0xf0] }
  0x9c   : > { %2107 = vmatmul.bf16.gmra.mxu1 %v3006_v53  ;;  %v3038_v53 = vor.u32 %v3852_v46, %v3037_v45  ;;  %v3062_v45 = vor.u32 %v3858_v38, %v3061_v37  ;;  %v3863_v38 = vld [vmem:[%s4133_s5 + $0x154] sm:$0xf] }
  0xa0   : > { %v2404_v56 = vpop.f32.mrf.mxu2 }
  0xa5   : > { %3764 = vmatmul.msk.bf16.gmra.mxu2 %vm1542_vm0, %v3034_v57  ;;  %v3042_v57 = vor.u32 %v3851_v50, %v3039_v51 }
  0xa8   : > { %v2407_v3 = vpop.f32.mrf.mxu2  ;;  %v1744_v4 = vpop.f32.mrf.mxu0 }
  0xa9   : > { %v1745_v6 = vadd.f32 %v4256_v62, %v1744_v4  ;;  %v2073_v7 = vpop.f32.mrf.mxu1 }
  0xab   : > { %v2074_v8 = vadd.f32 %v2073_v7, %v1745_v6  ;;  %1783 = vmatmul.bf16.gmra.mxu0 %v3014_v1  ;;  %2023 = vmatmul.bf16.gmra.mxu3 %v3590_v2  ;;  %v3859_v1 = vld [vmem:[%s4133_s5 + $0x130] sm:$0xf0] }
  0xac   : > { %2112 = vmatmul.bf16.gmra.mxu1 %v3018_v5  ;;  %v3070_v6 = vor.u32 %v3859_v1, %v3069_v0 }
  0xad   : > { %v2403_v9 = vadd.f32 %v2402_v52, %v2074_v8  ;;  %v3049_v8 = vld [vmem:[%s4133_s5 + $0x108] sm:$0xf] }
  0xae   : > { %v4267_v10 = vpop.f32.mrf.mxu3 }
  0xaf   : > { %2722 = vst [vmem:[%s4265_s9] sm:$0xff] %v2403_v9  ;;  %v3855_v9 = vld [vmem:[%s4133_s5 + $0x110] sm:$0xf0] }
  0xb0   : > { %v2409_v13 = vpop.f32.mrf.mxu2  ;;  %v1746_v14 = vpop.f32.mrf.mxu0 }
  0xb1   : > { %v1747_v15 = vadd.f32 %v4256_v62, %v1746_v14  ;;  %v2075_v16 = vpop.f32.mrf.mxu1  ;;  %v3854_v14 = vld [vmem:[%s4133_s5 + $0x10c] sm:$0xf] }
  0xb3   : > { %v2076_v18 = vadd.f32 %v2075_v16, %v1747_v15  ;;  %v3051_v15 = vld [vmem:[%s4133_s5 + $0x114] sm:$0xf0] }
  0xb4   : > { %v3054_v21 = vor.u32 %v3854_v14, %v3051_v15 }
  0xb5   : > { %v2405_v23 = vadd.f32 %v2404_v56, %v2076_v18  ;;  %3765 = vmatmul.msk.bf16.gmra.mxu2 %vm1542_vm0, %v3046_v17  ;;  %v3050_v17 = vor.u32 %v3855_v9, %v3049_v8  ;;  %v3626_v18 = vor.u32 %v3999_v12, %v3625_v11  ;;  %v3075_v8 = vld [vmem:[%s4133_s5 + $0x144] sm:$0xf0] }
  0xb6   : > { %v4280_v26 = vpop.f32.mrf.mxu3 }
  0xb7   : > { %2723 = vst [vmem:[%s4265_s9 + $0x8] sm:$0xff] %v2405_v23 }
  0xb8   : > { %v2412_v29 = vpop.f32.mrf.mxu2  ;;  %v1749_v30 = vpop.f32.mrf.mxu0 }
  0xb9   : > { %v1750_v32 = vadd.f32 %v4256_v62, %v1749_v30  ;;  %v2078_v33 = vpop.f32.mrf.mxu1 }
  0xbb   : > { %v2079_v34 = vadd.f32 %v2078_v33, %v1750_v32  ;;  %1788 = vmatmul.bf16.gmra.mxu0 %v3026_v27  ;;  %2028 = vmatmul.bf16.gmra.mxu3 %v3602_v28  ;;  %v3081_v28 = vld [vmem:[%s4133_s5 + $0x140] sm:$0xf] }
  0xbc   : > { %2117 = vmatmul.bf16.gmra.mxu1 %v3030_v31 }
  0xbd   : > { %v2408_v35 = vadd.f32 %v2407_v3, %v2079_v34 }
  0xbe   : > { %v4284_v36 = vpop.f32.mrf.mxu3 }
  0xbf   : > { %2724 = vst [vmem:[%s4265_s9 + $0x10] sm:$0xff] %v2408_v35 }
  0xc0   : > { %v2414_v39 = vpop.f32.mrf.mxu2  ;;  %v1751_v40 = vpop.f32.mrf.mxu0 }
  0xc1   : > { %v1752_v41 = vadd.f32 %v4256_v62, %v1751_v40  ;;  %v2080_v42 = vpop.f32.mrf.mxu1  ;;  %v4002_v40 = vld [vmem:[%s4133_s5 + $0x5a8] sm:$0xf0] }
  0xc3   : > { %v2081_v44 = vadd.f32 %v2080_v42, %v1752_v41  ;;  %v3857_v42 = vld [vmem:[%s4133_s5 + $0x124] sm:$0xf] }
  0xc5   : > { %v2410_v49 = vadd.f32 %v2409_v13, %v2081_v44  ;;  %3766 = vmatmul.msk.bf16.gmra.mxu2 %vm1542_vm0, %v3058_v43  ;;  %v3063_v43 = vld [vmem:[%s4133_s5 + $0x12c] sm:$0xf0] }
  0xc6   : > { %v4297_v52 = vpop.f32.mrf.mxu3 }
  0xc7   : > { %2725 = vst [vmem:[%s4265_s9 + $0x18] sm:$0xff] %v2410_v49  ;;  %v3066_v49 = vor.u32 %v3857_v42, %v3063_v43 }
  0xc8   : > { %v2417_v55 = vpop.f32.mrf.mxu2  ;;  %v1754_v56 = vpop.f32.mrf.mxu0 }
  0xc9   : > { %v1755_v58 = vadd.f32 %v4256_v62, %v1754_v56  ;;  %v2083_v59 = vpop.f32.mrf.mxu1  ;;  %v3093_v56 = vld [vmem:[%s4133_s5 + $0x158] sm:$0xf] }
  0xcb   : > { %v2084_v60 = vadd.f32 %v2083_v59, %v1755_v58  ;;  %1793 = vmatmul.bf16.gmra.mxu0 %v3038_v53  ;;  %2033 = vmatmul.bf16.gmra.mxu3 %v3614_v54 }
  0xcc   : > { %2122 = vmatmul.bf16.gmra.mxu1 %v3042_v57  ;;  %v3865_v57 = vld [vmem:[%s4133_s5 + $0x160] sm:$0xf0] }
  0xcd   : > { %v2413_v61 = vadd.f32 %v2412_v29, %v2084_v60  ;;  %v3862_v29 = vld [vmem:[%s4133_s5 + $0x148] sm:$0xf0]  ;;  %v3094_v0 = vor.u32 %v3865_v57, %v3093_v56 }
  0xce   : > { %v4301_v63 = vpop.f32.mrf.mxu3  ;;  %v3082_v34 = vor.u32 %v3862_v29, %v3081_v28 }
  0xcf   : > { %2726 = vst [vmem:[%s4265_s9 + $0x20] sm:$0xff] %v2413_v61 }
  0xd0   : > { %v2419_v2 = vpop.f32.mrf.mxu2  ;;  %v1756_v3 = vpop.f32.mrf.mxu0 }
  0xd1   : > { %v1757_v4 = vadd.f32 %v4256_v62, %v1756_v3  ;;  %v2085_v5 = vpop.f32.mrf.mxu1  ;;  %v3861_v3 = vld [vmem:[%s4133_s5 + $0x140] sm:$0xf0] }
  0xd3   : > { %v2086_v7 = vadd.f32 %v2085_v5, %v1757_v4  ;;  %v3649_v4 = vld [vmem:[%s4133_s5 + $0x5b8] sm:$0xf]  ;;  %v4005_v5 = vld [vmem:[%s4133_s5 + $0x5c0] sm:$0xf0] }
  0xd4   : > { %v3650_v12 = vor.u32 %v4005_v5, %v3649_v4  ;;  %v3866_v5 = vld [vmem:[%s4133_s5 + $0x16c] sm:$0xf] }
  0xd5   : > { %v2415_v13 = vadd.f32 %v2414_v39, %v2086_v7  ;;  %3767 = vmatmul.msk.bf16.gmra.mxu2 %vm1542_vm0, %v3070_v6  ;;  %v3637_v39 = vld [vmem:[%s4133_s5 + $0x5a0] sm:$0xf]  ;;  %v3860_v7 = vld [vmem:[%s4133_s5 + $0x13c] sm:$0xf] }
  0xd6   : > { %v4314_v16 = vpop.f32.mrf.mxu3  ;;  %v3638_v46 = vor.u32 %v4002_v40, %v3637_v39  ;;  %v3078_v15 = vor.u32 %v3860_v7, %v3075_v8  ;;  %v3087_v39 = vld [vmem:[%s4133_s5 + $0x15c] sm:$0xf0] }
  0xd7   : > { %2727 = vst [vmem:[%s4265_s9 + $0x28] sm:$0xff] %v2415_v13 }
  0xd8   : > { %v2422_v19 = vpop.f32.mrf.mxu2  ;;  %v1759_v20 = vpop.f32.mrf.mxu0 }
  0xd9   : > { %v1760_v22 = vadd.f32 %v4256_v62, %v1759_v20  ;;  %v2088_v23 = vpop.f32.mrf.mxu1 }
  0xdb   : > { %v2089_v24 = vadd.f32 %v2088_v23, %v1760_v22  ;;  %1798 = vmatmul.bf16.gmra.mxu0 %v3050_v17  ;;  %2038 = vmatmul.bf16.gmra.mxu3 %v3626_v18  ;;  %v3105_v22 = vld [vmem:[%s4133_s5 + $0x170] sm:$0xf]  ;;  %v3868_v23 = vld [vmem:[%s4133_s5 + $0x178] sm:$0xf0] }
  0xdc   : > { %2127 = vmatmul.bf16.gmra.mxu1 %v3054_v21 }
  0xdd   : > { %v2418_v25 = vadd.f32 %v2417_v55, %v2089_v24 }
  0xde   : > { %v4318_v27 = vpop.f32.mrf.mxu3 }
  0xdf   : > { %2728 = vst [vmem:[%s4265_s9 + $0x30] sm:$0xff] %v2418_v25 }
  0xe0   : > { %v2424_v30 = vpop.f32.mrf.mxu2  ;;  %v1761_v31 = vpop.f32.mrf.mxu0 }
  0xe1   : > { %v1762_v32 = vadd.f32 %v4256_v62, %v1761_v31  ;;  %v2090_v33 = vpop.f32.mrf.mxu1 }
  0xe3   : > { %v2091_v35 = vadd.f32 %v2090_v33, %v1762_v32  ;;  %v3085_v32 = vld [vmem:[%s4133_s5 + $0x150] sm:$0xf]  ;;  %v3864_v33 = vld [vmem:[%s4133_s5 + $0x158] sm:$0xf0] }
  0xe5   : > { %v2420_v41 = vadd.f32 %v2419_v2, %v2091_v35  ;;  %3768 = vmatmul.msk.bf16.gmra.mxu2 %vm1542_vm0, %v3082_v34  ;;  %v3073_v2 = vld [vmem:[%s4133_s5 + $0x138] sm:$0xf]  ;;  %v3661_v34 = vld [vmem:[%s4133_s5 + $0x5d0] sm:$0xf]  ;;  %v4008_v35 = vld [vmem:[%s4133_s5 + $0x5d8] sm:$0xf0] }
  0xe6   : > { %v4331_v44 = vpop.f32.mrf.mxu3  ;;  %v3074_v11 = vor.u32 %v3861_v3, %v3073_v2  ;;  %v3662_v42 = vor.u32 %v4008_v35, %v3661_v34  ;;  %v3673_v2 = vld [vmem:[%s4133_s5 + $0x5e8] sm:$0xf]  ;;  %v4011_v3 = vld [vmem:[%s4133_s5 + $0x5f0] sm:$0xf0]  ;;  %v3965_v34 = vld [vmem:[%s4133_s5 + $0x484] sm:$0xf] }
  0xe7   : > { %2729 = vst [vmem:[%s4265_s9 + $0x38] sm:$0xff] %v2420_v41  ;;  %v3086_v41 = vor.u32 %v3864_v33, %v3085_v32  ;;  %v3109_v32 = vld [vmem:[%s4133_s5 + $0x180] sm:$0xf]  ;;  %v3870_v33 = vld [vmem:[%s4133_s5 + $0x188] sm:$0xf0] }
  0xe8   : > { %v2427_v47 = vpop.f32.mrf.mxu2  ;;  %v1764_v48 = vpop.f32.mrf.mxu0  ;;  %v3495_v35 = vld [vmem:[%s4133_s5 + $0x48c] sm:$0xf0] }
  0xe9   : > { %v1765_v50 = vadd.f32 %v4256_v62, %v1764_v48  ;;  %v2093_v51 = vpop.f32.mrf.mxu1 }
  0xeb   : > { %v2094_v53 = vadd.f32 %v2093_v51, %v1765_v50  ;;  %1803 = vmatmul.bf16.gmra.mxu0 %v3062_v45  ;;  %2043 = vmatmul.bf16.gmra.mxu3 %v3638_v46  ;;  %v3090_v46 = vor.u32 %v3863_v38, %v3087_v39  ;;  %v3869_v38 = vld [vmem:[%s4133_s5 + $0x184] sm:$0xf]  ;;  %v3111_v39 = vld [vmem:[%s4133_s5 + $0x18c] sm:$0xf0] }
  0xec   : > { %2132 = vmatmul.bf16.gmra.mxu1 %v3066_v49 }
  0xed   : > { %v2423_v54 = vadd.f32 %v2422_v19, %v2094_v53  ;;  %v3117_v53 = vld [vmem:[%s4133_s5 + $0x188] sm:$0xf] }
  0xee   : > { %v4335_v55 = vpop.f32.mrf.mxu3 }
  0xef   : > { %2730 = vst [vmem:[%s4265_s9 + $0x40] sm:$0xff] %v2423_v54  ;;  %v3871_v54 = vld [vmem:[%s4133_s5 + $0x190] sm:$0xf0] }
  0xf0   : > { %v2429_v58 = vpop.f32.mrf.mxu2  ;;  %v1766_v59 = vpop.f32.mrf.mxu0 }
  0xf1   : > { %v1767_v60 = vadd.f32 %v4256_v62, %v1766_v59  ;;  %v2095_v61 = vpop.f32.mrf.mxu1 }
  0xf3   : > { %v2096_v1 = vadd.f32 %v2095_v61, %v1767_v60  ;;  %v3118_v60 = vor.u32 %v3871_v54, %v3117_v53 }
  0xf5   : > { %v2425_v6 = vadd.f32 %v2424_v30, %v2096_v1  ;;  %3769 = vmatmul.msk.bf16.gmra.mxu2 %vm1542_vm0, %v3094_v0  ;;  %v3106_v30 = vor.u32 %v3868_v23, %v3105_v22  ;;  %v3097_v0 = vld [vmem:[%s4133_s5 + $0x168] sm:$0xf]  ;;  %v3867_v1 = vld [vmem:[%s4133_s5 + $0x170] sm:$0xf0]  ;;  %v3129_v22 = vld [vmem:[%s4133_s5 + $0x1a0] sm:$0xf] }
  0xf6   : > { %v4348_v9 = vpop.f32.mrf.mxu3  ;;  %v3098_v8 = vor.u32 %v3867_v1, %v3097_v0  ;;  %v3874_v23 = vld [vmem:[%s4133_s5 + $0x1a8] sm:$0xf0] }
  0xf7   : > { %2731 = vst [vmem:[%s4265_s9 + $0x48] sm:$0xff] %v2425_v6  ;;  %v3099_v6 = vld [vmem:[%s4133_s5 + $0x174] sm:$0xf0] }
  0xf8   : > { %v2432_v13 = vpop.f32.mrf.mxu2  ;;  %v1769_v14 = vpop.f32.mrf.mxu0 }
  0xf9   : > { %v1770_v17 = vadd.f32 %v4256_v62, %v1769_v14  ;;  %v2098_v18 = vpop.f32.mrf.mxu1  ;;  %v3102_v14 = vor.u32 %v3866_v5, %v3099_v6  ;;  %v3507_v5 = vld [vmem:[%s4133_s5 + $0x4a4] sm:$0xf0] }
  0xfb   : > { %v2099_v19 = vadd.f32 %v2098_v18, %v1770_v17  ;;  %1808 = vmatmul.bf16.gmra.mxu0 %v3074_v11  ;;  %2048 = vmatmul.bf16.gmra.mxu3 %v3650_v12  ;;  %v3674_v11 = vor.u32 %v4011_v3, %v3673_v2  ;;  %v3121_v2 = vld [vmem:[%s4133_s5 + $0x198] sm:$0xf]  ;;  %v3873_v3 = vld [vmem:[%s4133_s5 + $0x1a0] sm:$0xf0] }
  0xfc   : > { %2137 = vmatmul.bf16.gmra.mxu1 %v3078_v15 }
  0xfd   : > { %v2428_v20 = vadd.f32 %v2427_v47, %v2099_v19 }
  0xfe   : > { %v4352_v21 = vpop.f32.mrf.mxu3 }
  0xff   : > { %2732 = vst [vmem:[%s4265_s9 + $0x50] sm:$0xff] %v2428_v20 }
 0x100   : > { %v2434_v24 = vpop.f32.mrf.mxu2  ;;  %v1771_v25 = vpop.f32.mrf.mxu0 }
 0x101   : > { %v1772_v28 = vadd.f32 %v4256_v62, %v1771_v25  ;;  %v2100_v29 = vpop.f32.mrf.mxu1 }
 0x103   : > { %v2101_v31 = vadd.f32 %v2100_v29, %v1772_v28 }
 0x105   : > { %v2430_v37 = vadd.f32 %v2429_v58, %v2101_v31  ;;  %3770 = vmatmul.msk.bf16.gmra.mxu2 %vm1542_vm0, %v3106_v30  ;;  %v3130_v30 = vor.u32 %v3874_v23, %v3129_v22 }
 0x106   : > { %v4365_v40 = vpop.f32.mrf.mxu3 }
 0x107   : > { %2733 = vst [vmem:[%s4265_s9 + $0x58] sm:$0xff] %v2430_v37 }
 0x108   : > { %v2437_v43 = vpop.f32.mrf.mxu2  ;;  %v1774_v45 = vpop.f32.mrf.mxu0 }
 0x109   : > { %v1775_v47 = vadd.f32 %v4256_v62, %v1774_v45  ;;  %v2103_v48 = vpop.f32.mrf.mxu1 }
 0x10b   : > { %v2104_v49 = vadd.f32 %v2103_v48, %v1775_v47  ;;  %1813 = vmatmul.bf16.gmra.mxu0 %v3086_v41  ;;  %2053 = vmatmul.bf16.gmra.mxu3 %v3662_v42  ;;  %v3110_v42 = vor.u32 %v3870_v33, %v3109_v32  ;;  %v3114_v47 = vor.u32 %v3869_v38, %v3111_v39  ;;  %v3876_v38 = vld [vmem:[%s4133_s5 + $0x1b8] sm:$0xf0]  ;;  %v3971_v39 = vld [vmem:[%s4133_s5 + $0x4b4] sm:$0xf] }
 0x10c   : > { %2142 = vmatmul.bf16.gmra.mxu1 %v3090_v46 }
 0x10d   : > { %v2433_v50 = vadd.f32 %v2432_v13, %v2104_v49 }
 0x10e   : > { %v4369_v51 = vpop.f32.mrf.mxu3 }
 0x10f   : > { %2734 = vst [vmem:[%s4265_s9 + $0x60] sm:$0xff] %v2433_v50 }
 0x110   : > { %v2439_v56 = vpop.f32.mrf.mxu2  ;;  %v1776_v57 = vpop.f32.mrf.mxu0 }
 0x111   : > { %v1777_v58 = vadd.f32 %v4256_v62, %v1776_v57  ;;  %v2105_v59 = vpop.f32.mrf.mxu1  ;;  %v3877_v57 = vld [vmem:[%s4133_s5 + $0x1c0] sm:$0xf0] }
 0x113   : > { %v2106_v61 = vadd.f32 %v2105_v59, %v1777_v58 }
 0x115   : > { %v2435_v4 = vadd.f32 %v2434_v24, %v2106_v61  ;;  %3771 = vmatmul.msk.bf16.gmra.mxu2 %vm1542_vm0, %v3118_v60 }
 0x116   : > { %v4382_v7 = vpop.f32.mrf.mxu3 }
 0x117   : > { %2735 = vst [vmem:[%s4265_s9 + $0x68] sm:$0xff] %v2435_v4  ;;  %v3968_v4 = vld [vmem:[%s4133_s5 + $0x49c] sm:$0xf] }
 0x118   : > { %v2442_v12 = vpop.f32.mrf.mxu2  ;;  %v1779_v13 = vpop.f32.mrf.mxu0 }
 0x119   : > { %v1780_v15 = vadd.f32 %v4256_v62, %v1779_v13  ;;  %v2108_v17 = vpop.f32.mrf.mxu1  ;;  %v3122_v13 = vor.u32 %v3873_v3, %v3121_v2 }
 0x11b   : > { %v2109_v18 = vadd.f32 %v2108_v17, %v1780_v15  ;;  %1818 = vmatmul.bf16.gmra.mxu0 %v3098_v8  ;;  %2058 = vmatmul.bf16.gmra.mxu3 %v3674_v11  ;;  %v3872_v8 = vld [vmem:[%s4133_s5 + $0x19c] sm:$0xf]  ;;  %v3123_v11 = vld [vmem:[%s4133_s5 + $0x1a4] sm:$0xf0] }
 0x11c   : > { %2147 = vmatmul.bf16.gmra.mxu1 %v3102_v14  ;;  %v3510_v14 = vor.u32 %v3968_v4, %v3507_v5 }
 0x11d   : > { %v2438_v19 = vadd.f32 %v2437_v43, %v2109_v18  ;;  %v3498_v43 = vor.u32 %v3965_v34, %v3495_v35  ;;  %v3126_v18 = vor.u32 %v3872_v8, %v3123_v11  ;;  %v3145_v11 = vld [vmem:[%s4133_s5 + $0x1c8] sm:$0xf] }
 0x11e   : > { %v4386_v20 = vpop.f32.mrf.mxu3 }
 0x11f   : > { %2736 = vst [vmem:[%s4265_s9 + $0x70] sm:$0xff] %v2438_v19 }
 0x120   : > { %v2444_v24 = vpop.f32.mrf.mxu2  ;;  %v1781_v25 = vpop.f32.mrf.mxu0 }
 0x121   : > { %v1782_v28 = vadd.f32 %v4256_v62, %v1781_v25  ;;  %v2110_v29 = vpop.f32.mrf.mxu1 }
 0x123   : > { %v2111_v31 = vadd.f32 %v2110_v29, %v1782_v28  ;;  %v3153_v28 = vld [vmem:[%s4133_s5 + $0x1d0] sm:$0xf]  ;;  %v3880_v29 = vld [vmem:[%s4133_s5 + $0x1d8] sm:$0xf0] }
 0x124   : > { %v3154_v34 = vor.u32 %v3880_v29, %v3153_v28 }
 0x125   : > { %v2440_v37 = vadd.f32 %v2439_v56, %v2111_v31  ;;  %3772 = vmatmul.msk.bf16.gmra.mxu2 %vm1542_vm0, %v3130_v30  ;;  %v3141_v56 = vld [vmem:[%s4133_s5 + $0x1b8] sm:$0xf] }
 0x126   : > { %v4399_v41 = vpop.f32.mrf.mxu3  ;;  %v3142_v0 = vor.u32 %v3877_v57, %v3141_v56 }
 0x127   : > { %2737 = vst [vmem:[%s4265_s9 + $0x78] sm:$0xff] %v2440_v37  ;;  %v3133_v37 = vld [vmem:[%s4133_s5 + $0x1b0] sm:$0xf] }
 0x128   : > { %v2447_v45 = vpop.f32.mrf.mxu2  ;;  %v1784_v46 = vpop.f32.mrf.mxu0 }
 0x129   : > { %v1785_v48 = vadd.f32 %v4256_v62, %v1784_v46  ;;  %v2113_v49 = vpop.f32.mrf.mxu1  ;;  %v3135_v46 = vld [vmem:[%s4133_s5 + $0x1bc] sm:$0xf0] }
 0x12b   : > { %v2114_v50 = vadd.f32 %v2113_v49, %v1785_v48  ;;  %1823 = vmatmul.bf16.gmra.mxu0 %v3110_v42  ;;  %2312 = vmatmul.bf16.vlgmr.msrb.gmra.mxu3 %v3498_v43  ;;  %v3519_v42 = vld [vmem:[%s4133_s5 + $0x4bc] sm:$0xf0]  ;;  %v3134_v48 = vor.u32 %v3876_v38, %v3133_v37  ;;  %v3886_v38 = vld [vmem:[%s4133_s5 + $0x208] sm:$0xf0] }
 0x12c   : > { %2152 = vmatmul.bf16.gmra.mxu1 %v3114_v47  ;;  %v3522_v49 = vor.u32 %v3971_v39, %v3519_v42  ;;  %v3177_v37 = vld [vmem:[%s4133_s5 + $0x200] sm:$0xf] }
 0x12d   : > { %v2443_v53 = vadd.f32 %v2442_v12, %v2114_v50 }
 0x12e   : > { %v4403_v54 = vpop.f32.mrf.mxu3 }
 0x12f   : > { %2738 = vst [vmem:[%s4265_s9 + $0x80] sm:$0xff] %v2443_v53 }
 0x130   : > { %v2449_v58 = vpop.f32.mrf.mxu2  ;;  %v1786_v59 = vpop.f32.mrf.mxu0 }
 0x131   : > { %v1787_v60 = vadd.f32 %v4256_v62, %v1786_v59  ;;  %v2115_v61 = vpop.f32.mrf.mxu1 }
 0x133   : > { %v2116_v1 = vadd.f32 %v2115_v61, %v1787_v60 }
 0x135   : > { %v2445_v6 = vadd.f32 %v2444_v24, %v2116_v1  ;;  %3773 = vmatmul.msk.bf16.gmra.mxu2 %vm1542_vm0, %v3142_v0  ;;  %v3165_v0 = vld [vmem:[%s4133_s5 + $0x1e8] sm:$0xf]  ;;  %v3883_v1 = vld [vmem:[%s4133_s5 + $0x1f0] sm:$0xf0] }
 0x136   : > { %v4416_v12 = vpop.f32.mrf.mxu3 }
 0x137   : > { %2739 = vst [vmem:[%s4265_s9 + $0x88] sm:$0xff] %v2445_v6  ;;  %v3166_v6 = vor.u32 %v3883_v1, %v3165_v0 }
 0x138   : > { %v2452_v15 = vpop.f32.mrf.mxu2  ;;  %v1789_v17 = vpop.f32.mrf.mxu0 }
 0x139   : > { %v1790_v19 = vadd.f32 %v4256_v62, %v1789_v17  ;;  %v2118_v22 = vpop.f32.mrf.mxu1  ;;  %v3531_v17 = vld [vmem:[%s4133_s5 + $0x4d4] sm:$0xf0] }
 0x13b   : > { %v2119_v23 = vadd.f32 %v2118_v22, %v1790_v19  ;;  %1828 = vmatmul.bf16.gmra.mxu0 %v3122_v13  ;;  %2317 = vmatmul.bf16.gmra.mxu3 %v3510_v14  ;;  %v3879_v13 = vld [vmem:[%s4133_s5 + $0x1d0] sm:$0xf0]  ;;  %v3974_v14 = vld [vmem:[%s4133_s5 + $0x4cc] sm:$0xf]  ;;  %v3147_v19 = vld [vmem:[%s4133_s5 + $0x1d4] sm:$0xf0] }
 0x13c   : > { %2157 = vmatmul.bf16.gmra.mxu1 %v3126_v18  ;;  %v3878_v18 = vld [vmem:[%s4133_s5 + $0x1cc] sm:$0xf] }
 0x13d   : > { %v2448_v24 = vadd.f32 %v2447_v45, %v2119_v23  ;;  %v3875_v45 = vld [vmem:[%s4133_s5 + $0x1b4] sm:$0xf]  ;;  %v3146_v23 = vor.u32 %v3879_v13, %v3145_v11 }
 0x13e   : > { %v4420_v25 = vpop.f32.mrf.mxu3  ;;  %v3138_v56 = vor.u32 %v3875_v45, %v3135_v46  ;;  %v3178_v46 = vor.u32 %v3886_v38, %v3177_v37  ;;  %v3171_v37 = vld [vmem:[%s4133_s5 + $0x204] sm:$0xf0] }
 0x13f   : > { %2740 = vst [vmem:[%s4265_s9 + $0x90] sm:$0xff] %v2448_v24  ;;  %v3534_v24 = vor.u32 %v3974_v14, %v3531_v17  ;;  %v3189_v14 = vld [vmem:[%s4133_s5 + $0x218] sm:$0xf]  ;;  %v3889_v17 = vld [vmem:[%s4133_s5 + $0x220] sm:$0xf0] }
 0x140   : > { %v2454_v30 = vpop.f32.mrf.mxu2  ;;  %v1791_v31 = vpop.f32.mrf.mxu0 }
 0x141   : > { %v1792_v32 = vadd.f32 %v4256_v62, %v1791_v31  ;;  %v2120_v33 = vpop.f32.mrf.mxu1  ;;  %v3150_v31 = vor.u32 %v3878_v18, %v3147_v19 }
 0x143   : > { %v2121_v35 = vadd.f32 %v2120_v33, %v1792_v32 }
 0x145   : > { %v2450_v43 = vadd.f32 %v2449_v58, %v2121_v35  ;;  %3774 = vmatmul.msk.bf16.gmra.mxu2 %vm1542_vm0, %v3154_v34 }
 0x146   : > { %v4433_v47 = vpop.f32.mrf.mxu3 }
 0x147   : > { %2741 = vst [vmem:[%s4265_s9 + $0x98] sm:$0xff] %v2450_v43 }
 0x148   : > { %v2457_v50 = vpop.f32.mrf.mxu2  ;;  %v1794_v53 = vpop.f32.mrf.mxu0 }
 0x149   : > { %v1795_v57 = vadd.f32 %v4256_v62, %v1794_v53  ;;  %v2123_v59 = vpop.f32.mrf.mxu1  ;;  %v3882_v53 = vld [vmem:[%s4133_s5 + $0x1e8] sm:$0xf0] }
 0x14b   : > { %v2124_v58 = vadd.f32 %v2123_v59, %v1795_v57  ;;  %1833 = vmatmul.bf16.gmra.mxu0 %v3134_v48  ;;  %2322 = vmatmul.bf16.gmra.mxu3 %v3522_v49  ;;  %v3157_v49 = vld [vmem:[%s4133_s5 + $0x1e0] sm:$0xf]  ;;  %v3543_v57 = vld [vmem:[%s4133_s5 + $0x4ec] sm:$0xf0]  ;;  %v3881_v59 = vld [vmem:[%s4133_s5 + $0x1e4] sm:$0xf] }
 0x14c   : > { %2162 = vmatmul.bf16.gmra.mxu1 %v3138_v56  ;;  %v3977_v56 = vld [vmem:[%s4133_s5 + $0x4e4] sm:$0xf]  ;;  %v3158_v0 = vor.u32 %v3882_v53, %v3157_v49 }
 0x14d   : > { %v2453_v60 = vadd.f32 %v2452_v15, %v2124_v58  ;;  %v3159_v58 = vld [vmem:[%s4133_s5 + $0x1ec] sm:$0xf0]  ;;  %v3546_v1 = vor.u32 %v3977_v56, %v3543_v57 }
 0x14e   : > { %v4437_v61 = vpop.f32.mrf.mxu3 }
 0x14f   : > { %2742 = vst [vmem:[%s4265_s9 + $0xa0] sm:$0xff] %v2453_v60 }
 0x150   : > { %v2459_v2 = vpop.f32.mrf.mxu2  ;;  %v1796_v3 = vpop.f32.mrf.mxu0 }
 0x151   : > { %v1797_v4 = vadd.f32 %v4256_v62, %v1796_v3  ;;  %v2125_v5 = vpop.f32.mrf.mxu1 }
 0x153   : > { %v2126_v8 = vadd.f32 %v2125_v5, %v1797_v4  ;;  %v3162_v5 = vor.u32 %v3881_v59, %v3159_v58  ;;  %v3892_v59 = vld [vmem:[%s4133_s5 + $0x238] sm:$0xf0] }
 0x155   : > { %v2455_v15 = vadd.f32 %v2454_v30, %v2126_v8  ;;  %3775 = vmatmul.msk.bf16.gmra.mxu2 %vm1542_vm0, %v3166_v6 }
 0x156   : > { %v4450_v22 = vpop.f32.mrf.mxu3 }
 0x157   : > { %2743 = vst [vmem:[%s4265_s9 + $0xa8] sm:$0xff] %v2455_v15 }
 0x158   : > { %v2462_v28 = vpop.f32.mrf.mxu2  ;;  %v1799_v29 = vpop.f32.mrf.mxu0 }
 0x159   : > { %v1800_v32 = vadd.f32 %v4256_v62, %v1799_v29  ;;  %v2128_v33 = vpop.f32.mrf.mxu1 }
 0x15b   : > { %v2129_v30 = vadd.f32 %v2128_v33, %v1800_v32  ;;  %1838 = vmatmul.bf16.gmra.mxu0 %v3146_v23  ;;  %2327 = vmatmul.bf16.gmra.mxu3 %v3534_v24  ;;  %v3190_v24 = vor.u32 %v3889_v17, %v3189_v14  ;;  %v3885_v32 = vld [vmem:[%s4133_s5 + $0x200] sm:$0xf0]  ;;  %v3980_v33 = vld [vmem:[%s4133_s5 + $0x4fc] sm:$0xf]  ;;  %v3567_v14 = vld [vmem:[%s4133_s5 + $0x51c] sm:$0xf0] }
 0x15c   : > { %2167 = vmatmul.bf16.gmra.mxu1 %v3150_v31  ;;  %v3169_v31 = vld [vmem:[%s4133_s5 + $0x1f8] sm:$0xf]  ;;  %v3887_v17 = vld [vmem:[%s4133_s5 + $0x214] sm:$0xf] }
 0x15d   : > { %v2458_v34 = vadd.f32 %v2457_v50, %v2129_v30  ;;  %v3555_v30 = vld [vmem:[%s4133_s5 + $0x504] sm:$0xf0] }
 0x15e   : > { %v4454_v35 = vpop.f32.mrf.mxu3 }
 0x15f   : > { %2744 = vst [vmem:[%s4265_s9 + $0xb0] sm:$0xff] %v2458_v34  ;;  %v3884_v34 = vld [vmem:[%s4133_s5 + $0x1fc] sm:$0xf] }
 0x160   : > { %v2464_v39 = vpop.f32.mrf.mxu2  ;;  %v1801_v42 = vpop.f32.mrf.mxu0 }
 0x161   : > { %v1802_v43 = vadd.f32 %v4256_v62, %v1801_v42  ;;  %v2130_v45 = vpop.f32.mrf.mxu1  ;;  %v3170_v42 = vor.u32 %v3885_v32, %v3169_v31 }
 0x163   : > { %v2131_v48 = vadd.f32 %v2130_v45, %v1802_v43  ;;  %v3558_v43 = vor.u32 %v3980_v33, %v3555_v30 }
 0x165   : > { %v2460_v50 = vadd.f32 %v2459_v2, %v2131_v48  ;;  %3776 = vmatmul.msk.bf16.gmra.mxu2 %vm1542_vm0, %v3178_v46  ;;  %v3174_v48 = vor.u32 %v3884_v34, %v3171_v37  ;;  %v3213_v37 = vld [vmem:[%s4133_s5 + $0x248] sm:$0xf] }
 0x166   : > { %v4467_v60 = vpop.f32.mrf.mxu3 }
 0x167   : > { %2745 = vst [vmem:[%s4265_s9 + $0xb8] sm:$0xff] %v2460_v50  ;;  %v3201_v50 = vld [vmem:[%s4133_s5 + $0x230] sm:$0xf] }
 0x168   : > { %v2467_v3 = vpop.f32.mrf.mxu2  ;;  %v1804_v4 = vpop.f32.mrf.mxu0 }
 0x169   : > { %v1805_v6 = vadd.f32 %v4256_v62, %v1804_v4  ;;  %v2133_v8 = vpop.f32.mrf.mxu1 }
 0x16b   : > { %v2134_v2 = vadd.f32 %v2133_v8, %v1805_v6  ;;  %1843 = vmatmul.bf16.gmra.mxu0 %v3158_v0  ;;  %2332 = vmatmul.bf16.gmra.mxu3 %v3546_v1  ;;  %v3181_v8 = vld [vmem:[%s4133_s5 + $0x210] sm:$0xf] }
 0x16c   : > { %2172 = vmatmul.bf16.gmra.mxu1 %v3162_v5  ;;  %v3202_v5 = vor.u32 %v3892_v59, %v3201_v50  ;;  %v3891_v50 = vld [vmem:[%s4133_s5 + $0x230] sm:$0xf0]  ;;  %v3986_v59 = vld [vmem:[%s4133_s5 + $0x52c] sm:$0xf] }
 0x16d   : > { %v2463_v11 = vadd.f32 %v2462_v28, %v2134_v2  ;;  %v3888_v2 = vld [vmem:[%s4133_s5 + $0x218] sm:$0xf0] }
 0x16e   : > { %v4471_v13 = vpop.f32.mrf.mxu3 }
 0x16f   : > { %2746 = vst [vmem:[%s4265_s9 + $0xc0] sm:$0xff] %v2463_v11  ;;  %v3983_v11 = vld [vmem:[%s4133_s5 + $0x514] sm:$0xf] }
 0x170   : > { %v2469_v15 = vpop.f32.mrf.mxu2  ;;  %v1806_v18 = vpop.f32.mrf.mxu0 }
 0x171   : > { %v1807_v19 = vadd.f32 %v4256_v62, %v1806_v18  ;;  %v2135_v23 = vpop.f32.mrf.mxu1  ;;  %v3183_v18 = vld [vmem:[%s4133_s5 + $0x21c] sm:$0xf0] }
 0x172   : > { %v3186_v32 = vor.u32 %v3887_v17, %v3183_v18 }
 0x173   : > { %v2136_v29 = vadd.f32 %v2135_v23, %v1807_v19  ;;  %v3182_v23 = vor.u32 %v3888_v2, %v3181_v8 }
 0x175   : > { %v2465_v28 = vadd.f32 %v2464_v39, %v2136_v29  ;;  %3777 = vmatmul.msk.bf16.gmra.mxu2 %vm1542_vm0, %v3190_v24  ;;  %v3570_v24 = vor.u32 %v3983_v11, %v3567_v14 }
 0x176   : > { %v4484_v38 = vpop.f32.mrf.mxu3 }
 0x177   : > { %2747 = vst [vmem:[%s4265_s9 + $0xc8] sm:$0xff] %v2465_v28 }
 0x178   : > { %v2472_v45 = vpop.f32.mrf.mxu2  ;;  %v1809_v46 = vpop.f32.mrf.mxu0 }
 0x179   : > { %v1810_v49 = vadd.f32 %v4256_v62, %v1809_v46  ;;  %v2138_v53 = vpop.f32.mrf.mxu1 }
 0x17b   : > { %v2139_v39 = vadd.f32 %v2138_v53, %v1810_v49  ;;  %1848 = vmatmul.bf16.gmra.mxu0 %v3170_v42  ;;  %2337 = vmatmul.bf16.gmra.mxu3 %v3558_v43  ;;  %v3895_v42 = vld [vmem:[%s4133_s5 + $0x250] sm:$0xf0] }
 0x17c   : > { %2177 = vmatmul.bf16.gmra.mxu1 %v3174_v48  ;;  %v3214_v53 = vor.u32 %v3895_v42, %v3213_v37  ;;  %v3205_v42 = vld [vmem:[%s4133_s5 + $0x240] sm:$0xf] }
 0x17d   : > { %v2468_v56 = vadd.f32 %v2467_v3, %v2139_v39 }
 0x17e   : > { %v4488_v57 = vpop.f32.mrf.mxu3 }
 0x17f   : > { %2748 = vst [vmem:[%s4265_s9 + $0xd0] sm:$0xff] %v2468_v56  ;;  %v3193_v56 = vld [vmem:[%s4133_s5 + $0x228] sm:$0xf] }
 0x180   : > { %v2474_v58 = vpop.f32.mrf.mxu2  ;;  %v1811_v0 = vpop.f32.mrf.mxu0 }
 0x181   : > { %v1812_v1 = vadd.f32 %v4256_v62, %v1811_v0  ;;  %v2140_v4 = vpop.f32.mrf.mxu1  ;;  %v3579_v0 = vld [vmem:[%s4133_s5 + $0x534] sm:$0xf0] }
 0x182   : > { %v3582_v8 = vor.u32 %v3986_v59, %v3579_v0 }
 0x183   : > { %v2141_v6 = vadd.f32 %v2140_v4, %v1812_v1  ;;  %v3890_v1 = vld [vmem:[%s4133_s5 + $0x22c] sm:$0xf]  ;;  %v3195_v4 = vld [vmem:[%s4133_s5 + $0x234] sm:$0xf0] }
 0x184   : > { %v3198_v14 = vor.u32 %v3890_v1, %v3195_v4  ;;  %v4541_v1 = vld [vmem:[%s5093_s2] ss:$0 sm:$0xff] }
 0x185   : > { %v2470_v3 = vadd.f32 %v2469_v15, %v2141_v6  ;;  %3778 = vmatmul.msk.bf16.gmra.mxu2 %vm1542_vm0, %v3202_v5  ;;  %v3194_v6 = vor.u32 %v3891_v50, %v3193_v56 }
 0x186   : > { %v4501_v19 = vpop.f32.mrf.mxu3 }
 0x187   : > { %2749 = vst [vmem:[%s4265_s9 + $0xd8] sm:$0xff] %v2470_v3 }
 0x188   : > { %v2477_v29 = vpop.f32.mrf.mxu2  ;;  %v1814_v31 = vpop.f32.mrf.mxu0 }
 0x189   : > { %v1815_v33 = vadd.f32 %v4256_v62, %v1814_v31  ;;  %v2143_v30 = vpop.f32.mrf.mxu1  ;;  %v3898_v31 = vld [vmem:[%s4133_s5 + $0x268] sm:$0xf0] }
 0x18b   : > { %v2144_v15 = vadd.f32 %v2143_v30, %v1815_v33  ;;  %1853 = vmatmul.bf16.gmra.mxu0 %v3182_v23  ;;  %2342 = vmatmul.bf16.gmra.mxu3 %v3570_v24  ;;  %v3225_v24 = vld [vmem:[%s4133_s5 + $0x260] sm:$0xf] }
 0x18c   : > { %2182 = vmatmul.bf16.gmra.mxu1 %v3186_v32 }
 0x18d   : > { %v2473_v28 = vadd.f32 %v2472_v45, %v2144_v15 }
 0x18e   : > { %v4505_v34 = vpop.f32.mrf.mxu3 }
 0x18f   : > { %2750 = vst [vmem:[%s4265_s9 + $0xe0] sm:$0xff] %v2473_v28  ;;  %v3226_v28 = vor.u32 %v3898_v31, %v3225_v24 }
 0x190   : > { %v2479_v43 = vpop.f32.mrf.mxu2  ;;  %v1816_v46 = vpop.f32.mrf.mxu0 }
 0x191   : > { %v1817_v48 = vadd.f32 %v4256_v62, %v1816_v46  ;;  %v2145_v49 = vpop.f32.mrf.mxu1  ;;  %v3894_v46 = vld [vmem:[%s4133_s5 + $0x248] sm:$0xf0] }
 0x192   : > { %v3206_v50 = vor.u32 %v3894_v46, %v3205_v42  ;;  %v1987_v42 = vadd.f32 %v4541_v1, %v4280_v26 }
 0x193   : > { %v2146_v39 = vadd.f32 %v2145_v49, %v1817_v48  ;;  %v3989_v48 = vld [vmem:[%s4133_s5 + $0x544] sm:$0xf]  ;;  %v3591_v49 = vld [vmem:[%s4133_s5 + $0x54c] sm:$0xf0] }
 0x194   : > { %v3594_v59 = vor.u32 %v3989_v48, %v3591_v49  ;;  %v3896_v48 = vld [vmem:[%s4133_s5 + $0x25c] sm:$0xf]  ;;  %v3219_v49 = vld [vmem:[%s4133_s5 + $0x264] sm:$0xf0] }
 0x195   : > { %v2475_v45 = vadd.f32 %v2474_v58, %v2146_v39  ;;  %3779 = vmatmul.msk.bf16.gmra.mxu2 %vm1542_vm0, %v3214_v53  ;;  %v3893_v53 = vld [vmem:[%s4133_s5 + $0x244] sm:$0xf]  ;;  %v3207_v39 = vld [vmem:[%s4133_s5 + $0x24c] sm:$0xf0] }
 0x196   : > { %v4518_v5 = vpop.f32.mrf.mxu3 }
 0x197   : > { %2751 = vst [vmem:[%s4265_s9 + $0xe8] sm:$0xff] %v2475_v45  ;;  %v3210_v45 = vor.u32 %v3893_v53, %v3207_v39 }
 0x198   : > { %v2482_v2 = vpop.f32.mrf.mxu2  ;;  %v1819_v11 = vpop.f32.mrf.mxu0 }
 0x199   : > { %v1820_v3 = vadd.f32 %v4256_v62, %v1819_v11  ;;  %v2148_v17 = vpop.f32.mrf.mxu1 }
 0x19b   : > { %v2149_v58 = vadd.f32 %v2148_v17, %v1820_v3  ;;  %1858 = vmatmul.bf16.gmra.mxu0 %v3194_v6  ;;  %2347 = vmatmul.bf16.gmra.mxu3 %v3582_v8  ;;  %v1985_v8 = vadd.f32 %v4541_v1, %v4267_v10  ;;  %v3237_v3 = vld [vmem:[%s4133_s5 + $0x278] sm:$0xf]  ;;  %v3901_v17 = vld [vmem:[%s4133_s5 + $0x280] sm:$0xf0] }
 0x19c   : > { %2187 = vmatmul.bf16.gmra.mxu1 %v3198_v14  ;;  %v3897_v10 = vld [vmem:[%s4133_s5 + $0x260] sm:$0xf0] }
 0x19d   : > { %v2478_v18 = vadd.f32 %v2477_v29, %v2149_v58 }
 0x19e   : > { %v4522_v23 = vpop.f32.mrf.mxu3 }
 0x19f   : > { %2752 = vst [vmem:[%s4265_s9 + $0xf0] sm:$0xff] %v2478_v18 }
 0x1a0   : > { %v2484_v32 = vpop.f32.mrf.mxu2  ;;  %v1821_v33 = vpop.f32.mrf.mxu0 }
 0x1a1   : > { %v1822_v30 = vadd.f32 %v4256_v62, %v1821_v33  ;;  %v2150_v15 = vpop.f32.mrf.mxu1 }
 0x1a3   : > { %v2151_v37 = vadd.f32 %v2150_v15, %v1822_v30  ;;  %v3238_v30 = vor.u32 %v3901_v17, %v3237_v3 }
 0x1a5   : > { %v2480_v29 = vadd.f32 %v2479_v43, %v2151_v37  ;;  %3780 = vmatmul.msk.bf16.gmra.mxu2 %vm1542_vm0, %v3226_v28  ;;  %v3217_v28 = vld [vmem:[%s4133_s5 + $0x258] sm:$0xf]  ;;  %v3992_v37 = vld [vmem:[%s4133_s5 + $0x55c] sm:$0xf] }
 0x1a6   : > { %v4535_v56 = vpop.f32.mrf.mxu3  ;;  %v3218_v39 = vor.u32 %v3897_v10, %v3217_v28  ;;  %v3229_v28 = vld [vmem:[%s4133_s5 + $0x270] sm:$0xf]  ;;  %v3995_v10 = vld [vmem:[%s4133_s5 + $0x574] sm:$0xf] }
 0x1a7   : > { %2753 = vst [vmem:[%s4265_s9 + $0xf8] sm:$0xff] %v2480_v29 }
 0x1a8   : > { %v2487_v62 = vpop.f32.mrf.mxu2  ;;  %v1824_v0 = vpop.f32.mrf.mxu0 }
 0x1a9   : > { %v1825_v43 = vadd.f32 %v4541_v1, %v1824_v0  ;;  %v2153_v4 = vpop.f32.mrf.mxu1 }
 0x1ab   : > { %v2154_v6 = vadd.f32 %v2153_v4, %v1825_v43  ;;  %1863 = vmatmul.bf16.gmra.mxu0 %v3206_v50  ;;  %2352 = vmatmul.bf16.gmra.mxu3 %v3594_v59  ;;  %v1990_v4 = vadd.f32 %v4541_v1, %v4284_v36  ;;  %v3900_v36 = vld [vmem:[%s4133_s5 + $0x278] sm:$0xf0] }
 0x1ac   : > { %2192 = vmatmul.bf16.gmra.mxu1 %v3210_v45  ;;  %v3222_v45 = vor.u32 %v3896_v48, %v3219_v49 }
 0x1ad   : > { %v2483_v11 = vadd.f32 %v2482_v2, %v2154_v6  ;;  %v3603_v2 = vld [vmem:[%s4133_s5 + $0x564] sm:$0xf0] }
 0x1ae   : > { %v2313_v14 = vpop.f32.mrf.mxu3  ;;  %v3606_v50 = vor.u32 %v3992_v37, %v3603_v2  ;;  %v1992_v37 = vadd.f32 %v4541_v1, %v4297_v52 }
 0x1af   : > { %2754 = vst [vmem:[%s4265_s9 + $0x100] sm:$0xff] %v2483_v11  ;;  %v4549_v58 = vadd.f32 %v2313_v14, %v1985_v8  ;;  %v3249_v11 = vld [vmem:[%s4133_s5 + $0x290] sm:$0xf]  ;;  %v3904_v14 = vld [vmem:[%s4133_s5 + $0x298] sm:$0xf0] }
 0x1b0   : > { %v2489_v18 = vpop.f32.mrf.mxu2  ;;  %v1826_v24 = vpop.f32.mrf.mxu0 }
 0x1b1   : > { %v1827_v31 = vadd.f32 %v4541_v1, %v1826_v24  ;;  %v2155_v33 = vpop.f32.mrf.mxu1 }
 0x1b3   : > { %v2156_v15 = vadd.f32 %v2155_v33, %v1827_v31 }
 0x1b5   : > { %v2485_v46 = vadd.f32 %v2484_v32, %v2156_v15  ;;  %3781 = vmatmul.msk.bf16.gmra.mxu2 %vm1542_vm0, %v3238_v30  ;;  %v3250_v30 = vor.u32 %v3904_v14, %v3249_v11 }
 0x1b6   : > { %v2315_v29 = vpop.f32.mrf.mxu3 }
 0x1b7   : > { %2755 = vst [vmem:[%s4265_s9 + $0x108] sm:$0xff] %v2485_v46  ;;  %v4562_v53 = vadd.f32 %v2315_v29, %v1987_v42  ;;  %v3899_v42 = vld [vmem:[%s4133_s5 + $0x274] sm:$0xf]  ;;  %v3231_v46 = vld [vmem:[%s4133_s5 + $0x27c] sm:$0xf0]  ;;  %v3230_v29 = vor.u32 %v3900_v36, %v3229_v28 }
 0x1b8   : > { %v2492_v59 = vpop.f32.mrf.mxu2  ;;  %v1829_v0 = vpop.f32.mrf.mxu0  ;;  %v3241_v28 = vld [vmem:[%s4133_s5 + $0x288] sm:$0xf]  ;;  %v3998_v36 = vld [vmem:[%s4133_s5 + $0x58c] sm:$0xf] }
 0x1b9   : > { %v1830_v43 = vadd.f32 %v4541_v1, %v1829_v0  ;;  %v2158_v26 = vpop.f32.mrf.mxu1 }
 0x1bb   : > { %v2159_v32 = vadd.f32 %v2158_v26, %v1830_v43  ;;  %1868 = vmatmul.bf16.gmra.mxu0 %v3218_v39  ;;  %2357 = vmatmul.bf16.gmra.mxu3 %v3606_v50  ;;  %v1995_v26 = vadd.f32 %v4541_v1, %v4301_v63  ;;  %v3903_v63 = vld [vmem:[%s4133_s5 + $0x290] sm:$0xf0] }
 0x1bc   : > { %2197 = vmatmul.bf16.gmra.mxu1 %v3222_v45  ;;  %v3234_v45 = vor.u32 %v3899_v42, %v3231_v46 }
 0x1bd   : > { %v2488_v6 = vadd.f32 %v2487_v62, %v2159_v32  ;;  %v3615_v62 = vld [vmem:[%s4133_s5 + $0x57c] sm:$0xf0] }
 0x1be   : > { %v2318_v8 = vpop.f32.mrf.mxu3  ;;  %v3618_v39 = vor.u32 %v3995_v10, %v3615_v62  ;;  %v1997_v10 = vadd.f32 %v4541_v1, %v4314_v16 }
 0x1bf   : > { %2756 = vst [vmem:[%s4265_s9 + $0x110] sm:$0xff] %v2488_v6  ;;  %v4570_v3 = vadd.f32 %v2318_v8, %v1990_v4  ;;  %v3261_v6 = vld [vmem:[%s4133_s5 + $0x2a8] sm:$0xf]  ;;  %v3907_v8 = vld [vmem:[%s4133_s5 + $0x2b0] sm:$0xf0] }
 0x1c0   : > { %v2494_v17 = vpop.f32.mrf.mxu2  ;;  %v1831_v24 = vpop.f32.mrf.mxu0 }
 0x1c1   : > { %v1832_v31 = vadd.f32 %v4541_v1, %v1831_v24  ;;  %v2160_v33 = vpop.f32.mrf.mxu1 }
 0x1c3   : > { %v2161_v15 = vadd.f32 %v2160_v33, %v1832_v31 }
 0x1c5   : > { %v2490_v2 = vadd.f32 %v2489_v18, %v2161_v15  ;;  %3782 = vmatmul.msk.bf16.gmra.mxu2 %vm1542_vm0, %v3250_v30  ;;  %v3262_v30 = vor.u32 %v3907_v8, %v3261_v6 }
 0x1c6   : > { %v2320_v48 = vpop.f32.mrf.mxu3 }
 0x1c7   : > { %2757 = vst [vmem:[%s4265_s9 + $0x118] sm:$0xff] %v2490_v2  ;;  %v4583_v49 = vadd.f32 %v2320_v48, %v1992_v37  ;;  %v3902_v37 = vld [vmem:[%s4133_s5 + $0x28c] sm:$0xf]  ;;  %v3243_v2 = vld [vmem:[%s4133_s5 + $0x294] sm:$0xf0]  ;;  %v3242_v48 = vor.u32 %v3903_v63, %v3241_v28 }
 0x1c8   : > { %v2497_v50 = vpop.f32.mrf.mxu2  ;;  %v1834_v0 = vpop.f32.mrf.mxu0  ;;  %v3253_v28 = vld [vmem:[%s4133_s5 + $0x2a0] sm:$0xf]  ;;  %v4001_v63 = vld [vmem:[%s4133_s5 + $0x5a4] sm:$0xf] }
 0x1c9   : > { %v1835_v43 = vadd.f32 %v4541_v1, %v1834_v0  ;;  %v2163_v52 = vpop.f32.mrf.mxu1 }
 0x1cb   : > { %v2164_v18 = vadd.f32 %v2163_v52, %v1835_v43  ;;  %1873 = vmatmul.bf16.gmra.mxu0 %v3230_v29  ;;  %2362 = vmatmul.bf16.gmra.mxu3 %v3618_v39  ;;  %v2000_v52 = vadd.f32 %v4541_v1, %v4318_v27  ;;  %v3906_v27 = vld [vmem:[%s4133_s5 + $0x2a8] sm:$0xf0] }
 0x1cc   : > { %2202 = vmatmul.bf16.gmra.mxu1 %v3234_v45  ;;  %v3246_v45 = vor.u32 %v3902_v37, %v3243_v2 }
 0x1cd   : > { %v2493_v32 = vadd.f32 %v2492_v59, %v2164_v18  ;;  %v3627_v59 = vld [vmem:[%s4133_s5 + $0x594] sm:$0xf0] }
 0x1ce   : > { %v2323_v4 = vpop.f32.mrf.mxu3  ;;  %v3630_v29 = vor.u32 %v3998_v36, %v3627_v59  ;;  %v2002_v36 = vadd.f32 %v4541_v1, %v4331_v44 }
 0x1cf   : > { %2758 = vst [vmem:[%s4265_s9 + $0x120] sm:$0xff] %v2493_v32  ;;  %v4591_v11 = vadd.f32 %v2323_v4, %v1995_v26  ;;  %v3273_v32 = vld [vmem:[%s4133_s5 + $0x2c0] sm:$0xf]  ;;  %v3910_v4 = vld [vmem:[%s4133_s5 + $0x2c8] sm:$0xf0] }
 0x1d0   : > { %v2499_v14 = vpop.f32.mrf.mxu2  ;;  %v1836_v24 = vpop.f32.mrf.mxu0 }
 0x1d1   : > { %v1837_v31 = vadd.f32 %v4541_v1, %v1836_v24  ;;  %v2165_v33 = vpop.f32.mrf.mxu1 }
 0x1d3   : > { %v2166_v15 = vadd.f32 %v2165_v33, %v1837_v31 }
 0x1d5   : > { %v2495_v62 = vadd.f32 %v2494_v17, %v2166_v15  ;;  %3783 = vmatmul.msk.bf16.gmra.mxu2 %vm1542_vm0, %v3262_v30  ;;  %v3274_v30 = vor.u32 %v3910_v4, %v3273_v32 }
 0x1d6   : > { %v2325_v42 = vpop.f32.mrf.mxu3 }
 0x1d7   : > { %2759 = vst [vmem:[%s4265_s9 + $0x128] sm:$0xff] %v2495_v62  ;;  %v4604_v46 = vadd.f32 %v2325_v42, %v1997_v10  ;;  %v3905_v10 = vld [vmem:[%s4133_s5 + $0x2a4] sm:$0xf]  ;;  %v3255_v62 = vld [vmem:[%s4133_s5 + $0x2ac] sm:$0xf0]  ;;  %v3254_v42 = vor.u32 %v3906_v27, %v3253_v28 }
 0x1d8   : > { %v2502_v39 = vpop.f32.mrf.mxu2  ;;  %v1839_v0 = vpop.f32.mrf.mxu0  ;;  %v3265_v28 = vld [vmem:[%s4133_s5 + $0x2b8] sm:$0xf]  ;;  %v4004_v27 = vld [vmem:[%s4133_s5 + $0x5bc] sm:$0xf] }
 0x1d9   : > { %v1840_v43 = vadd.f32 %v4541_v1, %v1839_v0  ;;  %v2168_v16 = vpop.f32.mrf.mxu1 }
 0x1db   : > { %v2169_v17 = vadd.f32 %v2168_v16, %v1840_v43  ;;  %1878 = vmatmul.bf16.gmra.mxu0 %v3242_v48  ;;  %2367 = vmatmul.bf16.gmra.mxu3 %v3630_v29  ;;  %v2005_v16 = vadd.f32 %v4541_v1, %v4335_v55  ;;  %v3909_v55 = vld [vmem:[%s4133_s5 + $0x2c0] sm:$0xf0] }
 0x1dc   : > { %2207 = vmatmul.bf16.gmra.mxu1 %v3246_v45  ;;  %v3258_v45 = vor.u32 %v3905_v10, %v3255_v62 }
 0x1dd   : > { %v2498_v18 = vadd.f32 %v2497_v50, %v2169_v17  ;;  %v3639_v50 = vld [vmem:[%s4133_s5 + $0x5ac] sm:$0xf0] }
 0x1de   : > { %v2328_v26 = vpop.f32.mrf.mxu3  ;;  %v3642_v48 = vor.u32 %v4001_v63, %v3639_v50  ;;  %v2007_v63 = vadd.f32 %v4541_v1, %v4348_v9 }
 0x1df   : > { %2760 = vst [vmem:[%s4265_s9 + $0x130] sm:$0xff] %v2498_v18  ;;  %v4612_v6 = vadd.f32 %v2328_v26, %v2000_v52  ;;  %v3285_v18 = vld [vmem:[%s4133_s5 + $0x2d8] sm:$0xf]  ;;  %v3913_v26 = vld [vmem:[%s4133_s5 + $0x2e0] sm:$0xf0] }
 0x1e0   : > { %v2504_v8 = vpop.f32.mrf.mxu2  ;;  %v1841_v24 = vpop.f32.mrf.mxu0 }
 0x1e1   : > { %v1842_v31 = vadd.f32 %v4541_v1, %v1841_v24  ;;  %v2170_v33 = vpop.f32.mrf.mxu1 }
 0x1e3   : > { %v2171_v15 = vadd.f32 %v2170_v33, %v1842_v31 }
 0x1e5   : > { %v2500_v59 = vadd.f32 %v2499_v14, %v2171_v15  ;;  %3784 = vmatmul.msk.bf16.gmra.mxu2 %vm1542_vm0, %v3274_v30  ;;  %v3286_v30 = vor.u32 %v3913_v26, %v3285_v18 }
 0x1e6   : > { %v2330_v37 = vpop.f32.mrf.mxu3 }
 0x1e7   : > { %2761 = vst [vmem:[%s4265_s9 + $0x138] sm:$0xff] %v2500_v59  ;;  %v4625_v2 = vadd.f32 %v2330_v37, %v2002_v36  ;;  %v3908_v36 = vld [vmem:[%s4133_s5 + $0x2bc] sm:$0xf]  ;;  %v3267_v59 = vld [vmem:[%s4133_s5 + $0x2c4] sm:$0xf0]  ;;  %v3266_v37 = vor.u32 %v3909_v55, %v3265_v28 }
 0x1e8   : > { %v2507_v29 = vpop.f32.mrf.mxu2  ;;  %v1844_v0 = vpop.f32.mrf.mxu0  ;;  %v3277_v28 = vld [vmem:[%s4133_s5 + $0x2d0] sm:$0xf]  ;;  %v4007_v55 = vld [vmem:[%s4133_s5 + $0x5d4] sm:$0xf] }
 0x1e9   : > { %v1845_v43 = vadd.f32 %v4541_v1, %v1844_v0  ;;  %v2173_v44 = vpop.f32.mrf.mxu1 }
 0x1eb   : > { %v2174_v14 = vadd.f32 %v2173_v44, %v1845_v43  ;;  %1883 = vmatmul.bf16.gmra.mxu0 %v3254_v42  ;;  %2372 = vmatmul.bf16.gmra.mxu3 %v3642_v48  ;;  %v2010_v44 = vadd.f32 %v4541_v1, %v4352_v21  ;;  %v3912_v21 = vld [vmem:[%s4133_s5 + $0x2d8] sm:$0xf0] }
 0x1ec   : > { %2212 = vmatmul.bf16.gmra.mxu1 %v3258_v45  ;;  %v3270_v45 = vor.u32 %v3908_v36, %v3267_v59 }
 0x1ed   : > { %v2503_v17 = vadd.f32 %v2502_v39, %v2174_v14  ;;  %v3651_v39 = vld [vmem:[%s4133_s5 + $0x5c4] sm:$0xf0] }
 0x1ee   : > { %v2333_v52 = vpop.f32.mrf.mxu3  ;;  %v3654_v42 = vor.u32 %v4004_v27, %v3651_v39  ;;  %v2012_v27 = vadd.f32 %v4541_v1, %v4365_v40 }
 0x1ef   : > { %2762 = vst [vmem:[%s4265_s9 + $0x140] sm:$0xff] %v2503_v17  ;;  %v4633_v32 = vadd.f32 %v2333_v52, %v2005_v16  ;;  %v3297_v17 = vld [vmem:[%s4133_s5 + $0x2f0] sm:$0xf]  ;;  %v3916_v52 = vld [vmem:[%s4133_s5 + $0x2f8] sm:$0xf0] }
 0x1f0   : > { %v2509_v4 = vpop.f32.mrf.mxu2  ;;  %v1846_v24 = vpop.f32.mrf.mxu0 }
 0x1f1   : > { %v1847_v31 = vadd.f32 %v4541_v1, %v1846_v24  ;;  %v2175_v33 = vpop.f32.mrf.mxu1 }
 0x1f3   : > { %v2176_v15 = vadd.f32 %v2175_v33, %v1847_v31 }
 0x1f5   : > { %v2505_v50 = vadd.f32 %v2504_v8, %v2176_v15  ;;  %3785 = vmatmul.msk.bf16.gmra.mxu2 %vm1542_vm0, %v3286_v30  ;;  %v3298_v30 = vor.u32 %v3916_v52, %v3297_v17 }
 0x1f6   : > { %v2335_v10 = vpop.f32.mrf.mxu3 }
 0x1f7   : > { %2763 = vst [vmem:[%s4265_s9 + $0x148] sm:$0xff] %v2505_v50  ;;  %v4646_v62 = vadd.f32 %v2335_v10, %v2007_v63  ;;  %v3911_v63 = vld [vmem:[%s4133_s5 + $0x2d4] sm:$0xf]  ;;  %v3279_v50 = vld [vmem:[%s4133_s5 + $0x2dc] sm:$0xf0]  ;;  %v3278_v10 = vor.u32 %v3912_v21, %v3277_v28 }
 0x1f8   : > { %v2512_v48 = vpop.f32.mrf.mxu2  ;;  %v1849_v0 = vpop.f32.mrf.mxu0  ;;  %v3289_v28 = vld [vmem:[%s4133_s5 + $0x2e8] sm:$0xf]  ;;  %v4010_v21 = vld [vmem:[%s4133_s5 + $0x5ec] sm:$0xf] }
 0x1f9   : > { %v1850_v43 = vadd.f32 %v4541_v1, %v1849_v0  ;;  %v2178_v9 = vpop.f32.mrf.mxu1 }
 0x1fb   : > { %v2179_v8 = vadd.f32 %v2178_v9, %v1850_v43  ;;  %1888 = vmatmul.bf16.gmra.mxu0 %v3266_v37  ;;  %2377 = vmatmul.bf16.gmra.mxu3 %v3654_v42  ;;  %v2015_v9 = vadd.f32 %v4541_v1, %v4369_v51  ;;  %v3915_v51 = vld [vmem:[%s4133_s5 + $0x2f0] sm:$0xf0] }
 0x1fc   : > { %2217 = vmatmul.bf16.gmra.mxu1 %v3270_v45  ;;  %v3282_v45 = vor.u32 %v3911_v63, %v3279_v50 }
 0x1fd   : > { %v2508_v14 = vadd.f32 %v2507_v29, %v2179_v8  ;;  %v3663_v29 = vld [vmem:[%s4133_s5 + $0x5dc] sm:$0xf0] }
 0x1fe   : > { %v2338_v16 = vpop.f32.mrf.mxu3  ;;  %v3666_v37 = vor.u32 %v4007_v55, %v3663_v29  ;;  %v2017_v55 = vadd.f32 %v4541_v1, %v4382_v7 }
 0x1ff   : > { %2764 = vst [vmem:[%s4265_s9 + $0x150] sm:$0xff] %v2508_v14  ;;  %v4654_v18 = vadd.f32 %v2338_v16, %v2010_v44  ;;  %v3309_v14 = vld [vmem:[%s4133_s5 + $0x308] sm:$0xf]  ;;  %v3919_v16 = vld [vmem:[%s4133_s5 + $0x310] sm:$0xf0] }
 0x200   : > { %v2514_v26 = vpop.f32.mrf.mxu2  ;;  %v1851_v24 = vpop.f32.mrf.mxu0 }
 0x201   : > { %v1852_v31 = vadd.f32 %v4541_v1, %v1851_v24  ;;  %v2180_v33 = vpop.f32.mrf.mxu1 }
 0x203   : > { %v2181_v15 = vadd.f32 %v2180_v33, %v1852_v31 }
 0x205   : > { %v2510_v39 = vadd.f32 %v2509_v4, %v2181_v15  ;;  %3786 = vmatmul.msk.bf16.gmra.mxu2 %vm1542_vm0, %v3298_v30  ;;  %v3310_v30 = vor.u32 %v3919_v16, %v3309_v14 }
 0x206   : > { %v2340_v36 = vpop.f32.mrf.mxu3 }
 0x207   : > { %2765 = vst [vmem:[%s4265_s9 + $0x158] sm:$0xff] %v2510_v39  ;;  %v4667_v59 = vadd.f32 %v2340_v36, %v2012_v27  ;;  %v3914_v27 = vld [vmem:[%s4133_s5 + $0x2ec] sm:$0xf]  ;;  %v3291_v39 = vld [vmem:[%s4133_s5 + $0x2f4] sm:$0xf0]  ;;  %v3290_v36 = vor.u32 %v3915_v51, %v3289_v28 }
 0x208   : > { %v2517_v42 = vpop.f32.mrf.mxu2  ;;  %v1854_v0 = vpop.f32.mrf.mxu0  ;;  %v3301_v28 = vld [vmem:[%s4133_s5 + $0x300] sm:$0xf]  ;;  %v3525_v51 = vld [vmem:[%s4133_s5 + $0x4b8] sm:$0xf] }
 0x209   : > { %v1855_v43 = vadd.f32 %v4541_v1, %v1854_v0  ;;  %v2183_v40 = vpop.f32.mrf.mxu1 }
 0x20b   : > { %v2184_v4 = vadd.f32 %v2183_v40, %v1855_v43  ;;  %1893 = vmatmul.bf16.gmra.mxu0 %v3278_v10  ;;  %2382 = vmatmul.bf16.gmra.mxu3 %v3666_v37  ;;  %v2020_v40 = vadd.f32 %v4541_v1, %v4386_v20  ;;  %v3918_v20 = vld [vmem:[%s4133_s5 + $0x308] sm:$0xf0] }
 0x20c   : > { %2222 = vmatmul.bf16.gmra.mxu1 %v3282_v45  ;;  %v3294_v45 = vor.u32 %v3914_v27, %v3291_v39 }
 0x20d   : > { %v2513_v8 = vadd.f32 %v2512_v48, %v2184_v4  ;;  %v3675_v48 = vld [vmem:[%s4133_s5 + $0x5f4] sm:$0xf0] }
 0x20e   : > { %v2343_v44 = vpop.f32.mrf.mxu3  ;;  %v3678_v10 = vor.u32 %v4010_v21, %v3675_v48  ;;  %v2022_v21 = vadd.f32 %v4541_v1, %v4399_v41 }
 0x20f   : > { %2766 = vst [vmem:[%s4265_s9 + $0x160] sm:$0xff] %v2513_v8  ;;  %v4675_v17 = vadd.f32 %v2343_v44, %v2015_v9  ;;  %v3321_v8 = vld [vmem:[%s4133_s5 + $0x320] sm:$0xf]  ;;  %v3922_v44 = vld [vmem:[%s4133_s5 + $0x328] sm:$0xf0] }
 0x210   : > { %v2519_v52 = vpop.f32.mrf.mxu2  ;;  %v1856_v24 = vpop.f32.mrf.mxu0 }
 0x211   : > { %v1857_v31 = vadd.f32 %v4541_v1, %v1856_v24  ;;  %v2185_v33 = vpop.f32.mrf.mxu1 }
 0x213   : > { %v2186_v15 = vadd.f32 %v2185_v33, %v1857_v31 }
 0x215   : > { %v2515_v29 = vadd.f32 %v2514_v26, %v2186_v15  ;;  %3787 = vmatmul.msk.bf16.gmra.mxu2 %vm1542_vm0, %v3310_v30  ;;  %v3322_v30 = vor.u32 %v3922_v44, %v3321_v8 }
 0x216   : > { %v2345_v63 = vpop.f32.mrf.mxu3 }
 0x217   : > { %2767 = vst [vmem:[%s4265_s9 + $0x168] sm:$0xff] %v2515_v29  ;;  %v4688_v50 = vadd.f32 %v2345_v63, %v2017_v55  ;;  %v3917_v55 = vld [vmem:[%s4133_s5 + $0x304] sm:$0xf]  ;;  %v3303_v29 = vld [vmem:[%s4133_s5 + $0x30c] sm:$0xf0]  ;;  %v3302_v63 = vor.u32 %v3918_v20, %v3301_v28 }
 0x218   : > { %v2522_v37 = vpop.f32.mrf.mxu2  ;;  %v1859_v0 = vpop.f32.mrf.mxu0  ;;  %v3313_v28 = vld [vmem:[%s4133_s5 + $0x318] sm:$0xf]  ;;  %v3537_v20 = vld [vmem:[%s4133_s5 + $0x4d0] sm:$0xf] }
 0x219   : > { %v1860_v43 = vadd.f32 %v4541_v1, %v1859_v0  ;;  %v2188_v7 = vpop.f32.mrf.mxu1 }
 0x21b   : > { %v2189_v26 = vadd.f32 %v2188_v7, %v1860_v43  ;;  %1898 = vmatmul.bf16.gmra.mxu0 %v3290_v36  ;;  %2387 = vmatmul.bf16.gmra.mxu3 %v3678_v10  ;;  %v2025_v7 = vadd.f32 %v4541_v1, %v4403_v54  ;;  %v3921_v54 = vld [vmem:[%s4133_s5 + $0x320] sm:$0xf0] }
 0x21c   : > { %2227 = vmatmul.bf16.gmra.mxu1 %v3294_v45  ;;  %v3306_v45 = vor.u32 %v3917_v55, %v3303_v29 }
 0x21d   : > { %v2518_v4 = vadd.f32 %v2517_v42, %v2189_v26  ;;  %v3973_v42 = vld [vmem:[%s4133_s5 + $0x4c0] sm:$0xf0] }
 0x21e   : > { %v2348_v9 = vpop.f32.mrf.mxu3  ;;  %v3526_v36 = vor.u32 %v3973_v42, %v3525_v51  ;;  %v2027_v51 = vadd.f32 %v4541_v1, %v4416_v12 }
 0x21f   : > { %2768 = vst [vmem:[%s4265_s9 + $0x170] sm:$0xff] %v2518_v4  ;;  %v4696_v14 = vadd.f32 %v2348_v9, %v2020_v40  ;;  %v3333_v4 = vld [vmem:[%s4133_s5 + $0x338] sm:$0xf]  ;;  %v3925_v9 = vld [vmem:[%s4133_s5 + $0x340] sm:$0xf0] }
 0x220   : > { %v2524_v16 = vpop.f32.mrf.mxu2  ;;  %v1861_v24 = vpop.f32.mrf.mxu0 }
 0x221   : > { %v1862_v31 = vadd.f32 %v4541_v1, %v1861_v24  ;;  %v2190_v33 = vpop.f32.mrf.mxu1 }
 0x223   : > { %v2191_v15 = vadd.f32 %v2190_v33, %v1862_v31 }
 0x225   : > { %v2520_v48 = vadd.f32 %v2519_v52, %v2191_v15  ;;  %3788 = vmatmul.msk.bf16.gmra.mxu2 %vm1542_vm0, %v3322_v30  ;;  %v3334_v30 = vor.u32 %v3925_v9, %v3333_v4 }
 0x226   : > { %v2350_v27 = vpop.f32.mrf.mxu3 }
 0x227   : > { %2769 = vst [vmem:[%s4265_s9 + $0x178] sm:$0xff] %v2520_v48  ;;  %v4709_v39 = vadd.f32 %v2350_v27, %v2022_v21  ;;  %v3920_v21 = vld [vmem:[%s4133_s5 + $0x31c] sm:$0xf]  ;;  %v3315_v48 = vld [vmem:[%s4133_s5 + $0x324] sm:$0xf0]  ;;  %v3314_v27 = vor.u32 %v3921_v54, %v3313_v28 }
 0x228   : > { %v2527_v10 = vpop.f32.mrf.mxu2  ;;  %v1864_v0 = vpop.f32.mrf.mxu0  ;;  %v3325_v28 = vld [vmem:[%s4133_s5 + $0x330] sm:$0xf]  ;;  %v3549_v54 = vld [vmem:[%s4133_s5 + $0x4e8] sm:$0xf] }
 0x229   : > { %v1865_v43 = vadd.f32 %v4541_v1, %v1864_v0  ;;  %v2193_v41 = vpop.f32.mrf.mxu1 }
 0x22b   : > { %v2194_v52 = vadd.f32 %v2193_v41, %v1865_v43  ;;  %1903 = vmatmul.bf16.gmra.mxu0 %v3302_v63  ;;  %3805 = vmatmul.msk.bf16.vlgmr.msra.gmra.mxu3 %vm1542_vm0, %v3526_v36  ;;  %v2030_v41 = vadd.f32 %v4541_v1, %v4420_v25  ;;  %v3924_v25 = vld [vmem:[%s4133_s5 + $0x338] sm:$0xf0] }
 0x22c   : > { %2232 = vmatmul.bf16.gmra.mxu1 %v3306_v45  ;;  %v3318_v45 = vor.u32 %v3920_v21, %v3315_v48 }
 0x22d   : > { %v2523_v26 = vadd.f32 %v2522_v37, %v2194_v52  ;;  %v3976_v37 = vld [vmem:[%s4133_s5 + $0x4d8] sm:$0xf0] }
 0x22e   : > { %v2353_v40 = vpop.f32.mrf.mxu3  ;;  %v3538_v63 = vor.u32 %v3976_v37, %v3537_v20  ;;  %v2032_v20 = vadd.f32 %v4541_v1, %v4433_v47 }
 0x22f   : > { %2770 = vst [vmem:[%s4265_s9 + $0x180] sm:$0xff] %v2523_v26  ;;  %v4718_v8 = vadd.f32 %v2353_v40, %v2025_v7  ;;  %v3345_v26 = vld [vmem:[%s4133_s5 + $0x350] sm:$0xf]  ;;  %v3928_v40 = vld [vmem:[%s4133_s5 + $0x358] sm:$0xf0] }
 0x230   : > { %v2529_v44 = vpop.f32.mrf.mxu2  ;;  %v1866_v24 = vpop.f32.mrf.mxu0 }
 0x231   : > { %v1867_v31 = vadd.f32 %v4541_v1, %v1866_v24  ;;  %v2195_v33 = vpop.f32.mrf.mxu1 }
 0x233   : > { %v2196_v15 = vadd.f32 %v2195_v33, %v1867_v31 }
 0x235   : > { %v2525_v42 = vadd.f32 %v2524_v16, %v2196_v15  ;;  %3789 = vmatmul.msk.bf16.gmra.mxu2 %vm1542_vm0, %v3334_v30  ;;  %v3346_v30 = vor.u32 %v3928_v40, %v3345_v26 }
 0x236   : > { %v2355_v55 = vpop.f32.mrf.mxu3 }
 0x237   : > { %2771 = vst [vmem:[%s4265_s9 + $0x188] sm:$0xff] %v2525_v42  ;;  %v4731_v29 = vadd.f32 %v2355_v55, %v2027_v51  ;;  %v3923_v51 = vld [vmem:[%s4133_s5 + $0x334] sm:$0xf]  ;;  %v3327_v42 = vld [vmem:[%s4133_s5 + $0x33c] sm:$0xf0]  ;;  %v3326_v55 = vor.u32 %v3924_v25, %v3325_v28 }
 0x238   : > { %v2532_v36 = vpop.f32.mrf.mxu2  ;;  %v1869_v0 = vpop.f32.mrf.mxu0  ;;  %v3337_v28 = vld [vmem:[%s4133_s5 + $0x348] sm:$0xf]  ;;  %v3561_v25 = vld [vmem:[%s4133_s5 + $0x500] sm:$0xf] }
 0x239   : > { %v1870_v43 = vadd.f32 %v4541_v1, %v1869_v0  ;;  %v2198_v12 = vpop.f32.mrf.mxu1 }
 0x23b   : > { %v2199_v16 = vadd.f32 %v2198_v12, %v1870_v43  ;;  %1908 = vmatmul.bf16.gmra.mxu0 %v3314_v27  ;;  %3806 = vmatmul.msk.bf16.gmra.mxu3 %vm1542_vm0, %v3538_v63  ;;  %v2035_v12 = vadd.f32 %v4541_v1, %v4437_v61  ;;  %v3927_v61 = vld [vmem:[%s4133_s5 + $0x350] sm:$0xf0] }
 0x23c   : > { %2237 = vmatmul.bf16.gmra.mxu1 %v3318_v45  ;;  %v3330_v45 = vor.u32 %v3923_v51, %v3327_v42 }
 0x23d   : > { %v2528_v52 = vadd.f32 %v2527_v10, %v2199_v16  ;;  %v3979_v10 = vld [vmem:[%s4133_s5 + $0x4f0] sm:$0xf0] }
 0x23e   : > { %v2358_v7 = vpop.f32.mrf.mxu3  ;;  %v3550_v27 = vor.u32 %v3979_v10, %v3549_v54  ;;  %v2037_v54 = vadd.f32 %v4541_v1, %v4450_v22 }
 0x23f   : > { %2772 = vst [vmem:[%s4265_s9 + $0x190] sm:$0xff] %v2528_v52  ;;  %v4740_v4 = vadd.f32 %v2358_v7, %v2030_v41  ;;  %v3357_v52 = vld [vmem:[%s4133_s5 + $0x368] sm:$0xf]  ;;  %v3931_v7 = vld [vmem:[%s4133_s5 + $0x370] sm:$0xf0] }
 0x240   : > { %v2534_v9 = vpop.f32.mrf.mxu2  ;;  %v1871_v24 = vpop.f32.mrf.mxu0 }
 0x241   : > { %v1872_v31 = vadd.f32 %v4541_v1, %v1871_v24  ;;  %v2200_v33 = vpop.f32.mrf.mxu1 }
 0x243   : > { %v2201_v15 = vadd.f32 %v2200_v33, %v1872_v31 }
 0x245   : > { %v2530_v37 = vadd.f32 %v2529_v44, %v2201_v15  ;;  %3790 = vmatmul.msk.bf16.gmra.mxu2 %vm1542_vm0, %v3346_v30  ;;  %v3358_v30 = vor.u32 %v3931_v7, %v3357_v52 }
 0x246   : > { %v2360_v21 = vpop.f32.mrf.mxu3 }
 0x247   : > { %2773 = vst [vmem:[%s4265_s9 + $0x198] sm:$0xff] %v2530_v37  ;;  %v4753_v48 = vadd.f32 %v2360_v21, %v2032_v20  ;;  %v3926_v20 = vld [vmem:[%s4133_s5 + $0x34c] sm:$0xf]  ;;  %v3339_v37 = vld [vmem:[%s4133_s5 + $0x354] sm:$0xf0]  ;;  %v3338_v21 = vor.u32 %v3927_v61, %v3337_v28 }
 0x248   : > { %v2537_v63 = vpop.f32.mrf.mxu2  ;;  %v1874_v0 = vpop.f32.mrf.mxu0  ;;  %v3349_v28 = vld [vmem:[%s4133_s5 + $0x360] sm:$0xf]  ;;  %v3573_v61 = vld [vmem:[%s4133_s5 + $0x518] sm:$0xf] }
 0x249   : > { %v1875_v43 = vadd.f32 %v4541_v1, %v1874_v0  ;;  %v2203_v47 = vpop.f32.mrf.mxu1 }
 0x24b   : > { %v2204_v44 = vadd.f32 %v2203_v47, %v1875_v43  ;;  %1913 = vmatmul.bf16.gmra.mxu0 %v3326_v55  ;;  %3807 = vmatmul.msk.bf16.gmra.mxu3 %vm1542_vm0, %v3550_v27  ;;  %v2040_v47 = vadd.f32 %v4541_v1, %v4454_v35  ;;  %v3930_v35 = vld [vmem:[%s4133_s5 + $0x368] sm:$0xf0] }
 0x24c   : > { %2242 = vmatmul.bf16.gmra.mxu1 %v3330_v45  ;;  %v3342_v45 = vor.u32 %v3926_v20, %v3339_v37 }
 0x24d   : > { %v2533_v16 = vadd.f32 %v2532_v36, %v2204_v44  ;;  %v3982_v36 = vld [vmem:[%s4133_s5 + $0x508] sm:$0xf0] }
 0x24e   : > { %v2363_v41 = vpop.f32.mrf.mxu3  ;;  %v3562_v55 = vor.u32 %v3982_v36, %v3561_v25  ;;  %v2042_v25 = vadd.f32 %v4541_v1, %v4467_v60 }
 0x24f   : > { %2774 = vst [vmem:[%s4265_s9 + $0x1a0] sm:$0xff] %v2533_v16  ;;  %v4762_v26 = vadd.f32 %v2363_v41, %v2035_v12  ;;  %v3369_v16 = vld [vmem:[%s4133_s5 + $0x380] sm:$0xf]  ;;  %v3934_v41 = vld [vmem:[%s4133_s5 + $0x388] sm:$0xf0] }
 0x250   : > { %v2539_v40 = vpop.f32.mrf.mxu2  ;;  %v1876_v24 = vpop.f32.mrf.mxu0 }
 0x251   : > { %v1877_v31 = vadd.f32 %v4541_v1, %v1876_v24  ;;  %v2205_v33 = vpop.f32.mrf.mxu1 }
 0x253   : > { %v2206_v15 = vadd.f32 %v2205_v33, %v1877_v31 }
 0x255   : > { %v2535_v10 = vadd.f32 %v2534_v9, %v2206_v15  ;;  %3791 = vmatmul.msk.bf16.gmra.mxu2 %vm1542_vm0, %v3358_v30  ;;  %v3370_v30 = vor.u32 %v3934_v41, %v3369_v16 }
 0x256   : > { %v2365_v51 = vpop.f32.mrf.mxu3 }
 0x257   : > { %2775 = vst [vmem:[%s4265_s9 + $0x1a8] sm:$0xff] %v2535_v10  ;;  %v4775_v42 = vadd.f32 %v2365_v51, %v2037_v54  ;;  %v3929_v54 = vld [vmem:[%s4133_s5 + $0x364] sm:$0xf]  ;;  %v3351_v10 = vld [vmem:[%s4133_s5 + $0x36c] sm:$0xf0]  ;;  %v3350_v51 = vor.u32 %v3930_v35, %v3349_v28 }
 0x258   : > { %v2542_v27 = vpop.f32.mrf.mxu2  ;;  %v1879_v0 = vpop.f32.mrf.mxu0  ;;  %v3361_v28 = vld [vmem:[%s4133_s5 + $0x378] sm:$0xf]  ;;  %v3585_v35 = vld [vmem:[%s4133_s5 + $0x530] sm:$0xf] }
 0x259   : > { %v1880_v43 = vadd.f32 %v4541_v1, %v1879_v0  ;;  %v2208_v22 = vpop.f32.mrf.mxu1 }
 0x25b   : > { %v2209_v9 = vadd.f32 %v2208_v22, %v1880_v43  ;;  %1918 = vmatmul.bf16.gmra.mxu0 %v3338_v21  ;;  %3808 = vmatmul.msk.bf16.gmra.mxu3 %vm1542_vm0, %v3562_v55  ;;  %v2045_v22 = vadd.f32 %v4541_v1, %v4471_v13  ;;  %v3933_v13 = vld [vmem:[%s4133_s5 + $0x380] sm:$0xf0] }
 0x25c   : > { %2247 = vmatmul.bf16.gmra.mxu1 %v3342_v45  ;;  %v3354_v45 = vor.u32 %v3929_v54, %v3351_v10 }
 0x25d   : > { %v2538_v44 = vadd.f32 %v2537_v63, %v2209_v9  ;;  %v3985_v63 = vld [vmem:[%s4133_s5 + $0x520] sm:$0xf0] }
 0x25e   : > { %v2368_v12 = vpop.f32.mrf.mxu3  ;;  %v3574_v21 = vor.u32 %v3985_v63, %v3573_v61  ;;  %v2047_v61 = vadd.f32 %v4541_v1, %v4484_v38 }
 0x25f   : > { %2776 = vst [vmem:[%s4265_s9 + $0x1b0] sm:$0xff] %v2538_v44  ;;  %v4784_v52 = vadd.f32 %v2368_v12, %v2040_v47  ;;  %v3381_v44 = vld [vmem:[%s4133_s5 + $0x398] sm:$0xf]  ;;  %v3937_v12 = vld [vmem:[%s4133_s5 + $0x3a0] sm:$0xf0] }
 0x260   : > { %v2544_v7 = vpop.f32.mrf.mxu2  ;;  %v1881_v24 = vpop.f32.mrf.mxu0 }
 0x261   : > { %v1882_v31 = vadd.f32 %v4541_v1, %v1881_v24  ;;  %v2210_v33 = vpop.f32.mrf.mxu1 }
 0x263   : > { %v2211_v15 = vadd.f32 %v2210_v33, %v1882_v31 }
 0x265   : > { %v2540_v36 = vadd.f32 %v2539_v40, %v2211_v15  ;;  %3792 = vmatmul.msk.bf16.gmra.mxu2 %vm1542_vm0, %v3370_v30  ;;  %v3382_v30 = vor.u32 %v3937_v12, %v3381_v44 }
 0x266   : > { %v2370_v20 = vpop.f32.mrf.mxu3 }
 0x267   : > { %2777 = vst [vmem:[%s4265_s9 + $0x1b8] sm:$0xff] %v2540_v36  ;;  %v4797_v37 = vadd.f32 %v2370_v20, %v2042_v25  ;;  %v3932_v25 = vld [vmem:[%s4133_s5 + $0x37c] sm:$0xf]  ;;  %v3363_v36 = vld [vmem:[%s4133_s5 + $0x384] sm:$0xf0]  ;;  %v3362_v20 = vor.u32 %v3933_v13, %v3361_v28 }
 0x268   : > { %v2547_v55 = vpop.f32.mrf.mxu2  ;;  %v1884_v0 = vpop.f32.mrf.mxu0  ;;  %v3373_v28 = vld [vmem:[%s4133_s5 + $0x390] sm:$0xf]  ;;  %v3597_v13 = vld [vmem:[%s4133_s5 + $0x548] sm:$0xf] }
 0x269   : > { %v1885_v43 = vadd.f32 %v4541_v1, %v1884_v0  ;;  %v2213_v60 = vpop.f32.mrf.mxu1 }
 0x26b   : > { %v2214_v40 = vadd.f32 %v2213_v60, %v1885_v43  ;;  %1923 = vmatmul.bf16.gmra.mxu0 %v3350_v51  ;;  %3809 = vmatmul.msk.bf16.gmra.mxu3 %vm1542_vm0, %v3574_v21  ;;  %v2050_v60 = vadd.f32 %v4541_v1, %v4488_v57  ;;  %v3936_v57 = vld [vmem:[%s4133_s5 + $0x398] sm:$0xf0] }
 0x26c   : > { %2252 = vmatmul.bf16.gmra.mxu1 %v3354_v45  ;;  %v3366_v45 = vor.u32 %v3932_v25, %v3363_v36 }
 0x26d   : > { %v2543_v9 = vadd.f32 %v2542_v27, %v2214_v40  ;;  %v3988_v27 = vld [vmem:[%s4133_s5 + $0x538] sm:$0xf0] }
 0x26e   : > { %v2373_v47 = vpop.f32.mrf.mxu3  ;;  %v3586_v51 = vor.u32 %v3988_v27, %v3585_v35  ;;  %v2052_v35 = vadd.f32 %v4541_v1, %v4501_v19 }
 0x26f   : > { %2778 = vst [vmem:[%s4265_s9 + $0x1c0] sm:$0xff] %v2543_v9  ;;  %v4806_v16 = vadd.f32 %v2373_v47, %v2045_v22  ;;  %v3393_v9 = vld [vmem:[%s4133_s5 + $0x3b0] sm:$0xf]  ;;  %v3940_v47 = vld [vmem:[%s4133_s5 + $0x3b8] sm:$0xf0] }
 0x270   : > { %v2549_v41 = vpop.f32.mrf.mxu2  ;;  %v1886_v24 = vpop.f32.mrf.mxu0 }
 0x271   : > { %v1887_v31 = vadd.f32 %v4541_v1, %v1886_v24  ;;  %v2215_v33 = vpop.f32.mrf.mxu1 }
 0x273   : > { %v2216_v15 = vadd.f32 %v2215_v33, %v1887_v31 }
 0x275   : > { %v2545_v63 = vadd.f32 %v2544_v7, %v2216_v15  ;;  %3793 = vmatmul.msk.bf16.gmra.mxu2 %vm1542_vm0, %v3382_v30  ;;  %v3394_v30 = vor.u32 %v3940_v47, %v3393_v9 }
 0x276   : > { %v2375_v54 = vpop.f32.mrf.mxu3 }
 0x277   : > { %2779 = vst [vmem:[%s4265_s9 + $0x1c8] sm:$0xff] %v2545_v63  ;;  %v4819_v10 = vadd.f32 %v2375_v54, %v2047_v61  ;;  %v3935_v61 = vld [vmem:[%s4133_s5 + $0x394] sm:$0xf]  ;;  %v3375_v63 = vld [vmem:[%s4133_s5 + $0x39c] sm:$0xf0]  ;;  %v3374_v54 = vor.u32 %v3936_v57, %v3373_v28 }
 0x278   : > { %v2552_v21 = vpop.f32.mrf.mxu2  ;;  %v1889_v0 = vpop.f32.mrf.mxu0  ;;  %v3609_v28 = vld [vmem:[%s4133_s5 + $0x560] sm:$0xf]  ;;  %v3994_v57 = vld [vmem:[%s4133_s5 + $0x568] sm:$0xf0] }
 0x279   : > { %v1890_v43 = vadd.f32 %v4541_v1, %v1889_v0  ;;  %v2218_v38 = vpop.f32.mrf.mxu1 }
 0x27b   : > { %v2219_v7 = vadd.f32 %v2218_v38, %v1890_v43  ;;  %1928 = vmatmul.bf16.gmra.mxu0 %v3362_v20  ;;  %3810 = vmatmul.msk.bf16.gmra.mxu3 %vm1542_vm0, %v3586_v51  ;;  %v2055_v38 = vadd.f32 %v4541_v1, %v4505_v34 }
 0x27c   : > { %2257 = vmatmul.bf16.gmra.mxu1 %v3366_v45  ;;  %v3378_v45 = vor.u32 %v3935_v61, %v3375_v63 }
 0x27d   : > { %v2548_v40 = vadd.f32 %v2547_v55, %v2219_v7  ;;  %v3991_v55 = vld [vmem:[%s4133_s5 + $0x550] sm:$0xf0] }
 0x27e   : > { %v2378_v22 = vpop.f32.mrf.mxu3  ;;  %v3598_v20 = vor.u32 %v3991_v55, %v3597_v13 }
 0x27f   : > { %2780 = vst [vmem:[%s4265_s9 + $0x1d0] sm:$0xff] %v2548_v40  ;;  %v4828_v44 = vadd.f32 %v2378_v22, %v2050_v60  ;;  %v3405_v40 = vld [vmem:[%s4133_s5 + $0x3c8] sm:$0xf]  ;;  %v3943_v22 = vld [vmem:[%s4133_s5 + $0x3d0] sm:$0xf0] }
 0x280   : > { %v2554_v12 = vpop.f32.mrf.mxu2  ;;  %v1891_v24 = vpop.f32.mrf.mxu0 }
 0x281   : > { %v1892_v31 = vadd.f32 %v4541_v1, %v1891_v24  ;;  %v2220_v33 = vpop.f32.mrf.mxu1 }
 0x283   : > { %v2221_v15 = vadd.f32 %v2220_v33, %v1892_v31  ;;  %v4855_v31 = vld [vmem:[%s5093_s2] ss:$0 sm:$0xff] }
 0x284   : > { %v2057_v13 = vadd.f32 %v4855_v31, %v4518_v5 }
 0x285   : > { %v2550_v27 = vadd.f32 %v2549_v41, %v2221_v15  ;;  %3794 = vmatmul.msk.bf16.gmra.mxu2 %vm1542_vm0, %v3394_v30  ;;  %v3385_v30 = vld [vmem:[%s4133_s5 + $0x3a8] sm:$0xf]  ;;  %v3939_v15 = vld [vmem:[%s4133_s5 + $0x3b0] sm:$0xf0] }
 0x286   : > { %v2380_v25 = vpop.f32.mrf.mxu3 }
 0x287   : > { %2781 = vst [vmem:[%s4265_s9 + $0x1d8] sm:$0xff] %v2550_v27  ;;  %v4841_v36 = vadd.f32 %v2380_v25, %v2052_v35  ;;  %v3938_v35 = vld [vmem:[%s4133_s5 + $0x3ac] sm:$0xf]  ;;  %v3387_v27 = vld [vmem:[%s4133_s5 + $0x3b4] sm:$0xf0]  ;;  %v3386_v25 = vor.u32 %v3939_v15, %v3385_v30 }
 0x288   : > { %v2557_v51 = vpop.f32.mrf.mxu2  ;;  %v1894_v0 = vpop.f32.mrf.mxu0  ;;  %v3397_v30 = vld [vmem:[%s4133_s5 + $0x3c0] sm:$0xf]  ;;  %v3621_v15 = vld [vmem:[%s4133_s5 + $0x578] sm:$0xf] }
 0x289   : > { %v1895_v43 = vadd.f32 %v4541_v1, %v1894_v0  ;;  %v2223_v19 = vpop.f32.mrf.mxu1 }
 0x28b   : > { %v2224_v41 = vadd.f32 %v2223_v19, %v1895_v43  ;;  %1933 = vmatmul.bf16.gmra.mxu0 %v3374_v54  ;;  %3811 = vmatmul.msk.bf16.gmra.mxu3 %vm1542_vm0, %v3598_v20  ;;  %v3610_v54 = vor.u32 %v3994_v57, %v3609_v28  ;;  %v2060_v19 = vadd.f32 %v4855_v31, %v4522_v23  ;;  %v3942_v23 = vld [vmem:[%s4133_s5 + $0x3c8] sm:$0xf0] }
 0x28c   : > { %2262 = vmatmul.bf16.gmra.mxu1 %v3378_v45  ;;  %v3390_v45 = vor.u32 %v3938_v35, %v3387_v27  ;;  %v2062_v28 = vadd.f32 %v4855_v31, %v4535_v56 }
 0x28d   : > { %v2553_v7 = vadd.f32 %v2552_v21, %v2224_v41  ;;  %v3406_v21 = vor.u32 %v3943_v22, %v3405_v40 }
 0x28e   : > { %v2383_v60 = vpop.f32.mrf.mxu3 }
 0x28f   : > { %2782 = vst [vmem:[%s4265_s9 + $0x1e0] sm:$0xff] %v2553_v7  ;;  %v4850_v9 = vadd.f32 %v2383_v60, %v2055_v38  ;;  %v3417_v7 = vld [vmem:[%s4133_s5 + $0x3e0] sm:$0xf]  ;;  %v3946_v60 = vld [vmem:[%s4133_s5 + $0x3e8] sm:$0xf0] }
 0x290   : > { %v2559_v47 = vpop.f32.mrf.mxu2  ;;  %v1896_v24 = vpop.f32.mrf.mxu0 }
 0x291   : > { %v1897_v34 = vadd.f32 %v4855_v31, %v1896_v24  ;;  %v2225_v1 = vpop.f32.mrf.mxu1 }
 0x293   : > { %v2226_v33 = vadd.f32 %v2225_v1, %v1897_v34 }
 0x295   : > { %v2555_v55 = vadd.f32 %v2554_v12, %v2226_v33  ;;  %3795 = vmatmul.msk.bf16.gmra.mxu2 %vm1542_vm0, %v3406_v21  ;;  %v3418_v21 = vor.u32 %v3946_v60, %v3417_v7 }
 0x296   : > { %v2385_v61 = vpop.f32.mrf.mxu3 }
 0x297   : > { %2783 = vst [vmem:[%s4265_s9 + $0x1e8] sm:$0xff] %v2555_v55  ;;  %v4868_v63 = vadd.f32 %v2385_v61, %v2057_v13  ;;  %v3941_v13 = vld [vmem:[%s4133_s5 + $0x3c4] sm:$0xf]  ;;  %v3399_v55 = vld [vmem:[%s4133_s5 + $0x3cc] sm:$0xf0]  ;;  %v3398_v61 = vor.u32 %v3942_v23, %v3397_v30 }
 0x298   : > { %v2562_v20 = vpop.f32.mrf.mxu2  ;;  %v1899_v0 = vpop.f32.mrf.mxu0  ;;  %v3633_v30 = vld [vmem:[%s4133_s5 + $0x590] sm:$0xf]  ;;  %v4000_v23 = vld [vmem:[%s4133_s5 + $0x598] sm:$0xf0] }
 0x299   : > { %v1900_v43 = vadd.f32 %v4855_v31, %v1899_v0  ;;  %v2228_v5 = vpop.f32.mrf.mxu1 }
 0x29b   : > { %v2229_v12 = vadd.f32 %v2228_v5, %v1900_v43  ;;  %1938 = vmatmul.bf16.gmra.mxu0 %v3386_v25  ;;  %3812 = vmatmul.msk.bf16.gmra.mxu3 %vm1542_vm0, %v3610_v54 }
 0x29c   : > { %2267 = vmatmul.bf16.gmra.mxu1 %v3390_v45  ;;  %v3402_v45 = vor.u32 %v3941_v13, %v3399_v55  ;;  %v3634_v55 = vor.u32 %v4000_v23, %v3633_v30  ;;  %v3423_v30 = vld [vmem:[%s4133_s5 + $0x3fc] sm:$0xf0] }
 0x29d   : > { %v2558_v41 = vadd.f32 %v2557_v51, %v2229_v12  ;;  %v3997_v51 = vld [vmem:[%s4133_s5 + $0x580] sm:$0xf0] }
 0x29e   : > { %v2388_v38 = vpop.f32.mrf.mxu3  ;;  %v3622_v25 = vor.u32 %v3997_v51, %v3621_v15  ;;  %v3944_v51 = vld [vmem:[%s4133_s5 + $0x3dc] sm:$0xf] }
 0x29f   : > { %2784 = vst [vmem:[%s4265_s9 + $0x1f0] sm:$0xff] %v2558_v41  ;;  %v4877_v40 = vadd.f32 %v2388_v38, %v2060_v19  ;;  %v3429_v19 = vld [vmem:[%s4133_s5 + $0x3f8] sm:$0xf]  ;;  %v3949_v41 = vld [vmem:[%s4133_s5 + $0x400] sm:$0xf0] }
 0x2a0   : > { %v2564_v22 = vpop.f32.mrf.mxu2  ;;  %v1901_v24 = vpop.f32.mrf.mxu0 }
 0x2a1   : > { %v1902_v34 = vadd.f32 %v4855_v31, %v1901_v24  ;;  %v2230_v1 = vpop.f32.mrf.mxu1 }
 0x2a3   : > { %v2231_v33 = vadd.f32 %v2230_v1, %v1902_v34  ;;  %v3430_v1 = vor.u32 %v3949_v41, %v3429_v19 }
 0x2a5   : > { %v2560_v57 = vadd.f32 %v2559_v47, %v2231_v33  ;;  %3796 = vmatmul.msk.bf16.gmra.mxu2 %vm1542_vm0, %v3418_v21  ;;  %v3409_v33 = vld [vmem:[%s4133_s5 + $0x3d8] sm:$0xf] }
 0x2a6   : > { %v2390_v35 = vpop.f32.mrf.mxu3 }
 0x2a7   : > { %2785 = vst [vmem:[%s4265_s9 + $0x1f8] sm:$0xff] %v2560_v57  ;;  %v4890_v27 = vadd.f32 %v2390_v35, %v2062_v28  ;;  %v3411_v28 = vld [vmem:[%s4133_s5 + $0x3e4] sm:$0xf0] }
 0x2a8   : > { %v2567_v54 = vpop.f32.mrf.mxu2  ;;  %v1904_v0 = vpop.f32.mrf.mxu0 }
 0x2a9   : > { %v1905_v56 = vadd.f32 %v4855_v31, %v1904_v0  ;;  %v2233_v47 = vpop.f32.mrf.mxu1 }
 0x2ab   : > { %v2234_v43 = vadd.f32 %v2233_v47, %v1905_v56  ;;  %1943 = vmatmul.bf16.gmra.mxu0 %v3398_v61  ;;  %3813 = vmatmul.msk.bf16.gmra.mxu3 %vm1542_vm0, %v3622_v25  ;;  %v3414_v25 = vor.u32 %v3944_v51, %v3411_v28  ;;  %v3441_v47 = vld [vmem:[%s4133_s5 + $0x410] sm:$0xf] }
 0x2ac   : > { %2272 = vmatmul.bf16.gmra.mxu1 %v3402_v45 }
 0x2ad   : > { %v2563_v5 = vadd.f32 %v2562_v20, %v2234_v43  ;;  %v3945_v20 = vld [vmem:[%s4133_s5 + $0x3e0] sm:$0xf0]  ;;  %v3952_v43 = vld [vmem:[%s4133_s5 + $0x418] sm:$0xf0] }
 0x2ae   : > { %v2652_v12 = vpop.f32.mrf.mxu3  ;;  %v3410_v13 = vor.u32 %v3945_v20, %v3409_v33  ;;  %v3947_v20 = vld [vmem:[%s4133_s5 + $0x3f4] sm:$0xf] }
 0x2af   : > { %2786 = vst [vmem:[%s4265_s9 + $0x200] sm:$0xff] %v2563_v5  ;;  %v2653_v38 = vadd.f32 %v2652_v12, %v4591_v11 }
 0x2b0   : > { %v2569_v7 = vpop.f32.mrf.mxu2  ;;  %v1906_v60 = vpop.f32.mrf.mxu0 }
 0x2b1   : > { %2822 = vst [vmem:[%s4265_s9 + $0x320] sm:$0xff] %v2653_v38  ;;  %v1907_v24 = vadd.f32 %v4855_v31, %v1906_v60  ;;  %v2235_v34 = vpop.f32.mrf.mxu1  ;;  %v3442_v60 = vor.u32 %v3952_v43, %v3441_v47 }
 0x2b3   : > { %v2236_v21 = vadd.f32 %v2235_v34, %v1907_v24  ;;  %v3421_v34 = vld [vmem:[%s4133_s5 + $0x3f0] sm:$0xf] }
 0x2b5   : > { %v2565_v15 = vadd.f32 %v2564_v22, %v2236_v21  ;;  %3797 = vmatmul.msk.bf16.gmra.mxu2 %vm1542_vm0, %v3430_v1  ;;  %v3645_v1 = vld [vmem:[%s4133_s5 + $0x5a8] sm:$0xf]  ;;  %v4003_v21 = vld [vmem:[%s4133_s5 + $0x5b0] sm:$0xf0] }
 0x2b6   : > { %v2654_v11 = vpop.f32.mrf.mxu3  ;;  %v3646_v51 = vor.u32 %v4003_v21, %v3645_v1 }
 0x2b7   : > { %2787 = vst [vmem:[%s4265_s9 + $0x208] sm:$0xff] %v2565_v15  ;;  %v2655_v57 = vadd.f32 %v2654_v11, %v4604_v46 }
 0x2b8   : > { %v2572_v35 = vpop.f32.mrf.mxu2  ;;  %v1909_v61 = vpop.f32.mrf.mxu0 }
 0x2b9   : > { %2823 = vst [vmem:[%s4265_s9 + $0x328] sm:$0xff] %v2655_v57  ;;  %v1910_v22 = vadd.f32 %v4855_v31, %v1909_v61  ;;  %v2238_v0 = vpop.f32.mrf.mxu1  ;;  %v3426_v57 = vor.u32 %v3947_v20, %v3423_v30 }
 0x2bb   : > { %v2239_v45 = vadd.f32 %v2238_v0, %v1910_v22  ;;  %1948 = vmatmul.bf16.gmra.mxu0 %v3410_v13  ;;  %3814 = vmatmul.msk.bf16.gmra.mxu3 %vm1542_vm0, %v3634_v55  ;;  %v3955_v22 = vld [vmem:[%s4133_s5 + $0x430] sm:$0xf0] }
 0x2bc   : > { %2277 = vmatmul.bf16.gmra.mxu1 %v3414_v25  ;;  %v3453_v25 = vld [vmem:[%s4133_s5 + $0x428] sm:$0xf] }
 0x2bd   : > { %v2568_v46 = vadd.f32 %v2567_v54, %v2239_v45  ;;  %v3948_v54 = vld [vmem:[%s4133_s5 + $0x3f8] sm:$0xf0]  ;;  %v3454_v43 = vor.u32 %v3955_v22, %v3453_v25  ;;  %v3445_v22 = vld [vmem:[%s4133_s5 + $0x420] sm:$0xf] }
 0x2be   : > { %v2657_v56 = vpop.f32.mrf.mxu3  ;;  %v3422_v15 = vor.u32 %v3948_v54, %v3421_v34  ;;  %v3435_v34 = vld [vmem:[%s4133_s5 + $0x414] sm:$0xf0] }
 0x2bf   : > { %2788 = vst [vmem:[%s4265_s9 + $0x210] sm:$0xff] %v2568_v46  ;;  %v2658_v5 = vadd.f32 %v2657_v56, %v4612_v6 }
 0x2c0   : > { %v2574_v12 = vpop.f32.mrf.mxu2  ;;  %v1911_v19 = vpop.f32.mrf.mxu0 }
 0x2c1   : > { %2824 = vst [vmem:[%s4265_s9 + $0x330] sm:$0xff] %v2658_v5  ;;  %v1912_v41 = vadd.f32 %v4855_v31, %v1911_v19  ;;  %v2240_v38 = vpop.f32.mrf.mxu1  ;;  %v3433_v19 = vld [vmem:[%s4133_s5 + $0x408] sm:$0xf] }
 0x2c3   : > { %v2241_v24 = vadd.f32 %v2240_v38, %v1912_v41  ;;  %v3657_v41 = vld [vmem:[%s4133_s5 + $0x5c0] sm:$0xf]  ;;  %v4006_v38 = vld [vmem:[%s4133_s5 + $0x5c8] sm:$0xf0] }
 0x2c4   : > { %v3658_v21 = vor.u32 %v4006_v38, %v3657_v41 }
 0x2c5   : > { %v2570_v33 = vadd.f32 %v2569_v7, %v2241_v24  ;;  %3798 = vmatmul.msk.bf16.gmra.mxu2 %vm1542_vm0, %v3442_v60  ;;  %v3950_v24 = vld [vmem:[%s4133_s5 + $0x40c] sm:$0xf] }
 0x2c6   : > { %v2659_v6 = vpop.f32.mrf.mxu3  ;;  %v3438_v30 = vor.u32 %v3950_v24, %v3435_v34 }
 0x2c7   : > { %2789 = vst [vmem:[%s4265_s9 + $0x218] sm:$0xff] %v2570_v33  ;;  %v2660_v23 = vadd.f32 %v2659_v6, %v4625_v2 }
 0x2c8   : > { %v2577_v28 = vpop.f32.mrf.mxu2  ;;  %v1914_v11 = vpop.f32.mrf.mxu0 }
 0x2c9   : > { %2825 = vst [vmem:[%s4265_s9 + $0x338] sm:$0xff] %v2660_v23  ;;  %v1915_v7 = vadd.f32 %v4855_v31, %v1914_v11  ;;  %v2243_v13 = vpop.f32.mrf.mxu1  ;;  %v3958_v11 = vld [vmem:[%s4133_s5 + $0x448] sm:$0xf0] }
 0x2cb   : > { %v2244_v55 = vadd.f32 %v2243_v13, %v1915_v7  ;;  %1953 = vmatmul.bf16.gmra.mxu0 %v3422_v15  ;;  %3815 = vmatmul.msk.bf16.gmra.mxu3 %vm1542_vm0, %v3646_v51  ;;  %v3465_v51 = vld [vmem:[%s4133_s5 + $0x440] sm:$0xf] }
 0x2cc   : > { %2282 = vmatmul.bf16.gmra.mxu1 %v3426_v57 }
 0x2cd   : > { %v2573_v2 = vadd.f32 %v2572_v35, %v2244_v55  ;;  %v3951_v35 = vld [vmem:[%s4133_s5 + $0x410] sm:$0xf0] }
 0x2ce   : > { %v2662_v61 = vpop.f32.mrf.mxu3  ;;  %v3434_v1 = vor.u32 %v3951_v35, %v3433_v19 }
 0x2cf   : > { %2790 = vst [vmem:[%s4265_s9 + $0x220] sm:$0xff] %v2573_v2  ;;  %v2663_v0 = vadd.f32 %v2662_v61, %v4633_v32  ;;  %v3466_v61 = vor.u32 %v3958_v11, %v3465_v51  ;;  %v3681_v51 = vld [vmem:[%s4133_s5 + $0x5f0] sm:$0xf]  ;;  %v4012_v11 = vld [vmem:[%s4133_s5 + $0x5f8] sm:$0xf0] }
 0x2d0   : > { %v2579_v45 = vpop.f32.mrf.mxu2  ;;  %v1916_v46 = vpop.f32.mrf.mxu0 }
 0x2d1   : > { %2826 = vst [vmem:[%s4265_s9 + $0x340] sm:$0xff] %v2663_v0  ;;  %v1917_v56 = vadd.f32 %v4855_v31, %v1916_v46  ;;  %v2245_v47 = vpop.f32.mrf.mxu1  ;;  %v3669_v0 = vld [vmem:[%s4133_s5 + $0x5d8] sm:$0xf]  ;;  %v4009_v46 = vld [vmem:[%s4133_s5 + $0x5e0] sm:$0xf0] }
 0x2d2   : > { %v3670_v35 = vor.u32 %v4009_v46, %v3669_v0 }
 0x2d3   : > { %v2246_v5 = vadd.f32 %v2245_v47, %v1917_v56  ;;  %v3953_v47 = vld [vmem:[%s4133_s5 + $0x424] sm:$0xf] }
 0x2d5   : > { %v2575_v60 = vadd.f32 %v2574_v12, %v2246_v5  ;;  %3799 = vmatmul.msk.bf16.gmra.mxu2 %vm1542_vm0, %v3454_v43  ;;  %v3447_v43 = vld [vmem:[%s4133_s5 + $0x42c] sm:$0xf0] }
 0x2d6   : > { %v2664_v32 = vpop.f32.mrf.mxu3 }
 0x2d7   : > { %2791 = vst [vmem:[%s4265_s9 + $0x228] sm:$0xff] %v2575_v60  ;;  %v2665_v54 = vadd.f32 %v2664_v32, %v4646_v62  ;;  %v3450_v60 = vor.u32 %v3953_v47, %v3447_v43  ;;  %v3489_v43 = vld [vmem:[%s4133_s5 + $0x470] sm:$0xf] }
 0x2d8   : > { %v2582_v33 = vpop.f32.mrf.mxu2  ;;  %v1919_v20 = vpop.f32.mrf.mxu0 }
 0x2d9   : > { %2827 = vst [vmem:[%s4265_s9 + $0x348] sm:$0xff] %v2665_v54  ;;  %v1920_v12 = vadd.f32 %v4855_v31, %v1919_v20  ;;  %v2248_v6 = vpop.f32.mrf.mxu1  ;;  %v3477_v54 = vld [vmem:[%s4133_s5 + $0x458] sm:$0xf] }
 0x2db   : > { %v2249_v23 = vadd.f32 %v2248_v6, %v1920_v12  ;;  %1958 = vmatmul.bf16.gmra.mxu0 %v3434_v1  ;;  %3816 = vmatmul.msk.bf16.gmra.mxu3 %vm1542_vm0, %v3658_v21  ;;  %v3961_v1 = vld [vmem:[%s4133_s5 + $0x460] sm:$0xf0] }
 0x2dc   : > { %2287 = vmatmul.bf16.gmra.mxu1 %v3438_v30 }
 0x2dd   : > { %v2578_v62 = vadd.f32 %v2577_v28, %v2249_v23  ;;  %v3954_v28 = vld [vmem:[%s4133_s5 + $0x428] sm:$0xf0]  ;;  %v3478_v23 = vor.u32 %v3961_v1, %v3477_v54  ;;  %v3471_v54 = vld [vmem:[%s4133_s5 + $0x45c] sm:$0xf0] }
 0x2de   : > { %v2667_v15 = vpop.f32.mrf.mxu3  ;;  %v3446_v19 = vor.u32 %v3954_v28, %v3445_v22 }
 0x2df   : > { %2792 = vst [vmem:[%s4265_s9 + $0x230] sm:$0xff] %v2578_v62  ;;  %v2668_v57 = vadd.f32 %v2667_v15, %v4654_v18  ;;  %v3457_v15 = vld [vmem:[%s4133_s5 + $0x438] sm:$0xf] }
 0x2e0   : > { %v2584_v7 = vpop.f32.mrf.mxu2  ;;  %v1921_v13 = vpop.f32.mrf.mxu0 }
 0x2e1   : > { %2828 = vst [vmem:[%s4265_s9 + $0x350] sm:$0xff] %v2668_v57  ;;  %v1922_v55 = vadd.f32 %v4855_v31, %v1921_v13  ;;  %v2250_v2 = vpop.f32.mrf.mxu1  ;;  %v3956_v13 = vld [vmem:[%s4133_s5 + $0x43c] sm:$0xf] }
 0x2e3   : > { %v2251_v25 = vadd.f32 %v2250_v2, %v1922_v55  ;;  %v3459_v55 = vld [vmem:[%s4133_s5 + $0x444] sm:$0xf0] }
 0x2e4   : > { %v3462_v0 = vor.u32 %v3956_v13, %v3459_v55 }
 0x2e5   : > { %v2580_v56 = vadd.f32 %v2579_v45, %v2251_v25  ;;  %3800 = vmatmul.msk.bf16.gmra.mxu2 %vm1542_vm0, %v3466_v61  ;;  %v3682_v25 = vor.u32 %v4012_v11, %v3681_v51  ;;  %v3501_v51 = vld [vmem:[%s4133_s5 + $0x488] sm:$0xf] }
 0x2e6   : > { %v2669_v18 = vpop.f32.mrf.mxu3 }
 0x2e7   : > { %2793 = vst [vmem:[%s4265_s9 + $0x238] sm:$0xff] %v2580_v56  ;;  %v2670_v5 = vadd.f32 %v2669_v18, %v4667_v59  ;;  %v3964_v18 = vld [vmem:[%s4133_s5 + $0x478] sm:$0xf0] }
 0x2e8   : > { %v2587_v41 = vpop.f32.mrf.mxu2  ;;  %v1924_v38 = vpop.f32.mrf.mxu0 }
 0x2e9   : > { %2829 = vst [vmem:[%s4265_s9 + $0x358] sm:$0xff] %v2670_v5  ;;  %v1925_v45 = vadd.f32 %v4855_v31, %v1924_v38  ;;  %v2253_v24 = vpop.f32.mrf.mxu1 }
 0x2eb   : > { %v2254_v34 = vadd.f32 %v2253_v24, %v1925_v45  ;;  %1963 = vmatmul.bf16.gmra.mxu0 %v3446_v19  ;;  %3817 = vmatmul.msk.bf16.gmra.mxu3 %vm1542_vm0, %v3670_v35  ;;  %v3490_v45 = vor.u32 %v3964_v18, %v3489_v43 }
 0x2ec   : > { %2292 = vmatmul.bf16.gmra.mxu1 %v3450_v60 }
 0x2ed   : > { %v2583_v59 = vadd.f32 %v2582_v33, %v2254_v34  ;;  %v3957_v33 = vld [vmem:[%s4133_s5 + $0x440] sm:$0xf0]  ;;  %v3469_v34 = vld [vmem:[%s4133_s5 + $0x450] sm:$0xf] }
 0x2ee   : > { %v2672_v32 = vpop.f32.mrf.mxu3  ;;  %v3458_v61 = vor.u32 %v3957_v33, %v3457_v15 }
 0x2ef   : > { %2794 = vst [vmem:[%s4265_s9 + $0x240] sm:$0xff] %v2583_v59  ;;  %v2673_v21 = vadd.f32 %v2672_v32, %v4675_v17  ;;  %v3959_v32 = vld [vmem:[%s4133_s5 + $0x454] sm:$0xf] }
 0x2f0   : > { %v2589_v20 = vpop.f32.mrf.mxu2  ;;  %v1926_v30 = vpop.f32.mrf.mxu0 }
 0x2f1   : > { %2830 = vst [vmem:[%s4265_s9 + $0x360] sm:$0xff] %v2673_v21  ;;  %v1927_v12 = vadd.f32 %v4855_v31, %v1926_v30  ;;  %v2255_v6 = vpop.f32.mrf.mxu1 }
 0x2f3   : > { %v2256_v62 = vadd.f32 %v2255_v6, %v1927_v12  ;;  %v3474_v6 = vor.u32 %v3959_v32, %v3471_v54 }
 0x2f5   : > { %v2585_v57 = vadd.f32 %v2584_v7, %v2256_v62  ;;  %3801 = vmatmul.msk.bf16.gmra.mxu2 %vm1542_vm0, %v3478_v23 }
 0x2f6   : > { %v2674_v17 = vpop.f32.mrf.mxu3 }
 0x2f7   : > { %2795 = vst [vmem:[%s4265_s9 + $0x248] sm:$0xff] %v2585_v57  ;;  %v2675_v2 = vadd.f32 %v2674_v17, %v4688_v50 }
 0x2f8   : > { %v2592_v22 = vpop.f32.mrf.mxu2  ;;  %v1929_v28 = vpop.f32.mrf.mxu0 }
 0x2f9   : > { %2831 = vst [vmem:[%s4265_s9 + $0x368] sm:$0xff] %v2675_v2  ;;  %v1930_v7 = vadd.f32 %v4855_v31, %v1929_v28  ;;  %v2258_v46 = vpop.f32.mrf.mxu1 }
 0x2fb   : > { %v2259_v56 = vadd.f32 %v2258_v46, %v1930_v7  ;;  %1968 = vmatmul.bf16.gmra.mxu0 %v3458_v61  ;;  %3818 = vmatmul.msk.bf16.gmra.mxu3 %vm1542_vm0, %v3682_v25  ;;  %v3481_v25 = vld [vmem:[%s4133_s5 + $0x468] sm:$0xf]  ;;  %v3483_v7 = vld [vmem:[%s4133_s5 + $0x474] sm:$0xf0] }
 0x2fc   : > { %2297 = vmatmul.bf16.gmra.mxu1 %v3462_v0  ;;  %v3962_v0 = vld [vmem:[%s4133_s5 + $0x46c] sm:$0xf] }
 0x2fd   : > { %v2588_v50 = vadd.f32 %v2587_v41, %v2259_v56  ;;  %v3960_v41 = vld [vmem:[%s4133_s5 + $0x458] sm:$0xf0]  ;;  %v3486_v43 = vor.u32 %v3962_v0, %v3483_v7 }
 0x2fe   : > { %v2677_v47 = vpop.f32.mrf.mxu3  ;;  %v3470_v21 = vor.u32 %v3960_v41, %v3469_v34 }
 0x2ff   : > { %2796 = vst [vmem:[%s4265_s9 + $0x250] sm:$0xff] %v2588_v50  ;;  %v2678_v5 = vadd.f32 %v2677_v47, %v4696_v14 }
 0x300   : > { %v2594_v19 = vpop.f32.mrf.mxu2  ;;  %v1931_v35 = vpop.f32.mrf.mxu0 }
 0x301   : > { %2832 = vst [vmem:[%s4265_s9 + $0x370] sm:$0xff] %v2678_v5  ;;  %v1932_v38 = vadd.f32 %v4855_v31, %v1931_v35  ;;  %v2260_v60 = vpop.f32.mrf.mxu1 }
 0x303   : > { %v2261_v24 = vadd.f32 %v2260_v60, %v1932_v38  ;;  %v3513_v60 = vld [vmem:[%s4133_s5 + $0x4a0] sm:$0xf] }
 0x305   : > { %v2590_v59 = vadd.f32 %v2589_v20, %v2261_v24  ;;  %3802 = vmatmul.msk.bf16.gmra.mxu2 %vm1542_vm0, %v3490_v45  ;;  %v3970_v45 = vld [vmem:[%s4133_s5 + $0x4a8] sm:$0xf0] }
 0x306   : > { %v2679_v1 = vpop.f32.mrf.mxu3  ;;  %v3514_v32 = vor.u32 %v3970_v45, %v3513_v60 }
 0x307   : > { %2797 = vst [vmem:[%s4265_s9 + $0x258] sm:$0xff] %v2590_v59  ;;  %v2680_v14 = vadd.f32 %v2679_v1, %v4709_v39  ;;  %v3967_v39 = vld [vmem:[%s4133_s5 + $0x490] sm:$0xf0] }
 0x308   : > { %v2597_v30 = vpop.f32.mrf.mxu2  ;;  %v1934_v12 = vpop.f32.mrf.mxu0  ;;  %v3502_v2 = vor.u32 %v3967_v39, %v3501_v51 }
 0x309   : > { %2833 = vst [vmem:[%s4265_s9 + $0x378] sm:$0xff] %v2680_v14  ;;  %v1935_v23 = vadd.f32 %v4855_v31, %v1934_v12  ;;  %v2263_v20 = vpop.f32.mrf.mxu1 }
 0x30b   : > { %v2264_v62 = vadd.f32 %v2263_v20, %v1935_v23  ;;  %1973 = vmatmul.bf16.gmra.mxu0 %v3470_v21 }
 0x30c   : > { %2302 = vmatmul.bf16.gmra.mxu1 %v3474_v6 }
 0x30d   : > { %v2593_v15 = vadd.f32 %v2592_v22, %v2264_v62  ;;  %v3963_v22 = vld [vmem:[%s4133_s5 + $0x470] sm:$0xf0] }
 0x30e   : > { %v2682_v33 = vpop.f32.mrf.mxu3  ;;  %v3482_v56 = vor.u32 %v3963_v22, %v3481_v25 }
 0x30f   : > { %2798 = vst [vmem:[%s4265_s9 + $0x260] sm:$0xff] %v2593_v15  ;;  %v2683_v11 = vadd.f32 %v2682_v33, %v4718_v8 }
 0x310   : > { %v2599_v57 = vpop.f32.mrf.mxu2  ;;  %v1936_v13 = vpop.f32.mrf.mxu0 }
 0x311   : > { %2834 = vst [vmem:[%s4265_s9 + $0x380] sm:$0xff] %v2683_v11  ;;  %v1937_v55 = vadd.f32 %v4855_v31, %v1936_v13  ;;  %v2265_v17 = vpop.f32.mrf.mxu1 }
 0x313   : > { %v2266_v61 = vadd.f32 %v2265_v17, %v1937_v55 }
 0x315   : > { %v2595_v28 = vadd.f32 %v2594_v19, %v2266_v61  ;;  %3803 = vmatmul.msk.bf16.gmra.mxu2 %vm1542_vm0, %v3502_v2 }
 0x316   : > { %v2684_v46 = vpop.f32.mrf.mxu3 }
 0x317   : > { %2799 = vst [vmem:[%s4265_s9 + $0x268] sm:$0xff] %v2595_v28  ;;  %v2685_v8 = vadd.f32 %v2684_v46, %v4731_v29 }
 0x318   : > { %v2602_v50 = vpop.f32.mrf.mxu2  ;;  %v1939_v47 = vpop.f32.mrf.mxu0 }
 0x319   : > { %2835 = vst [vmem:[%s4265_s9 + $0x388] sm:$0xff] %v2685_v8  ;;  %v1940_v18 = vadd.f32 %v4855_v31, %v1939_v47  ;;  %v2268_v5 = vpop.f32.mrf.mxu1 }
 0x31b   : > { %v2269_v19 = vadd.f32 %v2268_v5, %v1940_v18  ;;  %1978 = vmatmul.bf16.gmra.mxu0 %v3482_v56 }
 0x31c   : > { %2307 = vmatmul.bf16.gmra.mxu1 %v3486_v43 }
 0x31d   : > { %v2598_v35 = vadd.f32 %v2597_v30, %v2269_v19 }
 0x31e   : > { %v2687_v38 = vpop.f32.mrf.mxu3 }
 0x31f   : > { %2800 = vst [vmem:[%s4265_s9 + $0x270] sm:$0xff] %v2598_v35  ;;  %v2688_v29 = vadd.f32 %v2687_v38, %v4740_v4 }
 0x320   : > { %v2604_v24 = vpop.f32.mrf.mxu2  ;;  %v1941_v34 = vpop.f32.mrf.mxu0 }
 0x321   : > { %2836 = vst [vmem:[%s4265_s9 + $0x390] sm:$0xff] %v2688_v29  ;;  %v1942_v41 = vadd.f32 %v4855_v31, %v1941_v34  ;;  %v2270_v59 = vpop.f32.mrf.mxu1 }
 0x323   : > { %v2271_v54 = vadd.f32 %v2270_v59, %v1942_v41 }
 0x325   : > { %v2600_v1 = vadd.f32 %v2599_v57, %v2271_v54  ;;  %3804 = vmatmul.msk.bf16.gmra.mxu2 %vm1542_vm0, %v3514_v32 }
 0x326   : > { %v2689_v14 = vpop.f32.mrf.mxu3 }
 0x327   : > { %2801 = vst [vmem:[%s4265_s9 + $0x278] sm:$0xff] %v2600_v1  ;;  %v2690_v21 = vadd.f32 %v2689_v14, %v4753_v48 }
 0x328   : > { %v2607_v30 = vpop.f32.mrf.mxu2  ;;  %v1944_v12 = vpop.f32.mrf.mxu0 }
 0x329   : > { %2837 = vst [vmem:[%s4265_s9 + $0x398] sm:$0xff] %v2690_v21  ;;  %v1945_v4 = vadd.f32 %v4855_v31, %v1944_v12  ;;  %v2273_v6 = vpop.f32.mrf.mxu1 }
 0x32b   : > { %v2274_v23 = vadd.f32 %v2273_v6, %v1945_v4 }
 0x32d   : > { %v2603_v20 = vadd.f32 %v2602_v50, %v2274_v23 }
 0x32e   : > { %v2692_v62 = vpop.f32.mrf.mxu3 }
 0x32f   : > { %2802 = vst [vmem:[%s4265_s9 + $0x280] sm:$0xff] %v2603_v20  ;;  %v2693_v15 = vadd.f32 %v2692_v62, %v4762_v26 }
 0x330   : > { %v2609_v33 = vpop.f32.mrf.mxu2  ;;  %v1946_v51 = vpop.f32.mrf.mxu0 }
 0x331   : > { %2838 = vst [vmem:[%s4265_s9 + $0x3a0] sm:$0xff] %v2693_v15  ;;  %v1947_v48 = vadd.f32 %v4855_v31, %v1946_v51  ;;  %v2275_v39 = vpop.f32.mrf.mxu1 }
 0x333   : > { %v2276_v11 = vadd.f32 %v2275_v39, %v1947_v48 }
 0x335   : > { %v2605_v57 = vadd.f32 %v2604_v24, %v2276_v11 }
 0x336   : > { %v2694_v13 = vpop.f32.mrf.mxu3 }
 0x337   : > { %2803 = vst [vmem:[%s4265_s9 + $0x288] sm:$0xff] %v2605_v57  ;;  %v2695_v55 = vadd.f32 %v2694_v13, %v4775_v42 }
 0x338   : > { %v2612_v17 = vpop.f32.mrf.mxu2  ;;  %v1949_v2 = vpop.f32.mrf.mxu0 }
 0x339   : > { %2839 = vst [vmem:[%s4265_s9 + $0x3a8] sm:$0xff] %v2695_v55  ;;  %v1950_v26 = vadd.f32 %v4855_v31, %v1949_v2  ;;  %v2278_v61 = vpop.f32.mrf.mxu1 }
 0x33b   : > { %v2279_v25 = vadd.f32 %v2278_v61, %v1950_v26 }
 0x33d   : > { %v2608_v22 = vadd.f32 %v2607_v30, %v2279_v25 }
 0x33e   : > { %v2697_v28 = vpop.f32.mrf.mxu3 }
 0x33f   : > { %2804 = vst [vmem:[%s4265_s9 + $0x290] sm:$0xff] %v2608_v22  ;;  %v2698_v0 = vadd.f32 %v2697_v28, %v4784_v52 }
 0x340   : > { %v2614_v7 = vpop.f32.mrf.mxu2  ;;  %v1951_v46 = vpop.f32.mrf.mxu0 }
 0x341   : > { %2840 = vst [vmem:[%s4265_s9 + $0x3b0] sm:$0xff] %v2698_v0  ;;  %v1952_v42 = vadd.f32 %v4855_v31, %v1951_v46  ;;  %v2280_v8 = vpop.f32.mrf.mxu1 }
 0x343   : > { %v2281_v56 = vadd.f32 %v2280_v8, %v1952_v42 }
 0x345   : > { %v2610_v50 = vadd.f32 %v2609_v33, %v2281_v56 }
 0x346   : > { %v2699_v47 = vpop.f32.mrf.mxu3 }
 0x347   : > { %2805 = vst [vmem:[%s4265_s9 + $0x298] sm:$0xff] %v2610_v50  ;;  %v2700_v43 = vadd.f32 %v2699_v47, %v4797_v37 }
 0x348   : > { %v2617_v18 = vpop.f32.mrf.mxu2  ;;  %v1954_v5 = vpop.f32.mrf.mxu0 }
 0x349   : > { %2841 = vst [vmem:[%s4265_s9 + $0x3b8] sm:$0xff] %v2700_v43  ;;  %v1955_v52 = vadd.f32 %v4855_v31, %v1954_v5  ;;  %v2283_v19 = vpop.f32.mrf.mxu1 }
 0x34b   : > { %v2284_v35 = vadd.f32 %v2283_v19, %v1955_v52 }
 0x34d   : > { %v2613_v38 = vadd.f32 %v2612_v17, %v2284_v35 }
 0x34e   : > { %v2702_v60 = vpop.f32.mrf.mxu3 }
 0x34f   : > { %2806 = vst [vmem:[%s4265_s9 + $0x2a0] sm:$0xff] %v2613_v38  ;;  %v2703_v45 = vadd.f32 %v2702_v60, %v4806_v16 }
 0x350   : > { %v2619_v29 = vpop.f32.mrf.mxu2  ;;  %v1956_v24 = vpop.f32.mrf.mxu0 }
 0x351   : > { %2842 = vst [vmem:[%s4265_s9 + $0x3c0] sm:$0xff] %v2703_v45  ;;  %v1957_v37 = vadd.f32 %v4855_v31, %v1956_v24  ;;  %v2285_v34 = vpop.f32.mrf.mxu1 }
 0x353   : > { %v2286_v41 = vadd.f32 %v2285_v34, %v1957_v37 }
 0x355   : > { %v2615_v59 = vadd.f32 %v2614_v7, %v2286_v41 }
 0x356   : > { %v2704_v32 = vpop.f32.mrf.mxu3 }
 0x357   : > { %2807 = vst [vmem:[%s4265_s9 + $0x2a8] sm:$0xff] %v2615_v59  ;;  %v2705_v54 = vadd.f32 %v2704_v32, %v4819_v10 }
 0x358   : > { %v2622_v1 = vpop.f32.mrf.mxu2  ;;  %v1959_v14 = vpop.f32.mrf.mxu0 }
 0x359   : > { %2843 = vst [vmem:[%s4265_s9 + $0x3c8] sm:$0xff] %v2705_v54  ;;  %v1960_v16 = vadd.f32 %v4855_v31, %v1959_v14  ;;  %v2288_v21 = vpop.f32.mrf.mxu1 }
 0x35b   : > { %v2289_v30 = vadd.f32 %v2288_v21, %v1960_v16 }
 0x35d   : > { %v2618_v12 = vadd.f32 %v2617_v18, %v2289_v30 }
 0x35e   : > { %v2707_v4 = vpop.f32.mrf.mxu3 }
 0x35f   : > { %2808 = vst [vmem:[%s4265_s9 + $0x2b0] sm:$0xff] %v2618_v12  ;;  %v2708_v6 = vadd.f32 %v2707_v4, %v4828_v44 }
 0x360   : > { %v2624_v23 = vpop.f32.mrf.mxu2  ;;  %v1961_v20 = vpop.f32.mrf.mxu0 }
 0x361   : > { %2844 = vst [vmem:[%s4265_s9 + $0x3d0] sm:$0xff] %v2708_v6  ;;  %v1962_v10 = vadd.f32 %v4855_v31, %v1961_v20  ;;  %v2290_v62 = vpop.f32.mrf.mxu1 }
 0x363   : > { %v2291_v15 = vadd.f32 %v2290_v62, %v1962_v10 }
 0x365   : > { %v2620_v33 = vadd.f32 %v2619_v29, %v2291_v15 }
 0x366   : > { %v2709_v51 = vpop.f32.mrf.mxu3 }
 0x367   : > { %2809 = vst [vmem:[%s4265_s9 + $0x2b8] sm:$0xff] %v2620_v33  ;;  %v2710_v48 = vadd.f32 %v2709_v51, %v4841_v36 }
 0x368   : > { %v2627_v39 = vpop.f32.mrf.mxu2  ;;  %v1964_v11 = vpop.f32.mrf.mxu0 }
 0x369   : > { %2845 = vst [vmem:[%s4265_s9 + $0x3d8] sm:$0xff] %v2710_v48  ;;  %v1965_v44 = vadd.f32 %v4855_v31, %v1964_v11  ;;  %v2293_v57 = vpop.f32.mrf.mxu1 }
 0x36b   : > { %v2294_v13 = vadd.f32 %v2293_v57, %v1965_v44 }
 0x36d   : > { %v2623_v55 = vadd.f32 %v2622_v1, %v2294_v13 }
 0x36e   : > { %v2712_v17 = vpop.f32.mrf.mxu3 }
 0x36f   : > { %2810 = vst [vmem:[%s4265_s9 + $0x2c0] sm:$0xff] %v2623_v55  ;;  %v2713_v2 = vadd.f32 %v2712_v17, %v4850_v9 }
 0x370   : > { %v2629_v26 = vpop.f32.mrf.mxu2  ;;  %v1966_v61 = vpop.f32.mrf.mxu0 }
 0x371   : > { %2846 = vst [vmem:[%s4265_s9 + $0x3e0] sm:$0xff] %v2713_v2  ;;  %v1967_v36 = vadd.f32 %v4855_v31, %v1966_v61  ;;  %v2295_v25 = vpop.f32.mrf.mxu1 }
 0x373   : > { %v2296_v22 = vadd.f32 %v2295_v25, %v1967_v36 }
 0x375   : > { %v2625_v28 = vadd.f32 %v2624_v23, %v2296_v22 }
 0x376   : > { %v2714_v0 = vpop.f32.mrf.mxu3 }
 0x377   : > { %2811 = vst [vmem:[%s4265_s9 + $0x2c8] sm:$0xff] %v2625_v28  ;;  %v2715_v7 = vadd.f32 %v2714_v0, %v4868_v63 }
 0x378   : > { %v2632_v46 = vpop.f32.mrf.mxu2  ;;  %v1969_v42 = vpop.f32.mrf.mxu0 }
 0x379   : > { %2847 = vst [vmem:[%s4265_s9 + $0x3e8] sm:$0xff] %v2715_v7  ;;  %v1970_v9 = vadd.f32 %v4855_v31, %v1969_v42  ;;  %v2298_v8 = vpop.f32.mrf.mxu1 }
 0x37b   : > { %v2299_v56 = vadd.f32 %v2298_v8, %v1970_v9 }
 0x37d   : > { %v2628_v50 = vadd.f32 %v2627_v39, %v2299_v56 }
 0x37e   : > { %v2717_v47 = vpop.f32.mrf.mxu3 }
 0x37f   : > { %2812 = vst [vmem:[%s4265_s9 + $0x2d0] sm:$0xff] %v2628_v50  ;;  %v2718_v43 = vadd.f32 %v2717_v47, %v4877_v40 }
 0x380   : > { %v2634_v18 = vpop.f32.mrf.mxu2  ;;  %v1971_v5 = vpop.f32.mrf.mxu0 }
 0x381   : > { %2848 = vst [vmem:[%s4265_s9 + $0x3f0] sm:$0xff] %v2718_v43  ;;  %v1972_v63 = vadd.f32 %v4855_v31, %v1971_v5  ;;  %v2300_v52 = vpop.f32.mrf.mxu1 }
 0x383   : > { %v2301_v19 = vadd.f32 %v2300_v52, %v1972_v63 }
 0x385   : > { %v2630_v35 = vadd.f32 %v2629_v26, %v2301_v19 }
 0x386   : > { %v2719_v38 = vpop.f32.mrf.mxu3 }
 0x387   : > { %2813 = vst [vmem:[%s4265_s9 + $0x2d8] sm:$0xff] %v2630_v35  ;;  %v2720_v60 = vadd.f32 %v2719_v38, %v4890_v27 }
 0x388   : > { %v2637_v45 = vpop.f32.mrf.mxu2  ;;  %v1974_v29 = vpop.f32.mrf.mxu0 }
 0x389   : > { %2849 = vst [vmem:[%s4265_s9 + $0x3f8] sm:$0xff] %v2720_v60  ;;  %v1975_v24 = vadd.f32 %v4855_v31, %v1974_v29  ;;  %v2303_v40 = vpop.f32.mrf.mxu1 }
 0x38b   : > { %v2304_v37 = vadd.f32 %v2303_v40, %v1975_v24 }
 0x38d   : > { %v2633_v34 = vadd.f32 %v2632_v46, %v2304_v37 }
 0x38f   : > { %2814 = vst [vmem:[%s4265_s9 + $0x2e0] sm:$0xff] %v2633_v34 }
 0x390   : > { %v2639_v41 = vpop.f32.mrf.mxu2  ;;  %v1976_v59 = vpop.f32.mrf.mxu0 }
 0x391   : > { %v1977_v32 = vadd.f32 %v4855_v31, %v1976_v59  ;;  %v2305_v54 = vpop.f32.mrf.mxu1 }
 0x393   : > { %v2306_v1 = vadd.f32 %v2305_v54, %v1977_v32 }
 0x395   : > { %v2635_v14 = vadd.f32 %v2634_v18, %v2306_v1 }
 0x397   : > { %2815 = vst [vmem:[%s4265_s9 + $0x2e8] sm:$0xff] %v2635_v14 }
 0x398   : > { %v2642_v27 = vpop.f32.mrf.mxu2  ;;  %v1979_v16 = vpop.f32.mrf.mxu0 }
 0x399   : > { %v2643_v21 = vadd.f32 %v2642_v27, %v4549_v58  ;;  %v1980_v30 = vadd.f32 %v4855_v31, %v1979_v16  ;;  %v2308_v12 = vpop.f32.mrf.mxu1 }
 0x39b   : > { %2818 = vst [vmem:[%s4265_s9 + $0x300] sm:$0xff] %v2643_v21  ;;  %v2309_v4 = vadd.f32 %v2308_v12, %v1980_v30 }
 0x39d   : > { %v2638_v6 = vadd.f32 %v2637_v45, %v2309_v4 }
 0x39f   : > { %2816 = vst [vmem:[%s4265_s9 + $0x2f0] sm:$0xff] %v2638_v6 }
 0x3a0   : > { %v2644_v23 = vpop.f32.mrf.mxu2  ;;  %v1981_v20 = vpop.f32.mrf.mxu0 }
 0x3a1   : > { %v2645_v10 = vadd.f32 %v2644_v23, %v4562_v53  ;;  %v1982_v62 = vadd.f32 %v4855_v31, %v1981_v20  ;;  %v2310_v15 = vpop.f32.mrf.mxu1 }
 0x3a3   : > { %2819 = vst [vmem:[%s4265_s9 + $0x308] sm:$0xff] %v2645_v10  ;;  %v2311_v33 = vadd.f32 %v2310_v15, %v1982_v62 }
 0x3a5   : > { %v2640_v51 = vadd.f32 %v2639_v41, %v2311_v33 }
 0x3a7   : > { %2817 = vst [vmem:[%s4265_s9 + $0x2f8] sm:$0xff] %v2640_v51 }
 0x3a8   : > { %v2647_v58 = vpop.f32.mrf.mxu2 }
 0x3a9   : > { %v2648_v48 = vadd.f32 %v2647_v58, %v4570_v3 }
 0x3ab   : > { %2820 = vst [vmem:[%s4265_s9 + $0x310] sm:$0xff] %v2648_v48 }
 0x3b0   : > { %v2649_v39 = vpop.f32.mrf.mxu2 }
 0x3b1   : > { %v2650_v11 = vadd.f32 %v2649_v39, %v4583_v49 }
 0x3b3   : > { %2821 = vst [vmem:[%s4265_s9 + $0x318] sm:$0xff] %v2650_v11 }
 0x3b4 PF: > { %s13_s12 = sadd.s32 1, %s4067_s12  }
 0x3b5   : > { %p10_p4 = scmp.ge.s32.totalorder %s13_s12, 4  }
 0x3b7   :  { %12 = sbr.rel (!%p10_p4) target bundleno = 1 (0x1), region = 62 }

</bundles_post_ra>
